<compile_context>
chip_gen: v7x
topology: tpu7x:2x2x1
jax: 0.10.0
libtpu: 0.0.40
codegen_flags: <defaults>
</compile_context>

<pallas_src>
import functools

import jax
import jax.numpy as jnp
from jax.experimental import pallas as pl
from jax.experimental.pallas import tpu as pltpu

C2P = 64    # conv2 output-channel padding -> fc1 K = 12*12*64 = 9216 = 72*128
N1P = 512   # fc1 output padding
N2P = 128   # fc2 output padding


# ---------------------------------------------------------------------------
# XLA-side patch extraction (tap-major, then channel) - tiny at these shapes.
# ---------------------------------------------------------------------------
def _im2col(x_nhwc, kh, kw):
    n, h, w, c = x_nhwc.shape
    oh, ow = h - kh + 1, w - kw + 1
    cols = [x_nhwc[:, i:i + oh, j:j + ow, :]
            for i in range(kh) for j in range(kw)]
    return jnp.concatenate(cols, axis=-1).reshape(n, oh * ow, kh * kw * c)


# ---------------------------------------------------------------------------
# Fused (patches @ W) + bias + ReLU + 2x2 maxpool kernel (one image per step)
# ---------------------------------------------------------------------------
def _conv_kernel(p_ref, w_ref, b_ref, o_ref, hbuf_ref, *, OH, OW):
    oc = w_ref.shape[-1]
    ph, pw = OH // 2, OW // 2

    # ONE MXU matmul per image (bf16 operands, f32 accumulation).
    acc = jnp.dot(p_ref[0], w_ref[...], preferred_element_type=jnp.float32)
    act = jnp.maximum(acc + b_ref[...], 0.0)                # (OH*OW, oc)

    # 2x2/2 max-pool, fused:
    #  - H direction: split rows into (ph, 2) leading dims (free relayout).
    act = act.reshape(ph, 2, OW, oc)
    hbuf_ref[...] = jnp.maximum(act[:, 0], act[:, 1])       # (ph, OW, oc)
    #  - W direction: stride-2 sublane reads from the small VMEM scratch.
    w_even = hbuf_ref[:, pl.ds(0, pw, stride=2), :]
    w_odd = hbuf_ref[:, pl.ds(1, pw, stride=2), :]
    o_ref[0] = jnp.maximum(w_even, w_odd).astype(o_ref.dtype)   # (ph, pw, oc)


def conv_matmul_relu_pool(patches, w, b, *, oh, ow):
    n, m, k = patches.shape
    assert m == oh * ow and w.shape[0] == k
    oc = w.shape[1]
    ph, pw = oh // 2, ow // 2
    kernel = functools.partial(_conv_kernel, OH=oh, OW=ow)
    return pl.pallas_call(
        kernel,
        out_shape=jax.ShapeDtypeStruct((n, ph, pw, oc), jnp.bfloat16),
        grid=(n,),
        in_specs=[
            pl.BlockSpec((1, m, k), lambda i: (i, 0, 0)),
            pl.BlockSpec((k, oc), lambda i: (0, 0)),
            pl.BlockSpec((1, oc), lambda i: (0, 0)),
        ],
        out_specs=pl.BlockSpec((1, ph, pw, oc), lambda i: (i, 0, 0, 0)),
        scratch_shapes=[pltpu.VMEM((ph, ow, oc), jnp.float32)],
        compiler_params=pltpu.CompilerParams(
            dimension_semantics=("parallel",),
            vmem_limit_bytes=32 << 20,
        ),
    )(patches, w, b)


# ---------------------------------------------------------------------------
# Fused fc1 (K-streamed) + ReLU + fc2 kernel
# ---------------------------------------------------------------------------
def _mlp_head_kernel(x_ref, w1_ref, b1_ref, w2_ref, b2_ref, o_ref, acc_ref):
    k = pl.program_id(0)

    @pl.when(k == 0)
    def _():
        acc_ref[...] = jnp.zeros_like(acc_ref)

    acc_ref[...] += jnp.dot(x_ref[...].astype(jnp.bfloat16), w1_ref[...],
                            preferred_element_type=jnp.float32)

    @pl.when(k == pl.num_programs(0) - 1)
    def _():
        h = jnp.maximum(acc_ref[...] + b1_ref[...], 0.0).astype(jnp.bfloat16)
        out = jnp.dot(h, w2_ref[...], preferred_element_type=jnp.float32)
        o_ref[...] = out + b2_ref[...]


def mlp_head(x_flat, w1p, b1p, w2p, b2p, *, block_k=2304):
    m, k_dim = x_flat.shape
    assert k_dim % block_k == 0
    n1 = w1p.shape[1]
    n2 = w2p.shape[1]
    steps = k_dim // block_k
    return pl.pallas_call(
        _mlp_head_kernel,
        out_shape=jax.ShapeDtypeStruct((m, n2), jnp.float32),
        grid=(steps,),
        in_specs=[
            pl.BlockSpec((m, block_k), lambda k: (0, k)),
            pl.BlockSpec((block_k, n1), lambda k: (k, 0)),
            pl.BlockSpec((1, n1), lambda k: (0, 0)),
            pl.BlockSpec((n1, n2), lambda k: (0, 0)),
            pl.BlockSpec((1, n2), lambda k: (0, 0)),
        ],
        out_specs=pl.BlockSpec((m, n2), lambda k: (0, 0)),
        scratch_shapes=[pltpu.VMEM((m, n1), jnp.float32)],
        compiler_params=pltpu.CompilerParams(
            dimension_semantics=("arbitrary",),
            vmem_limit_bytes=32 << 20,
        ),
    )(x_flat, w1p, b1p, w2p, b2p)


# ---------------------------------------------------------------------------
# One-time parameter re-packing (PyTorch layouts -> kernel layouts, zero-padded)
# ---------------------------------------------------------------------------
def _pack_conv_w(w_oihw, cout_pad=None):
    oc, ic, kh, kw = w_oihw.shape
    # Row index = (i*KW + j)*Cin + c  -> matches _im2col tap/channel ordering.
    w = jnp.transpose(w_oihw, (2, 3, 1, 0)).reshape(kh * kw * ic, oc)
    if cout_pad is not None and cout_pad > oc:
        w = jnp.pad(w, ((0, 0), (0, cout_pad - oc)))
    return w.astype(jnp.bfloat16)


def _pack_bias(b, n_pad):
    return jnp.pad(b, (0, n_pad - b.shape[0])).reshape(1, n_pad).astype(jnp.float32)


def pack_params(params):
    w1, b1, w2, b2, fw1, fb1, fw2, fb2 = params
    w1p = _pack_conv_w(w1)                    # (75, 20)   no channel padding
    b1p = _pack_bias(b1, b1.shape[0])         # (1, 20)
    w2p = _pack_conv_w(w2, cout_pad=C2P)      # (500, 64)
    b2p = _pack_bias(b2, C2P)                 # (1, 64)

    # fc1: PyTorch columns ordered (c, h, w); kernel flatten is (h, w, c_pad).
    o, kk = fw1.shape
    c, hh, ww = 50, 12, 12
    assert kk == c * hh * ww
    f1 = jnp.transpose(fw1.reshape(o, c, hh, ww), (2, 3, 1, 0))     # (H, W, C, O)
    f1 = jnp.pad(f1, ((0, 0), (0, 0), (0, C2P - c), (0, N1P - o)))
    fw1p = f1.reshape(hh * ww * C2P, N1P).astype(jnp.bfloat16)      # (9216, 512)
    fb1p = _pack_bias(fb1, N1P)

    o2, k2 = fw2.shape
    fw2p = jnp.pad(fw2.T, ((0, N1P - k2), (0, N2P - o2))).astype(jnp.bfloat16)
    fb2p = _pack_bias(fb2, N2P)
    return (w1p, b1p, w2p, b2p, fw1p, fb1p, fw2p, fb2p)


# ---------------------------------------------------------------------------
# Forward pass (3 pallas_calls total)
# ---------------------------------------------------------------------------
def net_forward(x_nchw, packed):
    w1p, b1p, w2p, b2p, fw1p, fb1p, fw2p, fb2p = packed
    kh = kw = 5

    x = jnp.transpose(x_nchw, (0, 2, 3, 1)).astype(jnp.bfloat16)    # NHWC bf16
    n, h, w, _ = x.shape
    oh1, ow1 = h - kh + 1, w - kw + 1

    p1 = _im2col(x, kh, kw)                                         # (N, 3136, 75)
    y1 = conv_matmul_relu_pool(p1, w1p, b1p, oh=oh1, ow=ow1)        # (N, 28, 28, 20) bf16

    ph1, pw1 = oh1 // 2, ow1 // 2
    oh2, ow2 = ph1 - kh + 1, pw1 - kw + 1
    p2 = _im2col(y1, kh, kw)                                        # (N, 576, 500)
    y2 = conv_matmul_relu_pool(p2, w2p, b2p, oh=oh2, ow=ow2)        # (N, 12, 12, 64) bf16

    xf = y2.reshape(y2.shape[0], -1)                                # (N, 9216) bf16
    out = mlp_head(xf, fw1p, fb1p, fw2p, fb2p)                      # (N, 128) f32
    return out[:, :2]


# ---------------------------------------------------------------------------
# Pure-JAX reference (same bf16-operand / f32-accumulate mixed precision)
# ---------------------------------------------------------------------------
def net_reference(x_nchw, params):
    w1, b1, w2, b2, fw1, fb1, fw2, fb2 = params

    def conv(x, w, b):
        y = jax.lax.conv_general_dilated(
            x.astype(jnp.bfloat16), w.astype(jnp.bfloat16),
            window_strides=(1, 1), padding="VALID",
            dimension_numbers=("NCHW", "OIHW", "NCHW"),
            preferred_element_type=jnp.float32)
        return y + b[None, :, None, None]

    def pool(x):
        return jax.lax.reduce_window(
            x, -jnp.inf, jax.lax.max, (1, 1, 2, 2), (1, 1, 2, 2), "VALID")

    x = pool(jax.nn.relu(conv(x_nchw, w1, b1)))
    x = pool(jax.nn.relu(conv(x, w2, b2)))
    x = x.reshape(x.shape[0], -1)                         # (c, h, w) order
    h = jnp.maximum(
        jnp.dot(x.astype(jnp.bfloat16), fw1.T.astype(jnp.bfloat16),
                preferred_element_type=jnp.float32) + fb1, 0.0)
    return jnp.dot(h.astype(jnp.bfloat16), fw2.T.astype(jnp.bfloat16),
                   preferred_element_type=jnp.float32) + fb2


# ---------------------------------------------------------------------------
# Main
# ---------------------------------------------------------------------------
if __name__ == "__main__":
    input_channels = 3
    batch = 2
    spatial = 60  # fc1 expects 50*12*12 => 60x60 input

    key = jax.random.PRNGKey(0)
    ks = jax.random.split(key, 9)

    w1 = 0.05 * jax.random.normal(ks[0], (20, input_channels, 5, 5), jnp.float32)
    b1 = 0.05 * jax.random.normal(ks[1], (20,), jnp.float32)
    w2 = 0.05 * jax.random.normal(ks[2], (50, 20, 5, 5), jnp.float32)
    b2 = 0.05 * jax.random.normal(ks[3], (50,), jnp.float32)
    fw1 = 0.02 * jax.random.normal(ks[4], (500, 50 * 12 * 12), jnp.float32)
    fb1 = 0.02 * jax.random.normal(ks[5], (500,), jnp.float32)
    fw2 = 0.02 * jax.random.normal(ks[6], (2, 500), jnp.float32)
    fb2 = 0.02 * jax.random.normal(ks[7], (2,), jnp.float32)
    params = (w1, b1, w2, b2, fw1, fb1, fw2, fb2)
    packed = pack_params(params)

    x = jax.random.normal(ks[8], (batch, input_channels, spatial, spatial),
                          jnp.float32)

    fwd = jax.jit(net_forward)
    out = jax.block_until_ready(fwd(x, packed))
    assert out.shape == (batch, 2), out.shape

    ref = jax.block_until_ready(net_reference(x, params))
    err = jnp.max(jnp.abs(out - ref))
    assert jnp.allclose(out, ref, atol=5e-3, rtol=5e-3), err

    print("KERNEL_OK")
</pallas_src>

<mosaic_0001>
module attributes {stable_mosaic.version = 11 : i64} {
  func.func @_conv_kernel(%arg0: i32, %arg1: memref<1x3136x75xbf16, #tpu.memory_space<vmem>>, %arg2: memref<75x20xbf16, #tpu.memory_space<vmem>>, %arg3: memref<1x20xf32, #tpu.memory_space<vmem>>, %arg4: memref<1x28x28x20xbf16, #tpu.memory_space<vmem>>, %arg5: memref<28x56x20xf32, #tpu.memory_space<vmem>>) attributes {dimension_semantics = [#tpu.dimension_semantics<parallel>], iteration_bounds = array<i64: 2>, scalar_prefetch = 0 : i64, scratch_operands = 1 : i64, tpu.core_type = #tpu.core_type<tc>, window_params = [{transform_indices = @transform_0, window_bounds = array<i64: 1, 3136, 75>}, {pipeline_mode = #tpu.pipeline_mode<synchronous>, transform_indices = @transform_1, window_bounds = array<i64: 75, 20>}, {pipeline_mode = #tpu.pipeline_mode<synchronous>, transform_indices = @transform_2, window_bounds = array<i64: 1, 20>}, {transform_indices = @transform_3, window_bounds = array<i64: 1, 28, 28, 20>}]} {
    %c0 = arith.constant 0 : index
    %c0_0 = arith.constant 0 : index
    %c0_1 = arith.constant 0 : index
    %0 = vector.load %arg1[%c0, %c0_0, %c0_1] : memref<1x3136x75xbf16, #tpu.memory_space<vmem>>, vector<1x3136x75xbf16>
    %1 = vector.shape_cast %0 : vector<1x3136x75xbf16> to vector<3136x75xbf16>
    %c0_2 = arith.constant 0 : index
    %c0_3 = arith.constant 0 : index
    %2 = vector.load %arg2[%c0_2, %c0_3] : memref<75x20xbf16, #tpu.memory_space<vmem>>, vector<75x20xbf16>
    %cst = arith.constant dense<0.000000e+00> : vector<3136x20xf32>
    %3 = tpu.matmul %1, %2, %cst {dimension_numbers = #tpu.dot_dimension_numbers<[1], [0], [0], [1], [0, 0, 1, 1], [], []>} : vector<3136x75xbf16>, vector<75x20xbf16>, vector<3136x20xf32> -> vector<3136x20xf32>
    %c0_4 = arith.constant 0 : index
    %c0_5 = arith.constant 0 : index
    %4 = vector.load %arg3[%c0_4, %c0_5] : memref<1x20xf32, #tpu.memory_space<vmem>>, vector<1x20xf32>
    %5 = vector.broadcast %4 : vector<1x20xf32> to vector<3136x20xf32>
    %6 = arith.addf %3, %5 : vector<3136x20xf32>
    %cst_6 = arith.constant 0.000000e+00 : f32
    %7 = vector.broadcast %cst_6 : f32 to vector<3136x20xf32>
    %8 = arith.maximumf %6, %7 : vector<3136x20xf32>
    %9 = vector.shape_cast %8 : vector<3136x20xf32> to vector<28x2x56x20xf32>
    %10 = vector.extract_strided_slice %9 {offsets = [0, 0, 0, 0], sizes = [28, 1, 56, 20], strides = [1, 1, 1, 1]} : vector<28x2x56x20xf32> to vector<28x1x56x20xf32>
    %11 = vector.shape_cast %10 : vector<28x1x56x20xf32> to vector<28x56x20xf32>
    %12 = vector.extract_strided_slice %9 {offsets = [0, 1, 0, 0], sizes = [28, 1, 56, 20], strides = [1, 1, 1, 1]} : vector<28x2x56x20xf32> to vector<28x1x56x20xf32>
    %13 = vector.shape_cast %12 : vector<28x1x56x20xf32> to vector<28x56x20xf32>
    %14 = arith.maximumf %11, %13 : vector<28x56x20xf32>
    %c0_7 = arith.constant 0 : index
    %c0_8 = arith.constant 0 : index
    %c0_9 = arith.constant 0 : index
    %15 = vector.load %arg5[%c0_7, %c0_8, %c0_9] : memref<28x56x20xf32, #tpu.memory_space<vmem>>, vector<28x56x20xf32>
    tpu.vector_store %arg5[%c0_7, %c0_8, %c0_9], %14 {strides = array<i32>} : memref<28x56x20xf32, #tpu.memory_space<vmem>>, vector<28x56x20xf32>,
    %c0_10 = arith.constant 0 : index
    %c0_11 = arith.constant 0 : index
    %c0_12 = arith.constant 0 : index
    %16 = tpu.strided_load %arg5[%c0_10, %c0_11, %c0_12] {strides = array<i32: 1, 2, 1>} : memref<28x56x20xf32, #tpu.memory_space<vmem>>, vector<28x28x20xf32>
    %c0_13 = arith.constant 0 : index
    %c1 = arith.constant 1 : index
    %c0_14 = arith.constant 0 : index
    %17 = tpu.strided_load %arg5[%c0_13, %c1, %c0_14] {strides = array<i32: 1, 2, 1>} : memref<28x56x20xf32, #tpu.memory_space<vmem>>, vector<28x28x20xf32>
    %18 = arith.maximumf %16, %17 : vector<28x28x20xf32>
    %19 = arith.truncf %18 : vector<28x28x20xf32> to vector<28x28x20xbf16>
    %c0_15 = arith.constant 0 : index
    %c0_16 = arith.constant 0 : index
    %c0_17 = arith.constant 0 : index
    %c0_18 = arith.constant 0 : index
    %20 = vector.load %arg4[%c0_15, %c0_16, %c0_17, %c0_18] : memref<1x28x28x20xbf16, #tpu.memory_space<vmem>>, vector<1x28x28x20xbf16>
    %21 = vector.shape_cast %20 : vector<1x28x28x20xbf16> to vector<28x28x20xbf16>
    %22 = vector.shape_cast %19 : vector<28x28x20xbf16> to vector<1x28x28x20xbf16>
    tpu.vector_store %arg4[%c0_15, %c0_16, %c0_17, %c0_18], %22 {strides = array<i32>} : memref<1x28x28x20xbf16, #tpu.memory_space<vmem>>, vector<1x28x28x20xbf16>,
    return
  }
  func.func @transform_0(%arg0: i32) -> (i32, i32, i32) {
    %c0_i32 = arith.constant 0 : i32
    %c0_i32_0 = arith.constant 0 : i32
    %c0_i32_1 = arith.constant 0 : i32
    return %arg0, %c0_i32, %c0_i32_0 : i32, i32, i32
  }
  func.func @transform_1(%arg0: i32) -> (i32, i32) {
    %c0_i32 = arith.constant 0 : i32
    %c0_i32_0 = arith.constant 0 : i32
    %c0_i32_1 = arith.constant 0 : i32
    return %c0_i32, %c0_i32_0 : i32, i32
  }
  func.func @transform_2(%arg0: i32) -> (i32, i32) {
    %c0_i32 = arith.constant 0 : i32
    %c0_i32_0 = arith.constant 0 : i32
    %c0_i32_1 = arith.constant 0 : i32
    return %c0_i32, %c0_i32_0 : i32, i32
  }
  func.func @transform_3(%arg0: i32) -> (i32, i32, i32, i32) {
    %c0_i32 = arith.constant 0 : i32
    %c0_i32_0 = arith.constant 0 : i32
    %c0_i32_1 = arith.constant 0 : i32
    %c0_i32_2 = arith.constant 0 : i32
    return %arg0, %c0_i32, %c0_i32_0, %c0_i32_1 : i32, i32, i32, i32
  }
}

module attributes {stable_mosaic.version = 11 : i64} {
  func.func @_conv_kernel(%arg0: i32, %arg1: memref<1x576x500xbf16, #tpu.memory_space<vmem>>, %arg2: memref<500x64xbf16, #tpu.memory_space<vmem>>, %arg3: memref<1x64xf32, #tpu.memory_space<vmem>>, %arg4: memref<1x12x12x64xbf16, #tpu.memory_space<vmem>>, %arg5: memref<12x24x64xf32, #tpu.memory_space<vmem>>) attributes {dimension_semantics = [#tpu.dimension_semantics<parallel>], iteration_bounds = array<i64: 2>, scalar_prefetch = 0 : i64, scratch_operands = 1 : i64, tpu.core_type = #tpu.core_type<tc>, window_params = [{transform_indices = @transform_0, window_bounds = array<i64: 1, 576, 500>}, {pipeline_mode = #tpu.pipeline_mode<synchronous>, transform_indices = @transform_1, window_bounds = array<i64: 500, 64>}, {pipeline_mode = #tpu.pipeline_mode<synchronous>, transform_indices = @transform_2, window_bounds = array<i64: 1, 64>}, {transform_indices = @transform_3, window_bounds = array<i64: 1, 12, 12, 64>}]} {
    %c0 = arith.constant 0 : index
    %c0_0 = arith.constant 0 : index
    %c0_1 = arith.constant 0 : index
    %0 = vector.load %arg1[%c0, %c0_0, %c0_1] : memref<1x576x500xbf16, #tpu.memory_space<vmem>>, vector<1x576x500xbf16>
    %1 = vector.shape_cast %0 : vector<1x576x500xbf16> to vector<576x500xbf16>
    %c0_2 = arith.constant 0 : index
    %c0_3 = arith.constant 0 : index
    %2 = vector.load %arg2[%c0_2, %c0_3] : memref<500x64xbf16, #tpu.memory_space<vmem>>, vector<500x64xbf16>
    %cst = arith.constant dense<0.000000e+00> : vector<576x64xf32>
    %3 = tpu.matmul %1, %2, %cst {dimension_numbers = #tpu.dot_dimension_numbers<[1], [0], [0], [1], [0, 0, 1, 1], [], []>} : vector<576x500xbf16>, vector<500x64xbf16>, vector<576x64xf32> -> vector<576x64xf32>
    %c0_4 = arith.constant 0 : index
    %c0_5 = arith.constant 0 : index
    %4 = vector.load %arg3[%c0_4, %c0_5] : memref<1x64xf32, #tpu.memory_space<vmem>>, vector<1x64xf32>
    %5 = vector.broadcast %4 : vector<1x64xf32> to vector<576x64xf32>
    %6 = arith.addf %3, %5 : vector<576x64xf32>
    %cst_6 = arith.constant 0.000000e+00 : f32
    %7 = vector.broadcast %cst_6 : f32 to vector<576x64xf32>
    %8 = arith.maximumf %6, %7 : vector<576x64xf32>
    %9 = vector.shape_cast %8 : vector<576x64xf32> to vector<12x2x24x64xf32>
    %10 = vector.extract_strided_slice %9 {offsets = [0, 0, 0, 0], sizes = [12, 1, 24, 64], strides = [1, 1, 1, 1]} : vector<12x2x24x64xf32> to vector<12x1x24x64xf32>
    %11 = vector.shape_cast %10 : vector<12x1x24x64xf32> to vector<12x24x64xf32>
    %12 = vector.extract_strided_slice %9 {offsets = [0, 1, 0, 0], sizes = [12, 1, 24, 64], strides = [1, 1, 1, 1]} : vector<12x2x24x64xf32> to vector<12x1x24x64xf32>
    %13 = vector.shape_cast %12 : vector<12x1x24x64xf32> to vector<12x24x64xf32>
    %14 = arith.maximumf %11, %13 : vector<12x24x64xf32>
    %c0_7 = arith.constant 0 : index
    %c0_8 = arith.constant 0 : index
    %c0_9 = arith.constant 0 : index
    %15 = vector.load %arg5[%c0_7, %c0_8, %c0_9] : memref<12x24x64xf32, #tpu.memory_space<vmem>>, vector<12x24x64xf32>
    tpu.vector_store %arg5[%c0_7, %c0_8, %c0_9], %14 {strides = array<i32>} : memref<12x24x64xf32, #tpu.memory_space<vmem>>, vector<12x24x64xf32>,
    %c0_10 = arith.constant 0 : index
    %c0_11 = arith.constant 0 : index
    %c0_12 = arith.constant 0 : index
    %16 = tpu.strided_load %arg5[%c0_10, %c0_11, %c0_12] {strides = array<i32: 1, 2, 1>} : memref<12x24x64xf32, #tpu.memory_space<vmem>>, vector<12x12x64xf32>
    %c0_13 = arith.constant 0 : index
    %c1 = arith.constant 1 : index
    %c0_14 = arith.constant 0 : index
    %17 = tpu.strided_load %arg5[%c0_13, %c1, %c0_14] {strides = array<i32: 1, 2, 1>} : memref<12x24x64xf32, #tpu.memory_space<vmem>>, vector<12x12x64xf32>
    %18 = arith.maximumf %16, %17 : vector<12x12x64xf32>
    %19 = arith.truncf %18 : vector<12x12x64xf32> to vector<12x12x64xbf16>
    %c0_15 = arith.constant 0 : index
    %c0_16 = arith.constant 0 : index
    %c0_17 = arith.constant 0 : index
    %c0_18 = arith.constant 0 : index
    %20 = vector.load %arg4[%c0_15, %c0_16, %c0_17, %c0_18] : memref<1x12x12x64xbf16, #tpu.memory_space<vmem>>, vector<1x12x12x64xbf16>
    %21 = vector.shape_cast %20 : vector<1x12x12x64xbf16> to vector<12x12x64xbf16>
    %22 = vector.shape_cast %19 : vector<12x12x64xbf16> to vector<1x12x12x64xbf16>
    tpu.vector_store %arg4[%c0_15, %c0_16, %c0_17, %c0_18], %22 {strides = array<i32>} : memref<1x12x12x64xbf16, #tpu.memory_space<vmem>>, vector<1x12x12x64xbf16>,
    return
  }
  func.func @transform_0(%arg0: i32) -> (i32, i32, i32) {
    %c0_i32 = arith.constant 0 : i32
    %c0_i32_0 = arith.constant 0 : i32
    %c0_i32_1 = arith.constant 0 : i32
    return %arg0, %c0_i32, %c0_i32_0 : i32, i32, i32
  }
  func.func @transform_1(%arg0: i32) -> (i32, i32) {
    %c0_i32 = arith.constant 0 : i32
    %c0_i32_0 = arith.constant 0 : i32
    %c0_i32_1 = arith.constant 0 : i32
    return %c0_i32, %c0_i32_0 : i32, i32
  }
  func.func @transform_2(%arg0: i32) -> (i32, i32) {
    %c0_i32 = arith.constant 0 : i32
    %c0_i32_0 = arith.constant 0 : i32
    %c0_i32_1 = arith.constant 0 : i32
    return %c0_i32, %c0_i32_0 : i32, i32
  }
  func.func @transform_3(%arg0: i32) -> (i32, i32, i32, i32) {
    %c0_i32 = arith.constant 0 : i32
    %c0_i32_0 = arith.constant 0 : i32
    %c0_i32_1 = arith.constant 0 : i32
    %c0_i32_2 = arith.constant 0 : i32
    return %arg0, %c0_i32, %c0_i32_0, %c0_i32_1 : i32, i32, i32, i32
  }
}

module attributes {stable_mosaic.version = 11 : i64} {
  func.func @_mlp_head_kernel(%arg0: i32, %arg1: memref<2x2304xbf16, #tpu.memory_space<vmem>>, %arg2: memref<2304x512xbf16, #tpu.memory_space<vmem>>, %arg3: memref<1x512xf32, #tpu.memory_space<vmem>>, %arg4: memref<512x128xbf16, #tpu.memory_space<vmem>>, %arg5: memref<1x128xf32, #tpu.memory_space<vmem>>, %arg6: memref<2x128xf32, #tpu.memory_space<vmem>>, %arg7: memref<2x512xf32, #tpu.memory_space<vmem>>) attributes {dimension_semantics = [#tpu.dimension_semantics<arbitrary>], iteration_bounds = array<i64: 4>, scalar_prefetch = 0 : i64, scratch_operands = 1 : i64, tpu.core_type = #tpu.core_type<tc>, window_params = [{transform_indices = @transform_0, window_bounds = array<i64: 2, 2304>}, {transform_indices = @transform_1, window_bounds = array<i64: 2304, 512>}, {pipeline_mode = #tpu.pipeline_mode<synchronous>, transform_indices = @transform_2, window_bounds = array<i64: 1, 512>}, {pipeline_mode = #tpu.pipeline_mode<synchronous>, transform_indices = @transform_3, window_bounds = array<i64: 512, 128>}, {pipeline_mode = #tpu.pipeline_mode<synchronous>, transform_indices = @transform_4, window_bounds = array<i64: 1, 128>}, {pipeline_mode = #tpu.pipeline_mode<synchronous>, transform_indices = @transform_5, window_bounds = array<i64: 2, 128>}]} {
    %c0_i32 = arith.constant 0 : i32
    %0 = arith.cmpi eq, %arg0, %c0_i32 : i32
    %1 = arith.extui %0 : i1 to i32
    %c0_i32_0 = arith.constant 0 : i32
    %2 = arith.cmpi ne, %1, %c0_i32_0 : i32
    scf.if %2 {
      %cst_9 = arith.constant 0.000000e+00 : f32
      %12 = vector.broadcast %cst_9 : f32 to vector<2x512xf32>
      %c0_10 = arith.constant 0 : index
      %c0_11 = arith.constant 0 : index
      %13 = vector.load %arg7[%c0_10, %c0_11] : memref<2x512xf32, #tpu.memory_space<vmem>>, vector<2x512xf32>
      tpu.vector_store %arg7[%c0_10, %c0_11], %12 {strides = array<i32>} : memref<2x512xf32, #tpu.memory_space<vmem>>, vector<2x512xf32>,
    } else {
    }
    %c0 = arith.constant 0 : index
    %c0_1 = arith.constant 0 : index
    %3 = vector.load %arg7[%c0, %c0_1] : memref<2x512xf32, #tpu.memory_space<vmem>>, vector<2x512xf32>
    %c0_2 = arith.constant 0 : index
    %c0_3 = arith.constant 0 : index
    %4 = vector.load %arg1[%c0_2, %c0_3] : memref<2x2304xbf16, #tpu.memory_space<vmem>>, vector<2x2304xbf16>
    %c0_4 = arith.constant 0 : index
    %c0_5 = arith.constant 0 : index
    %5 = vector.load %arg2[%c0_4, %c0_5] : memref<2304x512xbf16, #tpu.memory_space<vmem>>, vector<2304x512xbf16>
    %cst = arith.constant dense<0.000000e+00> : vector<2x512xf32>
    %6 = tpu.matmul %4, %5, %cst {dimension_numbers = #tpu.dot_dimension_numbers<[1], [0], [0], [1], [0, 0, 1, 1], [], []>} : vector<2x2304xbf16>, vector<2304x512xbf16>, vector<2x512xf32> -> vector<2x512xf32>
    %7 = arith.addf %3, %6 : vector<2x512xf32>
    %c0_6 = arith.constant 0 : index
    %c0_7 = arith.constant 0 : index
    %8 = vector.load %arg7[%c0_6, %c0_7] : memref<2x512xf32, #tpu.memory_space<vmem>>, vector<2x512xf32>
    tpu.vector_store %arg7[%c0_6, %c0_7], %7 {strides = array<i32>} : memref<2x512xf32, #tpu.memory_space<vmem>>, vector<2x512xf32>,
    %c3_i32 = arith.constant 3 : i32
    %9 = arith.cmpi eq, %arg0, %c3_i32 : i32
    %10 = arith.extui %9 : i1 to i32
    %c0_i32_8 = arith.constant 0 : i32
    %11 = arith.cmpi ne, %10, %c0_i32_8 : i32
    scf.if %11 {
      %c0_9 = arith.constant 0 : index
      %c0_10 = arith.constant 0 : index
      %12 = vector.load %arg7[%c0_9, %c0_10] : memref<2x512xf32, #tpu.memory_space<vmem>>, vector<2x512xf32>
      %c0_11 = arith.constant 0 : index
      %c0_12 = arith.constant 0 : index
      %13 = vector.load %arg3[%c0_11, %c0_12] : memref<1x512xf32, #tpu.memory_space<vmem>>, vector<1x512xf32>
      %14 = vector.broadcast %13 : vector<1x512xf32> to vector<2x512xf32>
      %15 = arith.addf %12, %14 : vector<2x512xf32>
      %cst_13 = arith.constant 0.000000e+00 : f32
      %16 = vector.broadcast %cst_13 : f32 to vector<2x512xf32>
      %17 = arith.maximumf %15, %16 : vector<2x512xf32>
      %18 = arith.truncf %17 : vector<2x512xf32> to vector<2x512xbf16>
      %c0_14 = arith.constant 0 : index
      %c0_15 = arith.constant 0 : index
      %19 = vector.load %arg4[%c0_14, %c0_15] : memref<512x128xbf16, #tpu.memory_space<vmem>>, vector<512x128xbf16>
      %cst_16 = arith.constant dense<0.000000e+00> : vector<2x128xf32>
      %20 = tpu.matmul %18, %19, %cst_16 {dimension_numbers = #tpu.dot_dimension_numbers<[1], [0], [0], [1], [0, 0, 1, 1], [], []>} : vector<2x512xbf16>, vector<512x128xbf16>, vector<2x128xf32> -> vector<2x128xf32>
      %c0_17 = arith.constant 0 : index
      %c0_18 = arith.constant 0 : index
      %21 = vector.load %arg5[%c0_17, %c0_18] : memref<1x128xf32, #tpu.memory_space<vmem>>, vector<1x128xf32>
      %22 = vector.broadcast %21 : vector<1x128xf32> to vector<2x128xf32>
      %23 = arith.addf %20, %22 : vector<2x128xf32>
      %c0_19 = arith.constant 0 : index
      %c0_20 = arith.constant 0 : index
      %24 = vector.load %arg6[%c0_19, %c0_20] : memref<2x128xf32, #tpu.memory_space<vmem>>, vector<2x128xf32>
      tpu.vector_store %arg6[%c0_19, %c0_20], %23 {strides = array<i32>} : memref<2x128xf32, #tpu.memory_space<vmem>>, vector<2x128xf32>,
    } else {
    }
    return
  }
  func.func @transform_0(%arg0: i32) -> (i32, i32) {
    %c0_i32 = arith.constant 0 : i32
    %c0_i32_0 = arith.constant 0 : i32
    return %c0_i32, %arg0 : i32, i32
  }
  func.func @transform_1(%arg0: i32) -> (i32, i32) {
    %c0_i32 = arith.constant 0 : i32
    %c0_i32_0 = arith.constant 0 : i32
    return %arg0, %c0_i32 : i32, i32
  }
  func.func @transform_2(%arg0: i32) -> (i32, i32) {
    %c0_i32 = arith.constant 0 : i32
    %c0_i32_0 = arith.constant 0 : i32
    %c0_i32_1 = arith.constant 0 : i32
    return %c0_i32, %c0_i32_0 : i32, i32
  }
  func.func @transform_3(%arg0: i32) -> (i32, i32) {
    %c0_i32 = arith.constant 0 : i32
    %c0_i32_0 = arith.constant 0 : i32
    %c0_i32_1 = arith.constant 0 : i32
    return %c0_i32, %c0_i32_0 : i32, i32
  }
  func.func @transform_4(%arg0: i32) -> (i32, i32) {
    %c0_i32 = arith.constant 0 : i32
    %c0_i32_0 = arith.constant 0 : i32
    %c0_i32_1 = arith.constant 0 : i32
    return %c0_i32, %c0_i32_0 : i32, i32
  }
  func.func @transform_5(%arg0: i32) -> (i32, i32) {
    %c0_i32 = arith.constant 0 : i32
    %c0_i32_0 = arith.constant 0 : i32
    %c0_i32_1 = arith.constant 0 : i32
    return %c0_i32, %c0_i32_0 : i32, i32
  }
}

</mosaic_0001>

<bundles_post_ra>
// kernel: net_forward.4
= control target key start
LH: loop header
LB: loop body
LE: loop exit
PB: predicated region body
PF: predicated region fallthrough
CT: control target
= control target key end

     0   :  { %s3158_s12 = smov 0   ;;  %s3664_s0 = inlined_call_operand.vmem [shape: bf16[2,576,500], index: 0, kind: input, shape index: {}]   ;;  %s3665_s1 = inlined_call_operand.vmem [shape: bf16[500,64], index: 1, kind: input, shape index: {}]   ;;  %s3666_s2 = inlined_call_operand.vmem [shape: f32[1,64], index: 2, kind: input, shape index: {}]   ;;  %s3667_s3 = inlined_call_operand.vmem [shape: bf16[2,12,12,64], index: 3, kind: output, shape index: {}]  }
   0x1 LB: > { %s2455_s13 = sadd.s32 4294967295, %s3135_s12   ;;  %p2459_p0 = scmp.ge.s32.totalorder %s3135_s12, 1  ;;  %s3135_s12 = sphi %s3158_s12, %s13_s12  }
   0x2   : > { %p137_p1 = scmp.lt.s32.totalorder %s3135_s12, 3 }
   0x4   : > { %p138_p2 = pnand %p2459_p0, %p137_p1 }
   0x5   : > { %v2880_v0 = vld [vmem:[%s3665_s1] sm:$0xff] (!%p138_p2)   ;;  %v3137_v1 = vmov (!%p138_p2), 0   ;;  %v2882_v3 = vld [vmem:[%s3665_s1 + $0x8] sm:$0xff] (!%p138_p2)   ;;  %v2884_v5 = vld [vmem:[%s3665_s1 + $0x10] sm:$0xff] (!%p138_p2)   ;;  %p161_p3 = scmp.lt.s32.totalorder (!%p138_p2), %s2455_s13, 1  ;;  %vm1259_vm0 = vcmask (!%p138_p2), 949248  }
   0x6   : > { %141 = sbr.rel (%p138_p2) target bundleno = 585 (0x249), region = 32  ;;  %1372 = vmatprep.subr.bf16.mxu1 (!%p138_p2), %v3137_v1  ;;  %1693 = vmatprep.subr.bf16.mxu0 (!%p138_p2), %v3137_v1  ;;  %v2881_v2 = vld [vmem:[%s3665_s1 + $0x80] sm:$0xff] (!%p138_p2)   ;;  %v2883_v4 = vld [vmem:[%s3665_s1 + $0x88] sm:$0xff] (!%p138_p2)   ;;  %v2885_v6 = vld [vmem:[%s3665_s1 + $0x90] sm:$0xff] (!%p138_p2)   ;;  %vm1368_vm1 = vcmask (!%p138_p2), 1041408   ;;  %vm2122_vm2 = vcmask (!%p138_p2), 523264  }
   0x7   : > { %1373 = vmatpush1.bf16.msra.mxu1 (!%p138_p2), %v2880_v0  ;;  %1694 = vmatpush1.bf16.msra.mxu0 (!%p138_p2), %v2881_v2  ;;  %v2886_v7 = vld [vmem:[%s3665_s1 + $0x18] sm:$0xff] (!%p138_p2)   ;;  %v2888_v9 = vld [vmem:[%s3665_s1 + $0x20] sm:$0xff] (!%p138_p2)   ;;  %v2890_v11 = vld [vmem:[%s3665_s1 + $0x28] sm:$0xff] (!%p138_p2)   ;;  %vm2374_vm3 = vcmask (!%p138_p2), 519168   ;;  %vm2376_vm4 = vcmask (!%p138_p2), 517120  }
   0x8   : > { %1374 = vmatprep.subr.bf16.mxu1 (!%p138_p2), %v3137_v1  ;;  %1695 = vmatprep.subr.bf16.mxu0 (!%p138_p2), %v3137_v1  ;;  %v2887_v8 = vld [vmem:[%s3665_s1 + $0x98] sm:$0xff] (!%p138_p2)   ;;  %v2889_v10 = vld [vmem:[%s3665_s1 + $0xa0] sm:$0xff] (!%p138_p2)   ;;  %v2891_v12 = vld [vmem:[%s3665_s1 + $0xa8] sm:$0xff] (!%p138_p2)  }
   0x9   : > { %v2892_v13 = vld [vmem:[%s3665_s1 + $0x30] sm:$0xff] (!%p138_p2)   ;;  %v2894_v15 = vld [vmem:[%s3665_s1 + $0x38] sm:$0xff] (!%p138_p2)   ;;  %v2896_v17 = vld [vmem:[%s3665_s1 + $0x40] sm:$0xff] (!%p138_p2)  }
   0xa   : > { %v2893_v14 = vld [vmem:[%s3665_s1 + $0xb0] sm:$0xff] (!%p138_p2)   ;;  %v2895_v16 = vld [vmem:[%s3665_s1 + $0xb8] sm:$0xff] (!%p138_p2)   ;;  %v2897_v18 = vld [vmem:[%s3665_s1 + $0xc0] sm:$0xff] (!%p138_p2)  }
   0xb   : > { %1375 = vmatpush1.bf16.msra.mxu1 (!%p138_p2), %v2882_v3  ;;  %1696 = vmatpush1.bf16.msra.mxu0 (!%p138_p2), %v2883_v4  ;;  %v2898_v20 = vld [vmem:[%s3665_s1 + $0x48] sm:$0xff] (!%p138_p2)   ;;  %v2900_v23 = vld [vmem:[%s3665_s1 + $0x50] sm:$0xff] (!%p138_p2)   ;;  %v2902_v25 = vld [vmem:[%s3665_s1 + $0x58] sm:$0xff] (!%p138_p2)  }
   0xc   : > { %1376 = vmatprep.subr.bf16.mxu1 (!%p138_p2), %v3137_v1  ;;  %1697 = vmatprep.subr.bf16.mxu0 (!%p138_p2), %v3137_v1  ;;  %v2899_v22 = vld [vmem:[%s3665_s1 + $0xc8] sm:$0xff] (!%p138_p2)   ;;  %v2901_v24 = vld [vmem:[%s3665_s1 + $0xd0] sm:$0xff] (!%p138_p2)   ;;  %v2903_v26 = vld [vmem:[%s3665_s1 + $0xd8] sm:$0xff] (!%p138_p2)  }
   0xd   : > { %s3669_s13 = smov (!%p161_p3, %s2455_s13), 1  ;;  %v2904_v27 = vld [vmem:[%s3665_s1 + $0x60] sm:$0xff]   ;;  %v2906_v29 = vld [vmem:[%s3665_s1 + $0x68] sm:$0xff]   ;;  %v2908_v31 = vld [vmem:[%s3665_s1 + $0x70] sm:$0xff]  }
   0xe   : > { %s2869_s17 = smul.u32 1152, %s3669_s13  ;;  %v2905_v28 = vld [vmem:[%s3665_s1 + $0xe0] sm:$0xff]   ;;  %v2907_v30 = vld [vmem:[%s3665_s1 + $0xe8] sm:$0xff]   ;;  %v2909_v32 = vld [vmem:[%s3665_s1 + $0xf0] sm:$0xff]  }
   0xf   : > { %1377 = vmatpush1.bf16.msra.mxu1 %v2884_v5  ;;  %1698 = vmatpush1.bf16.msra.mxu0 %v2885_v6  ;;  %v2911_v33 = vld [vmem:[%s3665_s1 + $0xf8] ss:$0 sps:$4 sm:$0x33]   ;;  %s2870_s8 = smul.u32 96, %s3669_s13 }
  0x10   : > { %1378 = vmatprep.subr.bf16.mxu1 %v3137_v1  ;;  %1699 = vmatprep.subr.bf16.mxu0 %v3137_v1  ;;  %s3240_s24 = scalar_lea.vmem %s3664_s0, %s2869_s17  ;;  %v2910_v34 = vld [vmem:[%s3665_s1 + $0x78] sm:$0xff]   ;;  %v1370_v35 = vsel %vm1368_vm1, %v2911_v33, 0 }
  0x11   : > { %v2914_v19 = vld [vmem:[%s3240_s24 + $0x4] ss:$16 sps:$4 sm:$0xff]   ;;  %v2917_v21 = vld [vmem:[%s3240_s24 + $0xc] ss:$16 sps:$4 sm:$0xff]   ;;  %v2912_v36 = vld [vmem:[%s3240_s24] ss:$16 sps:$4 sm:$0xff]   ;;  %s3490_s13 = scalar_lea.vmem %s3667_s3, %s2870_s8 }
  0x12   : > { %1404 = vmatprep.mubr.bf16.mxu1 %v2914_v19  ;;  %2639 = vmatprep.mubr.msk.bf16.mxu0 %vm1259_vm0, %v2917_v21  ;;  %v2915_v37 = vld [vmem:[%s3240_s24 + $0x8] ss:$16 sps:$4 sm:$0xff]   ;;  %v2918_v38 = vld [vmem:[%s3240_s24 + $0x24] ss:$16 sps:$4 sm:$0xff]   ;;  %v2920_v39 = vld [vmem:[%s3240_s24 + $0x2c] ss:$16 sps:$4 sm:$0xff]  }
  0x13   : > { %1379 = vmatpush1.bf16.msra.mxu1 %v2886_v7  ;;  %1700 = vmatpush1.bf16.msra.mxu0 %v2887_v8  ;;  %v2922_v40 = vld [vmem:[%s3240_s24 + $0x20] ss:$16 sps:$4 sm:$0xff]   ;;  %v2923_v41 = vld [vmem:[%s3240_s24 + $0x28] ss:$16 sps:$4 sm:$0xff]   ;;  %v2924_v42 = vld [vmem:[%s3240_s24 + $0x44] ss:$16 sps:$4 sm:$0xff]  }
  0x14   : > { %1380 = vmatprep.subr.bf16.mxu1 %v3137_v1  ;;  %1701 = vmatprep.subr.bf16.mxu0 %v3137_v1  ;;  %v2926_v43 = vld [vmem:[%s3240_s24 + $0x4c] ss:$16 sps:$4 sm:$0xff]   ;;  %v2928_v44 = vld [vmem:[%s3240_s24 + $0x40] ss:$16 sps:$4 sm:$0xff]   ;;  %v2929_v45 = vld [vmem:[%s3240_s24 + $0x48] ss:$16 sps:$4 sm:$0xff]  }
  0x15   : > { %v2930_v46 = vld [vmem:[%s3240_s24 + $0x64] ss:$16 sps:$4 sm:$0xff]   ;;  %v2932_v47 = vld [vmem:[%s3240_s24 + $0x6c] ss:$16 sps:$4 sm:$0xff]   ;;  %v2934_v48 = vld [vmem:[%s3240_s24 + $0x60] ss:$16 sps:$4 sm:$0xff]  }
  0x16   : > { %v2935_v49 = vld [vmem:[%s3240_s24 + $0x68] ss:$16 sps:$4 sm:$0xff]   ;;  %v2936_v50 = vld [vmem:[%s3240_s24 + $0x84] ss:$16 sps:$4 sm:$0xff]   ;;  %v2938_v51 = vld [vmem:[%s3240_s24 + $0x8c] ss:$16 sps:$4 sm:$0xff]  }
  0x17   : > { %1381 = vmatpush1.bf16.msra.mxu1 %v2888_v9  ;;  %1702 = vmatpush1.bf16.msra.mxu0 %v2889_v10  ;;  %v2940_v52 = vld [vmem:[%s3240_s24 + $0x80] ss:$16 sps:$4 sm:$0xff]   ;;  %v2941_v53 = vld [vmem:[%s3240_s24 + $0x88] ss:$16 sps:$4 sm:$0xff]   ;;  %v2942_v54 = vld [vmem:[%s3240_s24 + $0xa4] ss:$16 sps:$4 sm:$0xff]  }
  0x18   : > { %1382 = vmatprep.subr.bf16.mxu1 %v3137_v1  ;;  %1703 = vmatprep.subr.bf16.mxu0 %v3137_v1  ;;  %v2944_v55 = vld [vmem:[%s3240_s24 + $0xac] ss:$16 sps:$4 sm:$0xff]   ;;  %v2946_v56 = vld [vmem:[%s3240_s24 + $0xa0] ss:$16 sps:$4 sm:$0xff]   ;;  %v2947_v57 = vld [vmem:[%s3240_s24 + $0xa8] ss:$16 sps:$4 sm:$0xff]  }
  0x19   : > { %v2948_v58 = vld [vmem:[%s3240_s24 + $0xc4] ss:$16 sps:$4 sm:$0xff]   ;;  %v2950_v59 = vld [vmem:[%s3240_s24 + $0xcc] ss:$16 sps:$4 sm:$0xff]   ;;  %v2952_v60 = vld [vmem:[%s3240_s24 + $0xc0] ss:$16 sps:$4 sm:$0xff]  }
  0x1a   : > { %v2953_v61 = vld [vmem:[%s3240_s24 + $0xc8] ss:$16 sps:$4 sm:$0xff]   ;;  %v2954_v62 = vld [vmem:[%s3240_s24 + $0xe4] ss:$16 sps:$4 sm:$0xff]   ;;  %v2956_v63 = vld [vmem:[%s3240_s24 + $0xec] ss:$16 sps:$4 sm:$0xff]  }
  0x1b   : > { %1383 = vmatpush1.bf16.msra.mxu1 %v2890_v11  ;;  %1704 = vmatpush1.bf16.msra.mxu0 %v2891_v12  ;;  %v2958_v0 = vld [vmem:[%s3240_s24 + $0xe0] ss:$16 sps:$4 sm:$0xff]   ;;  %v2960_v2 = vld [vmem:[%s3240_s24 + $0x104] ss:$16 sps:$4 sm:$0xff]   ;;  %v2962_v3 = vld [vmem:[%s3240_s24 + $0x10c] ss:$16 sps:$4 sm:$0xff]  }
  0x1c   : > { %1384 = vmatprep.subr.bf16.mxu1 %v3137_v1  ;;  %1705 = vmatprep.subr.bf16.mxu0 %v3137_v1  ;;  %v2964_v4 = vld [vmem:[%s3240_s24 + $0x100] ss:$16 sps:$4 sm:$0xff]   ;;  %v2965_v5 = vld [vmem:[%s3240_s24 + $0x108] ss:$16 sps:$4 sm:$0xff]   ;;  %v2966_v6 = vld [vmem:[%s3240_s24 + $0x124] ss:$16 sps:$4 sm:$0xff]  }
  0x1d   : > { %v2968_v7 = vld [vmem:[%s3240_s24 + $0x12c] ss:$16 sps:$4 sm:$0xff]   ;;  %v2970_v8 = vld [vmem:[%s3240_s24 + $0x120] ss:$16 sps:$4 sm:$0xff]   ;;  %v2971_v9 = vld [vmem:[%s3240_s24 + $0x128] ss:$16 sps:$4 sm:$0xff]  }
  0x1e   : > { %v2972_v10 = vld [vmem:[%s3240_s24 + $0x144] ss:$16 sps:$4 sm:$0xff]   ;;  %v2974_v11 = vld [vmem:[%s3240_s24 + $0x14c] ss:$16 sps:$4 sm:$0xff]   ;;  %v2976_v12 = vld [vmem:[%s3240_s24 + $0x140] ss:$16 sps:$4 sm:$0xff]  }
  0x1f   : > { %1385 = vmatpush1.bf16.msra.mxu1 %v2892_v13  ;;  %1706 = vmatpush1.bf16.msra.mxu0 %v2893_v14  ;;  %v2977_v13 = vld [vmem:[%s3240_s24 + $0x148] ss:$16 sps:$4 sm:$0xff]   ;;  %v2978_v14 = vld [vmem:[%s3240_s24 + $0x164] ss:$16 sps:$4 sm:$0xff]   ;;  %v2986_v19 = vld [vmem:[%s3240_s24 + $0x18c] ss:$16 sps:$4 sm:$0xff]  }
  0x20   : > { %1386 = vmatprep.subr.bf16.mxu1 %v3137_v1  ;;  %1707 = vmatprep.subr.bf16.mxu0 %v3137_v1  ;;  %v2989_v21 = vld [vmem:[%s3240_s24 + $0x188] ss:$16 sps:$4 sm:$0xff]  }
  0x21   : > { %v3007_v33 = vld [vmem:[%s3240_s24 + $0x1e8] ss:$16 sps:$4 sm:$0xff]  }
  0x23   : > { %1387 = vmatpush1.bf16.msra.mxu1 %v2894_v15  ;;  %1708 = vmatpush1.bf16.msra.mxu0 %v2895_v16  ;;  %v2980_v15 = vld [vmem:[%s3240_s24 + $0x16c] ss:$16 sps:$4 sm:$0xff]   ;;  %v2982_v16 = vld [vmem:[%s3240_s24 + $0x160] ss:$16 sps:$4 sm:$0xff]  }
  0x24   : > { %1388 = vmatprep.subr.bf16.mxu1 %v3137_v1  ;;  %1709 = vmatprep.subr.bf16.mxu0 %v3137_v1 }
  0x27   : > { %1389 = vmatpush1.bf16.msra.mxu1 %v2896_v17  ;;  %1710 = vmatpush1.bf16.msra.mxu0 %v2897_v18  ;;  %v2983_v17 = vld [vmem:[%s3240_s24 + $0x168] ss:$16 sps:$4 sm:$0xff]   ;;  %v2984_v18 = vld [vmem:[%s3240_s24 + $0x184] ss:$16 sps:$4 sm:$0xff]  }
  0x28   : > { %1390 = vmatprep.subr.bf16.mxu1 %v3137_v1  ;;  %1711 = vmatprep.subr.bf16.mxu0 %v3137_v1 }
  0x2b   : > { %1391 = vmatpush1.bf16.msra.mxu1 %v2898_v20  ;;  %1712 = vmatpush1.bf16.msra.mxu0 %v2899_v22  ;;  %v2988_v20 = vld [vmem:[%s3240_s24 + $0x180] ss:$16 sps:$4 sm:$0xff]   ;;  %v2990_v22 = vld [vmem:[%s3240_s24 + $0x1a4] ss:$16 sps:$4 sm:$0xff]  }
  0x2c   : > { %1392 = vmatprep.subr.bf16.mxu1 %v3137_v1  ;;  %1713 = vmatprep.subr.bf16.mxu0 %v3137_v1 }
  0x2f   : > { %1393 = vmatpush1.bf16.msra.mxu1 %v2900_v23  ;;  %1714 = vmatpush1.bf16.msra.mxu0 %v2901_v24  ;;  %v2992_v23 = vld [vmem:[%s3240_s24 + $0x1ac] ss:$16 sps:$4 sm:$0xff]   ;;  %v2994_v24 = vld [vmem:[%s3240_s24 + $0x1a0] ss:$16 sps:$4 sm:$0xff]  }
  0x30   : > { %1394 = vmatprep.subr.bf16.mxu1 %v3137_v1  ;;  %1715 = vmatprep.subr.bf16.mxu0 %v3137_v1 }
  0x33   : > { %1395 = vmatpush1.bf16.msra.mxu1 %v2902_v25  ;;  %1716 = vmatpush1.bf16.msra.mxu0 %v2903_v26  ;;  %v2995_v25 = vld [vmem:[%s3240_s24 + $0x1a8] ss:$16 sps:$4 sm:$0xff]   ;;  %v2996_v26 = vld [vmem:[%s3240_s24 + $0x1c4] ss:$16 sps:$4 sm:$0xff]  }
  0x34   : > { %1396 = vmatprep.subr.bf16.mxu1 %v3137_v1  ;;  %1717 = vmatprep.subr.bf16.mxu0 %v3137_v1 }
  0x37   : > { %1397 = vmatpush1.bf16.msra.mxu1 %v2904_v27  ;;  %1718 = vmatpush1.bf16.msra.mxu0 %v2905_v28  ;;  %v2998_v27 = vld [vmem:[%s3240_s24 + $0x1cc] ss:$16 sps:$4 sm:$0xff]   ;;  %v3000_v28 = vld [vmem:[%s3240_s24 + $0x1c0] ss:$16 sps:$4 sm:$0xff]  }
  0x38   : > { %1398 = vmatprep.subr.bf16.mxu1 %v3137_v1  ;;  %1719 = vmatprep.subr.bf16.mxu0 %v3137_v1 }
  0x3b   : > { %1399 = vmatpush1.bf16.msra.mxu1 %v2906_v29  ;;  %1720 = vmatpush1.bf16.msra.mxu0 %v2907_v30  ;;  %v3001_v29 = vld [vmem:[%s3240_s24 + $0x1c8] ss:$16 sps:$4 sm:$0xff]   ;;  %v3002_v30 = vld [vmem:[%s3240_s24 + $0x1e4] ss:$16 sps:$4 sm:$0xff]  }
  0x3c   : > { %1400 = vmatprep.subr.bf16.mxu1 %v3137_v1  ;;  %1721 = vmatprep.subr.bf16.mxu0 %v3137_v1 }
  0x3f   : > { %1401 = vmatpush1.bf16.msra.mxu1 %v2908_v31  ;;  %1722 = vmatpush1.bf16.msra.mxu0 %v2909_v32  ;;  %v3004_v31 = vld [vmem:[%s3240_s24 + $0x1ec] ss:$16 sps:$4 sm:$0xff]   ;;  %v3006_v32 = vld [vmem:[%s3240_s24 + $0x1e0] ss:$16 sps:$4 sm:$0xff]  }
  0x40   : > { %1402 = vmatprep.subr.bf16.mxu1 %v3137_v1  ;;  %1723 = vmatprep.subr.bf16.mxu0 %v3137_v1  ;;  %v2959_v1 = vld [vmem:[%s3240_s24 + $0xe8] ss:$16 sps:$4 sm:$0xff]  }
  0x43   : > { %1403 = vmatpush1.bf16.msra.mxu1 %v2910_v34  ;;  %1724 = vmatpush1.bf16.msra.mxu0 %v1370_v35  ;;  %v3008_v34 = vld [vmem:[%s3240_s24 + $0x204] ss:$16 sps:$4 sm:$0xff]   ;;  %v3010_v35 = vld [vmem:[%s3240_s24 + $0x20c] ss:$16 sps:$4 sm:$0xff]  }
  0x46   : > { %1405 = vmatmul.mubr.bf16.vlgmr.msra.gmra.mrb[0].mxu1 %v2912_v36  ;;  %1726 = vmatmul.mubr.bf16.vlgmr.msra.gmra.mrb[0].mxu0 %v2915_v37  ;;  %v3012_v36 = vld [vmem:[%s3240_s24 + $0x200] ss:$16 sps:$4 sm:$0xff]   ;;  %v3013_v37 = vld [vmem:[%s3240_s24 + $0x208] ss:$16 sps:$4 sm:$0xff]  }
  0x47   : > { %1412 = vmatprep.mubr.bf16.mxu1 %v2918_v38  ;;  %2640 = vmatprep.mubr.msk.bf16.mxu0 %vm1259_vm0, %v2920_v39  ;;  %v3014_v38 = vld [vmem:[%s3240_s24 + $0x224] ss:$16 sps:$4 sm:$0xff]   ;;  %v3016_v39 = vld [vmem:[%s3240_s24 + $0x22c] ss:$16 sps:$4 sm:$0xff]  }
  0x4e   : > { %1413 = vmatmul.mubr.bf16.gmra.mrb[4].mxu1 %v2922_v40  ;;  %1734 = vmatmul.mubr.bf16.gmra.mrb[4].mxu0 %v2923_v41  ;;  %v3018_v40 = vld [vmem:[%s3240_s24 + $0x220] ss:$16 sps:$4 sm:$0xff]   ;;  %v3019_v41 = vld [vmem:[%s3240_s24 + $0x228] ss:$16 sps:$4 sm:$0xff]  }
  0x4f   : > { %1420 = vmatprep.mubr.bf16.mxu1 %v2924_v42  ;;  %2641 = vmatprep.mubr.msk.bf16.mxu0 %vm1259_vm0, %v2926_v43  ;;  %v3020_v42 = vld [vmem:[%s3240_s24 + $0x244] ss:$16 sps:$4 sm:$0xff]   ;;  %v3022_v43 = vld [vmem:[%s3240_s24 + $0x24c] ss:$16 sps:$4 sm:$0xff]  }
  0x56   : > { %1421 = vmatmul.mubr.bf16.gmra.mrb[8].mxu1 %v2928_v44  ;;  %1742 = vmatmul.mubr.bf16.gmra.mrb[8].mxu0 %v2929_v45  ;;  %v3024_v44 = vld [vmem:[%s3240_s24 + $0x240] ss:$16 sps:$4 sm:$0xff]   ;;  %v3025_v45 = vld [vmem:[%s3240_s24 + $0x248] ss:$16 sps:$4 sm:$0xff]  }
  0x57   : > { %1428 = vmatprep.mubr.bf16.mxu1 %v2930_v46  ;;  %2642 = vmatprep.mubr.msk.bf16.mxu0 %vm1259_vm0, %v2932_v47  ;;  %v3026_v46 = vld [vmem:[%s3240_s24 + $0x264] ss:$16 sps:$4 sm:$0xff]   ;;  %v3028_v47 = vld [vmem:[%s3240_s24 + $0x26c] ss:$16 sps:$4 sm:$0xff]  }
  0x5e   : > { %1429 = vmatmul.mubr.bf16.gmra.mrb[12].mxu1 %v2934_v48  ;;  %1750 = vmatmul.mubr.bf16.gmra.mrb[12].mxu0 %v2935_v49  ;;  %v3030_v48 = vld [vmem:[%s3240_s24 + $0x260] ss:$16 sps:$4 sm:$0xff]   ;;  %v3031_v49 = vld [vmem:[%s3240_s24 + $0x268] ss:$16 sps:$4 sm:$0xff]  }
  0x5f   : > { %1436 = vmatprep.mubr.bf16.mxu1 %v2936_v50  ;;  %2643 = vmatprep.mubr.msk.bf16.mxu0 %vm1259_vm0, %v2938_v51  ;;  %v3032_v50 = vld [vmem:[%s3240_s24 + $0x284] ss:$16 sps:$4 sm:$0xff]   ;;  %v3034_v51 = vld [vmem:[%s3240_s24 + $0x28c] ss:$16 sps:$4 sm:$0xff]  }
  0x66   : > { %1437 = vmatmul.mubr.bf16.gmra.mrb[16].mxu1 %v2940_v52  ;;  %1758 = vmatmul.mubr.bf16.gmra.mrb[16].mxu0 %v2941_v53  ;;  %v3036_v52 = vld [vmem:[%s3240_s24 + $0x280] ss:$16 sps:$4 sm:$0xff]   ;;  %v3037_v53 = vld [vmem:[%s3240_s24 + $0x288] ss:$16 sps:$4 sm:$0xff]  }
  0x67   : > { %1444 = vmatprep.mubr.bf16.mxu1 %v2942_v54  ;;  %2644 = vmatprep.mubr.msk.bf16.mxu0 %vm1259_vm0, %v2944_v55  ;;  %v3038_v54 = vld [vmem:[%s3240_s24 + $0x2a4] ss:$16 sps:$4 sm:$0xff]   ;;  %v3040_v55 = vld [vmem:[%s3240_s24 + $0x2ac] ss:$16 sps:$4 sm:$0xff]  }
  0x6e   : > { %1445 = vmatmul.mubr.bf16.gmra.mrb[20].mxu1 %v2946_v56  ;;  %1766 = vmatmul.mubr.bf16.gmra.mrb[20].mxu0 %v2947_v57  ;;  %v3042_v56 = vld [vmem:[%s3240_s24 + $0x2a0] ss:$16 sps:$4 sm:$0xff]   ;;  %v3043_v57 = vld [vmem:[%s3240_s24 + $0x2a8] ss:$16 sps:$4 sm:$0xff]  }
  0x6f   : > { %1452 = vmatprep.mubr.bf16.mxu1 %v2948_v58  ;;  %2645 = vmatprep.mubr.msk.bf16.mxu0 %vm1259_vm0, %v2950_v59  ;;  %v3044_v58 = vld [vmem:[%s3240_s24 + $0x2c4] ss:$16 sps:$4 sm:$0xff]   ;;  %v3046_v59 = vld [vmem:[%s3240_s24 + $0x2cc] ss:$16 sps:$4 sm:$0xff]  }
  0x76   : > { %1453 = vmatmul.mubr.bf16.gmra.mrb[24].mxu1 %v2952_v60  ;;  %1774 = vmatmul.mubr.bf16.gmra.mrb[24].mxu0 %v2953_v61  ;;  %v3048_v60 = vld [vmem:[%s3240_s24 + $0x2c0] ss:$16 sps:$4 sm:$0xff]   ;;  %v3049_v61 = vld [vmem:[%s3240_s24 + $0x2c8] ss:$16 sps:$4 sm:$0xff]  }
  0x77   : > { %1460 = vmatprep.mubr.bf16.mxu1 %v2954_v62  ;;  %2646 = vmatprep.mubr.msk.bf16.mxu0 %vm1259_vm0, %v2956_v63  ;;  %v3050_v62 = vld [vmem:[%s3240_s24 + $0x2e4] ss:$16 sps:$4 sm:$0xff]   ;;  %v3052_v63 = vld [vmem:[%s3240_s24 + $0x2ec] ss:$16 sps:$4 sm:$0xff]  }
  0x7e   : > { %1461 = vmatmul.mubr.bf16.gmra.mrb[28].mxu1 %v2958_v0  ;;  %1782 = vmatmul.mubr.bf16.gmra.mrb[28].mxu0 %v2959_v1  ;;  %v3054_v0 = vld [vmem:[%s3240_s24 + $0x2e0] ss:$16 sps:$4 sm:$0xff]   ;;  %v3055_v1 = vld [vmem:[%s3240_s24 + $0x2e8] ss:$16 sps:$4 sm:$0xff]  }
  0x7f   : > { %1468 = vmatprep.mubr.bf16.mxu1 %v2960_v2  ;;  %2647 = vmatprep.mubr.msk.bf16.mxu0 %vm1259_vm0, %v2962_v3  ;;  %v3056_v2 = vld [vmem:[%s3240_s24 + $0x304] ss:$16 sps:$4 sm:$0xff]   ;;  %v3058_v3 = vld [vmem:[%s3240_s24 + $0x30c] ss:$16 sps:$4 sm:$0xff]  }
  0x86   : > { %1469 = vmatmul.mubr.bf16.gmra.mrb[32].mxu1 %v2964_v4  ;;  %1790 = vmatmul.mubr.bf16.gmra.mrb[32].mxu0 %v2965_v5  ;;  %v3060_v4 = vld [vmem:[%s3240_s24 + $0x300] ss:$16 sps:$4 sm:$0xff]   ;;  %v3061_v5 = vld [vmem:[%s3240_s24 + $0x308] ss:$16 sps:$4 sm:$0xff]  }
  0x87   : > { %1476 = vmatprep.mubr.bf16.mxu1 %v2966_v6  ;;  %2648 = vmatprep.mubr.msk.bf16.mxu0 %vm1259_vm0, %v2968_v7  ;;  %v3062_v6 = vld [vmem:[%s3240_s24 + $0x324] ss:$16 sps:$4 sm:$0xff]   ;;  %v3064_v7 = vld [vmem:[%s3240_s24 + $0x32c] ss:$16 sps:$4 sm:$0xff]  }
  0x8e   : > { %1477 = vmatmul.mubr.bf16.gmra.mrb[36].mxu1 %v2970_v8  ;;  %1798 = vmatmul.mubr.bf16.gmra.mrb[36].mxu0 %v2971_v9  ;;  %v3066_v8 = vld [vmem:[%s3240_s24 + $0x320] ss:$16 sps:$4 sm:$0xff]   ;;  %v3067_v9 = vld [vmem:[%s3240_s24 + $0x328] ss:$16 sps:$4 sm:$0xff]  }
  0x8f   : > { %1484 = vmatprep.mubr.bf16.mxu1 %v2972_v10  ;;  %2649 = vmatprep.mubr.msk.bf16.mxu0 %vm1259_vm0, %v2974_v11  ;;  %v3068_v10 = vld [vmem:[%s3240_s24 + $0x344] ss:$16 sps:$4 sm:$0xff]   ;;  %v3070_v11 = vld [vmem:[%s3240_s24 + $0x34c] ss:$16 sps:$4 sm:$0xff]  }
  0x96   : > { %1485 = vmatmul.mubr.bf16.gmra.mrb[40].mxu1 %v2976_v12  ;;  %1806 = vmatmul.mubr.bf16.gmra.mrb[40].mxu0 %v2977_v13  ;;  %v3072_v12 = vld [vmem:[%s3240_s24 + $0x340] ss:$16 sps:$4 sm:$0xff]   ;;  %v3073_v13 = vld [vmem:[%s3240_s24 + $0x348] ss:$16 sps:$4 sm:$0xff]  }
  0x97   : > { %1492 = vmatprep.mubr.bf16.mxu1 %v2978_v14  ;;  %2650 = vmatprep.mubr.msk.bf16.mxu0 %vm1259_vm0, %v2980_v15  ;;  %v3074_v14 = vld [vmem:[%s3240_s24 + $0x364] ss:$16 sps:$4 sm:$0xff]   ;;  %v3076_v15 = vld [vmem:[%s3240_s24 + $0x36c] ss:$16 sps:$4 sm:$0xff]  }
  0x9e   : > { %1493 = vmatmul.mubr.bf16.gmra.mrb[44].mxu1 %v2982_v16  ;;  %1814 = vmatmul.mubr.bf16.gmra.mrb[44].mxu0 %v2983_v17  ;;  %v3446_v16 = vld [vmem:[%s3666_s2] ss:$0 sm:$0xff] }
  0x9f   : > { %1500 = vmatprep.mubr.bf16.mxu1 %v2984_v18  ;;  %2651 = vmatprep.mubr.msk.bf16.mxu0 %vm1259_vm0, %v2986_v19 }
  0xa6   : > { %1501 = vmatmul.mubr.bf16.gmra.mrb[48].mxu1 %v2988_v20  ;;  %1822 = vmatmul.mubr.bf16.gmra.mrb[48].mxu0 %v2989_v21  ;;  %v3078_v21 = vld [vmem:[%s3240_s24 + $0x360] ss:$16 sps:$4 sm:$0xff]  }
  0xa7   : > { %1508 = vmatprep.mubr.bf16.mxu1 %v2990_v22  ;;  %2652 = vmatprep.mubr.msk.bf16.mxu0 %vm1259_vm0, %v2992_v23 }
  0xae   : > { %1509 = vmatmul.mubr.bf16.gmra.mrb[52].mxu1 %v2994_v24  ;;  %1830 = vmatmul.mubr.bf16.gmra.mrb[52].mxu0 %v2995_v25  ;;  %v3079_v24 = vld [vmem:[%s3240_s24 + $0x368] ss:$16 sps:$4 sm:$0xff]   ;;  %v3080_v25 = vld [vmem:[%s3240_s24 + $0x384] ss:$16 sps:$4 sm:$0xff]  }
  0xaf   : > { %1516 = vmatprep.mubr.bf16.mxu1 %v2996_v26  ;;  %2653 = vmatprep.mubr.msk.bf16.mxu0 %vm1259_vm0, %v2998_v27 }
  0xb6   : > { %1517 = vmatmul.mubr.bf16.gmra.mrb[56].mxu1 %v3000_v28  ;;  %1838 = vmatmul.mubr.bf16.gmra.mrb[56].mxu0 %v3001_v29 }
  0xb7   : > { %1524 = vmatprep.mubr.bf16.mxu1 %v3002_v30  ;;  %2654 = vmatprep.mubr.msk.bf16.mxu0 %vm1259_vm0, %v3004_v31  ;;  %v3082_v30 = vld [vmem:[%s3240_s24 + $0x38c] ss:$16 sps:$4 sm:$0xff]  }
  0xbe   : > { %1525 = vmatmul.mubr.bf16.gmra.mrb[60].mxu1 %v3006_v32  ;;  %1846 = vmatmul.mubr.bf16.gmra.mrb[60].mxu0 %v3007_v33 }
  0xbf   : > { %1532 = vmatprep.mubr.bf16.mxu1 %v3008_v34  ;;  %2655 = vmatprep.mubr.msk.bf16.mxu0 %vm1259_vm0, %v3010_v35 }
  0xc6   : > { %1533 = vmatmul.mubr.bf16.gmra.mrb[64].mxu1 %v3012_v36  ;;  %1854 = vmatmul.mubr.bf16.gmra.mrb[64].mxu0 %v3013_v37  ;;  %v3084_v37 = vld [vmem:[%s3240_s24 + $0x380] ss:$16 sps:$4 sm:$0xff]  }
  0xc7   : > { %1540 = vmatprep.mubr.bf16.mxu1 %v3014_v38  ;;  %2656 = vmatprep.mubr.msk.bf16.mxu0 %vm1259_vm0, %v3016_v39 }
  0xce   : > { %1541 = vmatmul.mubr.bf16.gmra.mrb[68].mxu1 %v3018_v40  ;;  %1862 = vmatmul.mubr.bf16.gmra.mrb[68].mxu0 %v3019_v41  ;;  %v3085_v40 = vld [vmem:[%s3240_s24 + $0x388] ss:$16 sps:$4 sm:$0xff]   ;;  %v3086_v41 = vld [vmem:[%s3240_s24 + $0x3a4] ss:$16 sps:$4 sm:$0xff]  }
  0xcf   : > { %1548 = vmatprep.mubr.bf16.mxu1 %v3020_v42  ;;  %2657 = vmatprep.mubr.msk.bf16.mxu0 %vm1259_vm0, %v3022_v43 }
  0xd6   : > { %1549 = vmatmul.mubr.bf16.gmra.mrb[72].mxu1 %v3024_v44  ;;  %1870 = vmatmul.mubr.bf16.gmra.mrb[72].mxu0 %v3025_v45 }
  0xd7   : > { %1556 = vmatprep.mubr.bf16.mxu1 %v3026_v46  ;;  %2658 = vmatprep.mubr.msk.bf16.mxu0 %vm1259_vm0, %v3028_v47  ;;  %v3088_v46 = vld [vmem:[%s3240_s24 + $0x3ac] ss:$16 sps:$4 sm:$0xff]  }
  0xde   : > { %1557 = vmatmul.mubr.bf16.gmra.mrb[76].mxu1 %v3030_v48  ;;  %1878 = vmatmul.mubr.bf16.gmra.mrb[76].mxu0 %v3031_v49 }
  0xdf   : > { %1564 = vmatprep.mubr.bf16.mxu1 %v3032_v50  ;;  %2659 = vmatprep.mubr.msk.bf16.mxu0 %vm1259_vm0, %v3034_v51 }
  0xe6   : > { %1565 = vmatmul.mubr.bf16.gmra.mrb[80].mxu1 %v3036_v52  ;;  %1886 = vmatmul.mubr.bf16.gmra.mrb[80].mxu0 %v3037_v53 }
  0xe7   : > { %1572 = vmatprep.mubr.bf16.mxu1 %v3038_v54  ;;  %2660 = vmatprep.mubr.msk.bf16.mxu0 %vm1259_vm0, %v3040_v55 }
  0xee   : > { %1573 = vmatmul.mubr.bf16.gmra.mrb[84].mxu1 %v3042_v56  ;;  %1894 = vmatmul.mubr.bf16.gmra.mrb[84].mxu0 %v3043_v57  ;;  %v3090_v56 = vld [vmem:[%s3240_s24 + $0x3a0] ss:$16 sps:$4 sm:$0xff]  }
  0xef   : > { %1580 = vmatprep.mubr.bf16.mxu1 %v3044_v58  ;;  %2661 = vmatprep.mubr.msk.bf16.mxu0 %vm1259_vm0, %v3046_v59  ;;  %v3091_v59 = vld [vmem:[%s3240_s24 + $0x3a8] ss:$16 sps:$4 sm:$0xff]  }
  0xf6   : > { %1581 = vmatmul.mubr.bf16.gmra.mrb[88].mxu1 %v3048_v60  ;;  %1902 = vmatmul.mubr.bf16.gmra.mrb[88].mxu0 %v3049_v61  ;;  %v3092_v60 = vld [vmem:[%s3240_s24 + $0x3c4] ss:$16 sps:$4 sm:$0xff]  }
  0xf7   : > { %1588 = vmatprep.mubr.bf16.mxu1 %v3050_v62  ;;  %2662 = vmatprep.mubr.msk.bf16.mxu0 %vm1259_vm0, %v3052_v63 }
  0xfe   : > { %1589 = vmatmul.mubr.bf16.gmra.mrb[92].mxu1 %v3054_v0  ;;  %1910 = vmatmul.mubr.bf16.gmra.mrb[92].mxu0 %v3055_v1  ;;  %v3094_v1 = vld [vmem:[%s3240_s24 + $0x3cc] ss:$16 sps:$4 sm:$0xff]  }
  0xff   : > { %1596 = vmatprep.mubr.bf16.mxu1 %v3056_v2  ;;  %2663 = vmatprep.mubr.msk.bf16.mxu0 %vm1259_vm0, %v3058_v3 }
 0x106   : > { %1597 = vmatmul.mubr.bf16.gmra.mrb[96].mxu1 %v3060_v4  ;;  %1918 = vmatmul.mubr.bf16.gmra.mrb[96].mxu0 %v3061_v5 }
 0x107   : > { %1604 = vmatprep.mubr.bf16.mxu1 %v3062_v6  ;;  %2664 = vmatprep.mubr.msk.bf16.mxu0 %vm1259_vm0, %v3064_v7 }
 0x10e   : > { %1605 = vmatmul.mubr.bf16.gmra.mrb[100].mxu1 %v3066_v8  ;;  %1926 = vmatmul.mubr.bf16.gmra.mrb[100].mxu0 %v3067_v9 }
 0x10f   : > { %1612 = vmatprep.mubr.bf16.mxu1 %v3068_v10  ;;  %2665 = vmatprep.mubr.msk.bf16.mxu0 %vm1259_vm0, %v3070_v11 }
 0x116   : > { %1613 = vmatmul.mubr.bf16.gmra.mrb[104].mxu1 %v3072_v12  ;;  %1934 = vmatmul.mubr.bf16.gmra.mrb[104].mxu0 %v3073_v13 }
 0x117   : > { %1620 = vmatprep.mubr.bf16.mxu1 %v3074_v14  ;;  %2666 = vmatprep.mubr.msk.bf16.mxu0 %vm1259_vm0, %v3076_v15  ;;  %v3096_v14 = vld [vmem:[%s3240_s24 + $0x3c0] ss:$16 sps:$4 sm:$0xff]  }
 0x119   : > { %v1406_v17 = vpop.f32.mrb[0].mxu1  ;;  %v1727_v19 = vpop.f32.mrb[0].mxu0 }
 0x11a   : > { %v1407_v18 = vadd.f32 %v3446_v16, %v1406_v17  ;;  %v1408_v20 = vpop.f32.mrb[1].mxu1  ;;  %v1729_v22 = vpop.f32.mrb[1].mxu0 }
 0x11b   : > { %v1409_v23 = vpop.f32.mrb[2].mxu1  ;;  %v1730_v28 = vpop.f32.mrb[2].mxu0 }
 0x11c   : > { %v1728_v26 = vadd.f32 %v1727_v19, %v1407_v18  ;;  %v1410_v27 = vadd.f32 %v3446_v16, %v1409_v23  ;;  %v1411_v29 = vpop.f32.mrb[3].mxu1  ;;  %v1732_v31 = vpop.f32.mrb[3].mxu0  ;;  %v3097_v18 = vld [vmem:[%s3240_s24 + $0x3c8] ss:$16 sps:$4 sm:$0xff]   ;;  %v3098_v19 = vld [vmem:[%s3240_s24 + $0x3e4] ss:$16 sps:$4 sm:$0xff]  }
 0x11e   : > { %v1731_v32 = vadd.f32 %v1730_v28, %v1410_v27  ;;  %1621 = vmatmul.mubr.bf16.gmra.mrb[108].mxu1 %v3078_v21  ;;  %1942 = vmatmul.mubr.bf16.gmra.mrb[108].mxu0 %v3079_v24  ;;  %v2014_v49 = vmax.f32 %v1728_v26, 0.0  ;;  %v3100_v24 = vld [vmem:[%s3240_s24 + $0x3ec] ss:$16 sps:$4 sm:$0xff]   ;;  %v3102_v27 = vld [vmem:[%s3240_s24 + $0x3e0] ss:$16 sps:$4 sm:$0xff]  }
 0x11f   : > { %1628 = vmatprep.mubr.bf16.mxu1 %v3080_v25  ;;  %2667 = vmatprep.mubr.msk.bf16.mxu0 %vm1259_vm0, %v3082_v30 }
 0x120   : > { %v2015_v3 = vmax.f32 %v1731_v32, 0.0 }
 0x121   : > { %v1414_v33 = vpop.f32.mrb[4].mxu1  ;;  %v1735_v35 = vpop.f32.mrb[4].mxu0 }
 0x122   : > { %v1415_v34 = vadd.f32 %v3446_v16, %v1414_v33  ;;  %v1416_v36 = vpop.f32.mrb[5].mxu1  ;;  %v1737_v38 = vpop.f32.mrb[5].mxu0 }
 0x123   : > { %v1417_v39 = vpop.f32.mrb[6].mxu1  ;;  %v1738_v44 = vpop.f32.mrb[6].mxu0  ;;  %v3104_v36 = vld [vmem:[%s3240_s24 + $0x404] ss:$16 sps:$4 sm:$0xff]  }
 0x124   : > { %v1736_v42 = vadd.f32 %v1735_v35, %v1415_v34  ;;  %v1418_v43 = vadd.f32 %v3446_v16, %v1417_v39  ;;  %v1419_v45 = vpop.f32.mrb[7].mxu1  ;;  %v1740_v47 = vpop.f32.mrb[7].mxu0  ;;  %v3103_v35 = vld [vmem:[%s3240_s24 + $0x3e8] ss:$16 sps:$4 sm:$0xff]  }
 0x126   : > { %v1739_v48 = vadd.f32 %v1738_v44, %v1418_v43  ;;  %1629 = vmatmul.mubr.bf16.gmra.mrb[112].mxu1 %v3084_v37  ;;  %1950 = vmatmul.mubr.bf16.gmra.mrb[112].mxu0 %v3085_v40  ;;  %v2016_v6 = vmax.f32 %v1736_v42, 0.0  ;;  %v3106_v44 = vld [vmem:[%s3240_s24 + $0x40c] ss:$16 sps:$4 sm:$0xff]  }
 0x127   : > { %1636 = vmatprep.mubr.bf16.mxu1 %v3086_v41  ;;  %2668 = vmatprep.mubr.msk.bf16.mxu0 %vm1259_vm0, %v3088_v46 }
 0x128   : > { %v2017_v50 = vmax.f32 %v1739_v48, 0.0 }
 0x129   : > { %v1422_v51 = vpop.f32.mrb[8].mxu1  ;;  %v1743_v54 = vpop.f32.mrb[8].mxu0 }
 0x12a   : > { %v2086_v52 = vmax.f32 %v2014_v49, %v2017_v50  ;;  %v1423_v53 = vadd.f32 %v3446_v16, %v1422_v51  ;;  %v1424_v55 = vpop.f32.mrb[9].mxu1  ;;  %v1745_v57 = vpop.f32.mrb[9].mxu0 }
 0x12b   : > { %v1425_v58 = vpop.f32.mrb[10].mxu1  ;;  %v1746_v63 = vpop.f32.mrb[10].mxu0  ;;  %v3108_v57 = vld [vmem:[%s3240_s24 + $0x400] ss:$16 sps:$4 sm:$0xff]  }
 0x12c   : > { %2123 = vst.msk [vmem:[#allocation2] sm:$0xff] %vm2122_vm2, %v2086_v52  ;;  %v1744_v61 = vadd.f32 %v1743_v54, %v1423_v53  ;;  %v1426_v62 = vadd.f32 %v3446_v16, %v1425_v58  ;;  %v1427_v0 = vpop.f32.mrb[11].mxu1  ;;  %v1748_v2 = vpop.f32.mrb[11].mxu0 }
 0x12e   : > { %v2018_v4 = vmax.f32 %v1744_v61, 0.0  ;;  %v1747_v5 = vadd.f32 %v1746_v63, %v1426_v62  ;;  %1637 = vmatmul.mubr.bf16.gmra.mrb[116].mxu1 %v3090_v56  ;;  %1958 = vmatmul.mubr.bf16.gmra.mrb[116].mxu0 %v3091_v59  ;;  %v3109_v61 = vld [vmem:[%s3240_s24 + $0x408] ss:$16 sps:$4 sm:$0xff]   ;;  %v3110_v62 = vld [vmem:[%s3240_s24 + $0x424] ss:$16 sps:$4 sm:$0xff]  }
 0x12f   : > { %1644 = vmatprep.mubr.bf16.mxu1 %v3092_v60  ;;  %2669 = vmatprep.mubr.msk.bf16.mxu0 %vm1259_vm0, %v3094_v1 }
 0x130   : > { %v2087_v7 = vmax.f32 %v2015_v3, %v2018_v4  ;;  %v2019_v8 = vmax.f32 %v1747_v5, 0.0  ;;  %v3112_v3 = vld [vmem:[%s3240_s24 + $0x42c] ss:$16 sps:$4 sm:$0xff]  }
 0x131   : > { %v1430_v9 = vpop.f32.mrb[12].mxu1  ;;  %v1751_v12 = vpop.f32.mrb[12].mxu0 }
 0x132   : > { %2124 = vst.msk [vmem:[#allocation2 + $0x8] sm:$0xff] %vm2122_vm2, %v2087_v7  ;;  %v2088_v10 = vmax.f32 %v2016_v6, %v2019_v8  ;;  %v1431_v11 = vadd.f32 %v3446_v16, %v1430_v9  ;;  %v1432_v13 = vpop.f32.mrb[13].mxu1  ;;  %v1753_v15 = vpop.f32.mrb[13].mxu0 }
 0x133   : > { %v1433_v17 = vpop.f32.mrb[14].mxu1  ;;  %v1754_v22 = vpop.f32.mrb[14].mxu0 }
 0x134   : > { %2125 = vst.msk [vmem:[#allocation2 + $0x10] sm:$0xff] %vm2122_vm2, %v2088_v10  ;;  %v1752_v20 = vadd.f32 %v1751_v12, %v1431_v11  ;;  %v1434_v21 = vadd.f32 %v3446_v16, %v1433_v17  ;;  %v1435_v23 = vpop.f32.mrb[15].mxu1  ;;  %v1756_v25 = vpop.f32.mrb[15].mxu0  ;;  %v3114_v17 = vld [vmem:[%s3240_s24 + $0x420] ss:$16 sps:$4 sm:$0xff]  }
 0x136   : > { %v3479_v26 = vadd.f32 %v1754_v22, %v1434_v21  ;;  %1645 = vmatmul.mubr.bf16.gmra.mrb[120].mxu1 %v3096_v14  ;;  %1966 = vmatmul.mubr.bf16.gmra.mrb[120].mxu0 %v3097_v18  ;;  %v2020_v51 = vmax.f32 %v1752_v20, 0.0  ;;  %v3115_v20 = vld [vmem:[%s3240_s24 + $0x428] ss:$16 sps:$4 sm:$0xff]   ;;  %v3116_v21 = vld [vmem:[%s3240_s24 + $0x444] ss:$16 sps:$4 sm:$0xff]  }
 0x137   : > { %1652 = vmatprep.mubr.bf16.mxu1 %v3098_v19  ;;  %2670 = vmatprep.mubr.msk.bf16.mxu0 %vm1259_vm0, %v3100_v24 }
 0x138   : > { %v2021_v5 = vmax.f32 %v3479_v26, 0.0  ;;  %v3118_v26 = vld [vmem:[%s3240_s24 + $0x44c] ss:$16 sps:$4 sm:$0xff]  }
 0x139   : > { %v2159_v28 = vld [vmem:[#allocation2] ss:$2 sm:$0xff]  ;;  %v2207_v29 = vld [vmem:[#allocation2 + $0x1] ss:$2 sm:$0xff]  ;;  %v1438_v30 = vpop.f32.mrb[16].mxu1  ;;  %v1759_v33 = vpop.f32.mrb[16].mxu0 }
 0x13a   : > { %v2254_v31 = vmax.f32 %v2159_v28, %v2207_v29  ;;  %v1439_v32 = vadd.f32 %v3446_v16, %v1438_v30  ;;  %v1440_v34 = vpop.f32.mrb[17].mxu1  ;;  %v1761_v42 = vpop.f32.mrb[17].mxu0  ;;  %v3120_v29 = vld [vmem:[%s3240_s24 + $0x440] ss:$16 sps:$4 sm:$0xff]  }
 0x13b   : > { %v2161_v37 = vld [vmem:[#allocation2 + $0x10] ss:$2 sm:$0xf]  ;;  %v2209_v38 = vld [vmem:[#allocation2 + $0x11] ss:$2 sm:$0xf] }
 0x13c   : > { %v2701_v39 = vpack.c.bf16 %v2254_v31, %v2254_v31  ;;  %v2255_v40 = vmax.f32 %v2161_v37, %v2209_v38  ;;  %v1760_v41 = vadd.f32 %v1759_v33, %v1439_v32  ;;  %v1441_v43 = vpop.f32.mrb[18].mxu1  ;;  %v1762_v46 = vpop.f32.mrb[18].mxu0  ;;  %v3121_v37 = vld [vmem:[%s3240_s24 + $0x448] ss:$16 sps:$4 sm:$0xff]   ;;  %v3122_v38 = vld [vmem:[%s3240_s24 + $0x464] ss:$16 sps:$4 sm:$0xff]  }
 0x13d   : > { %v1442_v45 = vadd.f32 %v3446_v16, %v1441_v43  ;;  %v1443_v47 = vpop.f32.mrb[19].mxu1  ;;  %v1764_v49 = vpop.f32.mrb[19].mxu0 }
 0x13e   : > { %2375 = vst.msk [vmem:[%s3490_s13] sm:$0xf] %vm2374_vm3, %v2701_v39  ;;  %v2702_v48 = vpack.c.bf16 %v2255_v40, %v2255_v40  ;;  %1653 = vmatmul.mubr.bf16.gmra.mrb[124].mxu1 %v3102_v27  ;;  %1974 = vmatmul.mubr.bf16.gmra.mrb[124].mxu0 %v3103_v35  ;;  %v2022_v8 = vmax.f32 %v1760_v41, 0.0 }
 0x13f   : > { %v1763_v50 = vadd.f32 %v1762_v46, %v1442_v45  ;;  %1660 = vmatprep.mubr.bf16.mxu1 %v3104_v36  ;;  %2671 = vmatprep.mubr.msk.bf16.mxu0 %vm1259_vm0, %v3106_v44  ;;  %v3124_v46 = vld [vmem:[%s3240_s24 + $0x46c] ss:$16 sps:$4 sm:$0xff]  }
 0x140   : > { %2377 = vst.msk [vmem:[%s3490_s13 + $0x4] sm:$0x3] %vm2376_vm4, %v2702_v48 }
 0x141   : > { %v2023_v52 = vmax.f32 %v1763_v50, 0.0  ;;  %v1446_v53 = vpop.f32.mrb[20].mxu1  ;;  %v1767_v55 = vpop.f32.mrb[20].mxu0 }
 0x142   : > { %v1447_v54 = vadd.f32 %v3446_v16, %v1446_v53  ;;  %v1448_v56 = vpop.f32.mrb[21].mxu1  ;;  %v1769_v59 = vpop.f32.mrb[21].mxu0 }
 0x143   : > { %v2089_v58 = vmax.f32 %v2020_v51, %v2023_v52  ;;  %v1449_v60 = vpop.f32.mrb[22].mxu1  ;;  %v1770_v1 = vpop.f32.mrb[22].mxu0  ;;  %v3126_v59 = vld [vmem:[%s3240_s24 + $0x460] ss:$16 sps:$4 sm:$0xff]  }
 0x144   : > { %v1768_v63 = vadd.f32 %v1767_v55, %v1447_v54  ;;  %v1450_v0 = vadd.f32 %v3446_v16, %v1449_v60  ;;  %v1451_v2 = vpop.f32.mrb[23].mxu1  ;;  %v1772_v4 = vpop.f32.mrb[23].mxu0 }
 0x145   : > { %2126 = vst.msk [vmem:[#allocation2 + $0x18] sm:$0xff] %vm2122_vm2, %v2089_v58 }
 0x146   : > { %v2024_v6 = vmax.f32 %v1768_v63, 0.0  ;;  %v1771_v7 = vadd.f32 %v1770_v1, %v1450_v0  ;;  %1661 = vmatmul.mubr.bf16.gmra.mrb[128].mxu1 %v3108_v57  ;;  %1982 = vmatmul.mubr.bf16.gmra.mrb[128].mxu0 %v3109_v61  ;;  %v3127_v63 = vld [vmem:[%s3240_s24 + $0x468] ss:$16 sps:$4 sm:$0xff]  }
 0x147   : > { %1668 = vmatprep.mubr.bf16.mxu1 %v3110_v62  ;;  %2672 = vmatprep.mubr.msk.bf16.mxu0 %vm1259_vm0, %v3112_v3 }
 0x148   : > { %v2090_v9 = vmax.f32 %v2021_v5, %v2024_v6  ;;  %v2025_v10 = vmax.f32 %v1771_v7, 0.0 }
 0x149   : > { %v1454_v11 = vpop.f32.mrb[24].mxu1  ;;  %v1775_v14 = vpop.f32.mrb[24].mxu0 }
 0x14a   : > { %2127 = vst.msk [vmem:[#allocation2 + $0x20] sm:$0xff] %vm2122_vm2, %v2090_v9  ;;  %v2091_v12 = vmax.f32 %v2022_v8, %v2025_v10  ;;  %v1455_v13 = vadd.f32 %v3446_v16, %v1454_v11  ;;  %v1456_v15 = vpop.f32.mrb[25].mxu1  ;;  %v1777_v18 = vpop.f32.mrb[25].mxu0 }
 0x14b   : > { %v1457_v19 = vpop.f32.mrb[26].mxu1  ;;  %v1778_v24 = vpop.f32.mrb[26].mxu0 }
 0x14c   : > { %2128 = vst.msk [vmem:[#allocation2 + $0x28] sm:$0xff] %vm2122_vm2, %v2091_v12  ;;  %v1776_v22 = vadd.f32 %v1775_v14, %v1455_v13  ;;  %v1458_v23 = vadd.f32 %v3446_v16, %v1457_v19  ;;  %v1459_v25 = vpop.f32.mrb[27].mxu1  ;;  %v1780_v27 = vpop.f32.mrb[27].mxu0 }
 0x14e   : > { %v1779_v28 = vadd.f32 %v1778_v24, %v1458_v23  ;;  %1669 = vmatmul.mubr.bf16.gmra.mrb[132].mxu1 %v3114_v17  ;;  %1990 = vmatmul.mubr.bf16.gmra.mrb[132].mxu0 %v3115_v20  ;;  %v2026_v53 = vmax.f32 %v1776_v22, 0.0 }
 0x14f   : > { %1676 = vmatprep.mubr.bf16.mxu1 %v3116_v21  ;;  %2673 = vmatprep.mubr.msk.bf16.mxu0 %vm1259_vm0, %v3118_v26 }
 0x150   : > { %v2027_v5 = vmax.f32 %v1779_v28, 0.0 }
 0x151   : > { %v2163_v30 = vld [vmem:[#allocation2 + $0x18] ss:$2 sm:$0xff]  ;;  %v2211_v31 = vld [vmem:[#allocation2 + $0x19] ss:$2 sm:$0xff]  ;;  %v1462_v32 = vpop.f32.mrb[28].mxu1  ;;  %v1783_v35 = vpop.f32.mrb[28].mxu0 }
 0x152   : > { %v2256_v33 = vmax.f32 %v2163_v30, %v2211_v31  ;;  %v1463_v34 = vadd.f32 %v3446_v16, %v1462_v32  ;;  %v1464_v36 = vpop.f32.mrb[29].mxu1  ;;  %v1785_v44 = vpop.f32.mrb[29].mxu0 }
 0x153   : > { %v2165_v39 = vld [vmem:[#allocation2 + $0x28] ss:$2 sm:$0xf]  ;;  %v2213_v40 = vld [vmem:[#allocation2 + $0x29] ss:$2 sm:$0xf] }
 0x154   : > { %v2703_v41 = vpack.c.bf16 %v2256_v33, %v2256_v33  ;;  %v2257_v42 = vmax.f32 %v2165_v39, %v2213_v40  ;;  %v1784_v43 = vadd.f32 %v1783_v35, %v1463_v34  ;;  %v1465_v45 = vpop.f32.mrb[30].mxu1  ;;  %v1786_v48 = vpop.f32.mrb[30].mxu0 }
 0x155   : > { %v1466_v47 = vadd.f32 %v3446_v16, %v1465_v45  ;;  %v1467_v49 = vpop.f32.mrb[31].mxu1  ;;  %v1788_v51 = vpop.f32.mrb[31].mxu0 }
 0x156   : > { %2378 = vst.msk [vmem:[%s3490_s13 + $0x8] sm:$0xf] %vm2374_vm3, %v2703_v41  ;;  %v2704_v50 = vpack.c.bf16 %v2257_v42, %v2257_v42  ;;  %1677 = vmatmul.mubr.bf16.gmra.mrb[136].mxu1 %v3120_v29  ;;  %1998 = vmatmul.mubr.bf16.gmra.mrb[136].mxu0 %v3121_v37  ;;  %v2028_v8 = vmax.f32 %v1784_v43, 0.0 }
 0x157   : > { %v1787_v52 = vadd.f32 %v1786_v48, %v1466_v47  ;;  %1684 = vmatprep.mubr.bf16.mxu1 %v3122_v38  ;;  %2674 = vmatprep.mubr.msk.bf16.mxu0 %vm1259_vm0, %v3124_v46 }
 0x158   : > { %2379 = vst.msk [vmem:[%s3490_s13 + $0xc] sm:$0x3] %vm2376_vm4, %v2704_v50 }
 0x159   : > { %v2029_v54 = vmax.f32 %v1787_v52, 0.0  ;;  %v1470_v55 = vpop.f32.mrb[32].mxu1  ;;  %v1791_v57 = vpop.f32.mrb[32].mxu0 }
 0x15a   : > { %v1471_v56 = vadd.f32 %v3446_v16, %v1470_v55  ;;  %v1472_v58 = vpop.f32.mrb[33].mxu1  ;;  %v1793_v61 = vpop.f32.mrb[33].mxu0 }
 0x15b   : > { %v2092_v60 = vmax.f32 %v2026_v53, %v2029_v54  ;;  %v1473_v62 = vpop.f32.mrb[34].mxu1  ;;  %v1794_v2 = vpop.f32.mrb[34].mxu0 }
 0x15c   : > { %v1792_v0 = vadd.f32 %v1791_v57, %v1471_v56  ;;  %v1474_v1 = vadd.f32 %v3446_v16, %v1473_v62  ;;  %v1475_v3 = vpop.f32.mrb[35].mxu1  ;;  %v1796_v4 = vpop.f32.mrb[35].mxu0 }
 0x15d   : > { %2129 = vst.msk [vmem:[#allocation2 + $0x30] sm:$0xff] %vm2122_vm2, %v2092_v60 }
 0x15e   : > { %v2030_v6 = vmax.f32 %v1792_v0, 0.0  ;;  %v1795_v7 = vadd.f32 %v1794_v2, %v1474_v1  ;;  %1685 = vmatmul.mubr.bf16.gmra.mrb[140].mxu1 %v3126_v59  ;;  %2006 = vmatmul.mubr.bf16.gmra.mrb[140].mxu0 %v3127_v63 }
 0x160   : > { %v2093_v9 = vmax.f32 %v2027_v5, %v2030_v6  ;;  %v2031_v10 = vmax.f32 %v1795_v7, 0.0 }
 0x161   : > { %v1478_v11 = vpop.f32.mrb[36].mxu1  ;;  %v1799_v14 = vpop.f32.mrb[36].mxu0 }
 0x162   : > { %2130 = vst.msk [vmem:[#allocation2 + $0x38] sm:$0xff] %vm2122_vm2, %v2093_v9  ;;  %v2094_v12 = vmax.f32 %v2028_v8, %v2031_v10  ;;  %v1479_v13 = vadd.f32 %v3446_v16, %v1478_v11  ;;  %v1480_v15 = vpop.f32.mrb[37].mxu1  ;;  %v1801_v17 = vpop.f32.mrb[37].mxu0 }
 0x163   : > { %v1481_v18 = vpop.f32.mrb[38].mxu1  ;;  %v1802_v21 = vpop.f32.mrb[38].mxu0 }
 0x164   : > { %2131 = vst.msk [vmem:[#allocation2 + $0x40] sm:$0xff] %vm2122_vm2, %v2094_v12  ;;  %v1800_v19 = vadd.f32 %v1799_v14, %v1479_v13  ;;  %v1482_v20 = vadd.f32 %v3446_v16, %v1481_v18  ;;  %v1483_v22 = vpop.f32.mrb[39].mxu1  ;;  %v1804_v23 = vpop.f32.mrb[39].mxu0 }
 0x166   : > { %v1803_v24 = vadd.f32 %v1802_v21, %v1482_v20  ;;  %v2032_v45 = vmax.f32 %v1800_v19, 0.0 }
 0x168   : > { %v2033_v59 = vmax.f32 %v1803_v24, 0.0 }
 0x169   : > { %v2167_v25 = vld [vmem:[#allocation2 + $0x30] ss:$2 sm:$0xff]  ;;  %v2215_v26 = vld [vmem:[#allocation2 + $0x31] ss:$2 sm:$0xff]  ;;  %v1486_v27 = vpop.f32.mrb[40].mxu1  ;;  %v1807_v30 = vpop.f32.mrb[40].mxu0 }
 0x16a   : > { %v2258_v28 = vmax.f32 %v2167_v25, %v2215_v26  ;;  %v1487_v29 = vadd.f32 %v3446_v16, %v1486_v27  ;;  %v1488_v31 = vpop.f32.mrb[41].mxu1  ;;  %v1809_v37 = vpop.f32.mrb[41].mxu0 }
 0x16b   : > { %v2169_v32 = vld [vmem:[#allocation2 + $0x40] ss:$2 sm:$0xf]  ;;  %v2217_v33 = vld [vmem:[#allocation2 + $0x41] ss:$2 sm:$0xf] }
 0x16c   : > { %v2705_v34 = vpack.c.bf16 %v2258_v28, %v2258_v28  ;;  %v2259_v35 = vmax.f32 %v2169_v32, %v2217_v33  ;;  %v1808_v36 = vadd.f32 %v1807_v30, %v1487_v29  ;;  %v1489_v38 = vpop.f32.mrb[42].mxu1  ;;  %v1810_v40 = vpop.f32.mrb[42].mxu0 }
 0x16d   : > { %v1490_v39 = vadd.f32 %v3446_v16, %v1489_v38  ;;  %v1491_v41 = vpop.f32.mrb[43].mxu1  ;;  %v1812_v43 = vpop.f32.mrb[43].mxu0 }
 0x16e   : > { %2380 = vst.msk [vmem:[%s3490_s13 + $0x10] sm:$0xf] %vm2374_vm3, %v2705_v34  ;;  %v2706_v42 = vpack.c.bf16 %v2259_v35, %v2259_v35  ;;  %v2034_v62 = vmax.f32 %v1808_v36, 0.0 }
 0x16f   : > { %v1811_v44 = vadd.f32 %v1810_v40, %v1490_v39 }
 0x170   : > { %2381 = vst.msk [vmem:[%s3490_s13 + $0x14] sm:$0x3] %vm2376_vm4, %v2706_v42 }
 0x171   : > { %v2035_v46 = vmax.f32 %v1811_v44, 0.0  ;;  %v1494_v47 = vpop.f32.mrb[44].mxu1  ;;  %v1815_v49 = vpop.f32.mrb[44].mxu0 }
 0x172   : > { %v1495_v48 = vadd.f32 %v3446_v16, %v1494_v47  ;;  %v1496_v50 = vpop.f32.mrb[45].mxu1  ;;  %v1817_v52 = vpop.f32.mrb[45].mxu0 }
 0x173   : > { %v2095_v51 = vmax.f32 %v2032_v45, %v2035_v46  ;;  %v1497_v53 = vpop.f32.mrb[46].mxu1  ;;  %v1818_v56 = vpop.f32.mrb[46].mxu0 }
 0x174   : > { %v1816_v54 = vadd.f32 %v1815_v49, %v1495_v48  ;;  %v1498_v55 = vadd.f32 %v3446_v16, %v1497_v53  ;;  %v1499_v57 = vpop.f32.mrb[47].mxu1  ;;  %v1820_v58 = vpop.f32.mrb[47].mxu0 }
 0x175   : > { %2132 = vst.msk [vmem:[#allocation2 + $0x48] sm:$0xff] %vm2122_vm2, %v2095_v51 }
 0x176   : > { %v2036_v60 = vmax.f32 %v1816_v54, 0.0  ;;  %v1819_v61 = vadd.f32 %v1818_v56, %v1498_v55 }
 0x178   : > { %v2096_v63 = vmax.f32 %v2033_v59, %v2036_v60  ;;  %v2037_v0 = vmax.f32 %v1819_v61, 0.0 }
 0x179   : > { %v1502_v1 = vpop.f32.mrb[48].mxu1  ;;  %v1823_v4 = vpop.f32.mrb[48].mxu0 }
 0x17a   : > { %2133 = vst.msk [vmem:[#allocation2 + $0x50] sm:$0xff] %vm2122_vm2, %v2096_v63  ;;  %v2097_v2 = vmax.f32 %v2034_v62, %v2037_v0  ;;  %v1503_v3 = vadd.f32 %v3446_v16, %v1502_v1  ;;  %v1504_v5 = vpop.f32.mrb[49].mxu1  ;;  %v1825_v6 = vpop.f32.mrb[49].mxu0 }
 0x17b   : > { %v1505_v7 = vpop.f32.mrb[50].mxu1  ;;  %v1826_v10 = vpop.f32.mrb[50].mxu0 }
 0x17c   : > { %2134 = vst.msk [vmem:[#allocation2 + $0x58] sm:$0xff] %vm2122_vm2, %v2097_v2  ;;  %v1824_v8 = vadd.f32 %v1823_v4, %v1503_v3  ;;  %v1506_v9 = vadd.f32 %v3446_v16, %v1505_v7  ;;  %v1507_v11 = vpop.f32.mrb[51].mxu1  ;;  %v1828_v12 = vpop.f32.mrb[51].mxu0 }
 0x17e   : > { %v1827_v13 = vadd.f32 %v1826_v10, %v1506_v9  ;;  %v2038_v35 = vmax.f32 %v1824_v8, 0.0 }
 0x180   : > { %v2039_v49 = vmax.f32 %v1827_v13, 0.0 }
 0x181   : > { %v2171_v14 = vld [vmem:[#allocation2 + $0x48] ss:$2 sm:$0xff]  ;;  %v2219_v15 = vld [vmem:[#allocation2 + $0x49] ss:$2 sm:$0xff]  ;;  %v1510_v17 = vpop.f32.mrb[52].mxu1  ;;  %v1831_v20 = vpop.f32.mrb[52].mxu0 }
 0x182   : > { %v2260_v18 = vmax.f32 %v2171_v14, %v2219_v15  ;;  %v1511_v19 = vadd.f32 %v3446_v16, %v1510_v17  ;;  %v1512_v21 = vpop.f32.mrb[53].mxu1  ;;  %v1833_v27 = vpop.f32.mrb[53].mxu0 }
 0x183   : > { %v2173_v22 = vld [vmem:[#allocation2 + $0x58] ss:$2 sm:$0xf]  ;;  %v2221_v23 = vld [vmem:[#allocation2 + $0x59] ss:$2 sm:$0xf] }
 0x184   : > { %v2707_v24 = vpack.c.bf16 %v2260_v18, %v2260_v18  ;;  %v2261_v25 = vmax.f32 %v2173_v22, %v2221_v23  ;;  %v1832_v26 = vadd.f32 %v1831_v20, %v1511_v19  ;;  %v1513_v28 = vpop.f32.mrb[54].mxu1  ;;  %v1834_v30 = vpop.f32.mrb[54].mxu0 }
 0x185   : > { %v1514_v29 = vadd.f32 %v3446_v16, %v1513_v28  ;;  %v1515_v31 = vpop.f32.mrb[55].mxu1  ;;  %v1836_v33 = vpop.f32.mrb[55].mxu0 }
 0x186   : > { %2382 = vst.msk [vmem:[%s3490_s13 + $0x18] sm:$0xf] %vm2374_vm3, %v2707_v24  ;;  %v2708_v32 = vpack.c.bf16 %v2261_v25, %v2261_v25  ;;  %v2040_v52 = vmax.f32 %v1832_v26, 0.0 }
 0x187   : > { %v1835_v34 = vadd.f32 %v1834_v30, %v1514_v29 }
 0x188   : > { %2383 = vst.msk [vmem:[%s3490_s13 + $0x1c] sm:$0x3] %vm2376_vm4, %v2708_v32 }
 0x189   : > { %v2041_v36 = vmax.f32 %v1835_v34, 0.0  ;;  %v1518_v37 = vpop.f32.mrb[56].mxu1  ;;  %v1839_v39 = vpop.f32.mrb[56].mxu0 }
 0x18a   : > { %v1519_v38 = vadd.f32 %v3446_v16, %v1518_v37  ;;  %v1520_v40 = vpop.f32.mrb[57].mxu1  ;;  %v1841_v42 = vpop.f32.mrb[57].mxu0 }
 0x18b   : > { %v2098_v41 = vmax.f32 %v2038_v35, %v2041_v36  ;;  %v1521_v43 = vpop.f32.mrb[58].mxu1  ;;  %v1842_v46 = vpop.f32.mrb[58].mxu0 }
 0x18c   : > { %v1840_v44 = vadd.f32 %v1839_v39, %v1519_v38  ;;  %v1522_v45 = vadd.f32 %v3446_v16, %v1521_v43  ;;  %v1523_v47 = vpop.f32.mrb[59].mxu1  ;;  %v1844_v48 = vpop.f32.mrb[59].mxu0 }
 0x18d   : > { %2135 = vst.msk [vmem:[#allocation2 + $0x60] sm:$0xff] %vm2122_vm2, %v2098_v41 }
 0x18e   : > { %v2042_v50 = vmax.f32 %v1840_v44, 0.0  ;;  %v1843_v51 = vadd.f32 %v1842_v46, %v1522_v45 }
 0x190   : > { %v2099_v53 = vmax.f32 %v2039_v49, %v2042_v50  ;;  %v2043_v54 = vmax.f32 %v1843_v51, 0.0 }
 0x191   : > { %v1526_v55 = vpop.f32.mrb[60].mxu1  ;;  %v1847_v58 = vpop.f32.mrb[60].mxu0 }
 0x192   : > { %2136 = vst.msk [vmem:[#allocation2 + $0x68] sm:$0xff] %vm2122_vm2, %v2099_v53  ;;  %v2100_v56 = vmax.f32 %v2040_v52, %v2043_v54  ;;  %v1527_v57 = vadd.f32 %v3446_v16, %v1526_v55  ;;  %v1528_v59 = vpop.f32.mrb[61].mxu1  ;;  %v1849_v60 = vpop.f32.mrb[61].mxu0 }
 0x193   : > { %v1529_v61 = vpop.f32.mrb[62].mxu1  ;;  %v1850_v0 = vpop.f32.mrb[62].mxu0 }
 0x194   : > { %2137 = vst.msk [vmem:[#allocation2 + $0x70] sm:$0xff] %vm2122_vm2, %v2100_v56  ;;  %v1848_v62 = vadd.f32 %v1847_v58, %v1527_v57  ;;  %v1530_v63 = vadd.f32 %v3446_v16, %v1529_v61  ;;  %v1531_v1 = vpop.f32.mrb[63].mxu1  ;;  %v1852_v2 = vpop.f32.mrb[63].mxu0 }
 0x196   : > { %v1851_v3 = vadd.f32 %v1850_v0, %v1530_v63  ;;  %v2044_v25 = vmax.f32 %v1848_v62, 0.0 }
 0x198   : > { %v2045_v39 = vmax.f32 %v1851_v3, 0.0 }
 0x199   : > { %v2175_v4 = vld [vmem:[#allocation2 + $0x60] ss:$2 sm:$0xff]  ;;  %v2223_v5 = vld [vmem:[#allocation2 + $0x61] ss:$2 sm:$0xff]  ;;  %v1534_v6 = vpop.f32.mrb[64].mxu1  ;;  %v1855_v9 = vpop.f32.mrb[64].mxu0 }
 0x19a   : > { %v2262_v7 = vmax.f32 %v2175_v4, %v2223_v5  ;;  %v1535_v8 = vadd.f32 %v3446_v16, %v1534_v6  ;;  %v1536_v10 = vpop.f32.mrb[65].mxu1  ;;  %v1857_v17 = vpop.f32.mrb[65].mxu0 }
 0x19b   : > { %v2177_v11 = vld [vmem:[#allocation2 + $0x70] ss:$2 sm:$0xf]  ;;  %v2225_v12 = vld [vmem:[#allocation2 + $0x71] ss:$2 sm:$0xf] }
 0x19c   : > { %v2709_v13 = vpack.c.bf16 %v2262_v7, %v2262_v7  ;;  %v2263_v14 = vmax.f32 %v2177_v11, %v2225_v12  ;;  %v1856_v15 = vadd.f32 %v1855_v9, %v1535_v8  ;;  %v1537_v18 = vpop.f32.mrb[66].mxu1  ;;  %v1858_v20 = vpop.f32.mrb[66].mxu0 }
 0x19d   : > { %v1538_v19 = vadd.f32 %v3446_v16, %v1537_v18  ;;  %v1539_v21 = vpop.f32.mrb[67].mxu1  ;;  %v1860_v23 = vpop.f32.mrb[67].mxu0 }
 0x19e   : > { %2384 = vst.msk [vmem:[%s3490_s13 + $0x20] sm:$0xf] %vm2374_vm3, %v2709_v13  ;;  %v2710_v22 = vpack.c.bf16 %v2263_v14, %v2263_v14  ;;  %v2046_v42 = vmax.f32 %v1856_v15, 0.0 }
 0x19f   : > { %v1859_v24 = vadd.f32 %v1858_v20, %v1538_v19 }
 0x1a0   : > { %2385 = vst.msk [vmem:[%s3490_s13 + $0x24] sm:$0x3] %vm2376_vm4, %v2710_v22 }
 0x1a1   : > { %v2047_v26 = vmax.f32 %v1859_v24, 0.0  ;;  %v1542_v27 = vpop.f32.mrb[68].mxu1  ;;  %v1863_v29 = vpop.f32.mrb[68].mxu0 }
 0x1a2   : > { %v1543_v28 = vadd.f32 %v3446_v16, %v1542_v27  ;;  %v1544_v30 = vpop.f32.mrb[69].mxu1  ;;  %v1865_v32 = vpop.f32.mrb[69].mxu0 }
 0x1a3   : > { %v2101_v31 = vmax.f32 %v2044_v25, %v2047_v26  ;;  %v1545_v33 = vpop.f32.mrb[70].mxu1  ;;  %v1866_v36 = vpop.f32.mrb[70].mxu0 }
 0x1a4   : > { %v1864_v34 = vadd.f32 %v1863_v29, %v1543_v28  ;;  %v1546_v35 = vadd.f32 %v3446_v16, %v1545_v33  ;;  %v1547_v37 = vpop.f32.mrb[71].mxu1  ;;  %v1868_v38 = vpop.f32.mrb[71].mxu0 }
 0x1a5   : > { %2138 = vst.msk [vmem:[#allocation2 + $0x78] sm:$0xff] %vm2122_vm2, %v2101_v31 }
 0x1a6   : > { %v2048_v40 = vmax.f32 %v1864_v34, 0.0  ;;  %v1867_v41 = vadd.f32 %v1866_v36, %v1546_v35 }
 0x1a8   : > { %v2102_v43 = vmax.f32 %v2045_v39, %v2048_v40  ;;  %v2049_v44 = vmax.f32 %v1867_v41, 0.0 }
 0x1a9   : > { %v1550_v45 = vpop.f32.mrb[72].mxu1  ;;  %v1871_v48 = vpop.f32.mrb[72].mxu0 }
 0x1aa   : > { %2139 = vst.msk [vmem:[#allocation2 + $0x80] sm:$0xff] %vm2122_vm2, %v2102_v43  ;;  %v2103_v46 = vmax.f32 %v2046_v42, %v2049_v44  ;;  %v1551_v47 = vadd.f32 %v3446_v16, %v1550_v45  ;;  %v1552_v49 = vpop.f32.mrb[73].mxu1  ;;  %v1873_v50 = vpop.f32.mrb[73].mxu0 }
 0x1ab   : > { %v1553_v51 = vpop.f32.mrb[74].mxu1  ;;  %v1874_v54 = vpop.f32.mrb[74].mxu0 }
 0x1ac   : > { %2140 = vst.msk [vmem:[#allocation2 + $0x88] sm:$0xff] %vm2122_vm2, %v2103_v46  ;;  %v1872_v52 = vadd.f32 %v1871_v48, %v1551_v47  ;;  %v1554_v53 = vadd.f32 %v3446_v16, %v1553_v51  ;;  %v1555_v55 = vpop.f32.mrb[75].mxu1  ;;  %v1876_v56 = vpop.f32.mrb[75].mxu0 }
 0x1ae   : > { %v1875_v57 = vadd.f32 %v1874_v54, %v1554_v53  ;;  %v2050_v14 = vmax.f32 %v1872_v52, 0.0 }
 0x1b0   : > { %v2051_v29 = vmax.f32 %v1875_v57, 0.0 }
 0x1b1   : > { %v2179_v58 = vld [vmem:[#allocation2 + $0x78] ss:$2 sm:$0xff]  ;;  %v2227_v59 = vld [vmem:[#allocation2 + $0x79] ss:$2 sm:$0xff]  ;;  %v1558_v60 = vpop.f32.mrb[76].mxu1  ;;  %v1879_v63 = vpop.f32.mrb[76].mxu0 }
 0x1b2   : > { %v2264_v61 = vmax.f32 %v2179_v58, %v2227_v59  ;;  %v1559_v62 = vadd.f32 %v3446_v16, %v1558_v60  ;;  %v1560_v0 = vpop.f32.mrb[77].mxu1  ;;  %v1881_v6 = vpop.f32.mrb[77].mxu0 }
 0x1b3   : > { %v2181_v1 = vld [vmem:[#allocation2 + $0x88] ss:$2 sm:$0xf]  ;;  %v2229_v2 = vld [vmem:[#allocation2 + $0x89] ss:$2 sm:$0xf] }
 0x1b4   : > { %v2711_v3 = vpack.c.bf16 %v2264_v61, %v2264_v61  ;;  %v2265_v4 = vmax.f32 %v2181_v1, %v2229_v2  ;;  %v1880_v5 = vadd.f32 %v1879_v63, %v1559_v62  ;;  %v1561_v7 = vpop.f32.mrb[78].mxu1  ;;  %v1882_v9 = vpop.f32.mrb[78].mxu0 }
 0x1b5   : > { %v1562_v8 = vadd.f32 %v3446_v16, %v1561_v7  ;;  %v1563_v10 = vpop.f32.mrb[79].mxu1  ;;  %v1884_v12 = vpop.f32.mrb[79].mxu0 }
 0x1b6   : > { %2386 = vst.msk [vmem:[%s3490_s13 + $0x28] sm:$0xf] %vm2374_vm3, %v2711_v3  ;;  %v2712_v11 = vpack.c.bf16 %v2265_v4, %v2265_v4  ;;  %v2052_v32 = vmax.f32 %v1880_v5, 0.0 }
 0x1b7   : > { %v1883_v13 = vadd.f32 %v1882_v9, %v1562_v8 }
 0x1b8   : > { %2387 = vst.msk [vmem:[%s3490_s13 + $0x2c] sm:$0x3] %vm2376_vm4, %v2712_v11 }
 0x1b9   : > { %v2053_v15 = vmax.f32 %v1883_v13, 0.0  ;;  %v1566_v17 = vpop.f32.mrb[80].mxu1  ;;  %v1887_v19 = vpop.f32.mrb[80].mxu0 }
 0x1ba   : > { %v1567_v18 = vadd.f32 %v3446_v16, %v1566_v17  ;;  %v1568_v20 = vpop.f32.mrb[81].mxu1  ;;  %v1889_v22 = vpop.f32.mrb[81].mxu0 }
 0x1bb   : > { %v2104_v21 = vmax.f32 %v2050_v14, %v2053_v15  ;;  %v1569_v23 = vpop.f32.mrb[82].mxu1  ;;  %v1890_v26 = vpop.f32.mrb[82].mxu0  ;;  %v3599_v14 = vld [vmem:[%s3666_s2] ss:$0 sm:$0xff] }
 0x1bc   : > { %v1888_v24 = vadd.f32 %v1887_v19, %v1567_v18  ;;  %v1570_v25 = vadd.f32 %v3446_v16, %v1569_v23  ;;  %v1571_v27 = vpop.f32.mrb[83].mxu1  ;;  %v1892_v28 = vpop.f32.mrb[83].mxu0 }
 0x1bd   : > { %2141 = vst.msk [vmem:[#allocation2 + $0x90] sm:$0xff] %vm2122_vm2, %v2104_v21 }
 0x1be   : > { %v2054_v30 = vmax.f32 %v1888_v24, 0.0  ;;  %v1891_v31 = vadd.f32 %v1890_v26, %v1570_v25 }
 0x1c0   : > { %v2105_v33 = vmax.f32 %v2051_v29, %v2054_v30  ;;  %v2055_v34 = vmax.f32 %v1891_v31, 0.0 }
 0x1c1   : > { %v1574_v35 = vpop.f32.mrb[84].mxu1  ;;  %v1895_v38 = vpop.f32.mrb[84].mxu0 }
 0x1c2   : > { %2142 = vst.msk [vmem:[#allocation2 + $0x98] sm:$0xff] %vm2122_vm2, %v2105_v33  ;;  %v2106_v36 = vmax.f32 %v2052_v32, %v2055_v34  ;;  %v1575_v37 = vadd.f32 %v3446_v16, %v1574_v35  ;;  %v1576_v39 = vpop.f32.mrb[85].mxu1  ;;  %v1897_v40 = vpop.f32.mrb[85].mxu0 }
 0x1c3   : > { %v1577_v41 = vpop.f32.mrb[86].mxu1  ;;  %v1898_v44 = vpop.f32.mrb[86].mxu0 }
 0x1c4   : > { %2143 = vst.msk [vmem:[#allocation2 + $0xa0] sm:$0xff] %vm2122_vm2, %v2106_v36  ;;  %v1896_v42 = vadd.f32 %v1895_v38, %v1575_v37  ;;  %v1578_v43 = vadd.f32 %v3446_v16, %v1577_v41  ;;  %v1579_v45 = vpop.f32.mrb[87].mxu1  ;;  %v1900_v46 = vpop.f32.mrb[87].mxu0 }
 0x1c6   : > { %v1899_v47 = vadd.f32 %v1898_v44, %v1578_v43  ;;  %v2056_v4 = vmax.f32 %v1896_v42, 0.0 }
 0x1c8   : > { %v2057_v20 = vmax.f32 %v1899_v47, 0.0 }
 0x1c9   : > { %v2183_v48 = vld [vmem:[#allocation2 + $0x90] ss:$2 sm:$0xff]  ;;  %v2231_v49 = vld [vmem:[#allocation2 + $0x91] ss:$2 sm:$0xff]  ;;  %v1582_v50 = vpop.f32.mrb[88].mxu1  ;;  %v1903_v53 = vpop.f32.mrb[88].mxu0 }
 0x1ca   : > { %v2266_v51 = vmax.f32 %v2183_v48, %v2231_v49  ;;  %v1583_v52 = vadd.f32 %v3446_v16, %v1582_v50  ;;  %v1584_v54 = vpop.f32.mrb[89].mxu1  ;;  %v1905_v60 = vpop.f32.mrb[89].mxu0 }
 0x1cb   : > { %v2185_v55 = vld [vmem:[#allocation2 + $0xa0] ss:$2 sm:$0xf]  ;;  %v2233_v56 = vld [vmem:[#allocation2 + $0xa1] ss:$2 sm:$0xf] }
 0x1cc   : > { %v2713_v57 = vpack.c.bf16 %v2266_v51, %v2266_v51  ;;  %v2267_v58 = vmax.f32 %v2185_v55, %v2233_v56  ;;  %v1904_v59 = vadd.f32 %v1903_v53, %v1583_v52  ;;  %v1585_v61 = vpop.f32.mrb[90].mxu1  ;;  %v1906_v63 = vpop.f32.mrb[90].mxu0 }
 0x1cd   : > { %v1586_v62 = vadd.f32 %v3446_v16, %v1585_v61  ;;  %v1587_v0 = vpop.f32.mrb[91].mxu1  ;;  %v1908_v2 = vpop.f32.mrb[91].mxu0 }
 0x1ce   : > { %2388 = vst.msk [vmem:[%s3490_s13 + $0x30] sm:$0xf] %vm2374_vm3, %v2713_v57  ;;  %v2714_v1 = vpack.c.bf16 %v2267_v58, %v2267_v58  ;;  %v2058_v22 = vmax.f32 %v1904_v59, 0.0 }
 0x1cf   : > { %v1907_v3 = vadd.f32 %v1906_v63, %v1586_v62 }
 0x1d0   : > { %2389 = vst.msk [vmem:[%s3490_s13 + $0x34] sm:$0x3] %vm2376_vm4, %v2714_v1 }
 0x1d1   : > { %v2059_v5 = vmax.f32 %v1907_v3, 0.0  ;;  %v1590_v6 = vpop.f32.mrb[92].mxu1  ;;  %v1911_v8 = vpop.f32.mrb[92].mxu0 }
 0x1d2   : > { %v1591_v7 = vadd.f32 %v3446_v16, %v1590_v6  ;;  %v1592_v9 = vpop.f32.mrb[93].mxu1  ;;  %v1913_v11 = vpop.f32.mrb[93].mxu0 }
 0x1d3   : > { %v2107_v10 = vmax.f32 %v2056_v4, %v2059_v5  ;;  %v1593_v12 = vpop.f32.mrb[94].mxu1  ;;  %v1914_v17 = vpop.f32.mrb[94].mxu0 }
 0x1d4   : > { %v1912_v13 = vadd.f32 %v1911_v8, %v1591_v7  ;;  %v1594_v15 = vadd.f32 %v3599_v14, %v1593_v12  ;;  %v1595_v18 = vpop.f32.mrb[95].mxu1  ;;  %v1916_v19 = vpop.f32.mrb[95].mxu0 }
 0x1d5   : > { %2144 = vst.msk [vmem:[#allocation2 + $0xa8] sm:$0xff] %vm2122_vm2, %v2107_v10 }
 0x1d6   : > { %v2060_v16 = vmax.f32 %v1912_v13, 0.0  ;;  %v1915_v21 = vadd.f32 %v1914_v17, %v1594_v15 }
 0x1d8   : > { %v2108_v23 = vmax.f32 %v2057_v20, %v2060_v16  ;;  %v2061_v24 = vmax.f32 %v1915_v21, 0.0 }
 0x1d9   : > { %v1598_v25 = vpop.f32.mrb[96].mxu1  ;;  %v1919_v28 = vpop.f32.mrb[96].mxu0 }
 0x1da   : > { %2145 = vst.msk [vmem:[#allocation2 + $0xb0] sm:$0xff] %vm2122_vm2, %v2108_v23  ;;  %v2109_v26 = vmax.f32 %v2058_v22, %v2061_v24  ;;  %v1599_v27 = vadd.f32 %v3599_v14, %v1598_v25  ;;  %v1600_v29 = vpop.f32.mrb[97].mxu1  ;;  %v1921_v30 = vpop.f32.mrb[97].mxu0 }
 0x1db   : > { %v1601_v31 = vpop.f32.mrb[98].mxu1  ;;  %v1922_v34 = vpop.f32.mrb[98].mxu0 }
 0x1dc   : > { %2146 = vst.msk [vmem:[#allocation2 + $0xb8] sm:$0xff] %vm2122_vm2, %v2109_v26  ;;  %v1920_v32 = vadd.f32 %v1919_v28, %v1599_v27  ;;  %v1602_v33 = vadd.f32 %v3599_v14, %v1601_v31  ;;  %v1603_v35 = vpop.f32.mrb[99].mxu1  ;;  %v1924_v36 = vpop.f32.mrb[99].mxu0 }
 0x1de   : > { %v1923_v37 = vadd.f32 %v1922_v34, %v1602_v33  ;;  %v2062_v58 = vmax.f32 %v1920_v32, 0.0 }
 0x1e0   : > { %v2063_v8 = vmax.f32 %v1923_v37, 0.0 }
 0x1e1   : > { %v2187_v38 = vld [vmem:[#allocation2 + $0xa8] ss:$2 sm:$0xff]  ;;  %v2235_v39 = vld [vmem:[#allocation2 + $0xa9] ss:$2 sm:$0xff]  ;;  %v1606_v40 = vpop.f32.mrb[100].mxu1  ;;  %v1927_v43 = vpop.f32.mrb[100].mxu0 }
 0x1e2   : > { %v2268_v41 = vmax.f32 %v2187_v38, %v2235_v39  ;;  %v1607_v42 = vadd.f32 %v3599_v14, %v1606_v40  ;;  %v1608_v44 = vpop.f32.mrb[101].mxu1  ;;  %v1929_v50 = vpop.f32.mrb[101].mxu0 }
 0x1e3   : > { %v2189_v45 = vld [vmem:[#allocation2 + $0xb8] ss:$2 sm:$0xf]  ;;  %v2237_v46 = vld [vmem:[#allocation2 + $0xb9] ss:$2 sm:$0xf] }
 0x1e4   : > { %v2715_v47 = vpack.c.bf16 %v2268_v41, %v2268_v41  ;;  %v2269_v48 = vmax.f32 %v2189_v45, %v2237_v46  ;;  %v1928_v49 = vadd.f32 %v1927_v43, %v1607_v42  ;;  %v1609_v51 = vpop.f32.mrb[102].mxu1  ;;  %v1930_v53 = vpop.f32.mrb[102].mxu0 }
 0x1e5   : > { %v1610_v52 = vadd.f32 %v3599_v14, %v1609_v51  ;;  %v1611_v54 = vpop.f32.mrb[103].mxu1  ;;  %v1932_v56 = vpop.f32.mrb[103].mxu0 }
 0x1e6   : > { %2390 = vst.msk [vmem:[%s3490_s13 + $0x38] sm:$0xf] %vm2374_vm3, %v2715_v47  ;;  %v2716_v55 = vpack.c.bf16 %v2269_v48, %v2269_v48  ;;  %v2064_v11 = vmax.f32 %v1928_v49, 0.0 }
 0x1e7   : > { %v1931_v57 = vadd.f32 %v1930_v53, %v1610_v52 }
 0x1e8   : > { %2391 = vst.msk [vmem:[%s3490_s13 + $0x3c] sm:$0x3] %vm2376_vm4, %v2716_v55 }
 0x1e9   : > { %v2065_v59 = vmax.f32 %v1931_v57, 0.0  ;;  %v1614_v60 = vpop.f32.mrb[104].mxu1  ;;  %v1935_v62 = vpop.f32.mrb[104].mxu0 }
 0x1ea   : > { %v1615_v61 = vadd.f32 %v3599_v14, %v1614_v60  ;;  %v1616_v63 = vpop.f32.mrb[105].mxu1  ;;  %v1937_v1 = vpop.f32.mrb[105].mxu0 }
 0x1eb   : > { %v2110_v0 = vmax.f32 %v2062_v58, %v2065_v59  ;;  %v1617_v2 = vpop.f32.mrb[106].mxu1  ;;  %v1938_v5 = vpop.f32.mrb[106].mxu0 }
 0x1ec   : > { %v1936_v3 = vadd.f32 %v1935_v62, %v1615_v61  ;;  %v1618_v4 = vadd.f32 %v3599_v14, %v1617_v2  ;;  %v1619_v6 = vpop.f32.mrb[107].mxu1  ;;  %v1940_v7 = vpop.f32.mrb[107].mxu0 }
 0x1ed   : > { %2147 = vst.msk [vmem:[#allocation2 + $0xc0] sm:$0xff] %vm2122_vm2, %v2110_v0 }
 0x1ee   : > { %v2066_v9 = vmax.f32 %v1936_v3, 0.0  ;;  %v1939_v10 = vadd.f32 %v1938_v5, %v1618_v4 }
 0x1f0   : > { %v2111_v12 = vmax.f32 %v2063_v8, %v2066_v9  ;;  %v2067_v13 = vmax.f32 %v1939_v10, 0.0 }
 0x1f1   : > { %v1622_v15 = vpop.f32.mrb[108].mxu1  ;;  %v1943_v19 = vpop.f32.mrb[108].mxu0 }
 0x1f2   : > { %2148 = vst.msk [vmem:[#allocation2 + $0xc8] sm:$0xff] %vm2122_vm2, %v2111_v12  ;;  %v2112_v17 = vmax.f32 %v2064_v11, %v2067_v13  ;;  %v1623_v18 = vadd.f32 %v3599_v14, %v1622_v15  ;;  %v1624_v20 = vpop.f32.mrb[109].mxu1  ;;  %v1945_v16 = vpop.f32.mrb[109].mxu0 }
 0x1f3   : > { %v1625_v21 = vpop.f32.mrb[110].mxu1  ;;  %v1946_v24 = vpop.f32.mrb[110].mxu0 }
 0x1f4   : > { %2149 = vst.msk [vmem:[#allocation2 + $0xd0] sm:$0xff] %vm2122_vm2, %v2112_v17  ;;  %v1944_v22 = vadd.f32 %v1943_v19, %v1623_v18  ;;  %v1626_v23 = vadd.f32 %v3599_v14, %v1625_v21  ;;  %v1627_v25 = vpop.f32.mrb[111].mxu1  ;;  %v1948_v26 = vpop.f32.mrb[111].mxu0 }
 0x1f6   : > { %v1947_v27 = vadd.f32 %v1946_v24, %v1626_v23  ;;  %v2068_v48 = vmax.f32 %v1944_v22, 0.0 }
 0x1f8   : > { %v2069_v62 = vmax.f32 %v1947_v27, 0.0 }
 0x1f9   : > { %v2191_v28 = vld [vmem:[#allocation2 + $0xc0] ss:$2 sm:$0xff]  ;;  %v2239_v29 = vld [vmem:[#allocation2 + $0xc1] ss:$2 sm:$0xff]  ;;  %v1630_v30 = vpop.f32.mrb[112].mxu1  ;;  %v1951_v33 = vpop.f32.mrb[112].mxu0 }
 0x1fa   : > { %v2270_v31 = vmax.f32 %v2191_v28, %v2239_v29  ;;  %v1631_v32 = vadd.f32 %v3599_v14, %v1630_v30  ;;  %v1632_v34 = vpop.f32.mrb[113].mxu1  ;;  %v1953_v40 = vpop.f32.mrb[113].mxu0 }
 0x1fb   : > { %v2193_v35 = vld [vmem:[#allocation2 + $0xd0] ss:$2 sm:$0xf]  ;;  %v2241_v36 = vld [vmem:[#allocation2 + $0xd1] ss:$2 sm:$0xf] }
 0x1fc   : > { %v2717_v37 = vpack.c.bf16 %v2270_v31, %v2270_v31  ;;  %v2271_v38 = vmax.f32 %v2193_v35, %v2241_v36  ;;  %v1952_v39 = vadd.f32 %v1951_v33, %v1631_v32  ;;  %v1633_v41 = vpop.f32.mrb[114].mxu1  ;;  %v1954_v43 = vpop.f32.mrb[114].mxu0 }
 0x1fd   : > { %v1634_v42 = vadd.f32 %v3599_v14, %v1633_v41  ;;  %v1635_v44 = vpop.f32.mrb[115].mxu1  ;;  %v1956_v46 = vpop.f32.mrb[115].mxu0 }
 0x1fe   : > { %2392 = vst.msk [vmem:[%s3490_s13 + $0x40] sm:$0xf] %vm2374_vm3, %v2717_v37  ;;  %v2718_v45 = vpack.c.bf16 %v2271_v38, %v2271_v38  ;;  %v2070_v1 = vmax.f32 %v1952_v39, 0.0 }
 0x1ff   : > { %v1955_v47 = vadd.f32 %v1954_v43, %v1634_v42 }
 0x200   : > { %2393 = vst.msk [vmem:[%s3490_s13 + $0x44] sm:$0x3] %vm2376_vm4, %v2718_v45 }
 0x201   : > { %v2071_v49 = vmax.f32 %v1955_v47, 0.0  ;;  %v1638_v50 = vpop.f32.mrb[116].mxu1  ;;  %v1959_v52 = vpop.f32.mrb[116].mxu0 }
 0x202   : > { %v1639_v51 = vadd.f32 %v3599_v14, %v1638_v50  ;;  %v1640_v53 = vpop.f32.mrb[117].mxu1  ;;  %v1961_v55 = vpop.f32.mrb[117].mxu0 }
 0x203   : > { %v2113_v54 = vmax.f32 %v2068_v48, %v2071_v49  ;;  %v1641_v56 = vpop.f32.mrb[118].mxu1  ;;  %v1962_v59 = vpop.f32.mrb[118].mxu0 }
 0x204   : > { %v1960_v57 = vadd.f32 %v1959_v52, %v1639_v51  ;;  %v1642_v58 = vadd.f32 %v3599_v14, %v1641_v56  ;;  %v1643_v60 = vpop.f32.mrb[119].mxu1  ;;  %v1964_v61 = vpop.f32.mrb[119].mxu0 }
 0x205   : > { %2150 = vst.msk [vmem:[#allocation2 + $0xd8] sm:$0xff] %vm2122_vm2, %v2113_v54 }
 0x206   : > { %v2072_v63 = vmax.f32 %v1960_v57, 0.0  ;;  %v1963_v0 = vadd.f32 %v1962_v59, %v1642_v58 }
 0x208   : > { %v2114_v2 = vmax.f32 %v2069_v62, %v2072_v63  ;;  %v2073_v3 = vmax.f32 %v1963_v0, 0.0 }
 0x209   : > { %v1646_v4 = vpop.f32.mrb[120].mxu1  ;;  %v1967_v7 = vpop.f32.mrb[120].mxu0 }
 0x20a   : > { %2151 = vst.msk [vmem:[#allocation2 + $0xe0] sm:$0xff] %vm2122_vm2, %v2114_v2  ;;  %v2115_v5 = vmax.f32 %v2070_v1, %v2073_v3  ;;  %v1647_v6 = vadd.f32 %v3599_v14, %v1646_v4  ;;  %v1648_v8 = vpop.f32.mrb[121].mxu1  ;;  %v1969_v9 = vpop.f32.mrb[121].mxu0 }
 0x20b   : > { %v1649_v10 = vpop.f32.mrb[122].mxu1  ;;  %v1970_v13 = vpop.f32.mrb[122].mxu0 }
 0x20c   : > { %2152 = vst.msk [vmem:[#allocation2 + $0xe8] sm:$0xff] %vm2122_vm2, %v2115_v5  ;;  %v1968_v11 = vadd.f32 %v1967_v7, %v1647_v6  ;;  %v1650_v12 = vadd.f32 %v3599_v14, %v1649_v10  ;;  %v1651_v15 = vpop.f32.mrb[123].mxu1  ;;  %v1972_v17 = vpop.f32.mrb[123].mxu0 }
 0x20e   : > { %v1971_v18 = vadd.f32 %v1970_v13, %v1650_v12  ;;  %v2074_v38 = vmax.f32 %v1968_v11, 0.0 }
 0x210   : > { %v2075_v52 = vmax.f32 %v1971_v18, 0.0 }
 0x211   : > { %v2195_v19 = vld [vmem:[#allocation2 + $0xd8] ss:$2 sm:$0xff]  ;;  %v2243_v20 = vld [vmem:[#allocation2 + $0xd9] ss:$2 sm:$0xff]  ;;  %v1654_v16 = vpop.f32.mrb[124].mxu1  ;;  %v1975_v23 = vpop.f32.mrb[124].mxu0 }
 0x212   : > { %v2272_v21 = vmax.f32 %v2195_v19, %v2243_v20  ;;  %v1655_v22 = vadd.f32 %v3599_v14, %v1654_v16  ;;  %v1656_v24 = vpop.f32.mrb[125].mxu1  ;;  %v1977_v30 = vpop.f32.mrb[125].mxu0 }
 0x213   : > { %v2197_v25 = vld [vmem:[#allocation2 + $0xe8] ss:$2 sm:$0xf]  ;;  %v2245_v26 = vld [vmem:[#allocation2 + $0xe9] ss:$2 sm:$0xf] }
 0x214   : > { %v2719_v27 = vpack.c.bf16 %v2272_v21, %v2272_v21  ;;  %v2273_v28 = vmax.f32 %v2197_v25, %v2245_v26  ;;  %v1976_v29 = vadd.f32 %v1975_v23, %v1655_v22  ;;  %v1657_v31 = vpop.f32.mrb[126].mxu1  ;;  %v1978_v33 = vpop.f32.mrb[126].mxu0 }
 0x215   : > { %v1658_v32 = vadd.f32 %v3599_v14, %v1657_v31  ;;  %v1659_v34 = vpop.f32.mrb[127].mxu1  ;;  %v1980_v36 = vpop.f32.mrb[127].mxu0 }
 0x216   : > { %2394 = vst.msk [vmem:[%s3490_s13 + $0x48] sm:$0xf] %vm2374_vm3, %v2719_v27  ;;  %v2720_v35 = vpack.c.bf16 %v2273_v28, %v2273_v28  ;;  %v2076_v55 = vmax.f32 %v1976_v29, 0.0 }
 0x217   : > { %v1979_v37 = vadd.f32 %v1978_v33, %v1658_v32 }
 0x218   : > { %2395 = vst.msk [vmem:[%s3490_s13 + $0x4c] sm:$0x3] %vm2376_vm4, %v2720_v35 }
 0x219   : > { %v2077_v39 = vmax.f32 %v1979_v37, 0.0  ;;  %v1662_v40 = vpop.f32.mrb[128].mxu1  ;;  %v1983_v42 = vpop.f32.mrb[128].mxu0 }
 0x21a   : > { %v1663_v41 = vadd.f32 %v3599_v14, %v1662_v40  ;;  %v1664_v43 = vpop.f32.mrb[129].mxu1  ;;  %v1985_v45 = vpop.f32.mrb[129].mxu0 }
 0x21b   : > { %v2116_v44 = vmax.f32 %v2074_v38, %v2077_v39  ;;  %v1665_v46 = vpop.f32.mrb[130].mxu1  ;;  %v1986_v49 = vpop.f32.mrb[130].mxu0 }
 0x21c   : > { %v1984_v47 = vadd.f32 %v1983_v42, %v1663_v41  ;;  %v1666_v48 = vadd.f32 %v3599_v14, %v1665_v46  ;;  %v1667_v50 = vpop.f32.mrb[131].mxu1  ;;  %v1988_v51 = vpop.f32.mrb[131].mxu0 }
 0x21d   : > { %2153 = vst.msk [vmem:[#allocation2 + $0xf0] sm:$0xff] %vm2122_vm2, %v2116_v44 }
 0x21e   : > { %v2078_v53 = vmax.f32 %v1984_v47, 0.0  ;;  %v1987_v54 = vadd.f32 %v1986_v49, %v1666_v48 }
 0x220   : > { %v2117_v56 = vmax.f32 %v2075_v52, %v2078_v53  ;;  %v2079_v57 = vmax.f32 %v1987_v54, 0.0 }
 0x221   : > { %v1670_v58 = vpop.f32.mrb[132].mxu1  ;;  %v1991_v61 = vpop.f32.mrb[132].mxu0 }
 0x222   : > { %2154 = vst.msk [vmem:[#allocation2 + $0xf8] sm:$0xff] %vm2122_vm2, %v2117_v56  ;;  %v2118_v59 = vmax.f32 %v2076_v55, %v2079_v57  ;;  %v1671_v60 = vadd.f32 %v3599_v14, %v1670_v58  ;;  %v1672_v62 = vpop.f32.mrb[133].mxu1  ;;  %v1993_v63 = vpop.f32.mrb[133].mxu0 }
 0x223   : > { %v1673_v0 = vpop.f32.mrb[134].mxu1  ;;  %v1994_v3 = vpop.f32.mrb[134].mxu0 }
 0x224   : > { %2155 = vst.msk [vmem:[#allocation2 + $0x100] sm:$0xff] %vm2122_vm2, %v2118_v59  ;;  %v1992_v1 = vadd.f32 %v1991_v61, %v1671_v60  ;;  %v1674_v2 = vadd.f32 %v3599_v14, %v1673_v0  ;;  %v1675_v4 = vpop.f32.mrb[135].mxu1  ;;  %v1996_v5 = vpop.f32.mrb[135].mxu0 }
 0x226   : > { %v1995_v6 = vadd.f32 %v1994_v3, %v1674_v2  ;;  %v2080_v28 = vmax.f32 %v1992_v1, 0.0 }
 0x228   : > { %v2081_v42 = vmax.f32 %v1995_v6, 0.0 }
 0x229   : > { %v2199_v7 = vld [vmem:[#allocation2 + $0xf0] ss:$2 sm:$0xff]  ;;  %v2247_v8 = vld [vmem:[#allocation2 + $0xf1] ss:$2 sm:$0xff]  ;;  %v1678_v9 = vpop.f32.mrb[136].mxu1  ;;  %v1999_v12 = vpop.f32.mrb[136].mxu0 }
 0x22a   : > { %v2274_v10 = vmax.f32 %v2199_v7, %v2247_v8  ;;  %v1679_v11 = vadd.f32 %v3599_v14, %v1678_v9  ;;  %v1680_v13 = vpop.f32.mrb[137].mxu1  ;;  %v2001_v16 = vpop.f32.mrb[137].mxu0 }
 0x22b   : > { %v2201_v15 = vld [vmem:[#allocation2 + $0x100] ss:$2 sm:$0xf]  ;;  %v2249_v17 = vld [vmem:[#allocation2 + $0x101] ss:$2 sm:$0xf] }
 0x22c   : > { %v2721_v18 = vpack.c.bf16 %v2274_v10, %v2274_v10  ;;  %v2275_v19 = vmax.f32 %v2201_v15, %v2249_v17  ;;  %v2000_v20 = vadd.f32 %v1999_v12, %v1679_v11  ;;  %v1681_v21 = vpop.f32.mrb[138].mxu1  ;;  %v2002_v23 = vpop.f32.mrb[138].mxu0 }
 0x22d   : > { %v1682_v22 = vadd.f32 %v3599_v14, %v1681_v21  ;;  %v1683_v24 = vpop.f32.mrb[139].mxu1  ;;  %v2004_v26 = vpop.f32.mrb[139].mxu0 }
 0x22e   : > { %2396 = vst.msk [vmem:[%s3490_s13 + $0x50] sm:$0xf] %vm2374_vm3, %v2721_v18  ;;  %v2722_v25 = vpack.c.bf16 %v2275_v19, %v2275_v19  ;;  %v2082_v45 = vmax.f32 %v2000_v20, 0.0 }
 0x22f   : > { %v2003_v27 = vadd.f32 %v2002_v23, %v1682_v22 }
 0x230   : > { %2397 = vst.msk [vmem:[%s3490_s13 + $0x54] sm:$0x3] %vm2376_vm4, %v2722_v25 }
 0x231   : > { %v2083_v29 = vmax.f32 %v2003_v27, 0.0  ;;  %v1686_v30 = vpop.f32.mrb[140].mxu1  ;;  %v2007_v32 = vpop.f32.mrb[140].mxu0 }
 0x232   : > { %v1687_v31 = vadd.f32 %v3599_v14, %v1686_v30  ;;  %v1688_v33 = vpop.f32.mrb[141].mxu1  ;;  %v2009_v35 = vpop.f32.mrb[141].mxu0 }
 0x233   : > { %v2119_v34 = vmax.f32 %v2080_v28, %v2083_v29  ;;  %v1689_v36 = vpop.f32.mrb[142].mxu1  ;;  %v2010_v39 = vpop.f32.mrb[142].mxu0 }
 0x234   : > { %v2008_v37 = vadd.f32 %v2007_v32, %v1687_v31  ;;  %v1690_v38 = vadd.f32 %v3599_v14, %v1689_v36  ;;  %v1691_v40 = vpop.f32.mrb[143].mxu1  ;;  %v2012_v41 = vpop.f32.mrb[143].mxu0 }
 0x235   : > { %2156 = vst.msk [vmem:[#allocation2 + $0x108] sm:$0xff] %vm2122_vm2, %v2119_v34 }
 0x236   : > { %v2084_v43 = vmax.f32 %v2008_v37, 0.0  ;;  %v2011_v44 = vadd.f32 %v2010_v39, %v1690_v38 }
 0x238   : > { %v2120_v46 = vmax.f32 %v2081_v42, %v2084_v43  ;;  %v2085_v47 = vmax.f32 %v2011_v44, 0.0 }
 0x23a   : > { %2157 = vst.msk [vmem:[#allocation2 + $0x110] sm:$0xff] %vm2122_vm2, %v2120_v46  ;;  %v2121_v48 = vmax.f32 %v2082_v45, %v2085_v47 }
 0x23c   : > { %2158 = vst.msk [vmem:[#allocation2 + $0x118] sm:$0xff] %vm2122_vm2, %v2121_v48 }
 0x241   : > { %v2203_v49 = vld [vmem:[#allocation2 + $0x108] ss:$2 sm:$0xff]  ;;  %v2251_v14 = vld [vmem:[#allocation2 + $0x109] ss:$2 sm:$0xff] }
 0x242   : > { %v2276_v50 = vmax.f32 %v2203_v49, %v2251_v14 }
 0x243   : > { %v2205_v51 = vld [vmem:[#allocation2 + $0x118] ss:$2 sm:$0xf]  ;;  %v2253_v52 = vld [vmem:[#allocation2 + $0x119] ss:$2 sm:$0xf] }
 0x244   : > { %v2723_v53 = vpack.c.bf16 %v2276_v50, %v2276_v50  ;;  %v2277_v54 = vmax.f32 %v2205_v51, %v2253_v52 }
 0x246   : > { %2398 = vst.msk [vmem:[%s3490_s13 + $0x58] sm:$0xf] %vm2374_vm3, %v2723_v53  ;;  %v2724_v55 = vpack.c.bf16 %v2277_v54, %v2277_v54 }
 0x248   : > { %2399 = vst.msk [vmem:[%s3490_s13 + $0x5c] sm:$0x3] %vm2376_vm4, %v2724_v55 }
 0x249 PF: > { %s13_s12 = sadd.s32 1, %s3135_s12  }
 0x24a   : > { %p10_p4 = scmp.ge.s32.totalorder %s13_s12, 4  }
 0x24c   :  { %12 = sbr.rel (!%p10_p4) target bundleno = 1 (0x1), region = 109 }

// kernel: net_forward.3
= control target key start
LH: loop header
LB: loop body
LE: loop exit
PB: predicated region body
PF: predicated region fallthrough
CT: control target
= control target key end

     0   :  { %s7237_s12 = smov 0   ;;  %s9042_s0 = inlined_call_operand.vmem [shape: bf16[2,3136,75], index: 0, kind: input, shape index: {}]   ;;  %s9043_s1 = inlined_call_operand.vmem [shape: bf16[75,20], index: 1, kind: input, shape index: {}]   ;;  %s9044_s2 = inlined_call_operand.vmem [shape: f32[1,20], index: 2, kind: input, shape index: {}]   ;;  %s9045_s3 = inlined_call_operand.vmem [shape: bf16[2,28,28,20], index: 3, kind: output, shape index: {}]  }
   0x1 LB: > { %s5748_s13 = sadd.s32 4294967295, %s7214_s12   ;;  %p5752_p0 = scmp.ge.s32.totalorder %s7214_s12, 1  ;;  %s7214_s12 = sphi %s7237_s12, %s13_s12  }
   0x2   : > { %p137_p1 = scmp.lt.s32.totalorder %s7214_s12, 3 }
   0x4   : > { %p138_p2 = pnand %p5752_p0, %p137_p1 }
   0x5   : > { %v7003_v0 = vld [vmem:[%s9043_s1] sm:$0xff] (!%p138_p2)   ;;  %v7004_v1 = vld [vmem:[%s9043_s1 + $0x8] sm:$0xff] (!%p138_p2)   ;;  %vm2179_vm0 = vcmask (!%p138_p2), 1044480   ;;  %v7005_v2 = vld [vmem:[%s9043_s1 + $0x10] sm:$0xff] (!%p138_p2)   ;;  %p161_p3 = scmp.lt.s32.totalorder (!%p138_p2), %s5748_s13, 1  ;;  %vm2180_vm1 = vcmask (!%p138_p2), 1045504  }
   0x6   : > { %141 = sbr.rel (%p138_p2) target bundleno = 648 (0x288), region = 32  ;;  %6580 = vmatprep.subr.bf16.mxu0 (!%p138_p2), %v7003_v0  ;;  %6982 = vmatprep.subr.bf16.mxu1 (!%p138_p2), %v7003_v0  ;;  %v7216_v3 = vmov (!%p138_p2), 65535   ;;  %v7006_v5 = vld [vmem:[%s9043_s1 + $0x18] sm:$0xff] (!%p138_p2)   ;;  %v7007_v6 = vld [vmem:[%s9043_s1 + $0x20] sm:$0x3f] (!%p138_p2)   ;;  %vm1590_vm2 = vcmask (!%p138_p2), 613376  }
   0x7   : > { %6581 = vmatpush3.bf16.msra.mxu0 (!%p138_p2), %v7003_v0  ;;  %6987 = vmatpush3.bf16.msra.mxu1 (!%p138_p2), %v7003_v0  ;;  %v2181_v4 = vsel (!%p138_p2), %vm2179_vm0, 4294967295, %v7216_v3  ;;  %vm4375_vm3 = vcmask (!%p138_p2), 162816   ;;  %vm5579_vm4 = vcmask (!%p138_p2), 158720   ;;  %vm5583_vm5 = vcmask (!%p138_p2), 156672  }
   0x8   : > { %6582 = vmatprep.subr.bf16.mxu0 (!%p138_p2), %v7004_v1  ;;  %6983 = vmatprep.subr.bf16.mxu1 (!%p138_p2), %v7004_v1  ;;  %v2182_v7 = vsel (!%p138_p2), %vm2180_vm1, %v2181_v4, 0 }
   0x9   : > { %v2184_v8 = vand.u32 (!%p138_p2), %v7007_v6, %v2182_v7 }
   0xb   : > { %6583 = vmatpush3.bf16.msra.mxu0 (!%p138_p2), %v7004_v1  ;;  %6988 = vmatpush3.bf16.msra.mxu1 (!%p138_p2), %v7004_v1 }
   0xc   : > { %6584 = vmatprep.subr.bf16.mxu0 (!%p138_p2), %v7005_v2  ;;  %6984 = vmatprep.subr.bf16.mxu1 (!%p138_p2), %v7005_v2 }
   0xd   : > { %s9047_s13 = smov (!%p161_p3, %s5748_s13), 1 }
   0xe   : > { %s6992_s24 = smul.u32 1568, %s9047_s13 }
   0xf   : > { %6585 = vmatpush3.bf16.msra.mxu0 %v7005_v2  ;;  %6989 = vmatpush3.bf16.msra.mxu1 %v7005_v2  ;;  %s6993_s30 = smul.u32 448, %s9047_s13 }
  0x10   : > { %s7266_s27 = scalar_lea.vmem %s9042_s0, %s6992_s24  ;;  %6586 = vmatprep.subr.bf16.mxu0 %v7006_v5  ;;  %6985 = vmatprep.subr.bf16.mxu1 %v7006_v5 }
  0x11   : > { %v7008_v9 = vld [vmem:[%s7266_s27] sm:$0xff]   ;;  %v7009_v10 = vld [vmem:[%s7266_s27 + $0x310] sm:$0xff]   ;;  %v7010_v11 = vld [vmem:[%s7266_s27 + $0x8] sm:$0xff]   ;;  %s7588_s6 = scalar_lea.vmem %s9045_s3, %s6993_s30 }
  0x12   : > { %6590 = vmatprep.mubr.msk.bf16.mxu0 %vm1590_vm2, %v7008_v9  ;;  %6786 = vmatprep.mubr.msk.bf16.mxu1 %vm1590_vm2, %v7009_v10  ;;  %v7011_v12 = vld [vmem:[%s7266_s27 + $0x318] sm:$0xff]   ;;  %v7012_v13 = vld [vmem:[%s7266_s27 + $0x10] sm:$0xff]   ;;  %v7013_v14 = vld [vmem:[%s7266_s27 + $0x320] sm:$0xff]  }
  0x13   : > { %6587 = vmatpush3.bf16.msra.mxu0 %v7006_v5  ;;  %6990 = vmatpush3.bf16.msra.mxu1 %v7006_v5  ;;  %v7014_v15 = vld [vmem:[%s7266_s27 + $0x18] sm:$0xff]   ;;  %v7015_v16 = vld [vmem:[%s7266_s27 + $0x328] sm:$0xff]   ;;  %v7016_v17 = vld [vmem:[%s7266_s27 + $0x20] sm:$0xff]  }
  0x14   : > { %6588 = vmatprep.subr.bf16.mxu0 %v2184_v8  ;;  %6986 = vmatprep.subr.bf16.mxu1 %v2184_v8  ;;  %v7017_v18 = vld [vmem:[%s7266_s27 + $0x330] sm:$0xff]   ;;  %v7018_v19 = vld [vmem:[%s7266_s27 + $0x28] sm:$0xff]   ;;  %v7019_v20 = vld [vmem:[%s7266_s27 + $0x338] sm:$0xff]  }
  0x15   : > { %v7020_v21 = vld [vmem:[%s7266_s27 + $0x30] sm:$0xff]   ;;  %v7021_v22 = vld [vmem:[%s7266_s27 + $0x340] sm:$0xff]   ;;  %v7022_v23 = vld [vmem:[%s7266_s27 + $0x38] sm:$0xff]  }
  0x16   : > { %v7023_v24 = vld [vmem:[%s7266_s27 + $0x348] sm:$0xff]   ;;  %v7024_v25 = vld [vmem:[%s7266_s27 + $0x40] sm:$0xff]   ;;  %v7025_v26 = vld [vmem:[%s7266_s27 + $0x350] sm:$0xff]  }
  0x17   : > { %6589 = vmatpush3.bf16.msra.mxu0 %v2184_v8  ;;  %6991 = vmatpush3.bf16.msra.mxu1 %v2184_v8  ;;  %v7026_v27 = vld [vmem:[%s7266_s27 + $0x48] sm:$0xff]   ;;  %v7027_v28 = vld [vmem:[%s7266_s27 + $0x358] sm:$0xff]   ;;  %v7028_v29 = vld [vmem:[%s7266_s27 + $0x50] sm:$0xff]  }
  0x18   : > { %v7029_v30 = vld [vmem:[%s7266_s27 + $0x360] sm:$0xff]   ;;  %v7030_v31 = vld [vmem:[%s7266_s27 + $0x58] sm:$0xff]   ;;  %v7031_v32 = vld [vmem:[%s7266_s27 + $0x368] sm:$0xff]  }
  0x19   : > { %v7032_v33 = vld [vmem:[%s7266_s27 + $0x60] sm:$0xff]   ;;  %v7033_v34 = vld [vmem:[%s7266_s27 + $0x370] sm:$0xff]   ;;  %v7034_v35 = vld [vmem:[%s7266_s27 + $0x68] sm:$0xff]  }
  0x1a   : > { %6591 = vmatmul.mubr.msk.bf16.vlgmr.msra.gmra.mrb[0].mxu0 %vm1590_vm2, %v7010_v11  ;;  %6787 = vmatmul.mubr.msk.bf16.vlgmr.msra.gmra.mrb[0].mxu1 %vm1590_vm2, %v7011_v12  ;;  %v7035_v36 = vld [vmem:[%s7266_s27 + $0x378] sm:$0xff]   ;;  %v7036_v37 = vld [vmem:[%s7266_s27 + $0x70] sm:$0xff]   ;;  %v7037_v38 = vld [vmem:[%s7266_s27 + $0x380] sm:$0xff]  }
  0x1b   : > { %6594 = vmatprep.mubr.msk.bf16.mxu0 %vm1590_vm2, %v7012_v13  ;;  %6790 = vmatprep.mubr.msk.bf16.mxu1 %vm1590_vm2, %v7013_v14  ;;  %v7038_v39 = vld [vmem:[%s7266_s27 + $0x78] sm:$0xff]   ;;  %v7039_v40 = vld [vmem:[%s7266_s27 + $0x388] sm:$0xff]   ;;  %v7040_v41 = vld [vmem:[%s7266_s27 + $0x80] sm:$0xff]  }
  0x1c   : > { %v7041_v42 = vld [vmem:[%s7266_s27 + $0x390] sm:$0xff]   ;;  %v7042_v43 = vld [vmem:[%s7266_s27 + $0x88] sm:$0xff]   ;;  %v7043_v44 = vld [vmem:[%s7266_s27 + $0x398] sm:$0xff]  }
  0x1d   : > { %v7044_v45 = vld [vmem:[%s7266_s27 + $0x90] sm:$0xff]   ;;  %v7045_v46 = vld [vmem:[%s7266_s27 + $0x3a0] sm:$0xff]   ;;  %v7046_v47 = vld [vmem:[%s7266_s27 + $0x98] sm:$0xff]  }
  0x1e   : > { %v7047_v48 = vld [vmem:[%s7266_s27 + $0x3a8] sm:$0xff]   ;;  %v7048_v49 = vld [vmem:[%s7266_s27 + $0xa0] sm:$0xff]   ;;  %v7049_v50 = vld [vmem:[%s7266_s27 + $0x3b0] sm:$0xff]  }
  0x1f   : > { %v7050_v51 = vld [vmem:[%s7266_s27 + $0xa8] sm:$0xff]   ;;  %v7051_v52 = vld [vmem:[%s7266_s27 + $0x3b8] sm:$0xff]   ;;  %v7052_v53 = vld [vmem:[%s7266_s27 + $0xb0] sm:$0xff]  }
  0x20   : > { %v7053_v54 = vld [vmem:[%s7266_s27 + $0x3c0] sm:$0xff]   ;;  %v7054_v55 = vld [vmem:[%s7266_s27 + $0xb8] sm:$0xff]   ;;  %v7055_v56 = vld [vmem:[%s7266_s27 + $0x3c8] sm:$0xff]  }
  0x21   : > { %v7056_v57 = vld [vmem:[%s7266_s27 + $0xc0] sm:$0xff]   ;;  %v7057_v58 = vld [vmem:[%s7266_s27 + $0x3d0] sm:$0xff]   ;;  %v7058_v59 = vld [vmem:[%s7266_s27 + $0xc8] sm:$0xff]  }
  0x22   : > { %6595 = vmatmul.mubr.msk.bf16.gmra.mrb[4].mxu0 %vm1590_vm2, %v7014_v15  ;;  %6791 = vmatmul.mubr.msk.bf16.gmra.mrb[4].mxu1 %vm1590_vm2, %v7015_v16  ;;  %v7059_v60 = vld [vmem:[%s7266_s27 + $0x3d8] sm:$0xff]   ;;  %v7060_v61 = vld [vmem:[%s7266_s27 + $0xd0] sm:$0xff]   ;;  %v7061_v62 = vld [vmem:[%s7266_s27 + $0x3e0] sm:$0xff]  }
  0x23   : > { %6598 = vmatprep.mubr.msk.bf16.mxu0 %vm1590_vm2, %v7016_v17  ;;  %6794 = vmatprep.mubr.msk.bf16.mxu1 %vm1590_vm2, %v7017_v18  ;;  %v7062_v63 = vld [vmem:[%s7266_s27 + $0xd8] sm:$0xff]   ;;  %v7063_v0 = vld [vmem:[%s7266_s27 + $0x3e8] sm:$0xff]   ;;  %v7064_v1 = vld [vmem:[%s7266_s27 + $0xe0] sm:$0xff]  }
  0x24   : > { %v7065_v2 = vld [vmem:[%s7266_s27 + $0x3f0] sm:$0xff]   ;;  %v7066_v3 = vld [vmem:[%s7266_s27 + $0xe8] sm:$0xff]   ;;  %v7067_v4 = vld [vmem:[%s7266_s27 + $0x3f8] sm:$0xff]  }
  0x25   : > { %v7068_v5 = vld [vmem:[%s7266_s27 + $0xf0] sm:$0xff]   ;;  %v7069_v6 = vld [vmem:[%s7266_s27 + $0x400] sm:$0xff]   ;;  %v7070_v7 = vld [vmem:[%s7266_s27 + $0xf8] sm:$0xff]  }
  0x26   : > { %v7071_v8 = vld [vmem:[%s7266_s27 + $0x408] sm:$0xff]   ;;  %v7072_v9 = vld [vmem:[%s7266_s27 + $0x100] sm:$0xff]   ;;  %v7073_v10 = vld [vmem:[%s7266_s27 + $0x410] sm:$0xff]  }
  0x27   : > { %v7074_v11 = vld [vmem:[%s7266_s27 + $0x108] sm:$0xff]   ;;  %v7075_v12 = vld [vmem:[%s7266_s27 + $0x418] sm:$0xff]   ;;  %v7076_v13 = vld [vmem:[%s7266_s27 + $0x110] sm:$0xff]  }
  0x28   : > { %v7077_v14 = vld [vmem:[%s7266_s27 + $0x420] sm:$0xff]   ;;  %v7078_v15 = vld [vmem:[%s7266_s27 + $0x118] sm:$0xff]   ;;  %v7079_v16 = vld [vmem:[%s7266_s27 + $0x428] sm:$0xff]  }
  0x29   : > { %v7080_v17 = vld [vmem:[%s7266_s27 + $0x120] sm:$0xff]   ;;  %v7081_v18 = vld [vmem:[%s7266_s27 + $0x430] sm:$0xff]  }
  0x2a   : > { %6599 = vmatmul.mubr.msk.bf16.gmra.mrb[8].mxu0 %vm1590_vm2, %v7018_v19  ;;  %6795 = vmatmul.mubr.msk.bf16.gmra.mrb[8].mxu1 %vm1590_vm2, %v7019_v20  ;;  %v7082_v19 = vld [vmem:[%s7266_s27 + $0x128] sm:$0xff]   ;;  %v7083_v20 = vld [vmem:[%s7266_s27 + $0x438] sm:$0xff]  }
  0x2b   : > { %6602 = vmatprep.mubr.msk.bf16.mxu0 %vm1590_vm2, %v7020_v21  ;;  %6798 = vmatprep.mubr.msk.bf16.mxu1 %vm1590_vm2, %v7021_v22  ;;  %v7084_v21 = vld [vmem:[%s7266_s27 + $0x130] sm:$0xff]   ;;  %v7085_v22 = vld [vmem:[%s7266_s27 + $0x440] sm:$0xff]  }
  0x32   : > { %6603 = vmatmul.mubr.msk.bf16.gmra.mrb[12].mxu0 %vm1590_vm2, %v7022_v23  ;;  %6799 = vmatmul.mubr.msk.bf16.gmra.mrb[12].mxu1 %vm1590_vm2, %v7023_v24  ;;  %v7086_v23 = vld [vmem:[%s7266_s27 + $0x138] sm:$0xff]   ;;  %v7087_v24 = vld [vmem:[%s7266_s27 + $0x448] sm:$0xff]  }
  0x33   : > { %6606 = vmatprep.mubr.msk.bf16.mxu0 %vm1590_vm2, %v7024_v25  ;;  %6802 = vmatprep.mubr.msk.bf16.mxu1 %vm1590_vm2, %v7025_v26  ;;  %v7088_v25 = vld [vmem:[%s7266_s27 + $0x140] sm:$0xff]   ;;  %v7089_v26 = vld [vmem:[%s7266_s27 + $0x450] sm:$0xff]  }
  0x3a   : > { %6607 = vmatmul.mubr.msk.bf16.gmra.mrb[16].mxu0 %vm1590_vm2, %v7026_v27  ;;  %6803 = vmatmul.mubr.msk.bf16.gmra.mrb[16].mxu1 %vm1590_vm2, %v7027_v28  ;;  %v7090_v27 = vld [vmem:[%s7266_s27 + $0x148] sm:$0xff]   ;;  %v7091_v28 = vld [vmem:[%s7266_s27 + $0x458] sm:$0xff]  }
  0x3b   : > { %6610 = vmatprep.mubr.msk.bf16.mxu0 %vm1590_vm2, %v7028_v29  ;;  %6806 = vmatprep.mubr.msk.bf16.mxu1 %vm1590_vm2, %v7029_v30  ;;  %v7092_v29 = vld [vmem:[%s7266_s27 + $0x150] sm:$0xff]   ;;  %v7093_v30 = vld [vmem:[%s7266_s27 + $0x460] sm:$0xff]  }
  0x42   : > { %6611 = vmatmul.mubr.msk.bf16.gmra.mrb[20].mxu0 %vm1590_vm2, %v7030_v31  ;;  %6807 = vmatmul.mubr.msk.bf16.gmra.mrb[20].mxu1 %vm1590_vm2, %v7031_v32  ;;  %v7094_v31 = vld [vmem:[%s7266_s27 + $0x158] sm:$0xff]   ;;  %v7095_v32 = vld [vmem:[%s7266_s27 + $0x468] sm:$0xff]  }
  0x43   : > { %6614 = vmatprep.mubr.msk.bf16.mxu0 %vm1590_vm2, %v7032_v33  ;;  %6810 = vmatprep.mubr.msk.bf16.mxu1 %vm1590_vm2, %v7033_v34  ;;  %v7096_v33 = vld [vmem:[%s7266_s27 + $0x160] sm:$0xff]   ;;  %v7097_v34 = vld [vmem:[%s7266_s27 + $0x470] sm:$0xff]  }
  0x4a   : > { %6615 = vmatmul.mubr.msk.bf16.gmra.mrb[24].mxu0 %vm1590_vm2, %v7034_v35  ;;  %6811 = vmatmul.mubr.msk.bf16.gmra.mrb[24].mxu1 %vm1590_vm2, %v7035_v36  ;;  %v7098_v35 = vld [vmem:[%s7266_s27 + $0x168] sm:$0xff]   ;;  %v7099_v36 = vld [vmem:[%s7266_s27 + $0x478] sm:$0xff]  }
  0x4b   : > { %6618 = vmatprep.mubr.msk.bf16.mxu0 %vm1590_vm2, %v7036_v37  ;;  %6814 = vmatprep.mubr.msk.bf16.mxu1 %vm1590_vm2, %v7037_v38  ;;  %v7100_v37 = vld [vmem:[%s7266_s27 + $0x170] sm:$0xff]   ;;  %v7101_v38 = vld [vmem:[%s7266_s27 + $0x480] sm:$0xff]  }
  0x52   : > { %6619 = vmatmul.mubr.msk.bf16.gmra.mrb[28].mxu0 %vm1590_vm2, %v7038_v39  ;;  %6815 = vmatmul.mubr.msk.bf16.gmra.mrb[28].mxu1 %vm1590_vm2, %v7039_v40  ;;  %v7102_v39 = vld [vmem:[%s7266_s27 + $0x178] sm:$0xff]   ;;  %v7103_v40 = vld [vmem:[%s7266_s27 + $0x488] sm:$0xff]  }
  0x53   : > { %6622 = vmatprep.mubr.msk.bf16.mxu0 %vm1590_vm2, %v7040_v41  ;;  %6818 = vmatprep.mubr.msk.bf16.mxu1 %vm1590_vm2, %v7041_v42  ;;  %v7104_v41 = vld [vmem:[%s7266_s27 + $0x180] sm:$0xff]   ;;  %v7105_v42 = vld [vmem:[%s7266_s27 + $0x490] sm:$0xff]  }
  0x5a   : > { %6623 = vmatmul.mubr.msk.bf16.gmra.mrb[32].mxu0 %vm1590_vm2, %v7042_v43  ;;  %6819 = vmatmul.mubr.msk.bf16.gmra.mrb[32].mxu1 %vm1590_vm2, %v7043_v44  ;;  %v7106_v43 = vld [vmem:[%s7266_s27 + $0x188] sm:$0xff]   ;;  %v7107_v44 = vld [vmem:[%s7266_s27 + $0x498] sm:$0xff]  }
  0x5b   : > { %6626 = vmatprep.mubr.msk.bf16.mxu0 %vm1590_vm2, %v7044_v45  ;;  %6822 = vmatprep.mubr.msk.bf16.mxu1 %vm1590_vm2, %v7045_v46  ;;  %v7108_v45 = vld [vmem:[%s7266_s27 + $0x190] sm:$0xff]   ;;  %v7109_v46 = vld [vmem:[%s7266_s27 + $0x4a0] sm:$0xff]  }
  0x62   : > { %6627 = vmatmul.mubr.msk.bf16.gmra.mrb[36].mxu0 %vm1590_vm2, %v7046_v47  ;;  %6823 = vmatmul.mubr.msk.bf16.gmra.mrb[36].mxu1 %vm1590_vm2, %v7047_v48  ;;  %v7110_v47 = vld [vmem:[%s7266_s27 + $0x198] sm:$0xff]   ;;  %v7111_v48 = vld [vmem:[%s7266_s27 + $0x4a8] sm:$0xff]  }
  0x63   : > { %6630 = vmatprep.mubr.msk.bf16.mxu0 %vm1590_vm2, %v7048_v49  ;;  %6826 = vmatprep.mubr.msk.bf16.mxu1 %vm1590_vm2, %v7049_v50  ;;  %v7112_v49 = vld [vmem:[%s7266_s27 + $0x1a0] sm:$0xff]   ;;  %v7113_v50 = vld [vmem:[%s7266_s27 + $0x4b0] sm:$0xff]  }
  0x6a   : > { %6631 = vmatmul.mubr.msk.bf16.gmra.mrb[40].mxu0 %vm1590_vm2, %v7050_v51  ;;  %6827 = vmatmul.mubr.msk.bf16.gmra.mrb[40].mxu1 %vm1590_vm2, %v7051_v52  ;;  %v7114_v51 = vld [vmem:[%s7266_s27 + $0x1a8] sm:$0xff]   ;;  %v7115_v52 = vld [vmem:[%s7266_s27 + $0x4b8] sm:$0xff]  }
  0x6b   : > { %6634 = vmatprep.mubr.msk.bf16.mxu0 %vm1590_vm2, %v7052_v53  ;;  %6830 = vmatprep.mubr.msk.bf16.mxu1 %vm1590_vm2, %v7053_v54  ;;  %v7116_v53 = vld [vmem:[%s7266_s27 + $0x1b0] sm:$0xff]   ;;  %v7117_v54 = vld [vmem:[%s7266_s27 + $0x4c0] sm:$0xff]  }
  0x72   : > { %6635 = vmatmul.mubr.msk.bf16.gmra.mrb[44].mxu0 %vm1590_vm2, %v7054_v55  ;;  %6831 = vmatmul.mubr.msk.bf16.gmra.mrb[44].mxu1 %vm1590_vm2, %v7055_v56 }
  0x73   : > { %6638 = vmatprep.mubr.msk.bf16.mxu0 %vm1590_vm2, %v7056_v57  ;;  %6834 = vmatprep.mubr.msk.bf16.mxu1 %vm1590_vm2, %v7057_v58 }
  0x7a   : > { %6639 = vmatmul.mubr.msk.bf16.gmra.mrb[48].mxu0 %vm1590_vm2, %v7058_v59  ;;  %6835 = vmatmul.mubr.msk.bf16.gmra.mrb[48].mxu1 %vm1590_vm2, %v7059_v60  ;;  %v7118_v59 = vld [vmem:[%s7266_s27 + $0x1b8] sm:$0xff]   ;;  %v7119_v60 = vld [vmem:[%s7266_s27 + $0x4c8] sm:$0xff]  }
  0x7b   : > { %6642 = vmatprep.mubr.msk.bf16.mxu0 %vm1590_vm2, %v7060_v61  ;;  %6838 = vmatprep.mubr.msk.bf16.mxu1 %vm1590_vm2, %v7061_v62 }
  0x82   : > { %6643 = vmatmul.mubr.msk.bf16.gmra.mrb[52].mxu0 %vm1590_vm2, %v7062_v63  ;;  %6839 = vmatmul.mubr.msk.bf16.gmra.mrb[52].mxu1 %vm1590_vm2, %v7063_v0  ;;  %v7120_v63 = vld [vmem:[%s7266_s27 + $0x1c0] sm:$0xff]   ;;  %v7121_v0 = vld [vmem:[%s7266_s27 + $0x4d0] sm:$0xff]  }
  0x83   : > { %6646 = vmatprep.mubr.msk.bf16.mxu0 %vm1590_vm2, %v7064_v1  ;;  %6842 = vmatprep.mubr.msk.bf16.mxu1 %vm1590_vm2, %v7065_v2 }
  0x8a   : > { %6647 = vmatmul.mubr.msk.bf16.gmra.mrb[56].mxu0 %vm1590_vm2, %v7066_v3  ;;  %6843 = vmatmul.mubr.msk.bf16.gmra.mrb[56].mxu1 %vm1590_vm2, %v7067_v4  ;;  %v7495_v3 = vld [vmem:[%s9044_s2] ss:$0 sm:$0xff] }
  0x8b   : > { %6650 = vmatprep.mubr.msk.bf16.mxu0 %vm1590_vm2, %v7068_v5  ;;  %6846 = vmatprep.mubr.msk.bf16.mxu1 %vm1590_vm2, %v7069_v6 }
  0x92   : > { %6651 = vmatmul.mubr.msk.bf16.gmra.mrb[60].mxu0 %vm1590_vm2, %v7070_v7  ;;  %6847 = vmatmul.mubr.msk.bf16.gmra.mrb[60].mxu1 %vm1590_vm2, %v7071_v8 }
  0x93   : > { %6654 = vmatprep.mubr.msk.bf16.mxu0 %vm1590_vm2, %v7072_v9  ;;  %6850 = vmatprep.mubr.msk.bf16.mxu1 %vm1590_vm2, %v7073_v10  ;;  %v7122_v10 = vld [vmem:[%s7266_s27 + $0x1c8] sm:$0xff]  }
  0x9a   : > { %6655 = vmatmul.mubr.msk.bf16.gmra.mrb[64].mxu0 %vm1590_vm2, %v7074_v11  ;;  %6851 = vmatmul.mubr.msk.bf16.gmra.mrb[64].mxu1 %vm1590_vm2, %v7075_v12  ;;  %v7123_v11 = vld [vmem:[%s7266_s27 + $0x4d8] sm:$0xff]  }
  0x9b   : > { %6658 = vmatprep.mubr.msk.bf16.mxu0 %vm1590_vm2, %v7076_v13  ;;  %6854 = vmatprep.mubr.msk.bf16.mxu1 %vm1590_vm2, %v7077_v14  ;;  %v7124_v14 = vld [vmem:[%s7266_s27 + $0x1d0] sm:$0xff]  }
  0xa2   : > { %6659 = vmatmul.mubr.msk.bf16.gmra.mrb[68].mxu0 %vm1590_vm2, %v7078_v15  ;;  %6855 = vmatmul.mubr.msk.bf16.gmra.mrb[68].mxu1 %vm1590_vm2, %v7079_v16  ;;  %v7125_v15 = vld [vmem:[%s7266_s27 + $0x4e0] sm:$0xff]  }
  0xa3   : > { %6662 = vmatprep.mubr.msk.bf16.mxu0 %vm1590_vm2, %v7080_v17  ;;  %6858 = vmatprep.mubr.msk.bf16.mxu1 %vm1590_vm2, %v7081_v18 }
  0xaa   : > { %6663 = vmatmul.mubr.msk.bf16.gmra.mrb[72].mxu0 %vm1590_vm2, %v7082_v19  ;;  %6859 = vmatmul.mubr.msk.bf16.gmra.mrb[72].mxu1 %vm1590_vm2, %v7083_v20 }
  0xab   : > { %6666 = vmatprep.mubr.msk.bf16.mxu0 %vm1590_vm2, %v7084_v21  ;;  %6862 = vmatprep.mubr.msk.bf16.mxu1 %vm1590_vm2, %v7085_v22 }
  0xb2   : > { %6667 = vmatmul.mubr.msk.bf16.gmra.mrb[76].mxu0 %vm1590_vm2, %v7086_v23  ;;  %6863 = vmatmul.mubr.msk.bf16.gmra.mrb[76].mxu1 %vm1590_vm2, %v7087_v24 }
  0xb3   : > { %6670 = vmatprep.mubr.msk.bf16.mxu0 %vm1590_vm2, %v7088_v25  ;;  %6866 = vmatprep.mubr.msk.bf16.mxu1 %vm1590_vm2, %v7089_v26 }
  0xba   : > { %6671 = vmatmul.mubr.msk.bf16.gmra.mrb[80].mxu0 %vm1590_vm2, %v7090_v27  ;;  %6867 = vmatmul.mubr.msk.bf16.gmra.mrb[80].mxu1 %vm1590_vm2, %v7091_v28 }
  0xbb   : > { %6674 = vmatprep.mubr.msk.bf16.mxu0 %vm1590_vm2, %v7092_v29  ;;  %6870 = vmatprep.mubr.msk.bf16.mxu1 %vm1590_vm2, %v7093_v30 }
  0xc2   : > { %6675 = vmatmul.mubr.msk.bf16.gmra.mrb[84].mxu0 %vm1590_vm2, %v7094_v31  ;;  %6871 = vmatmul.mubr.msk.bf16.gmra.mrb[84].mxu1 %vm1590_vm2, %v7095_v32 }
  0xc3   : > { %6678 = vmatprep.mubr.msk.bf16.mxu0 %vm1590_vm2, %v7096_v33  ;;  %6874 = vmatprep.mubr.msk.bf16.mxu1 %vm1590_vm2, %v7097_v34 }
  0xca   : > { %6679 = vmatmul.mubr.msk.bf16.gmra.mrb[88].mxu0 %vm1590_vm2, %v7098_v35  ;;  %6875 = vmatmul.mubr.msk.bf16.gmra.mrb[88].mxu1 %vm1590_vm2, %v7099_v36 }
  0xcb   : > { %6682 = vmatprep.mubr.msk.bf16.mxu0 %vm1590_vm2, %v7100_v37  ;;  %6878 = vmatprep.mubr.msk.bf16.mxu1 %vm1590_vm2, %v7101_v38 }
  0xd2   : > { %6683 = vmatmul.mubr.msk.bf16.gmra.mrb[92].mxu0 %vm1590_vm2, %v7102_v39  ;;  %6879 = vmatmul.mubr.msk.bf16.gmra.mrb[92].mxu1 %vm1590_vm2, %v7103_v40 }
  0xd3   : > { %6686 = vmatprep.mubr.msk.bf16.mxu0 %vm1590_vm2, %v7104_v41  ;;  %6882 = vmatprep.mubr.msk.bf16.mxu1 %vm1590_vm2, %v7105_v42 }
  0xda   : > { %6687 = vmatmul.mubr.msk.bf16.gmra.mrb[96].mxu0 %vm1590_vm2, %v7106_v43  ;;  %6883 = vmatmul.mubr.msk.bf16.gmra.mrb[96].mxu1 %vm1590_vm2, %v7107_v44 }
  0xdb   : > { %6690 = vmatprep.mubr.msk.bf16.mxu0 %vm1590_vm2, %v7108_v45  ;;  %6886 = vmatprep.mubr.msk.bf16.mxu1 %vm1590_vm2, %v7109_v46  ;;  %v7126_v46 = vld [vmem:[%s7266_s27 + $0x1d8] sm:$0xff]  }
  0xe2   : > { %6691 = vmatmul.mubr.msk.bf16.gmra.mrb[100].mxu0 %vm1590_vm2, %v7110_v47  ;;  %6887 = vmatmul.mubr.msk.bf16.gmra.mrb[100].mxu1 %vm1590_vm2, %v7111_v48  ;;  %v7127_v47 = vld [vmem:[%s7266_s27 + $0x4e8] sm:$0xff]  }
  0xe3   : > { %6694 = vmatprep.mubr.msk.bf16.mxu0 %vm1590_vm2, %v7112_v49  ;;  %6890 = vmatprep.mubr.msk.bf16.mxu1 %vm1590_vm2, %v7113_v50 }
  0xea   : > { %6695 = vmatmul.mubr.msk.bf16.gmra.mrb[104].mxu0 %vm1590_vm2, %v7114_v51  ;;  %6891 = vmatmul.mubr.msk.bf16.gmra.mrb[104].mxu1 %vm1590_vm2, %v7115_v52 }
  0xeb   : > { %6698 = vmatprep.mubr.msk.bf16.mxu0 %vm1590_vm2, %v7116_v53  ;;  %6894 = vmatprep.mubr.msk.bf16.mxu1 %vm1590_vm2, %v7117_v54  ;;  %v7128_v54 = vld [vmem:[%s7266_s27 + $0x1e0] sm:$0xff]  }
  0xed   : > { %v6592_v55 = vpop.f32.mrb[0].mxu0  ;;  %v6788_v56 = vpop.f32.mrb[0].mxu1 }
  0xee   : > { %v2220_v57 = vpop.f32.mrb[1].mxu0  ;;  %v3004_v58 = vpop.f32.mrb[1].mxu1  ;;  %v7512_v16 = vadd.f32 %v6592_v55, %v7495_v3  ;;  %v7515_v17 = vadd.f32 %v6788_v56, %v7495_v3  ;;  %v7129_v55 = vld [vmem:[%s7266_s27 + $0x4f0] sm:$0xff]  }
  0xef   : > { %v6593_v61 = vpop.f32.mrb[2].mxu0  ;;  %v6789_v62 = vpop.f32.mrb[2].mxu1  ;;  %v2221_v4 = vadd.f32 %v7495_v3, %v2220_v57  ;;  %v3005_v5 = vadd.f32 %v7495_v3, %v3004_v58 }
  0xf0   : > { %v2223_v1 = vpop.f32.mrb[3].mxu0  ;;  %v3007_v2 = vpop.f32.mrb[3].mxu1  ;;  %v2232_v24 = vadd.f32 %v6593_v61, %v7495_v3  ;;  %v3016_v25 = vadd.f32 %v6789_v62, %v7495_v3  ;;  %v3789_v34 = vmax.f32 %v7512_v16, 0.0  ;;  %v3985_v35 = vmax.f32 %v7515_v17, 0.0 }
  0xf1   : > { %v3787_v22 = vmax.f32 %v2221_v4, 0.0  ;;  %v3983_v23 = vmax.f32 %v3005_v5, 0.0  ;;  %v2224_v26 = vadd.f32 %v7495_v3, %v2223_v1  ;;  %v3008_v27 = vadd.f32 %v7495_v3, %v3007_v2 }
  0xf2   : > { %6699 = vmatmul.mubr.msk.bf16.gmra.mrb[108].mxu0 %vm1590_vm2, %v7118_v59  ;;  %6895 = vmatmul.mubr.msk.bf16.gmra.mrb[108].mxu1 %vm1590_vm2, %v7119_v60  ;;  %v3790_v36 = vmax.f32 %v2232_v24, 0.0  ;;  %v3986_v37 = vmax.f32 %v3016_v25, 0.0  ;;  %v7130_v25 = vld [vmem:[%s7266_s27 + $0x1e8] sm:$0xff]  }
  0xf3   : > { %6702 = vmatprep.mubr.msk.bf16.mxu0 %vm1590_vm2, %v7120_v63  ;;  %6898 = vmatprep.mubr.msk.bf16.mxu1 %vm1590_vm2, %v7121_v0  ;;  %v3788_v40 = vmax.f32 %v2224_v26, 0.0  ;;  %v3984_v41 = vmax.f32 %v3008_v27, 0.0  ;;  %v7131_v26 = vld [vmem:[%s7266_s27 + $0x4f8] sm:$0xff]  }
  0xf5   : > { %v7503_v6 = vpop.f32.mrb[4].mxu0  ;;  %v7505_v7 = vpop.f32.mrb[4].mxu1 }
  0xf6   : > { %v2236_v8 = vpop.f32.mrb[5].mxu0  ;;  %v3020_v9 = vpop.f32.mrb[5].mxu1 }
  0xf7   : > { %v6597_v12 = vpop.f32.mrb[6].mxu0  ;;  %v6793_v13 = vpop.f32.mrb[6].mxu1  ;;  %v2237_v30 = vadd.f32 %v7495_v3, %v2236_v8  ;;  %v3021_v31 = vadd.f32 %v7495_v3, %v3020_v9 }
  0xf8   : > { %v2248_v18 = vadd.f32 %v6597_v12, %v7495_v3  ;;  %v3032_v19 = vadd.f32 %v6793_v13, %v7495_v3  ;;  %v7519_v20 = vpop.f32.mrb[7].mxu0  ;;  %v7521_v21 = vpop.f32.mrb[7].mxu1 }
  0xf9   : > { %v3791_v48 = vmax.f32 %v2237_v30, 0.0  ;;  %v3987_v49 = vmax.f32 %v3021_v31, 0.0  ;;  %v2240_v13 = vadd.f32 %v7495_v3, %v7519_v20  ;;  %v7133_v30 = vld [vmem:[%s7266_s27 + $0x500] sm:$0xff]  }
  0xfa   : > { %v3794_v28 = vmax.f32 %v2248_v18, 0.0  ;;  %v3990_v29 = vmax.f32 %v3032_v19, 0.0  ;;  %6703 = vmatmul.mubr.msk.bf16.gmra.mrb[112].mxu0 %vm1590_vm2, %v7122_v10  ;;  %6899 = vmatmul.mubr.msk.bf16.gmra.mrb[112].mxu1 %vm1590_vm2, %v7123_v11 }
  0xfb   : > { %6706 = vmatprep.mubr.msk.bf16.mxu0 %vm1590_vm2, %v7124_v14  ;;  %6902 = vmatprep.mubr.msk.bf16.mxu1 %vm1590_vm2, %v7125_v15  ;;  %v3024_v14 = vadd.f32 %v7495_v3, %v7521_v21  ;;  %v2245_v21 = vadd.f32 %v7503_v6, %v7495_v3  ;;  %v3792_v31 = vmax.f32 %v2240_v13, 0.0 }
  0xfc   : > { %v4179_v32 = vmax.f32 %v3787_v22, %v3794_v28  ;;  %v4277_v33 = vmax.f32 %v3983_v23, %v3990_v29  ;;  %v3029_v22 = vadd.f32 %v7505_v7, %v7495_v3  ;;  %v7132_v7 = vld [vmem:[%s7266_s27 + $0x1f0] sm:$0xff]  }
  0xfd   : > { %v6600_v38 = vpop.f32.mrb[8].mxu0  ;;  %v6796_v39 = vpop.f32.mrb[8].mxu1 }
  0xfe   : > { %4376 = vst.msk [vmem:[#allocation2] sm:$0xff] %vm4375_vm3, %v4179_v32  ;;  %4474 = vst.msk [vmem:[#allocation2 + $0x310] sm:$0xff] %vm4375_vm3, %v4277_v33  ;;  %v2261_v42 = vadd.f32 %v6600_v38, %v7495_v3  ;;  %v3045_v43 = vadd.f32 %v6796_v39, %v7495_v3  ;;  %v2252_v44 = vpop.f32.mrb[9].mxu0  ;;  %v3036_v45 = vpop.f32.mrb[9].mxu1  ;;  %v3988_v32 = vmax.f32 %v3024_v14, 0.0  ;;  %v3793_v39 = vmax.f32 %v2245_v21, 0.0 }
  0xff   : > { %v2253_v50 = vadd.f32 %v7495_v3, %v2252_v44  ;;  %v3037_v51 = vadd.f32 %v7495_v3, %v3036_v45  ;;  %v6601_v52 = vpop.f32.mrb[10].mxu0  ;;  %v6797_v53 = vpop.f32.mrb[10].mxu1  ;;  %v7137_v14 = vld [vmem:[%s7266_s27 + $0x510] sm:$0xff]  }
 0x100   : > { %v3797_v56 = vmax.f32 %v2261_v42, 0.0  ;;  %v3993_v57 = vmax.f32 %v3045_v43, 0.0  ;;  %v2264_v58 = vadd.f32 %v6601_v52, %v7495_v3  ;;  %v3048_v59 = vadd.f32 %v6797_v53, %v7495_v3  ;;  %v2255_v60 = vpop.f32.mrb[11].mxu0  ;;  %v3039_v61 = vpop.f32.mrb[11].mxu1 }
 0x101   : > { %v3795_v62 = vmax.f32 %v2253_v50, 0.0  ;;  %v3991_v63 = vmax.f32 %v3037_v51, 0.0  ;;  %v2256_v0 = vadd.f32 %v7495_v3, %v2255_v60  ;;  %v3040_v1 = vadd.f32 %v7495_v3, %v3039_v61 }
 0x102   : > { %v4182_v2 = vmax.f32 %v3790_v36, %v3797_v56  ;;  %v4280_v4 = vmax.f32 %v3986_v37, %v3993_v57  ;;  %v3798_v5 = vmax.f32 %v2264_v58, 0.0  ;;  %v3994_v8 = vmax.f32 %v3048_v59, 0.0  ;;  %6707 = vmatmul.mubr.msk.bf16.gmra.mrb[116].mxu0 %vm1590_vm2, %v7126_v46  ;;  %6903 = vmatmul.mubr.msk.bf16.gmra.mrb[116].mxu1 %vm1590_vm2, %v7127_v47 }
 0x103   : > { %v4180_v9 = vmax.f32 %v3788_v40, %v3795_v62  ;;  %v4278_v10 = vmax.f32 %v3984_v41, %v3991_v63  ;;  %v3796_v11 = vmax.f32 %v2256_v0, 0.0  ;;  %v3992_v12 = vmax.f32 %v3040_v1, 0.0  ;;  %6710 = vmatprep.mubr.msk.bf16.mxu0 %vm1590_vm2, %v7128_v54  ;;  %6906 = vmatprep.mubr.msk.bf16.mxu1 %vm1590_vm2, %v7129_v55  ;;  %v7134_v54 = vld [vmem:[%s7266_s27 + $0x1f8] sm:$0xff]  }
 0x104   : > { %4379 = vst.msk [vmem:[#allocation2 + $0x18] sm:$0xff] %vm4375_vm3, %v4182_v2  ;;  %4477 = vst.msk [vmem:[#allocation2 + $0x328] sm:$0xff] %vm4375_vm3, %v4280_v4  ;;  %v4183_v15 = vmax.f32 %v3791_v48, %v3798_v5  ;;  %v4281_v16 = vmax.f32 %v3987_v49, %v3994_v8  ;;  %v3989_v40 = vmax.f32 %v3029_v22, 0.0  ;;  %v7135_v8 = vld [vmem:[%s7266_s27 + $0x508] sm:$0xff]  }
 0x105   : > { %4377 = vst.msk [vmem:[#allocation2 + $0x8] sm:$0xff] %vm4375_vm3, %v4180_v9  ;;  %4475 = vst.msk [vmem:[#allocation2 + $0x318] sm:$0xff] %vm4375_vm3, %v4278_v10  ;;  %v4181_v17 = vmax.f32 %v3789_v34, %v3796_v11  ;;  %v4279_v18 = vmax.f32 %v3985_v35, %v3992_v12  ;;  %v6604_v19 = vpop.f32.mrb[12].mxu0  ;;  %v6800_v20 = vpop.f32.mrb[12].mxu1  ;;  %v7136_v9 = vld [vmem:[%s7266_s27 + $0x200] sm:$0xff]  }
 0x106   : > { %4380 = vst.msk [vmem:[#allocation2 + $0x20] sm:$0xff] %vm4375_vm3, %v4183_v15  ;;  %4478 = vst.msk [vmem:[#allocation2 + $0x330] sm:$0xff] %vm4375_vm3, %v4281_v16  ;;  %v2268_v23 = vpop.f32.mrb[13].mxu0  ;;  %v3052_v24 = vpop.f32.mrb[13].mxu1  ;;  %v7591_v59 = vadd.f32 %v6604_v19, %v7495_v3  ;;  %v7594_v60 = vadd.f32 %v6800_v20, %v7495_v3 }
 0x107   : > { %4378 = vst.msk [vmem:[#allocation2 + $0x10] sm:$0xff] %vm4375_vm3, %v4181_v17  ;;  %4476 = vst.msk [vmem:[#allocation2 + $0x320] sm:$0xff] %vm4375_vm3, %v4279_v18  ;;  %v2269_v27 = vadd.f32 %v7495_v3, %v2268_v23  ;;  %v3053_v6 = vadd.f32 %v7495_v3, %v3052_v24  ;;  %v6605_v28 = vpop.f32.mrb[14].mxu0  ;;  %v6801_v29 = vpop.f32.mrb[14].mxu1 }
 0x108   : > { %v2271_v33 = vpop.f32.mrb[15].mxu0  ;;  %v3055_v34 = vpop.f32.mrb[15].mxu1  ;;  %v7597_v61 = vadd.f32 %v6605_v28, %v7495_v3  ;;  %v7600_v1 = vadd.f32 %v6801_v29, %v7495_v3  ;;  %v3801_v21 = vmax.f32 %v7591_v59, 0.0  ;;  %v3997_v22 = vmax.f32 %v7594_v60, 0.0  ;;  %v7138_v29 = vld [vmem:[%s7266_s27 + $0x208] sm:$0xff]  }
 0x109   : > { %v3799_v35 = vmax.f32 %v2269_v27, 0.0  ;;  %v3995_v36 = vmax.f32 %v3053_v6, 0.0  ;;  %v2272_v37 = vadd.f32 %v7495_v3, %v2271_v33  ;;  %v3056_v38 = vadd.f32 %v7495_v3, %v3055_v34 }
 0x10a   : > { %6711 = vmatmul.mubr.msk.bf16.gmra.mrb[120].mxu0 %vm1590_vm2, %v7130_v25  ;;  %6907 = vmatmul.mubr.msk.bf16.gmra.mrb[120].mxu1 %vm1590_vm2, %v7131_v26  ;;  %v3802_v23 = vmax.f32 %v7597_v61, 0.0  ;;  %v3998_v24 = vmax.f32 %v7600_v1, 0.0 }
 0x10b   : > { %v4184_v41 = vmax.f32 %v3792_v31, %v3799_v35  ;;  %v4282_v42 = vmax.f32 %v3988_v32, %v3995_v36  ;;  %v3800_v43 = vmax.f32 %v2272_v37, 0.0  ;;  %v3996_v44 = vmax.f32 %v3056_v38, 0.0  ;;  %6714 = vmatprep.mubr.msk.bf16.mxu0 %vm1590_vm2, %v7132_v7  ;;  %6910 = vmatprep.mubr.msk.bf16.mxu1 %vm1590_vm2, %v7133_v30  ;;  %v7139_v35 = vld [vmem:[%s7266_s27 + $0x518] sm:$0xff]   ;;  %v7140_v36 = vld [vmem:[%s7266_s27 + $0x210] sm:$0xff]  }
 0x10c   : > { %v4572_v45 = vld [vmem:[#allocation2] ss:$2 sm:$0xff]  ;;  %v4796_v46 = vld [vmem:[#allocation2 + $0x1] ss:$2 sm:$0xff]  ;;  %v4684_v47 = vld [vmem:[#allocation2 + $0x310] ss:$2 sm:$0xff] }
 0x10d   : > { %v5019_v48 = vmax.f32 %v4572_v45, %v4796_v46  ;;  %v4908_v49 = vld [vmem:[#allocation2 + $0x311] ss:$2 sm:$0xff]  ;;  %4381 = vst.msk [vmem:[#allocation2 + $0x28] sm:$0xff] %vm4375_vm3, %v4184_v41  ;;  %4479 = vst.msk [vmem:[#allocation2 + $0x338] sm:$0xff] %vm4375_vm3, %v4282_v42  ;;  %v4185_v50 = vmax.f32 %v3793_v39, %v3800_v43  ;;  %v4283_v51 = vmax.f32 %v3989_v40, %v3996_v44  ;;  %v6608_v52 = vpop.f32.mrb[16].mxu0  ;;  %v6804_v53 = vpop.f32.mrb[16].mxu1 }
 0x10e   : > { %v5075_v55 = vmax.f32 %v4684_v47, %v4908_v49  ;;  %v4574_v56 = vld [vmem:[#allocation2 + $0x10] ss:$2 sm:$0xff]  ;;  %v4798_v57 = vld [vmem:[#allocation2 + $0x11] ss:$2 sm:$0xff]  ;;  %v4686_v58 = vld [vmem:[#allocation2 + $0x320] ss:$2 sm:$0xff]  ;;  %v7605_v2 = vadd.f32 %v6608_v52, %v7495_v3  ;;  %v7645_v40 = vadd.f32 %v6804_v53, %v7495_v3 }
 0x10f   : > { %v6267_v62 = vpack.c.bf16 %v5019_v48, %v5019_v48  ;;  %v5020_v63 = vmax.f32 %v4574_v56, %v4798_v57  ;;  %v4910_v0 = vld [vmem:[#allocation2 + $0x321] ss:$2 sm:$0xff]  ;;  %4382 = vst.msk [vmem:[#allocation2 + $0x30] sm:$0xff] %vm4375_vm3, %v4185_v50  ;;  %4480 = vst.msk [vmem:[#allocation2 + $0x340] sm:$0xff] %vm4375_vm3, %v4283_v51  ;;  %v2284_v4 = vpop.f32.mrb[17].mxu0  ;;  %v3068_v5 = vpop.f32.mrb[17].mxu1 }
 0x110   : > { %v6323_v10 = vpack.c.bf16 %v5075_v55, %v5075_v55  ;;  %v5076_v11 = vmax.f32 %v4686_v58, %v4910_v0  ;;  %v6609_v12 = vpop.f32.mrb[18].mxu0  ;;  %v6805_v13 = vpop.f32.mrb[18].mxu1  ;;  %v7613_v16 = vadd.f32 %v7495_v3, %v2284_v4  ;;  %v7616_v17 = vadd.f32 %v7495_v3, %v3068_v5 }
 0x111   : > { %5580 = vst.msk [vmem:[%s7588_s6] sm:$0xf] %vm5579_vm4, %v6267_v62  ;;  %v6268_v15 = vpack.c.bf16 %v5020_v63, %v5020_v63  ;;  %v2287_v18 = vpop.f32.mrb[19].mxu0  ;;  %v3071_v19 = vpop.f32.mrb[19].mxu1  ;;  %v3805_v25 = vmax.f32 %v7605_v2, 0.0  ;;  %v7633_v28 = vadd.f32 %v6609_v12, %v7495_v3  ;;  %v7640_v33 = vadd.f32 %v6805_v13, %v7495_v3 }
 0x112   : > { %5637 = vst.msk [vmem:[%s7588_s6 + $0xe0] sm:$0xf] %vm5579_vm4, %v6323_v10  ;;  %v6324_v20 = vpack.c.bf16 %v5076_v11, %v5076_v11  ;;  %6715 = vmatmul.mubr.msk.bf16.gmra.mrb[124].mxu0 %vm1590_vm2, %v7134_v54  ;;  %6911 = vmatmul.mubr.msk.bf16.gmra.mrb[124].mxu1 %vm1590_vm2, %v7135_v8  ;;  %v3803_v31 = vmax.f32 %v7613_v16, 0.0  ;;  %v3999_v32 = vmax.f32 %v7616_v17, 0.0  ;;  %v7649_v46 = vadd.f32 %v7495_v3, %v2287_v18  ;;  %v7141_v54 = vld [vmem:[%s7266_s27 + $0x520] sm:$0xff]  }
 0x113   : > { %5581 = vst.msk [vmem:[%s7588_s6 + $0x4] sm:$0xf] %vm5579_vm4, %v6268_v15  ;;  %6718 = vmatprep.mubr.msk.bf16.mxu0 %vm1590_vm2, %v7136_v9  ;;  %6914 = vmatprep.mubr.msk.bf16.mxu1 %vm1590_vm2, %v7137_v14  ;;  %v7652_v47 = vadd.f32 %v7495_v3, %v3071_v19  ;;  %v3806_v50 = vmax.f32 %v7633_v28, 0.0  ;;  %v4002_v56 = vmax.f32 %v7640_v33, 0.0 }
 0x114   : > { %5638 = vst.msk [vmem:[%s7588_s6 + $0xe4] sm:$0xf] %vm5579_vm4, %v6324_v20  ;;  %v4576_v26 = vld [vmem:[#allocation2 + $0x20] ss:$2 sm:$0xff]  ;;  %v4800_v27 = vld [vmem:[#allocation2 + $0x21] ss:$2 sm:$0xff] }
 0x115   : > { %v4688_v6 = vld [vmem:[#allocation2 + $0x330] ss:$2 sm:$0xff]  ;;  %v5021_v7 = vmax.f32 %v4576_v26, %v4800_v27  ;;  %v4912_v30 = vld [vmem:[#allocation2 + $0x331] ss:$2 sm:$0xff]  ;;  %v6612_v34 = vpop.f32.mrb[20].mxu0  ;;  %v6808_v52 = vpop.f32.mrb[20].mxu1 }
 0x116   : > { %v5077_v37 = vmax.f32 %v4688_v6, %v4912_v30  ;;  %v4578_v38 = vld [vmem:[#allocation2 + $0x30] ss:$2 sm:$0xf]  ;;  %v4802_v39 = vld [vmem:[#allocation2 + $0x31] ss:$2 sm:$0xf]  ;;  %v2309_v41 = vadd.f32 %v6612_v34, %v7495_v3  ;;  %v3093_v57 = vadd.f32 %v6808_v52, %v7495_v3 }
 0x117   : > { %v6269_v42 = vpack.c.bf16 %v5021_v7, %v5021_v7  ;;  %v5022_v43 = vmax.f32 %v4578_v38, %v4802_v39  ;;  %v4690_v44 = vld [vmem:[#allocation2 + $0x340] ss:$2 sm:$0xf]  ;;  %v4914_v45 = vld [vmem:[#allocation2 + $0x341] ss:$2 sm:$0xf] }
 0x118   : > { %v6325_v48 = vpack.c.bf16 %v5077_v37, %v5077_v37  ;;  %v5078_v49 = vmax.f32 %v4690_v44, %v4914_v45  ;;  %v3809_v51 = vmax.f32 %v2309_v41, 0.0  ;;  %v2300_v53 = vpop.f32.mrb[21].mxu0  ;;  %v3084_v61 = vpop.f32.mrb[21].mxu1  ;;  %v3804_v10 = vmax.f32 %v7649_v46, 0.0  ;;  %v7142_v38 = vld [vmem:[%s7266_s27 + $0x218] sm:$0xff]   ;;  %v7144_v44 = vld [vmem:[%s7266_s27 + $0x220] sm:$0xff]  }
 0x119   : > { %5582 = vst.msk [vmem:[%s7588_s6 + $0x8] sm:$0xf] %vm5579_vm4, %v6269_v42  ;;  %v6270_v55 = vpack.c.bf16 %v5022_v43, %v5022_v43  ;;  %v7661_v58 = vadd.f32 %v7495_v3, %v2300_v53  ;;  %v6613_v62 = vpop.f32.mrb[22].mxu0  ;;  %v7666_v4 = vadd.f32 %v7495_v3, %v3084_v61  ;;  %v6809_v8 = vpop.f32.mrb[22].mxu1  ;;  %v4005_v11 = vmax.f32 %v3093_v57, 0.0  ;;  %v7143_v43 = vld [vmem:[%s7266_s27 + $0x528] sm:$0xff]  }
 0x11a   : > { %5639 = vst.msk [vmem:[%s7588_s6 + $0xe8] sm:$0xf] %vm5579_vm4, %v6325_v48  ;;  %v6326_v63 = vpack.c.bf16 %v5078_v49, %v5078_v49  ;;  %v4187_v0 = vmax.f32 %v3802_v23, %v3809_v51  ;;  %v2312_v5 = vadd.f32 %v6613_v62, %v7495_v3  ;;  %v2303_v9 = vpop.f32.mrb[23].mxu0  ;;  %6719 = vmatmul.mubr.msk.bf16.gmra.mrb[128].mxu0 %vm1590_vm2, %v7138_v29  ;;  %v3087_v14 = vpop.f32.mrb[23].mxu1  ;;  %v4000_v15 = vmax.f32 %v7652_v47, 0.0 }
 0x11b   : > { %5584 = vst.msk [vmem:[%s7588_s6 + $0xc] sm:$0x3] %vm5583_vm5, %v6270_v55  ;;  %v3096_v12 = vadd.f32 %v6809_v8, %v7495_v3  ;;  %v2304_v13 = vadd.f32 %v7495_v3, %v2303_v9  ;;  %6915 = vmatmul.mubr.msk.bf16.gmra.mrb[128].mxu1 %vm1590_vm2, %v7139_v35  ;;  %6722 = vmatprep.mubr.msk.bf16.mxu0 %vm1590_vm2, %v7140_v36  ;;  %v3807_v16 = vmax.f32 %v7661_v58, 0.0  ;;  %v4003_v23 = vmax.f32 %v7666_v4, 0.0  ;;  %v7146_v8 = vld [vmem:[%s7266_s27 + $0x228] sm:$0xff]  }
 0x11c   : > { %5640 = vst.msk [vmem:[%s7588_s6 + $0xec] sm:$0x3] %vm5583_vm5, %v6326_v63  ;;  %v3810_v18 = vmax.f32 %v2312_v5, 0.0  ;;  %v3088_v19 = vadd.f32 %v7495_v3, %v3087_v14  ;;  %6918 = vmatprep.mubr.msk.bf16.mxu1 %vm1590_vm2, %v7141_v54  ;;  %v4285_v20 = vmax.f32 %v3998_v24, %v4005_v11  ;;  %v4001_v62 = vmax.f32 %v7645_v40, 0.0  ;;  %v7147_v11 = vld [vmem:[%s7266_s27 + $0x538] sm:$0xff]  }
 0x11d   : > { %4384 = vst.msk [vmem:[#allocation2 + $0x40] sm:$0xff] %vm4375_vm3, %v4187_v0  ;;  %v4006_v26 = vmax.f32 %v3096_v12, 0.0  ;;  %v3808_v27 = vmax.f32 %v2304_v13, 0.0  ;;  %v6616_v6 = vpop.f32.mrb[24].mxu0  ;;  %v6812_v29 = vpop.f32.mrb[24].mxu1  ;;  %v7148_v12 = vld [vmem:[%s7266_s27 + $0x230] sm:$0xff]  }
 0x11e   : > { %v4188_v7 = vmax.f32 %v3803_v31, %v3810_v18  ;;  %v4004_v30 = vmax.f32 %v3088_v19, 0.0  ;;  %v2325_v34 = vadd.f32 %v6616_v6, %v7495_v3  ;;  %v3109_v35 = vadd.f32 %v6812_v29, %v7495_v3  ;;  %v2316_v36 = vpop.f32.mrb[25].mxu0  ;;  %v3100_v37 = vpop.f32.mrb[25].mxu1  ;;  %4482 = vst.msk [vmem:[#allocation2 + $0x350] sm:$0xff] %vm4375_vm3, %v4285_v20 }
 0x11f   : > { %v4286_v1 = vmax.f32 %v3999_v32, %v4006_v26  ;;  %v4186_v24 = vmax.f32 %v3801_v21, %v3808_v27  ;;  %v2317_v39 = vadd.f32 %v7495_v3, %v2316_v36  ;;  %v3101_v31 = vadd.f32 %v7495_v3, %v3100_v37  ;;  %v6617_v41 = vpop.f32.mrb[26].mxu0  ;;  %v6813_v42 = vpop.f32.mrb[26].mxu1  ;;  %v7145_v21 = vld [vmem:[%s7266_s27 + $0x530] sm:$0xff]   ;;  %v7151_v36 = vld [vmem:[%s7266_s27 + $0x548] sm:$0xff]  }
 0x120   : > { %4385 = vst.msk [vmem:[#allocation2 + $0x48] sm:$0xff] %vm4375_vm3, %v4188_v7  ;;  %v4284_v45 = vmax.f32 %v3997_v22, %v4004_v30  ;;  %v3813_v46 = vmax.f32 %v2325_v34, 0.0  ;;  %v4009_v17 = vmax.f32 %v3109_v35, 0.0  ;;  %v2328_v32 = vadd.f32 %v6617_v41, %v7495_v3  ;;  %v2319_v47 = vpop.f32.mrb[27].mxu0  ;;  %v3103_v59 = vpop.f32.mrb[27].mxu1  ;;  %v7150_v7 = vld [vmem:[%s7266_s27 + $0x238] sm:$0xff]  }
 0x121   : > { %4483 = vst.msk [vmem:[#allocation2 + $0x358] sm:$0xff] %vm4375_vm3, %v4286_v1  ;;  %4383 = vst.msk [vmem:[#allocation2 + $0x38] sm:$0xff] %vm4375_vm3, %v4186_v24  ;;  %v3811_v48 = vmax.f32 %v2317_v39, 0.0  ;;  %v4007_v49 = vmax.f32 %v3101_v31, 0.0  ;;  %v3112_v51 = vadd.f32 %v6813_v42, %v7495_v3  ;;  %v2320_v52 = vadd.f32 %v7495_v3, %v2319_v47  ;;  %v7152_v41 = vld [vmem:[%s7266_s27 + $0x240] sm:$0xff]  }
 0x122   : > { %4481 = vst.msk [vmem:[#allocation2 + $0x348] sm:$0xff] %vm4375_vm3, %v4284_v45  ;;  %v4191_v60 = vmax.f32 %v3806_v50, %v3813_v46  ;;  %v4289_v22 = vmax.f32 %v4002_v56, %v4009_v17  ;;  %v3814_v53 = vmax.f32 %v2328_v32, 0.0  ;;  %v3104_v54 = vadd.f32 %v7495_v3, %v3103_v59  ;;  %6723 = vmatmul.mubr.msk.bf16.gmra.mrb[132].mxu0 %vm1590_vm2, %v7142_v38  ;;  %v7153_v32 = vld [vmem:[%s7266_s27 + $0x550] sm:$0xff]  }
 0x123   : > { %v4189_v55 = vmax.f32 %v3804_v10, %v3811_v48  ;;  %v4287_v57 = vmax.f32 %v4000_v15, %v4007_v49  ;;  %v4010_v58 = vmax.f32 %v3112_v51, 0.0  ;;  %v3812_v61 = vmax.f32 %v2320_v52, 0.0  ;;  %6919 = vmatmul.mubr.msk.bf16.gmra.mrb[132].mxu1 %vm1590_vm2, %v7143_v43  ;;  %6726 = vmatprep.mubr.msk.bf16.mxu0 %vm1590_vm2, %v7144_v44 }
 0x124   : > { %4388 = vst.msk [vmem:[#allocation2 + $0x60] sm:$0xff] %vm4375_vm3, %v4191_v60  ;;  %4486 = vst.msk [vmem:[#allocation2 + $0x370] sm:$0xff] %vm4375_vm3, %v4289_v22  ;;  %v4192_v28 = vmax.f32 %v3807_v16, %v3814_v53  ;;  %v4008_v33 = vmax.f32 %v3104_v54, 0.0  ;;  %6922 = vmatprep.mubr.msk.bf16.mxu1 %vm1590_vm2, %v7145_v21 }
 0x125   : > { %4386 = vst.msk [vmem:[#allocation2 + $0x50] sm:$0xff] %vm4375_vm3, %v4189_v55  ;;  %4484 = vst.msk [vmem:[#allocation2 + $0x360] sm:$0xff] %vm4375_vm3, %v4287_v57  ;;  %v4290_v50 = vmax.f32 %v4003_v23, %v4010_v58  ;;  %v4190_v56 = vmax.f32 %v3805_v25, %v3812_v61  ;;  %v6620_v40 = vpop.f32.mrb[28].mxu0  ;;  %v6816_v63 = vpop.f32.mrb[28].mxu1  ;;  %v7149_v25 = vld [vmem:[%s7266_s27 + $0x540] sm:$0xff]  }
 0x126   : > { %4389 = vst.msk [vmem:[#allocation2 + $0x68] sm:$0xff] %vm4375_vm3, %v4192_v28  ;;  %v4288_v0 = vmax.f32 %v4001_v62, %v4008_v33  ;;  %v2332_v4 = vpop.f32.mrb[29].mxu0  ;;  %v3116_v5 = vpop.f32.mrb[29].mxu1  ;;  %v7744_v24 = vadd.f32 %v6620_v40, %v7495_v3  ;;  %v7747_v39 = vadd.f32 %v6816_v63, %v7495_v3 }
 0x127   : > { %4487 = vst.msk [vmem:[#allocation2 + $0x378] sm:$0xff] %vm4375_vm3, %v4290_v50  ;;  %4387 = vst.msk [vmem:[#allocation2 + $0x58] sm:$0xff] %vm4375_vm3, %v4190_v56  ;;  %v6621_v9 = vpop.f32.mrb[30].mxu0  ;;  %v6817_v10 = vpop.f32.mrb[30].mxu1  ;;  %v7750_v31 = vadd.f32 %v7495_v3, %v2332_v4  ;;  %v7754_v46 = vadd.f32 %v7495_v3, %v3116_v5 }
 0x128   : > { %v4580_v13 = vld [vmem:[#allocation2 + $0x38] ss:$2 sm:$0xff]  ;;  %v4804_v2 = vld [vmem:[#allocation2 + $0x39] ss:$2 sm:$0xff]  ;;  %4485 = vst.msk [vmem:[#allocation2 + $0x368] sm:$0xff] %vm4375_vm3, %v4288_v0  ;;  %v2335_v19 = vpop.f32.mrb[31].mxu0  ;;  %v7757_v17 = vadd.f32 %v6621_v9, %v7495_v3  ;;  %v7761_v51 = vadd.f32 %v6817_v10, %v7495_v3 }
 0x129   : > { %v5023_v14 = vmax.f32 %v4580_v13, %v4804_v2  ;;  %v4692_v15 = vld [vmem:[#allocation2 + $0x348] ss:$2 sm:$0xff]  ;;  %v4916_v16 = vld [vmem:[#allocation2 + $0x349] ss:$2 sm:$0xff]  ;;  %v3119_v20 = vpop.f32.mrb[31].mxu1  ;;  %v7764_v52 = vadd.f32 %v7495_v3, %v2335_v19  ;;  %v3817_v61 = vmax.f32 %v7744_v24, 0.0 }
 0x12a   : > { %v5079_v18 = vmax.f32 %v4692_v15, %v4916_v16  ;;  %6727 = vmatmul.mubr.msk.bf16.gmra.mrb[136].mxu0 %vm1590_vm2, %v7146_v8  ;;  %v7769_v54 = vadd.f32 %v7495_v3, %v3119_v20  ;;  %v4013_v62 = vmax.f32 %v7747_v39, 0.0  ;;  %v3815_v5 = vmax.f32 %v7750_v31, 0.0  ;;  %v7160_v24 = vld [vmem:[%s7266_s27 + $0x260] sm:$0xff]  }
 0x12b   : > { %v6271_v23 = vpack.c.bf16 %v5023_v14, %v5023_v14  ;;  %6923 = vmatmul.mubr.msk.bf16.gmra.mrb[136].mxu1 %vm1590_vm2, %v7147_v11  ;;  %6730 = vmatprep.mubr.msk.bf16.mxu0 %vm1590_vm2, %v7148_v12  ;;  %v4011_v8 = vmax.f32 %v7754_v46, 0.0  ;;  %v3818_v13 = vmax.f32 %v7757_v17, 0.0  ;;  %v4014_v2 = vmax.f32 %v7761_v51, 0.0 }
 0x12c   : > { %v6327_v26 = vpack.c.bf16 %v5079_v18, %v5079_v18  ;;  %v4582_v27 = vld [vmem:[#allocation2 + $0x48] ss:$2 sm:$0xff]  ;;  %v4806_v6 = vld [vmem:[#allocation2 + $0x49] ss:$2 sm:$0xff]  ;;  %v4694_v29 = vld [vmem:[#allocation2 + $0x358] ss:$2 sm:$0xff]  ;;  %6926 = vmatprep.mubr.msk.bf16.mxu1 %vm1590_vm2, %v7149_v25 }
 0x12d   : > { %5585 = vst.msk [vmem:[%s7588_s6 + $0x10] sm:$0xf] %vm5579_vm4, %v6271_v23  ;;  %v5024_v30 = vmax.f32 %v4582_v27, %v4806_v6  ;;  %v4918_v34 = vld [vmem:[#allocation2 + $0x359] ss:$2 sm:$0xff]  ;;  %v7771_v55 = vpop.f32.mrb[32].mxu0  ;;  %v7773_v57 = vpop.f32.mrb[32].mxu1 }
 0x12e   : > { %v4586_v35 = vld [vmem:[#allocation2 + $0x68] ss:$2 sm:$0xf]  ;;  %5641 = vst.msk [vmem:[%s7588_s6 + $0xf0] sm:$0xf] %vm5579_vm4, %v6327_v26  ;;  %v5080_v37 = vmax.f32 %v4694_v29, %v4918_v34  ;;  %v2348_v28 = vpop.f32.mrb[33].mxu0 }
 0x12f   : > { %v4810_v38 = vld [vmem:[#allocation2 + $0x69] ss:$2 sm:$0xf]  ;;  %v4698_v1 = vld [vmem:[#allocation2 + $0x378] ss:$2 sm:$0xf]  ;;  %v6272_v42 = vpack.c.bf16 %v5024_v30, %v5024_v30  ;;  %v7783_v40 = vadd.f32 %v7495_v3, %v2348_v28 }
 0x130   : > { %v5026_v43 = vmax.f32 %v4586_v35, %v4810_v38  ;;  %v4922_v44 = vld [vmem:[#allocation2 + $0x379] ss:$2 sm:$0xf]  ;;  %v4584_v45 = vld [vmem:[#allocation2 + $0x58] ss:$2 sm:$0xff]  ;;  %v6328_v47 = vpack.c.bf16 %v5080_v37, %v5080_v37  ;;  %v3132_v33 = vpop.f32.mrb[33].mxu1 }
 0x131   : > { %v5082_v59 = vmax.f32 %v4698_v1, %v4922_v44  ;;  %v4808_v21 = vld [vmem:[#allocation2 + $0x59] ss:$2 sm:$0xff]  ;;  %v4696_v48 = vld [vmem:[#allocation2 + $0x368] ss:$2 sm:$0xff]  ;;  %v4920_v49 = vld [vmem:[#allocation2 + $0x369] ss:$2 sm:$0xff]  ;;  %v7786_v63 = vadd.f32 %v7495_v3, %v3132_v33 }
 0x132   : > { %5586 = vst.msk [vmem:[%s7588_s6 + $0x14] sm:$0xf] %vm5579_vm4, %v6272_v42  ;;  %v6274_v60 = vpack.c.bf16 %v5026_v43, %v5026_v43  ;;  %v5025_v22 = vmax.f32 %v4584_v45, %v4808_v21  ;;  %v5081_v53 = vmax.f32 %v4696_v48, %v4920_v49  ;;  %5642 = vst.msk [vmem:[%s7588_s6 + $0xf4] sm:$0xf] %vm5579_vm4, %v6328_v47  ;;  %6731 = vmatmul.mubr.msk.bf16.gmra.mrb[140].mxu0 %vm1590_vm2, %v7150_v7  ;;  %v6625_v0 = vpop.f32.mrb[34].mxu0  ;;  %v6821_v4 = vpop.f32.mrb[34].mxu1 }
 0x133   : > { %v6330_v58 = vpack.c.bf16 %v5082_v59, %v5082_v59  ;;  %6927 = vmatmul.mubr.msk.bf16.gmra.mrb[140].mxu1 %vm1590_vm2, %v7151_v36  ;;  %v2360_v9 = vadd.f32 %v6625_v0, %v7495_v3  ;;  %v3144_v10 = vadd.f32 %v6821_v4, %v7495_v3  ;;  %v2351_v11 = vpop.f32.mrb[35].mxu0  ;;  %v3135_v12 = vpop.f32.mrb[35].mxu1  ;;  %6734 = vmatprep.mubr.msk.bf16.mxu0 %vm1590_vm2, %v7152_v41  ;;  %v3816_v25 = vmax.f32 %v7764_v52, 0.0  ;;  %v7154_v6 = vld [vmem:[%s7266_s27 + $0x248] sm:$0xff]   ;;  %v7155_v37 = vld [vmem:[%s7266_s27 + $0x558] sm:$0xff]   ;;  %v7156_v38 = vld [vmem:[%s7266_s27 + $0x250] sm:$0xff]  }
 0x134   : > { %5588 = vst.msk [vmem:[%s7588_s6 + $0x1c] sm:$0x3] %vm5583_vm5, %v6274_v60  ;;  %v6273_v50 = vpack.c.bf16 %v5025_v22, %v5025_v22  ;;  %v6329_v56 = vpack.c.bf16 %v5081_v53, %v5081_v53  ;;  %6930 = vmatprep.mubr.msk.bf16.mxu1 %vm1590_vm2, %v7153_v32  ;;  %v4012_v14 = vmax.f32 %v7769_v54, 0.0  ;;  %v3819_v29 = vmax.f32 %v7783_v40, 0.0  ;;  %v7157_v45 = vld [vmem:[%s7266_s27 + $0x560] sm:$0xff]  }
 0x135   : > { %5644 = vst.msk [vmem:[%s7588_s6 + $0xfc] sm:$0x3] %vm5583_vm5, %v6330_v58  ;;  %v6628_v15 = vpop.f32.mrb[36].mxu0  ;;  %v6824_v16 = vpop.f32.mrb[36].mxu1  ;;  %v3822_v18 = vmax.f32 %v2360_v9, 0.0  ;;  %v4018_v19 = vmax.f32 %v3144_v10, 0.0  ;;  %v2352_v53 = vadd.f32 %v7495_v3, %v2351_v11  ;;  %v3136_v54 = vadd.f32 %v7495_v3, %v3135_v12 }
 0x136   : > { %5587 = vst.msk [vmem:[%s7588_s6 + $0x18] sm:$0xf] %vm5579_vm4, %v6273_v50  ;;  %5643 = vst.msk [vmem:[%s7588_s6 + $0xf8] sm:$0xf] %vm5579_vm4, %v6329_v56  ;;  %v2373_v20 = vadd.f32 %v6628_v15, %v7495_v3  ;;  %v3157_v23 = vadd.f32 %v6824_v16, %v7495_v3  ;;  %v2364_v26 = vpop.f32.mrb[37].mxu0  ;;  %v3148_v27 = vpop.f32.mrb[37].mxu1  ;;  %v3141_v0 = vadd.f32 %v7773_v57, %v7495_v3 }
 0x137   : > { %v4015_v7 = vmax.f32 %v7786_v63, 0.0  ;;  %v2365_v30 = vadd.f32 %v7495_v3, %v2364_v26  ;;  %v3149_v34 = vadd.f32 %v7495_v3, %v3148_v27  ;;  %v6629_v35 = vpop.f32.mrb[38].mxu0  ;;  %v6825_v36 = vpop.f32.mrb[38].mxu1  ;;  %v4193_v1 = vmax.f32 %v3815_v5, %v3822_v18  ;;  %v7158_v10 = vld [vmem:[%s7266_s27 + $0x258] sm:$0xff]  }
 0x138   : > { %v4291_v31 = vmax.f32 %v4011_v8, %v4018_v19  ;;  %v3825_v41 = vmax.f32 %v2373_v20, 0.0  ;;  %v4021_v42 = vmax.f32 %v3157_v23, 0.0  ;;  %v2367_v43 = vpop.f32.mrb[39].mxu0  ;;  %v3151_v44 = vpop.f32.mrb[39].mxu1  ;;  %v2376_v32 = vadd.f32 %v6629_v35, %v7495_v3 }
 0x139   : > { %v3823_v46 = vmax.f32 %v2365_v30, 0.0  ;;  %v4019_v17 = vmax.f32 %v3149_v34, 0.0  ;;  %v3160_v47 = vadd.f32 %v6825_v36, %v7495_v3  ;;  %4390 = vst.msk [vmem:[#allocation2 + $0x70] sm:$0xff] %vm4375_vm3, %v4193_v1  ;;  %v2368_v48 = vadd.f32 %v7495_v3, %v2367_v43 }
 0x13a   : > { %4488 = vst.msk [vmem:[#allocation2 + $0x380] sm:$0xff] %vm4375_vm3, %v4291_v31  ;;  %v4196_v59 = vmax.f32 %v3818_v13, %v3825_v41  ;;  %v4294_v21 = vmax.f32 %v4014_v2, %v4021_v42  ;;  %v3152_v49 = vadd.f32 %v7495_v3, %v3151_v44  ;;  %6735 = vmatmul.mubr.msk.bf16.gmra.mrb[144].mxu0 %vm1590_vm2, %v7154_v6  ;;  %v3826_v60 = vmax.f32 %v2376_v32, 0.0  ;;  %v7159_v13 = vld [vmem:[%s7266_s27 + $0x568] sm:$0xff]  }
 0x13b   : > { %v4194_v51 = vmax.f32 %v3816_v25, %v3823_v46  ;;  %v4292_v52 = vmax.f32 %v4012_v14, %v4019_v17  ;;  %v4022_v22 = vmax.f32 %v3160_v47, 0.0  ;;  %6931 = vmatmul.mubr.msk.bf16.gmra.mrb[144].mxu1 %vm1590_vm2, %v7155_v37  ;;  %6738 = vmatprep.mubr.msk.bf16.mxu0 %vm1590_vm2, %v7156_v38  ;;  %v3824_v58 = vmax.f32 %v2368_v48, 0.0  ;;  %v7161_v25 = vld [vmem:[%s7266_s27 + $0x570] sm:$0xff]   ;;  %v7163_v46 = vld [vmem:[%s7266_s27 + $0x578] sm:$0xff]   ;;  %v7869_v48 = vld [vmem:[%s9044_s2] ss:$0 sm:$0xff] }
 0x13c   : > { %4393 = vst.msk [vmem:[#allocation2 + $0x88] sm:$0xff] %vm4375_vm3, %v4196_v59  ;;  %4491 = vst.msk [vmem:[#allocation2 + $0x398] sm:$0xff] %vm4375_vm3, %v4294_v21  ;;  %v4020_v28 = vmax.f32 %v3152_v49, 0.0  ;;  %6934 = vmatprep.mubr.msk.bf16.mxu1 %vm1590_vm2, %v7157_v45  ;;  %v4197_v33 = vmax.f32 %v3819_v29, %v3826_v60  ;;  %v2357_v63 = vadd.f32 %v7771_v55, %v7495_v3  ;;  %v4016_v2 = vmax.f32 %v3136_v54, 0.0  ;;  %v7162_v45 = vld [vmem:[%s7266_s27 + $0x268] sm:$0xff]   ;;  %v7164_v17 = vld [vmem:[%s7266_s27 + $0x270] sm:$0xff]  }
 0x13d   : > { %4391 = vst.msk [vmem:[#allocation2 + $0x78] sm:$0xff] %vm4375_vm3, %v4194_v51  ;;  %4489 = vst.msk [vmem:[#allocation2 + $0x388] sm:$0xff] %vm4375_vm3, %v4292_v52  ;;  %v4295_v50 = vmax.f32 %v4015_v7, %v4022_v22  ;;  %v6632_v56 = vpop.f32.mrb[40].mxu0  ;;  %v6828_v40 = vpop.f32.mrb[40].mxu1  ;;  %v4195_v4 = vmax.f32 %v3817_v61, %v3824_v58  ;;  %v3820_v61 = vmax.f32 %v2352_v53, 0.0  ;;  %v4017_v20 = vmax.f32 %v3141_v0, 0.0 }
 0x13e   : > { %v4293_v5 = vmax.f32 %v4013_v62, %v4020_v28  ;;  %v2380_v8 = vpop.f32.mrb[41].mxu0  ;;  %v3164_v9 = vpop.f32.mrb[41].mxu1  ;;  %4394 = vst.msk [vmem:[#allocation2 + $0x90] sm:$0xff] %vm4375_vm3, %v4197_v33  ;;  %v3821_v19 = vmax.f32 %v2357_v63, 0.0  ;;  %v7858_v41 = vadd.f32 %v6632_v56, %v7495_v3  ;;  %v7861_v42 = vadd.f32 %v6828_v40, %v7495_v3  ;;  %v7165_v58 = vld [vmem:[%s7266_s27 + $0x580] sm:$0xff]  }
 0x13f   : > { %4492 = vst.msk [vmem:[#allocation2 + $0x3a0] sm:$0xff] %vm4375_vm3, %v4295_v50  ;;  %v2381_v11 = vadd.f32 %v7495_v3, %v2380_v8  ;;  %v3165_v55 = vadd.f32 %v7495_v3, %v3164_v9  ;;  %v6633_v12 = vpop.f32.mrb[42].mxu0  ;;  %v6829_v57 = vpop.f32.mrb[42].mxu1  ;;  %4392 = vst.msk [vmem:[#allocation2 + $0x80] sm:$0xff] %vm4375_vm3, %v4195_v4 }
 0x140   : > { %4490 = vst.msk [vmem:[#allocation2 + $0x390] sm:$0xff] %vm4375_vm3, %v4293_v5  ;;  %v2383_v39 = vpop.f32.mrb[43].mxu0  ;;  %v3167_v62 = vpop.f32.mrb[43].mxu1  ;;  %v7872_v49 = vadd.f32 %v7869_v48, %v6633_v12  ;;  %v3829_v0 = vmax.f32 %v7858_v41, 0.0  ;;  %v4025_v4 = vmax.f32 %v7861_v42, 0.0 }
 0x141   : > { %v3827_v14 = vmax.f32 %v2381_v11, 0.0  ;;  %v4023_v15 = vmax.f32 %v3165_v55, 0.0  ;;  %v2384_v16 = vadd.f32 %v7495_v3, %v2383_v39  ;;  %v3168_v18 = vadd.f32 %v7495_v3, %v3167_v62 }
 0x142   : > { %6739 = vmatmul.mubr.msk.bf16.gmra.mrb[148].mxu0 %vm1590_vm2, %v7158_v10  ;;  %v7875_v3 = vadd.f32 %v7869_v48, %v6829_v57  ;;  %v3830_v8 = vmax.f32 %v7872_v49, 0.0 }
 0x143   : > { %v4198_v23 = vmax.f32 %v3820_v61, %v3827_v14  ;;  %v4296_v26 = vmax.f32 %v4016_v2, %v4023_v15  ;;  %v3828_v27 = vmax.f32 %v2384_v16, 0.0  ;;  %v4024_v6 = vmax.f32 %v3168_v18, 0.0  ;;  %6935 = vmatmul.mubr.msk.bf16.gmra.mrb[148].mxu1 %vm1590_vm2, %v7159_v13  ;;  %6742 = vmatprep.mubr.msk.bf16.mxu0 %vm1590_vm2, %v7160_v24  ;;  %v7166_v13 = vld [vmem:[%s7266_s27 + $0x278] sm:$0xff]   ;;  %v7167_v14 = vld [vmem:[%s7266_s27 + $0x588] sm:$0xff]   ;;  %v7168_v15 = vld [vmem:[%s7266_s27 + $0x280] sm:$0xff]  }
 0x144   : > { %v4588_v29 = vld [vmem:[#allocation2 + $0x70] ss:$2 sm:$0xff]  ;;  %v4812_v7 = vld [vmem:[#allocation2 + $0x71] ss:$2 sm:$0xff]  ;;  %v4700_v30 = vld [vmem:[#allocation2 + $0x380] ss:$2 sm:$0xff]  ;;  %6938 = vmatprep.mubr.msk.bf16.mxu1 %vm1590_vm2, %v7161_v25 }
 0x145   : > { %v5027_v34 = vmax.f32 %v4588_v29, %v4812_v7  ;;  %v4924_v35 = vld [vmem:[#allocation2 + $0x381] ss:$2 sm:$0xff]  ;;  %4395 = vst.msk [vmem:[#allocation2 + $0x98] sm:$0xff] %vm4375_vm3, %v4198_v23  ;;  %4493 = vst.msk [vmem:[#allocation2 + $0x3a8] sm:$0xff] %vm4375_vm3, %v4296_v26  ;;  %v4199_v36 = vmax.f32 %v3821_v19, %v3828_v27  ;;  %v4297_v37 = vmax.f32 %v4017_v20, %v4024_v6  ;;  %v6636_v38 = vpop.f32.mrb[44].mxu0  ;;  %v6832_v1 = vpop.f32.mrb[44].mxu1 }
 0x146   : > { %v5083_v31 = vmax.f32 %v4700_v30, %v4924_v35  ;;  %v2396_v43 = vpop.f32.mrb[45].mxu0  ;;  %v3180_v44 = vpop.f32.mrb[45].mxu1  ;;  %v4590_v47 = vld [vmem:[#allocation2 + $0x80] ss:$2 sm:$0xff]  ;;  %v4814_v59 = vld [vmem:[#allocation2 + $0x81] ss:$2 sm:$0xff]  ;;  %v7880_v51 = vadd.f32 %v7869_v48, %v6636_v38  ;;  %v7918_v20 = vadd.f32 %v7869_v48, %v6832_v1 }
 0x147   : > { %v6275_v32 = vpack.c.bf16 %v5027_v34, %v5027_v34  ;;  %v4702_v21 = vld [vmem:[#allocation2 + $0x390] ss:$2 sm:$0xff]  ;;  %4396 = vst.msk [vmem:[#allocation2 + $0xa0] sm:$0xff] %vm4375_vm3, %v4199_v36  ;;  %4494 = vst.msk [vmem:[#allocation2 + $0x3b0] sm:$0xff] %vm4375_vm3, %v4297_v37  ;;  %v5028_v60 = vmax.f32 %v4590_v47, %v4814_v59  ;;  %v4926_v22 = vld [vmem:[#allocation2 + $0x391] ss:$2 sm:$0xff]  ;;  %v7886_v33 = vadd.f32 %v7869_v48, %v2396_v43 }
 0x148   : > { %v6331_v52 = vpack.c.bf16 %v5083_v31, %v5083_v31  ;;  %v6637_v53 = vpop.f32.mrb[46].mxu0  ;;  %v6833_v54 = vpop.f32.mrb[46].mxu1  ;;  %v5084_v28 = vmax.f32 %v4702_v21, %v4926_v22  ;;  %v7889_v50 = vadd.f32 %v7869_v48, %v3180_v44  ;;  %v4026_v9 = vmax.f32 %v7875_v3, 0.0  ;;  %v7169_v31 = vld [vmem:[%s7266_s27 + $0x590] sm:$0xff]  }
 0x149   : > { %5589 = vst.msk [vmem:[%s7588_s6 + $0x20] sm:$0xf] %vm5579_vm4, %v6275_v32  ;;  %v2399_v56 = vpop.f32.mrb[47].mxu0  ;;  %v3183_v40 = vpop.f32.mrb[47].mxu1  ;;  %v6276_v63 = vpack.c.bf16 %v5028_v60, %v5028_v60  ;;  %v3833_v10 = vmax.f32 %v7880_v51, 0.0  ;;  %v7904_v57 = vadd.f32 %v7869_v48, %v6637_v53  ;;  %v3831_v2 = vmax.f32 %v7886_v33, 0.0 }
 0x14a   : > { %5645 = vst.msk [vmem:[%s7588_s6 + $0x100] sm:$0xf] %vm5579_vm4, %v6331_v52  ;;  %6743 = vmatmul.mubr.msk.bf16.gmra.mrb[152].mxu0 %vm1590_vm2, %v7162_v45  ;;  %v6332_v5 = vpack.c.bf16 %v5084_v28, %v5084_v28  ;;  %v4027_v39 = vmax.f32 %v7889_v50, 0.0  ;;  %v7913_v62 = vadd.f32 %v7869_v48, %v6833_v54  ;;  %v7922_v7 = vadd.f32 %v7869_v48, %v2399_v56 }
 0x14b   : > { %6939 = vmatmul.mubr.msk.bf16.gmra.mrb[152].mxu1 %vm1590_vm2, %v7163_v46  ;;  %6746 = vmatprep.mubr.msk.bf16.mxu0 %vm1590_vm2, %v7164_v17  ;;  %5590 = vst.msk [vmem:[%s7588_s6 + $0x24] sm:$0xf] %vm5579_vm4, %v6276_v63  ;;  %v7925_v30 = vadd.f32 %v7869_v48, %v3183_v40  ;;  %v3834_v36 = vmax.f32 %v7904_v57, 0.0 }
 0x14c   : > { %v4592_v11 = vld [vmem:[#allocation2 + $0x90] ss:$2 sm:$0xff]  ;;  %v4816_v55 = vld [vmem:[#allocation2 + $0x91] ss:$2 sm:$0xff]  ;;  %v4704_v12 = vld [vmem:[#allocation2 + $0x3a0] ss:$2 sm:$0xff]  ;;  %6942 = vmatprep.mubr.msk.bf16.mxu1 %vm1590_vm2, %v7165_v58 }
 0x14d   : > { %5646 = vst.msk [vmem:[%s7588_s6 + $0x104] sm:$0xf] %vm5579_vm4, %v6332_v5  ;;  %v5029_v24 = vmax.f32 %v4592_v11, %v4816_v55  ;;  %v4928_v61 = vld [vmem:[#allocation2 + $0x3a1] ss:$2 sm:$0xff]  ;;  %v6640_v25 = vpop.f32.mrb[48].mxu0  ;;  %v6836_v38 = vpop.f32.mrb[48].mxu1 }
 0x14e   : > { %v5085_v16 = vmax.f32 %v4704_v12, %v4928_v61  ;;  %v4594_v18 = vld [vmem:[#allocation2 + $0xa0] ss:$2 sm:$0xf]  ;;  %v4818_v19 = vld [vmem:[#allocation2 + $0xa1] ss:$2 sm:$0xf]  ;;  %v2421_v23 = vadd.f32 %v7869_v48, %v6640_v25  ;;  %v3205_v45 = vadd.f32 %v7869_v48, %v6836_v38 }
 0x14f   : > { %v6277_v26 = vpack.c.bf16 %v5029_v24, %v5029_v24  ;;  %v5030_v27 = vmax.f32 %v4594_v18, %v4818_v19  ;;  %v4706_v6 = vld [vmem:[#allocation2 + $0x3b0] ss:$2 sm:$0xf]  ;;  %v4930_v29 = vld [vmem:[#allocation2 + $0x3b1] ss:$2 sm:$0xf] }
 0x150   : > { %v6333_v34 = vpack.c.bf16 %v5085_v16, %v5085_v16  ;;  %v5086_v35 = vmax.f32 %v4706_v6, %v4930_v29  ;;  %v3837_v37 = vmax.f32 %v2421_v23, 0.0  ;;  %v2412_v1 = vpop.f32.mrb[49].mxu0  ;;  %v4030_v44 = vmax.f32 %v7913_v62, 0.0  ;;  %v3196_v17 = vpop.f32.mrb[49].mxu1  ;;  %v7170_v18 = vld [vmem:[%s7266_s27 + $0x288] sm:$0xff]   ;;  %v7172_v6 = vld [vmem:[%s7266_s27 + $0x290] sm:$0xff]  }
 0x151   : > { %5591 = vst.msk [vmem:[%s7588_s6 + $0x28] sm:$0xf] %vm5579_vm4, %v6277_v26  ;;  %v6278_v43 = vpack.c.bf16 %v5030_v27, %v5030_v27  ;;  %v7934_v46 = vadd.f32 %v7869_v48, %v2412_v1  ;;  %v6641_v32 = vpop.f32.mrb[50].mxu0  ;;  %v7939_v21 = vadd.f32 %v7869_v48, %v3196_v17  ;;  %v6837_v52 = vpop.f32.mrb[50].mxu1  ;;  %v3832_v22 = vmax.f32 %v7922_v7, 0.0  ;;  %v7171_v27 = vld [vmem:[%s7266_s27 + $0x598] sm:$0xff]  }
 0x152   : > { %5647 = vst.msk [vmem:[%s7588_s6 + $0x108] sm:$0xf] %vm5579_vm4, %v6333_v34  ;;  %v6334_v47 = vpack.c.bf16 %v5086_v35, %v5086_v35  ;;  %v4201_v59 = vmax.f32 %v3830_v8, %v3837_v37  ;;  %v2424_v49 = vadd.f32 %v7869_v48, %v6641_v32  ;;  %v2415_v60 = vpop.f32.mrb[51].mxu0  ;;  %6747 = vmatmul.mubr.msk.bf16.gmra.mrb[156].mxu0 %vm1590_vm2, %v7166_v13  ;;  %v4033_v53 = vmax.f32 %v3205_v45, 0.0  ;;  %v3199_v28 = vpop.f32.mrb[51].mxu1 }
 0x153   : > { %5592 = vst.msk [vmem:[%s7588_s6 + $0x2c] sm:$0x3] %vm5583_vm5, %v6278_v43  ;;  %v3208_v54 = vadd.f32 %v7869_v48, %v6837_v52  ;;  %v2416_v58 = vadd.f32 %v7869_v48, %v2415_v60  ;;  %6943 = vmatmul.mubr.msk.bf16.gmra.mrb[156].mxu1 %vm1590_vm2, %v7167_v14  ;;  %6750 = vmatprep.mubr.msk.bf16.mxu0 %vm1590_vm2, %v7168_v15  ;;  %v4028_v33 = vmax.f32 %v7925_v30, 0.0  ;;  %v3835_v56 = vmax.f32 %v7934_v46, 0.0  ;;  %v7174_v52 = vld [vmem:[%s7266_s27 + $0x298] sm:$0xff]  }
 0x154   : > { %5648 = vst.msk [vmem:[%s7588_s6 + $0x10c] sm:$0x3] %vm5583_vm5, %v6334_v47  ;;  %v3838_v40 = vmax.f32 %v2424_v49, 0.0  ;;  %v3200_v63 = vadd.f32 %v7869_v48, %v3199_v28  ;;  %6946 = vmatprep.mubr.msk.bf16.mxu1 %vm1590_vm2, %v7169_v31  ;;  %v4299_v5 = vmax.f32 %v4026_v9, %v4033_v53  ;;  %v4031_v8 = vmax.f32 %v7939_v21, 0.0  ;;  %v7175_v53 = vld [vmem:[%s7266_s27 + $0x5a8] sm:$0xff]  }
 0x155   : > { %4398 = vst.msk [vmem:[#allocation2 + $0xb0] sm:$0xff] %vm4375_vm3, %v4201_v59  ;;  %v4034_v11 = vmax.f32 %v3208_v54, 0.0  ;;  %v3836_v55 = vmax.f32 %v2416_v58, 0.0  ;;  %v6644_v12 = vpop.f32.mrb[52].mxu0  ;;  %v6840_v13 = vpop.f32.mrb[52].mxu1  ;;  %v4029_v32 = vmax.f32 %v7918_v20, 0.0 }
 0x156   : > { %v4202_v24 = vmax.f32 %v3831_v2, %v3838_v40  ;;  %v4032_v61 = vmax.f32 %v3200_v63, 0.0  ;;  %v2437_v25 = vadd.f32 %v7869_v48, %v6644_v12  ;;  %v3221_v14 = vadd.f32 %v7869_v48, %v6840_v13  ;;  %v2428_v15 = vpop.f32.mrb[53].mxu0  ;;  %v3212_v16 = vpop.f32.mrb[53].mxu1  ;;  %4496 = vst.msk [vmem:[#allocation2 + $0x3c0] sm:$0xff] %vm4375_vm3, %v4299_v5  ;;  %v7176_v54 = vld [vmem:[%s7266_s27 + $0x2a0] sm:$0xff]  }
 0x157   : > { %v4300_v3 = vmax.f32 %v4027_v39, %v4034_v11  ;;  %v4200_v9 = vmax.f32 %v3829_v0, %v3836_v55  ;;  %v2429_v19 = vadd.f32 %v7869_v48, %v2428_v15  ;;  %v3213_v2 = vadd.f32 %v7869_v48, %v3212_v16  ;;  %v6645_v23 = vpop.f32.mrb[54].mxu0  ;;  %v6841_v26 = vpop.f32.mrb[54].mxu1  ;;  %v7173_v0 = vld [vmem:[%s7266_s27 + $0x5a0] sm:$0xff]   ;;  %v7179_v15 = vld [vmem:[%s7266_s27 + $0x5b8] sm:$0xff]  }
 0x158   : > { %4399 = vst.msk [vmem:[#allocation2 + $0xb8] sm:$0xff] %vm4375_vm3, %v4202_v24  ;;  %v4298_v29 = vmax.f32 %v4025_v4, %v4032_v61  ;;  %v3841_v7 = vmax.f32 %v2437_v25, 0.0  ;;  %v4037_v50 = vmax.f32 %v3221_v14, 0.0  ;;  %v2440_v39 = vadd.f32 %v7869_v48, %v6645_v23  ;;  %v2431_v30 = vpop.f32.mrb[55].mxu0  ;;  %v3215_v41 = vpop.f32.mrb[55].mxu1  ;;  %v7178_v24 = vld [vmem:[%s7266_s27 + $0x2a8] sm:$0xff]  }
 0x159   : > { %4497 = vst.msk [vmem:[#allocation2 + $0x3c8] sm:$0xff] %vm4375_vm3, %v4300_v3  ;;  %4397 = vst.msk [vmem:[#allocation2 + $0xa8] sm:$0xff] %vm4375_vm3, %v4200_v9  ;;  %v3839_v34 = vmax.f32 %v2429_v19, 0.0  ;;  %v4035_v35 = vmax.f32 %v3213_v2, 0.0  ;;  %v3224_v37 = vadd.f32 %v7869_v48, %v6841_v26  ;;  %v2432_v38 = vadd.f32 %v7869_v48, %v2431_v30  ;;  %v7180_v23 = vld [vmem:[%s7266_s27 + $0x2b0] sm:$0xff]  }
 0x15a   : > { %4495 = vst.msk [vmem:[#allocation2 + $0x3b8] sm:$0xff] %vm4375_vm3, %v4298_v29  ;;  %v4205_v42 = vmax.f32 %v3834_v36, %v3841_v7  ;;  %v4303_v4 = vmax.f32 %v4030_v44, %v4037_v50  ;;  %v3842_v1 = vmax.f32 %v2440_v39, 0.0  ;;  %v3216_v31 = vadd.f32 %v7869_v48, %v3215_v41  ;;  %6751 = vmatmul.mubr.msk.bf16.gmra.mrb[160].mxu0 %vm1590_vm2, %v7170_v18  ;;  %v7181_v39 = vld [vmem:[%s7266_s27 + $0x5c0] sm:$0xff]  }
 0x15b   : > { %v4203_v43 = vmax.f32 %v3832_v22, %v3839_v34  ;;  %v4301_v45 = vmax.f32 %v4028_v33, %v4035_v35  ;;  %v4038_v46 = vmax.f32 %v3224_v37, 0.0  ;;  %v3840_v17 = vmax.f32 %v2432_v38, 0.0  ;;  %6947 = vmatmul.mubr.msk.bf16.gmra.mrb[160].mxu1 %vm1590_vm2, %v7171_v27  ;;  %6754 = vmatprep.mubr.msk.bf16.mxu0 %vm1590_vm2, %v7172_v6 }
 0x15c   : > { %4402 = vst.msk [vmem:[#allocation2 + $0xd0] sm:$0xff] %vm4375_vm3, %v4205_v42  ;;  %4500 = vst.msk [vmem:[#allocation2 + $0x3e0] sm:$0xff] %vm4375_vm3, %v4303_v4  ;;  %v4206_v57 = vmax.f32 %v3835_v56, %v3842_v1  ;;  %v4036_v62 = vmax.f32 %v3216_v31, 0.0  ;;  %6950 = vmatprep.mubr.msk.bf16.mxu1 %vm1590_vm2, %v7173_v0 }
 0x15d   : > { %4400 = vst.msk [vmem:[#allocation2 + $0xc0] sm:$0xff] %vm4375_vm3, %v4203_v43  ;;  %4498 = vst.msk [vmem:[#allocation2 + $0x3d0] sm:$0xff] %vm4375_vm3, %v4301_v45  ;;  %v4304_v36 = vmax.f32 %v4031_v8, %v4038_v46  ;;  %v4204_v44 = vmax.f32 %v3833_v10, %v3840_v17  ;;  %v6648_v20 = vpop.f32.mrb[56].mxu0  ;;  %v6844_v47 = vpop.f32.mrb[56].mxu1  ;;  %v7177_v10 = vld [vmem:[%s7266_s27 + $0x5b0] sm:$0xff]  }
 0x15e   : > { %4403 = vst.msk [vmem:[#allocation2 + $0xd8] sm:$0xff] %vm4375_vm3, %v4206_v57  ;;  %v4302_v59 = vmax.f32 %v4029_v32, %v4036_v62  ;;  %v2444_v21 = vpop.f32.mrb[57].mxu0  ;;  %v3228_v49 = vpop.f32.mrb[57].mxu1  ;;  %v8017_v9 = vadd.f32 %v7869_v48, %v6648_v20  ;;  %v8020_v19 = vadd.f32 %v7869_v48, %v6844_v47 }
 0x15f   : > { %4501 = vst.msk [vmem:[#allocation2 + $0x3e8] sm:$0xff] %vm4375_vm3, %v4304_v36  ;;  %4401 = vst.msk [vmem:[#allocation2 + $0xc8] sm:$0xff] %vm4375_vm3, %v4204_v44  ;;  %v6649_v60 = vpop.f32.mrb[58].mxu0  ;;  %v6845_v22 = vpop.f32.mrb[58].mxu1  ;;  %v8023_v2 = vadd.f32 %v7869_v48, %v2444_v21  ;;  %v8027_v7 = vadd.f32 %v7869_v48, %v3228_v49 }
 0x160   : > { %v4596_v58 = vld [vmem:[#allocation2 + $0xa8] ss:$2 sm:$0xff]  ;;  %v4820_v51 = vld [vmem:[#allocation2 + $0xa9] ss:$2 sm:$0xff]  ;;  %4499 = vst.msk [vmem:[#allocation2 + $0x3d8] sm:$0xff] %vm4375_vm3, %v4302_v59  ;;  %v2447_v63 = vpop.f32.mrb[59].mxu0  ;;  %v8030_v50 = vadd.f32 %v7869_v48, %v6649_v60  ;;  %v8034_v37 = vadd.f32 %v7869_v48, %v6845_v22 }
 0x161   : > { %v5031_v28 = vmax.f32 %v4596_v58, %v4820_v51  ;;  %v4708_v33 = vld [vmem:[#allocation2 + $0x3b8] ss:$2 sm:$0xff]  ;;  %v4932_v56 = vld [vmem:[#allocation2 + $0x3b9] ss:$2 sm:$0xff]  ;;  %v3231_v5 = vpop.f32.mrb[59].mxu1  ;;  %v8037_v38 = vadd.f32 %v7869_v48, %v2447_v63  ;;  %v3845_v17 = vmax.f32 %v8017_v9, 0.0 }
 0x162   : > { %v5087_v40 = vmax.f32 %v4708_v33, %v4932_v56  ;;  %6755 = vmatmul.mubr.msk.bf16.gmra.mrb[164].mxu0 %vm1590_vm2, %v7174_v52  ;;  %v8042_v31 = vadd.f32 %v7869_v48, %v3231_v5  ;;  %v4041_v32 = vmax.f32 %v8020_v19, 0.0  ;;  %v3843_v49 = vmax.f32 %v8023_v2, 0.0  ;;  %v7188_v9 = vld [vmem:[%s7266_s27 + $0x2d0] sm:$0xff]  }
 0x163   : > { %v6279_v8 = vpack.c.bf16 %v5031_v28, %v5031_v28  ;;  %6951 = vmatmul.mubr.msk.bf16.gmra.mrb[164].mxu1 %vm1590_vm2, %v7175_v53  ;;  %6758 = vmatprep.mubr.msk.bf16.mxu0 %vm1590_vm2, %v7176_v54  ;;  %v4039_v52 = vmax.f32 %v8027_v7, 0.0  ;;  %v3846_v58 = vmax.f32 %v8030_v50, 0.0  ;;  %v4042_v51 = vmax.f32 %v8034_v37, 0.0 }
 0x164   : > { %v6335_v11 = vpack.c.bf16 %v5087_v40, %v5087_v40  ;;  %v4598_v55 = vld [vmem:[#allocation2 + $0xb8] ss:$2 sm:$0xff]  ;;  %v4822_v12 = vld [vmem:[#allocation2 + $0xb9] ss:$2 sm:$0xff]  ;;  %v4710_v13 = vld [vmem:[#allocation2 + $0x3c8] ss:$2 sm:$0xff]  ;;  %6954 = vmatprep.mubr.msk.bf16.mxu1 %vm1590_vm2, %v7177_v10 }
 0x165   : > { %5593 = vst.msk [vmem:[%s7588_s6 + $0x30] sm:$0xf] %vm5579_vm4, %v6279_v8  ;;  %v5032_v61 = vmax.f32 %v4598_v55, %v4822_v12  ;;  %v4934_v25 = vld [vmem:[#allocation2 + $0x3c9] ss:$2 sm:$0xff]  ;;  %v8044_v43 = vpop.f32.mrb[60].mxu0  ;;  %v8046_v45 = vpop.f32.mrb[60].mxu1 }
 0x166   : > { %v4602_v14 = vld [vmem:[#allocation2 + $0xd8] ss:$2 sm:$0xf]  ;;  %5649 = vst.msk [vmem:[%s7588_s6 + $0x110] sm:$0xf] %vm5579_vm4, %v6335_v11  ;;  %v5088_v16 = vmax.f32 %v4710_v13, %v4934_v25  ;;  %v2460_v57 = vpop.f32.mrb[61].mxu0 }
 0x167   : > { %v4826_v18 = vld [vmem:[#allocation2 + $0xd9] ss:$2 sm:$0xf]  ;;  %v4714_v3 = vld [vmem:[#allocation2 + $0x3e8] ss:$2 sm:$0xf]  ;;  %v6280_v26 = vpack.c.bf16 %v5032_v61, %v5032_v61  ;;  %v8056_v20 = vadd.f32 %v7869_v48, %v2460_v57 }
 0x168   : > { %v5034_v27 = vmax.f32 %v4602_v14, %v4826_v18  ;;  %v4938_v6 = vld [vmem:[#allocation2 + $0x3e9] ss:$2 sm:$0xf]  ;;  %v4600_v29 = vld [vmem:[#allocation2 + $0xc8] ss:$2 sm:$0xff]  ;;  %v6336_v30 = vpack.c.bf16 %v5088_v16, %v5088_v16  ;;  %v3244_v62 = vpop.f32.mrb[61].mxu1 }
 0x169   : > { %v5090_v41 = vmax.f32 %v4714_v3, %v4938_v6  ;;  %v4824_v0 = vld [vmem:[#allocation2 + $0xc9] ss:$2 sm:$0xff]  ;;  %v4712_v34 = vld [vmem:[#allocation2 + $0x3d8] ss:$2 sm:$0xff]  ;;  %v4936_v35 = vld [vmem:[#allocation2 + $0x3d9] ss:$2 sm:$0xff]  ;;  %v8059_v47 = vadd.f32 %v7869_v48, %v3244_v62 }
 0x16a   : > { %5594 = vst.msk [vmem:[%s7588_s6 + $0x34] sm:$0xf] %vm5579_vm4, %v6280_v26  ;;  %v6282_v42 = vpack.c.bf16 %v5034_v27, %v5034_v27  ;;  %v5033_v4 = vmax.f32 %v4600_v29, %v4824_v0  ;;  %v5089_v1 = vmax.f32 %v4712_v34, %v4936_v35  ;;  %5650 = vst.msk [vmem:[%s7588_s6 + $0x114] sm:$0xf] %vm5579_vm4, %v6336_v30  ;;  %6759 = vmatmul.mubr.msk.bf16.gmra.mrb[168].mxu0 %vm1590_vm2, %v7178_v24  ;;  %v6653_v59 = vpop.f32.mrb[62].mxu0  ;;  %v6849_v21 = vpop.f32.mrb[62].mxu1 }
 0x16b   : > { %v6338_v46 = vpack.c.bf16 %v5090_v41, %v5090_v41  ;;  %6955 = vmatmul.mubr.msk.bf16.gmra.mrb[168].mxu1 %vm1590_vm2, %v7179_v15  ;;  %v2472_v60 = vadd.f32 %v7869_v48, %v6653_v59  ;;  %v3256_v22 = vadd.f32 %v7869_v48, %v6849_v21  ;;  %v2463_v53 = vpop.f32.mrb[63].mxu0  ;;  %v3247_v54 = vpop.f32.mrb[63].mxu1  ;;  %6762 = vmatprep.mubr.msk.bf16.mxu0 %vm1590_vm2, %v7180_v23  ;;  %v3844_v10 = vmax.f32 %v8037_v38, 0.0  ;;  %v7182_v12 = vld [vmem:[%s7266_s27 + $0x2b8] sm:$0xff]   ;;  %v7183_v16 = vld [vmem:[%s7266_s27 + $0x5c8] sm:$0xff]   ;;  %v7184_v18 = vld [vmem:[%s7266_s27 + $0x2c0] sm:$0xff]  }
 0x16c   : > { %5596 = vst.msk [vmem:[%s7588_s6 + $0x3c] sm:$0x3] %vm5583_vm5, %v6282_v42  ;;  %v6281_v36 = vpack.c.bf16 %v5033_v4, %v5033_v4  ;;  %v6337_v44 = vpack.c.bf16 %v5089_v1, %v5089_v1  ;;  %6958 = vmatprep.mubr.msk.bf16.mxu1 %vm1590_vm2, %v7181_v39  ;;  %v4040_v28 = vmax.f32 %v8042_v31, 0.0  ;;  %v3847_v13 = vmax.f32 %v8056_v20, 0.0  ;;  %v7185_v29 = vld [vmem:[%s7266_s27 + $0x5d0] sm:$0xff]  }
 0x16d   : > { %5652 = vst.msk [vmem:[%s7588_s6 + $0x11c] sm:$0x3] %vm5583_vm5, %v6338_v46  ;;  %v6656_v33 = vpop.f32.mrb[64].mxu0  ;;  %v6852_v56 = vpop.f32.mrb[64].mxu1  ;;  %v3850_v40 = vmax.f32 %v2472_v60, 0.0  ;;  %v4046_v63 = vmax.f32 %v3256_v22, 0.0  ;;  %v2464_v1 = vadd.f32 %v7869_v48, %v2463_v53  ;;  %v3248_v31 = vadd.f32 %v7869_v48, %v3247_v54 }
 0x16e   : > { %5595 = vst.msk [vmem:[%s7588_s6 + $0x38] sm:$0xf] %vm5579_vm4, %v6281_v36  ;;  %5651 = vst.msk [vmem:[%s7588_s6 + $0x118] sm:$0xf] %vm5579_vm4, %v6337_v44  ;;  %v2485_v5 = vadd.f32 %v7869_v48, %v6656_v33  ;;  %v3269_v8 = vadd.f32 %v7869_v48, %v6852_v56  ;;  %v2476_v11 = vpop.f32.mrb[65].mxu0  ;;  %v3260_v55 = vpop.f32.mrb[65].mxu1  ;;  %v3253_v59 = vadd.f32 %v7869_v48, %v8046_v45 }
 0x16f   : > { %v4043_v24 = vmax.f32 %v8059_v47, 0.0  ;;  %v2477_v61 = vadd.f32 %v7869_v48, %v2476_v11  ;;  %v3261_v25 = vadd.f32 %v7869_v48, %v3260_v55  ;;  %v6657_v14 = vpop.f32.mrb[66].mxu0  ;;  %v6853_v15 = vpop.f32.mrb[66].mxu1  ;;  %v4207_v3 = vmax.f32 %v3843_v49, %v3850_v40  ;;  %v7186_v22 = vld [vmem:[%s7266_s27 + $0x2c8] sm:$0xff]  }
 0x170   : > { %v4305_v2 = vmax.f32 %v4039_v52, %v4046_v63  ;;  %v3853_v23 = vmax.f32 %v2485_v5, 0.0  ;;  %v4049_v26 = vmax.f32 %v3269_v8, 0.0  ;;  %v2479_v27 = vpop.f32.mrb[67].mxu0  ;;  %v3263_v6 = vpop.f32.mrb[67].mxu1  ;;  %v2488_v39 = vadd.f32 %v7869_v48, %v6657_v14 }
 0x171   : > { %v3851_v7 = vmax.f32 %v2477_v61, 0.0  ;;  %v4047_v50 = vmax.f32 %v3261_v25, 0.0  ;;  %v3272_v30 = vadd.f32 %v7869_v48, %v6853_v15  ;;  %4404 = vst.msk [vmem:[#allocation2 + $0xe0] sm:$0xff] %vm4375_vm3, %v4207_v3  ;;  %v2480_v34 = vadd.f32 %v7869_v48, %v2479_v27 }
 0x172   : > { %4502 = vst.msk [vmem:[#allocation2 + $0x3f0] sm:$0xff] %vm4375_vm3, %v4305_v2  ;;  %v4210_v41 = vmax.f32 %v3846_v58, %v3853_v23  ;;  %v4308_v0 = vmax.f32 %v4042_v51, %v4049_v26  ;;  %v3264_v35 = vadd.f32 %v7869_v48, %v3263_v6  ;;  %6763 = vmatmul.mubr.msk.bf16.gmra.mrb[172].mxu0 %vm1590_vm2, %v7182_v12  ;;  %v3854_v42 = vmax.f32 %v2488_v39, 0.0  ;;  %v7187_v58 = vld [vmem:[%s7266_s27 + $0x5d8] sm:$0xff]  }
 0x173   : > { %v4208_v37 = vmax.f32 %v3844_v10, %v3851_v7  ;;  %v4306_v38 = vmax.f32 %v4040_v28, %v4047_v50  ;;  %v4050_v4 = vmax.f32 %v3272_v30, 0.0  ;;  %6959 = vmatmul.mubr.msk.bf16.gmra.mrb[172].mxu1 %vm1590_vm2, %v7183_v16  ;;  %6766 = vmatprep.mubr.msk.bf16.mxu0 %vm1590_vm2, %v7184_v18  ;;  %v3852_v46 = vmax.f32 %v2480_v34, 0.0  ;;  %v7189_v10 = vld [vmem:[%s7266_s27 + $0x5e0] sm:$0xff]   ;;  %v7191_v7 = vld [vmem:[%s7266_s27 + $0x5e8] sm:$0xff]  }
 0x174   : > { %4407 = vst.msk [vmem:[#allocation2 + $0xf8] sm:$0xff] %vm4375_vm3, %v4210_v41  ;;  %4505 = vst.msk [vmem:[#allocation2 + $0x408] sm:$0xff] %vm4375_vm3, %v4308_v0  ;;  %v4048_v57 = vmax.f32 %v3264_v35, 0.0  ;;  %6962 = vmatprep.mubr.msk.bf16.mxu1 %vm1590_vm2, %v7185_v29  ;;  %v4211_v62 = vmax.f32 %v3847_v13, %v3854_v42  ;;  %v2469_v47 = vadd.f32 %v7869_v48, %v8044_v43  ;;  %v4044_v51 = vmax.f32 %v3248_v31, 0.0  ;;  %v7190_v29 = vld [vmem:[%s7266_s27 + $0x2d8] sm:$0xff]   ;;  %v7192_v50 = vld [vmem:[%s7266_s27 + $0x2e0] sm:$0xff]  }
 0x175   : > { %4405 = vst.msk [vmem:[#allocation2 + $0xe8] sm:$0xff] %vm4375_vm3, %v4208_v37  ;;  %4503 = vst.msk [vmem:[#allocation2 + $0x3f8] sm:$0xff] %vm4375_vm3, %v4306_v38  ;;  %v4309_v36 = vmax.f32 %v4043_v24, %v4050_v4  ;;  %v6660_v44 = vpop.f32.mrb[68].mxu0  ;;  %v6856_v20 = vpop.f32.mrb[68].mxu1  ;;  %v4209_v21 = vmax.f32 %v3845_v17, %v3852_v46  ;;  %v3848_v17 = vmax.f32 %v2464_v1, 0.0  ;;  %v4045_v5 = vmax.f32 %v3253_v59, 0.0 }
 0x176   : > { %v4307_v49 = vmax.f32 %v4041_v32, %v4048_v57  ;;  %v2492_v52 = vpop.f32.mrb[69].mxu0  ;;  %v3276_v60 = vpop.f32.mrb[69].mxu1  ;;  %4408 = vst.msk [vmem:[#allocation2 + $0x100] sm:$0xff] %vm4375_vm3, %v4211_v62  ;;  %v3849_v63 = vmax.f32 %v2469_v47, 0.0  ;;  %v8131_v23 = vadd.f32 %v7869_v48, %v6660_v44  ;;  %v8134_v26 = vadd.f32 %v7869_v48, %v6856_v20  ;;  %v7193_v46 = vld [vmem:[%s7266_s27 + $0x5f0] sm:$0xff]  }
 0x177   : > { %4506 = vst.msk [vmem:[#allocation2 + $0x410] sm:$0xff] %vm4375_vm3, %v4309_v36  ;;  %v2493_v53 = vadd.f32 %v7869_v48, %v2492_v52  ;;  %v3277_v43 = vadd.f32 %v7869_v48, %v3276_v60  ;;  %v6661_v54 = vpop.f32.mrb[70].mxu0  ;;  %v6857_v45 = vpop.f32.mrb[70].mxu1  ;;  %4406 = vst.msk [vmem:[#allocation2 + $0xf0] sm:$0xff] %vm4375_vm3, %v4209_v21 }
 0x178   : > { %4504 = vst.msk [vmem:[#allocation2 + $0x400] sm:$0xff] %vm4375_vm3, %v4307_v49  ;;  %v2495_v19 = vpop.f32.mrb[71].mxu0  ;;  %v3279_v32 = vpop.f32.mrb[71].mxu1  ;;  %v8140_v34 = vadd.f32 %v7869_v48, %v6661_v54  ;;  %v8143_v35 = vadd.f32 %v7869_v48, %v6857_v45  ;;  %v3857_v59 = vmax.f32 %v8131_v23, 0.0  ;;  %v4053_v21 = vmax.f32 %v8134_v26, 0.0 }
 0x179   : > { %v3855_v28 = vmax.f32 %v2493_v53, 0.0  ;;  %v4051_v33 = vmax.f32 %v3277_v43, 0.0  ;;  %v2496_v56 = vadd.f32 %v7869_v48, %v2495_v19  ;;  %v3280_v40 = vadd.f32 %v7869_v48, %v3279_v32 }
 0x17a   : > { %6767 = vmatmul.mubr.msk.bf16.gmra.mrb[176].mxu0 %vm1590_vm2, %v7186_v22  ;;  %v3858_v52 = vmax.f32 %v8140_v34, 0.0  ;;  %v4054_v60 = vmax.f32 %v8143_v35, 0.0 }
 0x17b   : > { %v4212_v8 = vmax.f32 %v3848_v17, %v3855_v28  ;;  %v4310_v11 = vmax.f32 %v4044_v51, %v4051_v33  ;;  %v3856_v55 = vmax.f32 %v2496_v56, 0.0  ;;  %v4052_v12 = vmax.f32 %v3280_v40, 0.0  ;;  %6963 = vmatmul.mubr.msk.bf16.gmra.mrb[176].mxu1 %vm1590_vm2, %v7187_v58  ;;  %6770 = vmatprep.mubr.msk.bf16.mxu0 %vm1590_vm2, %v7188_v9  ;;  %v7194_v58 = vld [vmem:[%s7266_s27 + $0x2e8] sm:$0xff]   ;;  %v7195_v28 = vld [vmem:[%s7266_s27 + $0x5f8] sm:$0xff]   ;;  %v7196_v33 = vld [vmem:[%s7266_s27 + $0x2f0] sm:$0xff]  }
 0x17c   : > { %v4604_v13 = vld [vmem:[#allocation2 + $0xe0] ss:$2 sm:$0xff]  ;;  %v4828_v24 = vld [vmem:[#allocation2 + $0xe1] ss:$2 sm:$0xff]  ;;  %v4716_v61 = vld [vmem:[#allocation2 + $0x3f0] ss:$2 sm:$0xff]  ;;  %6966 = vmatprep.mubr.msk.bf16.mxu1 %vm1590_vm2, %v7189_v10 }
 0x17d   : > { %v5035_v25 = vmax.f32 %v4604_v13, %v4828_v24  ;;  %v4940_v14 = vld [vmem:[#allocation2 + $0x3f1] ss:$2 sm:$0xff]  ;;  %4409 = vst.msk [vmem:[#allocation2 + $0x108] sm:$0xff] %vm4375_vm3, %v4212_v8  ;;  %4507 = vst.msk [vmem:[#allocation2 + $0x418] sm:$0xff] %vm4375_vm3, %v4310_v11  ;;  %v4213_v15 = vmax.f32 %v3849_v63, %v3856_v55  ;;  %v4311_v16 = vmax.f32 %v4045_v5, %v4052_v12  ;;  %v6664_v18 = vpop.f32.mrb[72].mxu0  ;;  %v6860_v3 = vpop.f32.mrb[72].mxu1 }
 0x17e   : > { %v5091_v2 = vmax.f32 %v4716_v61, %v4940_v14  ;;  %v2508_v27 = vpop.f32.mrb[73].mxu0  ;;  %v3292_v6 = vpop.f32.mrb[73].mxu1  ;;  %v4606_v30 = vld [vmem:[#allocation2 + $0xf0] ss:$2 sm:$0xff]  ;;  %v4830_v41 = vld [vmem:[#allocation2 + $0xf1] ss:$2 sm:$0xff]  ;;  %v8148_v37 = vadd.f32 %v7869_v48, %v6664_v18  ;;  %v8186_v5 = vadd.f32 %v7869_v48, %v6860_v3 }
 0x17f   : > { %v6283_v39 = vpack.c.bf16 %v5035_v25, %v5035_v25  ;;  %v4718_v0 = vld [vmem:[#allocation2 + $0x400] ss:$2 sm:$0xff]  ;;  %4410 = vst.msk [vmem:[#allocation2 + $0x110] sm:$0xff] %vm4375_vm3, %v4213_v15  ;;  %4508 = vst.msk [vmem:[#allocation2 + $0x420] sm:$0xff] %vm4375_vm3, %v4311_v16  ;;  %v5036_v42 = vmax.f32 %v4606_v30, %v4830_v41  ;;  %v4942_v4 = vld [vmem:[#allocation2 + $0x401] ss:$2 sm:$0xff]  ;;  %v8154_v62 = vadd.f32 %v7869_v48, %v2508_v27 }
 0x180   : > { %v6339_v38 = vpack.c.bf16 %v5091_v2, %v5091_v2  ;;  %v6665_v1 = vpop.f32.mrb[74].mxu0  ;;  %v6861_v31 = vpop.f32.mrb[74].mxu1  ;;  %v5092_v57 = vmax.f32 %v4718_v0, %v4942_v4  ;;  %v8157_v36 = vadd.f32 %v7869_v48, %v3292_v6  ;;  %v3861_v22 = vmax.f32 %v8148_v37, 0.0  ;;  %v7197_v2 = vld [vmem:[%s7266_s27 + $0x600] sm:$0xff]  }
 0x181   : > { %5597 = vst.msk [vmem:[%s7588_s6 + $0x40] sm:$0xf] %vm5579_vm4, %v6283_v39  ;;  %v2511_v44 = vpop.f32.mrb[75].mxu0  ;;  %v3295_v20 = vpop.f32.mrb[75].mxu1  ;;  %v6284_v47 = vpack.c.bf16 %v5036_v42, %v5036_v42  ;;  %v8172_v45 = vadd.f32 %v7869_v48, %v6665_v1  ;;  %v3859_v51 = vmax.f32 %v8154_v62, 0.0  ;;  %v8181_v32 = vadd.f32 %v7869_v48, %v6861_v31 }
 0x182   : > { %5653 = vst.msk [vmem:[%s7588_s6 + $0x120] sm:$0xf] %vm5579_vm4, %v6339_v38  ;;  %6771 = vmatmul.mubr.msk.bf16.gmra.mrb[180].mxu0 %vm1590_vm2, %v7190_v29  ;;  %v6340_v49 = vpack.c.bf16 %v5092_v57, %v5092_v57  ;;  %v4055_v19 = vmax.f32 %v8157_v36, 0.0  ;;  %v8190_v24 = vadd.f32 %v7869_v48, %v2511_v44  ;;  %v8193_v61 = vadd.f32 %v7869_v48, %v3295_v20 }
 0x183   : > { %6967 = vmatmul.mubr.msk.bf16.gmra.mrb[180].mxu1 %vm1590_vm2, %v7191_v7  ;;  %6774 = vmatprep.mubr.msk.bf16.mxu0 %vm1590_vm2, %v7192_v50  ;;  %5598 = vst.msk [vmem:[%s7588_s6 + $0x44] sm:$0xf] %vm5579_vm4, %v6284_v47  ;;  %v3862_v15 = vmax.f32 %v8172_v45, 0.0  ;;  %v4058_v6 = vmax.f32 %v8181_v32, 0.0 }
 0x184   : > { %v4608_v53 = vld [vmem:[#allocation2 + $0x100] ss:$2 sm:$0xff]  ;;  %v4832_v43 = vld [vmem:[#allocation2 + $0x101] ss:$2 sm:$0xff]  ;;  %v4720_v54 = vld [vmem:[#allocation2 + $0x410] ss:$2 sm:$0xff]  ;;  %6970 = vmatprep.mubr.msk.bf16.mxu1 %vm1590_vm2, %v7193_v46 }
 0x185   : > { %5654 = vst.msk [vmem:[%s7588_s6 + $0x124] sm:$0xf] %vm5579_vm4, %v6340_v49  ;;  %v5037_v9 = vmax.f32 %v4608_v53, %v4832_v43  ;;  %v4944_v17 = vld [vmem:[#allocation2 + $0x411] ss:$2 sm:$0xff]  ;;  %v6668_v10 = vpop.f32.mrb[76].mxu0  ;;  %v6864_v18 = vpop.f32.mrb[76].mxu1 }
 0x186   : > { %v5093_v56 = vmax.f32 %v4720_v54, %v4944_v17  ;;  %v4610_v40 = vld [vmem:[#allocation2 + $0x110] ss:$2 sm:$0xf]  ;;  %v4834_v63 = vld [vmem:[#allocation2 + $0x111] ss:$2 sm:$0xf]  ;;  %v2533_v8 = vadd.f32 %v7869_v48, %v6668_v10  ;;  %v3317_v29 = vadd.f32 %v7869_v48, %v6864_v18 }
 0x187   : > { %v6285_v11 = vpack.c.bf16 %v5037_v9, %v5037_v9  ;;  %v5038_v55 = vmax.f32 %v4610_v40, %v4834_v63  ;;  %v4722_v12 = vld [vmem:[#allocation2 + $0x420] ss:$2 sm:$0xf]  ;;  %v4946_v13 = vld [vmem:[#allocation2 + $0x421] ss:$2 sm:$0xf] }
 0x188   : > { %v6341_v25 = vpack.c.bf16 %v5093_v56, %v5093_v56  ;;  %v5094_v14 = vmax.f32 %v4722_v12, %v4946_v13  ;;  %v3865_v16 = vmax.f32 %v2533_v8, 0.0  ;;  %v2524_v3 = vpop.f32.mrb[77].mxu0  ;;  %v3308_v50 = vpop.f32.mrb[77].mxu1  ;;  %v3860_v4 = vmax.f32 %v8190_v24, 0.0  ;;  %v7198_v40 = vld [vmem:[%s7266_s27 + $0x2f8] sm:$0xff]   ;;  %v7200_v12 = vld [vmem:[%s7266_s27 + $0x300] sm:$0xff]  }
 0x189   : > { %5599 = vst.msk [vmem:[%s7588_s6 + $0x48] sm:$0xf] %vm5579_vm4, %v6285_v11  ;;  %v6286_v27 = vpack.c.bf16 %v5038_v55, %v5038_v55  ;;  %v8202_v7 = vadd.f32 %v7869_v48, %v2524_v3  ;;  %v6669_v39 = vpop.f32.mrb[78].mxu0  ;;  %v8207_v0 = vadd.f32 %v7869_v48, %v3308_v50  ;;  %v6865_v38 = vpop.f32.mrb[78].mxu1  ;;  %v4061_v1 = vmax.f32 %v3317_v29, 0.0  ;;  %v7199_v55 = vld [vmem:[%s7266_s27 + $0x608] sm:$0xff]  }
 0x18a   : > { %5655 = vst.msk [vmem:[%s7588_s6 + $0x128] sm:$0xf] %vm5579_vm4, %v6341_v25  ;;  %v6342_v30 = vpack.c.bf16 %v5094_v14, %v5094_v14  ;;  %v4215_v41 = vmax.f32 %v3858_v52, %v3865_v16  ;;  %v2536_v34 = vadd.f32 %v7869_v48, %v6669_v39  ;;  %v2527_v42 = vpop.f32.mrb[79].mxu0  ;;  %6775 = vmatmul.mubr.msk.bf16.gmra.mrb[184].mxu0 %vm1590_vm2, %v7194_v58  ;;  %v3311_v57 = vpop.f32.mrb[79].mxu1  ;;  %v4056_v62 = vmax.f32 %v8193_v61, 0.0 }
 0x18b   : > { %5600 = vst.msk [vmem:[%s7588_s6 + $0x4c] sm:$0x3] %vm5583_vm5, %v6286_v27  ;;  %v3320_v31 = vadd.f32 %v7869_v48, %v6865_v38  ;;  %v2528_v46 = vadd.f32 %v7869_v48, %v2527_v42  ;;  %6971 = vmatmul.mubr.msk.bf16.gmra.mrb[184].mxu1 %vm1590_vm2, %v7195_v28  ;;  %6778 = vmatprep.mubr.msk.bf16.mxu0 %vm1590_vm2, %v7196_v33  ;;  %v3863_v44 = vmax.f32 %v8202_v7, 0.0  ;;  %v4059_v52 = vmax.f32 %v8207_v0, 0.0 }
 0x18c   : > { %5656 = vst.msk [vmem:[%s7588_s6 + $0x12c] sm:$0x3] %vm5583_vm5, %v6342_v30  ;;  %v3866_v20 = vmax.f32 %v2536_v34, 0.0  ;;  %v3312_v47 = vadd.f32 %v7869_v48, %v3311_v57  ;;  %6974 = vmatprep.mubr.msk.bf16.mxu1 %vm1590_vm2, %v7197_v2  ;;  %v4313_v49 = vmax.f32 %v4054_v60, %v4061_v1  ;;  %v4057_v39 = vmax.f32 %v8186_v5, 0.0  ;;  %v7202_v34 = vld [vmem:[%s7266_s27 + $0x308] sm:$0xff]  }
 0x18d   : > { %4412 = vst.msk [vmem:[#allocation2 + $0x120] sm:$0xff] %vm4375_vm3, %v4215_v41  ;;  %v4062_v53 = vmax.f32 %v3320_v31, 0.0  ;;  %v3864_v43 = vmax.f32 %v2528_v46, 0.0  ;;  %v6672_v54 = vpop.f32.mrb[80].mxu0  ;;  %v6868_v58 = vpop.f32.mrb[80].mxu1 }
 0x18e   : > { %v4216_v9 = vmax.f32 %v3859_v51, %v3866_v20  ;;  %v4060_v17 = vmax.f32 %v3312_v47, 0.0  ;;  %v2549_v10 = vadd.f32 %v7869_v48, %v6672_v54  ;;  %v3333_v28 = vadd.f32 %v7869_v48, %v6868_v58  ;;  %v2540_v33 = vpop.f32.mrb[81].mxu0  ;;  %v3324_v56 = vpop.f32.mrb[81].mxu1  ;;  %4510 = vst.msk [vmem:[#allocation2 + $0x430] sm:$0xff] %vm4375_vm3, %v4313_v49 }
 0x18f   : > { %v4314_v35 = vmax.f32 %v4055_v19, %v4062_v53  ;;  %v4214_v60 = vmax.f32 %v3857_v59, %v3864_v43  ;;  %v2541_v63 = vadd.f32 %v7869_v48, %v2540_v33  ;;  %v3325_v51 = vadd.f32 %v7869_v48, %v3324_v56  ;;  %v6673_v8 = vpop.f32.mrb[82].mxu0  ;;  %v6869_v11 = vpop.f32.mrb[82].mxu1  ;;  %v7201_v59 = vld [vmem:[%s7266_s27 + $0x610] sm:$0xff]  }
 0x190   : > { %4413 = vst.msk [vmem:[#allocation2 + $0x128] sm:$0xff] %vm4375_vm3, %v4216_v9  ;;  %v4312_v13 = vmax.f32 %v4053_v21, %v4060_v17  ;;  %v3869_v24 = vmax.f32 %v2549_v10, 0.0  ;;  %v4065_v36 = vmax.f32 %v3333_v28, 0.0  ;;  %v2552_v19 = vadd.f32 %v7869_v48, %v6673_v8  ;;  %v2543_v61 = vpop.f32.mrb[83].mxu0  ;;  %v3327_v23 = vpop.f32.mrb[83].mxu1 }
 0x191   : > { %4511 = vst.msk [vmem:[#allocation2 + $0x438] sm:$0xff] %vm4375_vm3, %v4314_v35  ;;  %4411 = vst.msk [vmem:[#allocation2 + $0x118] sm:$0xff] %vm4375_vm3, %v4214_v60  ;;  %v3867_v25 = vmax.f32 %v2541_v63, 0.0  ;;  %v4063_v14 = vmax.f32 %v3325_v51, 0.0  ;;  %v3336_v16 = vadd.f32 %v7869_v48, %v6869_v11  ;;  %v2544_v18 = vadd.f32 %v7869_v48, %v2543_v61  ;;  %v8281_v28 = vld [vmem:[%s9044_s2] ss:$0 sm:$0xff] }
 0x192   : > { %4509 = vst.msk [vmem:[#allocation2 + $0x428] sm:$0xff] %vm4375_vm3, %v4312_v13  ;;  %v4219_v26 = vmax.f32 %v3862_v15, %v3869_v24  ;;  %v4317_v21 = vmax.f32 %v4058_v6, %v4065_v36  ;;  %v3870_v3 = vmax.f32 %v2552_v19, 0.0  ;;  %v3328_v2 = vadd.f32 %v7869_v48, %v3327_v23  ;;  %6779 = vmatmul.mubr.msk.bf16.gmra.mrb[188].mxu0 %vm1590_vm2, %v7198_v40 }
 0x193   : > { %v4217_v27 = vmax.f32 %v3860_v4, %v3867_v25  ;;  %v4315_v29 = vmax.f32 %v4056_v62, %v4063_v14  ;;  %v4066_v7 = vmax.f32 %v3336_v16, 0.0  ;;  %v3868_v50 = vmax.f32 %v2544_v18, 0.0  ;;  %6975 = vmatmul.mubr.msk.bf16.gmra.mrb[188].mxu1 %vm1590_vm2, %v7199_v55  ;;  %6782 = vmatprep.mubr.msk.bf16.mxu0 %vm1590_vm2, %v7200_v12  ;;  %v7203_v4 = vld [vmem:[%s7266_s27 + $0x618] sm:$0xff]  }
 0x194   : > { %4416 = vst.msk [vmem:[#allocation2 + $0x140] sm:$0xff] %vm4375_vm3, %v4219_v26  ;;  %4514 = vst.msk [vmem:[#allocation2 + $0x450] sm:$0xff] %vm4375_vm3, %v4317_v21  ;;  %v4220_v45 = vmax.f32 %v3863_v44, %v3870_v3  ;;  %v4064_v32 = vmax.f32 %v3328_v2, 0.0  ;;  %6978 = vmatprep.mubr.msk.bf16.mxu1 %vm1590_vm2, %v7201_v59 }
 0x195   : > { %4414 = vst.msk [vmem:[#allocation2 + $0x130] sm:$0xff] %vm4375_vm3, %v4217_v27  ;;  %4512 = vst.msk [vmem:[#allocation2 + $0x440] sm:$0xff] %vm4375_vm3, %v4315_v29  ;;  %v4318_v48 = vmax.f32 %v4059_v52, %v4066_v7  ;;  %v4218_v15 = vmax.f32 %v3861_v22, %v3868_v50  ;;  %v6676_v6 = vpop.f32.mrb[84].mxu0  ;;  %v6872_v5 = vpop.f32.mrb[84].mxu1 }
 0x196   : > { %4417 = vst.msk [vmem:[#allocation2 + $0x148] sm:$0xff] %vm4375_vm3, %v4220_v45  ;;  %v4316_v30 = vmax.f32 %v4057_v39, %v4064_v32  ;;  %v2556_v41 = vpop.f32.mrb[85].mxu0  ;;  %v3340_v0 = vpop.f32.mrb[85].mxu1  ;;  %v8284_v33 = vadd.f32 %v8281_v28, %v6676_v6  ;;  %v8287_v56 = vadd.f32 %v8281_v28, %v6872_v5 }
 0x197   : > { %4515 = vst.msk [vmem:[#allocation2 + $0x458] sm:$0xff] %vm4375_vm3, %v4318_v48  ;;  %4415 = vst.msk [vmem:[#allocation2 + $0x138] sm:$0xff] %vm4375_vm3, %v4218_v15  ;;  %v6677_v38 = vpop.f32.mrb[86].mxu0  ;;  %v6873_v42 = vpop.f32.mrb[86].mxu1  ;;  %v2557_v40 = vadd.f32 %v8281_v28, %v2556_v41  ;;  %v3341_v8 = vadd.f32 %v8281_v28, %v3340_v0 }
 0x198   : > { %v4612_v1 = vld [vmem:[#allocation2 + $0x118] ss:$2 sm:$0xff]  ;;  %v4836_v31 = vld [vmem:[#allocation2 + $0x119] ss:$2 sm:$0xff]  ;;  %4513 = vst.msk [vmem:[#allocation2 + $0x448] sm:$0xff] %vm4375_vm3, %v4316_v30  ;;  %v2559_v62 = vpop.f32.mrb[87].mxu0  ;;  %v8292_v11 = vadd.f32 %v8281_v28, %v6677_v38  ;;  %v8295_v19 = vadd.f32 %v8281_v28, %v6873_v42 }
 0x199   : > { %v5039_v37 = vmax.f32 %v4612_v1, %v4836_v31  ;;  %v4724_v22 = vld [vmem:[#allocation2 + $0x428] ss:$2 sm:$0xff]  ;;  %v4948_v46 = vld [vmem:[#allocation2 + $0x429] ss:$2 sm:$0xff]  ;;  %v3343_v44 = vpop.f32.mrb[87].mxu1  ;;  %v8298_v61 = vadd.f32 %v8281_v28, %v2559_v62  ;;  %v3873_v21 = vmax.f32 %v8284_v33, 0.0 }
 0x19a   : > { %v5095_v57 = vmax.f32 %v4724_v22, %v4948_v46  ;;  %6783 = vmatmul.mubr.msk.bf16.gmra.mrb[192].mxu0 %vm1590_vm2, %v7202_v34  ;;  %v3344_v14 = vadd.f32 %v8281_v28, %v3343_v44  ;;  %v4069_v3 = vmax.f32 %v8287_v56, 0.0  ;;  %v3871_v48 = vmax.f32 %v2557_v40, 0.0 }
 0x19b   : > { %v6287_v20 = vpack.c.bf16 %v5039_v37, %v5039_v37  ;;  %6979 = vmatmul.mubr.msk.bf16.gmra.mrb[192].mxu1 %vm1590_vm2, %v7203_v4  ;;  %v4067_v15 = vmax.f32 %v3341_v8, 0.0  ;;  %v3874_v0 = vmax.f32 %v8292_v11, 0.0  ;;  %v4070_v34 = vmax.f32 %v8295_v19, 0.0 }
 0x19c   : > { %v6343_v47 = vpack.c.bf16 %v5095_v57, %v5095_v57  ;;  %v4614_v49 = vld [vmem:[#allocation2 + $0x128] ss:$2 sm:$0xff]  ;;  %v4838_v52 = vld [vmem:[#allocation2 + $0x129] ss:$2 sm:$0xff]  ;;  %v4726_v53 = vld [vmem:[#allocation2 + $0x438] ss:$2 sm:$0xff] }
 0x19d   : > { %5601 = vst.msk [vmem:[%s7588_s6 + $0x50] sm:$0xf] %vm5579_vm4, %v6287_v20  ;;  %v5040_v43 = vmax.f32 %v4614_v49, %v4838_v52  ;;  %v4950_v54 = vld [vmem:[#allocation2 + $0x439] ss:$2 sm:$0xff]  ;;  %v8303_v16 = vpop.f32.mrb[88].mxu0  ;;  %v8305_v18 = vpop.f32.mrb[88].mxu1 }
 0x19e   : > { %v4618_v58 = vld [vmem:[#allocation2 + $0x148] ss:$2 sm:$0xf]  ;;  %5657 = vst.msk [vmem:[%s7588_s6 + $0x130] sm:$0xf] %vm5579_vm4, %v6343_v47  ;;  %v5096_v9 = vmax.f32 %v4726_v53, %v4950_v54  ;;  %v2572_v2 = vpop.f32.mrb[89].mxu0 }
 0x19f   : > { %v4842_v17 = vld [vmem:[#allocation2 + $0x149] ss:$2 sm:$0xf]  ;;  %v4730_v10 = vld [vmem:[#allocation2 + $0x458] ss:$2 sm:$0xf]  ;;  %v6288_v35 = vpack.c.bf16 %v5040_v43, %v5040_v43  ;;  %v2573_v50 = vadd.f32 %v8281_v28, %v2572_v2 }
 0x1a0   : > { %v5042_v60 = vmax.f32 %v4618_v58, %v4842_v17  ;;  %v4954_v63 = vld [vmem:[#allocation2 + $0x459] ss:$2 sm:$0xf]  ;;  %v4616_v51 = vld [vmem:[#allocation2 + $0x138] ss:$2 sm:$0xff]  ;;  %v6344_v55 = vpack.c.bf16 %v5096_v9, %v5096_v9  ;;  %v3356_v27 = vpop.f32.mrb[89].mxu1 }
 0x1a1   : > { %v5098_v12 = vmax.f32 %v4730_v10, %v4954_v63  ;;  %v4840_v13 = vld [vmem:[#allocation2 + $0x139] ss:$2 sm:$0xff]  ;;  %v4728_v24 = vld [vmem:[#allocation2 + $0x448] ss:$2 sm:$0xff]  ;;  %v4952_v36 = vld [vmem:[#allocation2 + $0x449] ss:$2 sm:$0xff]  ;;  %v3357_v39 = vadd.f32 %v8281_v28, %v3356_v27  ;;  %v2581_v27 = vadd.f32 %v8281_v28, %v8303_v16 }
 0x1a2   : > { %5602 = vst.msk [vmem:[%s7588_s6 + $0x54] sm:$0xf] %vm5579_vm4, %v6288_v35  ;;  %v6290_v23 = vpack.c.bf16 %v5042_v60, %v5042_v60  ;;  %v5041_v59 = vmax.f32 %v4616_v51, %v4840_v13  ;;  %v5097_v25 = vmax.f32 %v4728_v24, %v4952_v36  ;;  %5658 = vst.msk [vmem:[%s7588_s6 + $0x134] sm:$0xf] %vm5579_vm4, %v6344_v55  ;;  %v6681_v45 = vpop.f32.mrb[90].mxu0  ;;  %v6877_v32 = vpop.f32.mrb[90].mxu1 }
 0x1a3   : > { %v6346_v26 = vpack.c.bf16 %v5098_v12, %v5098_v12  ;;  %v2584_v6 = vadd.f32 %v8281_v28, %v6681_v45  ;;  %v3368_v5 = vadd.f32 %v8281_v28, %v6877_v32  ;;  %v2575_v30 = vpop.f32.mrb[91].mxu0  ;;  %v3359_v41 = vpop.f32.mrb[91].mxu1  ;;  %v3872_v38 = vmax.f32 %v8298_v61, 0.0 }
 0x1a4   : > { %5604 = vst.msk [vmem:[%s7588_s6 + $0x5c] sm:$0x3] %vm5583_vm5, %v6290_v23  ;;  %v6289_v29 = vpack.c.bf16 %v5041_v59, %v5041_v59  ;;  %v6345_v7 = vpack.c.bf16 %v5097_v25, %v5097_v25  ;;  %v4068_v42 = vmax.f32 %v3344_v14, 0.0  ;;  %v3875_v44 = vmax.f32 %v2573_v50, 0.0 }
 0x1a5   : > { %5660 = vst.msk [vmem:[%s7588_s6 + $0x13c] sm:$0x3] %vm5583_vm5, %v6346_v26  ;;  %v6684_v4 = vpop.f32.mrb[92].mxu0  ;;  %v6880_v1 = vpop.f32.mrb[92].mxu1  ;;  %v3878_v31 = vmax.f32 %v2584_v6, 0.0  ;;  %v4074_v37 = vmax.f32 %v3368_v5, 0.0  ;;  %v2576_v19 = vadd.f32 %v8281_v28, %v2575_v30  ;;  %v3360_v61 = vadd.f32 %v8281_v28, %v3359_v41 }
 0x1a6   : > { %5603 = vst.msk [vmem:[%s7588_s6 + $0x58] sm:$0xf] %vm5579_vm4, %v6289_v29  ;;  %5659 = vst.msk [vmem:[%s7588_s6 + $0x138] sm:$0xf] %vm5579_vm4, %v6345_v7  ;;  %v2597_v22 = vadd.f32 %v8281_v28, %v6684_v4  ;;  %v3381_v46 = vadd.f32 %v8281_v28, %v6880_v1  ;;  %v2588_v57 = vpop.f32.mrb[93].mxu0  ;;  %v3372_v62 = vpop.f32.mrb[93].mxu1  ;;  %v3365_v29 = vadd.f32 %v8281_v28, %v8305_v18 }
 0x1a7   : > { %v4071_v20 = vmax.f32 %v3357_v39, 0.0  ;;  %v2589_v47 = vadd.f32 %v8281_v28, %v2588_v57  ;;  %v3373_v49 = vadd.f32 %v8281_v28, %v3372_v62  ;;  %v6685_v52 = vpop.f32.mrb[94].mxu0  ;;  %v6881_v53 = vpop.f32.mrb[94].mxu1  ;;  %v4221_v43 = vmax.f32 %v3871_v48, %v3878_v31 }
 0x1a8   : > { %v4319_v54 = vmax.f32 %v4067_v15, %v4074_v37  ;;  %v3881_v58 = vmax.f32 %v2597_v22, 0.0  ;;  %v4077_v9 = vmax.f32 %v3381_v46, 0.0  ;;  %v2591_v17 = vpop.f32.mrb[95].mxu0  ;;  %v3375_v10 = vpop.f32.mrb[95].mxu1  ;;  %v2600_v60 = vadd.f32 %v8281_v28, %v6685_v52 }
 0x1a9   : > { %v3879_v40 = vmax.f32 %v2589_v47, 0.0  ;;  %v4075_v35 = vmax.f32 %v3373_v49, 0.0  ;;  %v3384_v63 = vadd.f32 %v8281_v28, %v6881_v53  ;;  %4418 = vst.msk [vmem:[#allocation2 + $0x150] sm:$0xff] %vm4375_vm3, %v4221_v43  ;;  %v2592_v11 = vadd.f32 %v8281_v28, %v2591_v17 }
 0x1aa   : > { %4516 = vst.msk [vmem:[#allocation2 + $0x460] sm:$0xff] %vm4375_vm3, %v4319_v54  ;;  %v4224_v51 = vmax.f32 %v3874_v0, %v3881_v58  ;;  %v4322_v8 = vmax.f32 %v4070_v34, %v4077_v9  ;;  %v3376_v55 = vadd.f32 %v8281_v28, %v3375_v10  ;;  %v3882_v24 = vmax.f32 %v2600_v60, 0.0 }
 0x1ab   : > { %v4222_v12 = vmax.f32 %v3872_v38, %v3879_v40  ;;  %v4320_v13 = vmax.f32 %v4068_v42, %v4075_v35  ;;  %v4078_v36 = vmax.f32 %v3384_v63, 0.0  ;;  %v3880_v23 = vmax.f32 %v2592_v11, 0.0 }
 0x1ac   : > { %4421 = vst.msk [vmem:[#allocation2 + $0x168] sm:$0xff] %vm4375_vm3, %v4224_v51  ;;  %4519 = vst.msk [vmem:[#allocation2 + $0x478] sm:$0xff] %vm4375_vm3, %v4322_v8  ;;  %v4076_v59 = vmax.f32 %v3376_v55, 0.0  ;;  %v4225_v25 = vmax.f32 %v3875_v44, %v3882_v24  ;;  %v3876_v6 = vmax.f32 %v2576_v19, 0.0  ;;  %v4072_v18 = vmax.f32 %v3360_v61, 0.0 }
 0x1ad   : > { %4419 = vst.msk [vmem:[#allocation2 + $0x158] sm:$0xff] %vm4375_vm3, %v4222_v12  ;;  %4517 = vst.msk [vmem:[#allocation2 + $0x468] sm:$0xff] %vm4375_vm3, %v4320_v13  ;;  %v4323_v14 = vmax.f32 %v4071_v20, %v4078_v36  ;;  %v6688_v26 = vpop.f32.mrb[96].mxu0  ;;  %v6884_v2 = vpop.f32.mrb[96].mxu1  ;;  %v4223_v7 = vmax.f32 %v3873_v21, %v3880_v23  ;;  %v3877_v41 = vmax.f32 %v2581_v27, 0.0  ;;  %v4073_v0 = vmax.f32 %v3365_v29, 0.0 }
 0x1ae   : > { %v4321_v50 = vmax.f32 %v4069_v3, %v4076_v59  ;;  %v2604_v39 = vpop.f32.mrb[97].mxu0  ;;  %v3388_v45 = vpop.f32.mrb[97].mxu1  ;;  %4422 = vst.msk [vmem:[#allocation2 + $0x170] sm:$0xff] %vm4375_vm3, %v4225_v25  ;;  %v8361_v49 = vadd.f32 %v8281_v28, %v6688_v26  ;;  %v8364_v52 = vadd.f32 %v8281_v28, %v6884_v2 }
 0x1af   : > { %4520 = vst.msk [vmem:[#allocation2 + $0x480] sm:$0xff] %vm4375_vm3, %v4323_v14  ;;  %v2605_v32 = vadd.f32 %v8281_v28, %v2604_v39  ;;  %v3389_v48 = vadd.f32 %v8281_v28, %v3388_v45  ;;  %v6689_v16 = vpop.f32.mrb[98].mxu0  ;;  %v6885_v15 = vpop.f32.mrb[98].mxu1  ;;  %4420 = vst.msk [vmem:[#allocation2 + $0x160] sm:$0xff] %vm4375_vm3, %v4223_v7 }
 0x1b0   : > { %4518 = vst.msk [vmem:[#allocation2 + $0x470] sm:$0xff] %vm4375_vm3, %v4321_v50  ;;  %v2607_v33 = vpop.f32.mrb[99].mxu0  ;;  %v3391_v56 = vpop.f32.mrb[99].mxu1  ;;  %v8367_v10 = vadd.f32 %v8281_v28, %v6689_v16  ;;  %v8370_v40 = vadd.f32 %v8281_v28, %v6885_v15  ;;  %v3885_v61 = vmax.f32 %v8361_v49, 0.0  ;;  %v4081_v23 = vmax.f32 %v8364_v52, 0.0 }
 0x1b1   : > { %v3883_v21 = vmax.f32 %v2605_v32, 0.0  ;;  %v4079_v3 = vmax.f32 %v3389_v48, 0.0  ;;  %v2608_v5 = vadd.f32 %v8281_v28, %v2607_v33  ;;  %v3392_v30 = vadd.f32 %v8281_v28, %v3391_v56 }
 0x1b2   : > { %v3886_v25 = vmax.f32 %v8367_v10, 0.0  ;;  %v4082_v14 = vmax.f32 %v8370_v40, 0.0 }
 0x1b3   : > { %v4226_v34 = vmax.f32 %v3876_v6, %v3883_v21  ;;  %v4324_v38 = vmax.f32 %v4072_v18, %v4079_v3  ;;  %v3884_v42 = vmax.f32 %v2608_v5, 0.0  ;;  %v4080_v4 = vmax.f32 %v3392_v30, 0.0 }
 0x1b4   : > { %v4620_v1 = vld [vmem:[#allocation2 + $0x150] ss:$2 sm:$0xff]  ;;  %v4844_v31 = vld [vmem:[#allocation2 + $0x151] ss:$2 sm:$0xff]  ;;  %v4732_v37 = vld [vmem:[#allocation2 + $0x460] ss:$2 sm:$0xff] }
 0x1b5   : > { %v5043_v22 = vmax.f32 %v4620_v1, %v4844_v31  ;;  %v4956_v46 = vld [vmem:[#allocation2 + $0x461] ss:$2 sm:$0xff]  ;;  %4423 = vst.msk [vmem:[#allocation2 + $0x178] sm:$0xff] %vm4375_vm3, %v4226_v34  ;;  %4521 = vst.msk [vmem:[#allocation2 + $0x488] sm:$0xff] %vm4375_vm3, %v4324_v38  ;;  %v4227_v57 = vmax.f32 %v3877_v41, %v3884_v42  ;;  %v4325_v62 = vmax.f32 %v4073_v0, %v4080_v4  ;;  %v6692_v44 = vpop.f32.mrb[100].mxu0  ;;  %v6888_v20 = vpop.f32.mrb[100].mxu1 }
 0x1b6   : > { %v5099_v47 = vmax.f32 %v4732_v37, %v4956_v46  ;;  %v2620_v53 = vpop.f32.mrb[101].mxu0  ;;  %v3404_v43 = vpop.f32.mrb[101].mxu1  ;;  %v4622_v58 = vld [vmem:[#allocation2 + $0x160] ss:$2 sm:$0xff]  ;;  %v4846_v9 = vld [vmem:[#allocation2 + $0x161] ss:$2 sm:$0xff]  ;;  %v8375_v35 = vadd.f32 %v8281_v28, %v6692_v44  ;;  %v8405_v33 = vadd.f32 %v8281_v28, %v6888_v20 }
 0x1b7   : > { %v6291_v54 = vpack.c.bf16 %v5043_v22, %v5043_v22  ;;  %v4734_v17 = vld [vmem:[#allocation2 + $0x470] ss:$2 sm:$0xff]  ;;  %4424 = vst.msk [vmem:[#allocation2 + $0x180] sm:$0xff] %vm4375_vm3, %v4227_v57  ;;  %4522 = vst.msk [vmem:[#allocation2 + $0x490] sm:$0xff] %vm4375_vm3, %v4325_v62  ;;  %v5044_v63 = vmax.f32 %v4622_v58, %v4846_v9  ;;  %v4958_v51 = vld [vmem:[#allocation2 + $0x471] ss:$2 sm:$0xff]  ;;  %v8380_v12 = vadd.f32 %v8281_v28, %v2620_v53 }
 0x1b8   : > { %v6347_v60 = vpack.c.bf16 %v5099_v47, %v5099_v47  ;;  %v6693_v8 = vpop.f32.mrb[102].mxu0  ;;  %v6889_v11 = vpop.f32.mrb[102].mxu1  ;;  %v5100_v55 = vmax.f32 %v4734_v17, %v4958_v51  ;;  %v8383_v13 = vadd.f32 %v8281_v28, %v3404_v43  ;;  %v3889_v26 = vmax.f32 %v8375_v35, 0.0 }
 0x1b9   : > { %5605 = vst.msk [vmem:[%s7588_s6 + $0x60] sm:$0xf] %vm5579_vm4, %v6291_v54  ;;  %v2623_v24 = vpop.f32.mrb[103].mxu0  ;;  %v3407_v36 = vpop.f32.mrb[103].mxu1  ;;  %v6292_v19 = vpack.c.bf16 %v5044_v63, %v5044_v63  ;;  %v8395_v7 = vadd.f32 %v8281_v28, %v6693_v8  ;;  %v3887_v45 = vmax.f32 %v8380_v12, 0.0  ;;  %v8402_v48 = vadd.f32 %v8281_v28, %v6889_v11 }
 0x1ba   : > { %5661 = vst.msk [vmem:[%s7588_s6 + $0x140] sm:$0xf] %vm5579_vm4, %v6347_v60  ;;  %v6348_v59 = vpack.c.bf16 %v5100_v55, %v5100_v55  ;;  %v4083_v32 = vmax.f32 %v8383_v13, 0.0  ;;  %v8409_v41 = vadd.f32 %v8281_v28, %v2623_v24  ;;  %v8412_v0 = vadd.f32 %v8281_v28, %v3407_v36 }
 0x1bb   : > { %5606 = vst.msk [vmem:[%s7588_s6 + $0x64] sm:$0xf] %vm5579_vm4, %v6292_v19  ;;  %v3890_v42 = vmax.f32 %v8395_v7, 0.0  ;;  %v4086_v22 = vmax.f32 %v8402_v48, 0.0 }
 0x1bc   : > { %v4624_v2 = vld [vmem:[#allocation2 + $0x170] ss:$2 sm:$0xff]  ;;  %v4848_v27 = vld [vmem:[#allocation2 + $0x171] ss:$2 sm:$0xff]  ;;  %v4736_v29 = vld [vmem:[#allocation2 + $0x480] ss:$2 sm:$0xff] }
 0x1bd   : > { %5662 = vst.msk [vmem:[%s7588_s6 + $0x144] sm:$0xf] %vm5579_vm4, %v6348_v59  ;;  %v5045_v50 = vmax.f32 %v4624_v2, %v4848_v27  ;;  %v4960_v39 = vld [vmem:[#allocation2 + $0x481] ss:$2 sm:$0xff]  ;;  %v6696_v16 = vpop.f32.mrb[104].mxu0  ;;  %v6892_v1 = vpop.f32.mrb[104].mxu1 }
 0x1be   : > { %v5101_v15 = vmax.f32 %v4736_v29, %v4960_v39  ;;  %v4626_v6 = vld [vmem:[#allocation2 + $0x180] ss:$2 sm:$0xf]  ;;  %v4850_v18 = vld [vmem:[#allocation2 + $0x181] ss:$2 sm:$0xf]  ;;  %v2645_v56 = vadd.f32 %v8281_v28, %v6696_v16  ;;  %v3429_v46 = vadd.f32 %v8281_v28, %v6892_v1 }
 0x1bf   : > { %v6293_v21 = vpack.c.bf16 %v5045_v50, %v5045_v50  ;;  %v5046_v3 = vmax.f32 %v4626_v6, %v4850_v18  ;;  %v4738_v5 = vld [vmem:[#allocation2 + $0x490] ss:$2 sm:$0xf]  ;;  %v4962_v30 = vld [vmem:[#allocation2 + $0x491] ss:$2 sm:$0xf] }
 0x1c0   : > { %v6349_v34 = vpack.c.bf16 %v5101_v15, %v5101_v15  ;;  %v5102_v38 = vmax.f32 %v4738_v5, %v4962_v30  ;;  %v3893_v4 = vmax.f32 %v2645_v56, 0.0  ;;  %v2636_v31 = vpop.f32.mrb[105].mxu0  ;;  %v3420_v62 = vpop.f32.mrb[105].mxu1  ;;  %v3888_v9 = vmax.f32 %v8409_v41, 0.0 }
 0x1c1   : > { %5607 = vst.msk [vmem:[%s7588_s6 + $0x68] sm:$0xf] %vm5579_vm4, %v6293_v21  ;;  %v6294_v37 = vpack.c.bf16 %v5046_v3, %v5046_v3  ;;  %v8420_v57 = vadd.f32 %v8281_v28, %v2636_v31  ;;  %v6697_v44 = vpop.f32.mrb[106].mxu0  ;;  %v8425_v53 = vadd.f32 %v8281_v28, %v3420_v62  ;;  %v6893_v54 = vpop.f32.mrb[106].mxu1  ;;  %v4089_v17 = vmax.f32 %v3429_v46, 0.0 }
 0x1c2   : > { %5663 = vst.msk [vmem:[%s7588_s6 + $0x148] sm:$0xf] %vm5579_vm4, %v6349_v34  ;;  %v6350_v20 = vpack.c.bf16 %v5102_v38, %v5102_v38  ;;  %v4229_v47 = vmax.f32 %v3886_v25, %v3893_v4  ;;  %v2648_v43 = vadd.f32 %v8281_v28, %v6697_v44  ;;  %v2639_v58 = vpop.f32.mrb[107].mxu0  ;;  %v3432_v10 = vadd.f32 %v8281_v28, %v6893_v54  ;;  %v3423_v60 = vpop.f32.mrb[107].mxu1 }
 0x1c3   : > { %5608 = vst.msk [vmem:[%s7588_s6 + $0x6c] sm:$0x3] %vm5583_vm5, %v6294_v37  ;;  %v2640_v40 = vadd.f32 %v8281_v28, %v2639_v58  ;;  %v4084_v63 = vmax.f32 %v8412_v0, 0.0  ;;  %v3891_v51 = vmax.f32 %v8420_v57, 0.0  ;;  %v3424_v11 = vadd.f32 %v8281_v28, %v3423_v60 }
 0x1c4   : > { %5664 = vst.msk [vmem:[%s7588_s6 + $0x14c] sm:$0x3] %vm5583_vm5, %v6350_v20  ;;  %v3894_v8 = vmax.f32 %v2648_v43, 0.0  ;;  %v4327_v55 = vmax.f32 %v4082_v14, %v4089_v17  ;;  %v4087_v12 = vmax.f32 %v8425_v53, 0.0  ;;  %v4090_v13 = vmax.f32 %v3432_v10, 0.0 }
 0x1c5   : > { %4426 = vst.msk [vmem:[#allocation2 + $0x190] sm:$0xff] %vm4375_vm3, %v4229_v47  ;;  %v3892_v24 = vmax.f32 %v2640_v40, 0.0  ;;  %v6700_v36 = vpop.f32.mrb[108].mxu0  ;;  %v6896_v19 = vpop.f32.mrb[108].mxu1  ;;  %v4088_v25 = vmax.f32 %v3424_v11, 0.0  ;;  %v4085_v31 = vmax.f32 %v8405_v33, 0.0 }
 0x1c6   : > { %v4230_v59 = vmax.f32 %v3887_v45, %v3894_v8  ;;  %v2661_v2 = vadd.f32 %v8281_v28, %v6700_v36  ;;  %v3445_v27 = vadd.f32 %v8281_v28, %v6896_v19  ;;  %v2652_v29 = vpop.f32.mrb[109].mxu0  ;;  %v3436_v50 = vpop.f32.mrb[109].mxu1  ;;  %4524 = vst.msk [vmem:[#allocation2 + $0x4a0] sm:$0xff] %vm4375_vm3, %v4327_v55  ;;  %v4328_v39 = vmax.f32 %v4083_v32, %v4090_v13 }
 0x1c7   : > { %v4228_v14 = vmax.f32 %v3885_v61, %v3892_v24  ;;  %v2653_v48 = vadd.f32 %v8281_v28, %v2652_v29  ;;  %v3437_v16 = vadd.f32 %v8281_v28, %v3436_v50  ;;  %v6701_v15 = vpop.f32.mrb[110].mxu0  ;;  %v6897_v6 = vpop.f32.mrb[110].mxu1  ;;  %v4326_v45 = vmax.f32 %v4081_v23, %v4088_v25 }
 0x1c8   : > { %4427 = vst.msk [vmem:[#allocation2 + $0x198] sm:$0xff] %vm4375_vm3, %v4230_v59  ;;  %v3897_v18 = vmax.f32 %v2661_v2, 0.0  ;;  %v4093_v56 = vmax.f32 %v3445_v27, 0.0  ;;  %v2664_v21 = vadd.f32 %v8281_v28, %v6701_v15  ;;  %v2655_v3 = vpop.f32.mrb[111].mxu0  ;;  %v3439_v32 = vpop.f32.mrb[111].mxu1  ;;  %4525 = vst.msk [vmem:[#allocation2 + $0x4a8] sm:$0xff] %vm4375_vm3, %v4328_v39  ;;  %v3448_v5 = vadd.f32 %v8281_v28, %v6897_v6 }
 0x1c9   : > { %4425 = vst.msk [vmem:[#allocation2 + $0x188] sm:$0xff] %vm4375_vm3, %v4228_v14  ;;  %v3895_v49 = vmax.f32 %v2653_v48, 0.0  ;;  %v4091_v61 = vmax.f32 %v3437_v16, 0.0  ;;  %v2656_v30 = vadd.f32 %v8281_v28, %v2655_v3  ;;  %4523 = vst.msk [vmem:[#allocation2 + $0x498] sm:$0xff] %vm4375_vm3, %v4326_v45  ;;  %v3440_v0 = vadd.f32 %v8281_v28, %v3439_v32 }
 0x1ca   : > { %v4233_v52 = vmax.f32 %v3890_v42, %v3897_v18  ;;  %v4331_v23 = vmax.f32 %v4086_v22, %v4093_v56  ;;  %v3898_v41 = vmax.f32 %v2664_v21, 0.0  ;;  %v4094_v4 = vmax.f32 %v3448_v5, 0.0 }
 0x1cb   : > { %v4231_v34 = vmax.f32 %v3888_v9, %v3895_v49  ;;  %v4329_v38 = vmax.f32 %v4084_v63, %v4091_v61  ;;  %v3896_v1 = vmax.f32 %v2656_v30, 0.0  ;;  %v4092_v46 = vmax.f32 %v3440_v0, 0.0 }
 0x1cc   : > { %4430 = vst.msk [vmem:[#allocation2 + $0x1b0] sm:$0xff] %vm4375_vm3, %v4233_v52  ;;  %4528 = vst.msk [vmem:[#allocation2 + $0x4c0] sm:$0xff] %vm4375_vm3, %v4331_v23  ;;  %v4234_v37 = vmax.f32 %v3891_v51, %v3898_v41  ;;  %v4332_v7 = vmax.f32 %v4087_v12, %v4094_v4 }
 0x1cd   : > { %4428 = vst.msk [vmem:[#allocation2 + $0x1a0] sm:$0xff] %vm4375_vm3, %v4231_v34  ;;  %4526 = vst.msk [vmem:[#allocation2 + $0x4b0] sm:$0xff] %vm4375_vm3, %v4329_v38  ;;  %v4232_v42 = vmax.f32 %v3889_v26, %v3896_v1  ;;  %v6704_v22 = vpop.f32.mrb[112].mxu0  ;;  %v6900_v57 = vpop.f32.mrb[112].mxu1  ;;  %v4330_v62 = vmax.f32 %v4085_v31, %v4092_v46 }
 0x1ce   : > { %4431 = vst.msk [vmem:[#allocation2 + $0x1b8] sm:$0xff] %vm4375_vm3, %v4234_v37  ;;  %v2668_v33 = vpop.f32.mrb[113].mxu0  ;;  %v3452_v44 = vpop.f32.mrb[113].mxu1  ;;  %4529 = vst.msk [vmem:[#allocation2 + $0x4c8] sm:$0xff] %vm4375_vm3, %v4332_v7  ;;  %v8495_v61 = vadd.f32 %v8281_v28, %v6704_v22  ;;  %v8498_v5 = vadd.f32 %v8281_v28, %v6900_v57 }
 0x1cf   : > { %4429 = vst.msk [vmem:[#allocation2 + $0x1a8] sm:$0xff] %vm4375_vm3, %v4232_v42  ;;  %v6705_v20 = vpop.f32.mrb[114].mxu0  ;;  %v6901_v47 = vpop.f32.mrb[114].mxu1  ;;  %4527 = vst.msk [vmem:[#allocation2 + $0x4b8] sm:$0xff] %vm4375_vm3, %v4330_v62  ;;  %v2669_v36 = vadd.f32 %v8281_v28, %v2668_v33  ;;  %v3453_v27 = vadd.f32 %v8281_v28, %v3452_v44 }
 0x1d0   : > { %v4628_v53 = vld [vmem:[#allocation2 + $0x188] ss:$2 sm:$0xff]  ;;  %v4852_v43 = vld [vmem:[#allocation2 + $0x189] ss:$2 sm:$0xff]  ;;  %v4740_v26 = vld [vmem:[#allocation2 + $0x498] ss:$2 sm:$0xff]  ;;  %v8477_v29 = vadd.f32 %v8281_v28, %v6705_v20  ;;  %v8480_v15 = vadd.f32 %v8281_v28, %v6901_v47 }
 0x1d1   : > { %v5047_v35 = vmax.f32 %v4628_v53, %v4852_v43  ;;  %v4964_v54 = vld [vmem:[#allocation2 + $0x499] ss:$2 sm:$0xff]  ;;  %v2671_v9 = vpop.f32.mrb[115].mxu0  ;;  %v3455_v17 = vpop.f32.mrb[115].mxu1  ;;  %v3899_v1 = vmax.f32 %v2669_v36, 0.0  ;;  %v4095_v31 = vmax.f32 %v3453_v27, 0.0 }
 0x1d2   : > { %v5103_v58 = vmax.f32 %v4740_v26, %v4964_v54  ;;  %v8483_v6 = vadd.f32 %v8281_v28, %v2671_v9  ;;  %v3456_v21 = vadd.f32 %v8281_v28, %v3455_v17  ;;  %v3902_v22 = vmax.f32 %v8477_v29, 0.0 }
 0x1d3   : > { %v6295_v10 = vpack.c.bf16 %v5047_v35, %v5047_v35  ;;  %v4098_v57 = vmax.f32 %v8480_v15, 0.0 }
 0x1d4   : > { %v6351_v40 = vpack.c.bf16 %v5103_v58, %v5103_v58  ;;  %v4630_v60 = vld [vmem:[#allocation2 + $0x198] ss:$2 sm:$0xff]  ;;  %v4854_v63 = vld [vmem:[#allocation2 + $0x199] ss:$2 sm:$0xff]  ;;  %v4742_v51 = vld [vmem:[#allocation2 + $0x4a8] ss:$2 sm:$0xff] }
 0x1d5   : > { %5609 = vst.msk [vmem:[%s7588_s6 + $0x70] sm:$0xf] %vm5579_vm4, %v6295_v10  ;;  %v5048_v8 = vmax.f32 %v4630_v60, %v4854_v63  ;;  %v4966_v11 = vld [vmem:[#allocation2 + $0x4a9] ss:$2 sm:$0xff]  ;;  %v8488_v3 = vpop.f32.mrb[116].mxu0  ;;  %v8490_v32 = vpop.f32.mrb[116].mxu1 }
 0x1d6   : > { %v4634_v55 = vld [vmem:[#allocation2 + $0x1b8] ss:$2 sm:$0xf]  ;;  %5665 = vst.msk [vmem:[%s7588_s6 + $0x150] sm:$0xf] %vm5579_vm4, %v6351_v40  ;;  %v5104_v12 = vmax.f32 %v4742_v51, %v4966_v11  ;;  %v2684_v30 = vpop.f32.mrb[117].mxu0 }
 0x1d7   : > { %v4858_v13 = vld [vmem:[#allocation2 + $0x1b9] ss:$2 sm:$0xf]  ;;  %v4746_v24 = vld [vmem:[#allocation2 + $0x4c8] ss:$2 sm:$0xf]  ;;  %v6296_v19 = vpack.c.bf16 %v5048_v8, %v5048_v8  ;;  %v2685_v0 = vadd.f32 %v8281_v28, %v2684_v30 }
 0x1d8   : > { %v5050_v59 = vmax.f32 %v4634_v55, %v4858_v13  ;;  %v4970_v25 = vld [vmem:[#allocation2 + $0x4c9] ss:$2 sm:$0xf]  ;;  %v4632_v2 = vld [vmem:[#allocation2 + $0x1a8] ss:$2 sm:$0xff]  ;;  %v6352_v50 = vpack.c.bf16 %v5104_v12, %v5104_v12  ;;  %v3468_v52 = vpop.f32.mrb[117].mxu1 }
 0x1d9   : > { %v5106_v39 = vmax.f32 %v4746_v24, %v4970_v25  ;;  %v4856_v14 = vld [vmem:[#allocation2 + $0x1a9] ss:$2 sm:$0xff]  ;;  %v4744_v48 = vld [vmem:[#allocation2 + $0x4b8] ss:$2 sm:$0xff]  ;;  %v4968_v16 = vld [vmem:[#allocation2 + $0x4b9] ss:$2 sm:$0xff]  ;;  %v3469_v34 = vadd.f32 %v8281_v28, %v3468_v52 }
 0x1da   : > { %5610 = vst.msk [vmem:[%s7588_s6 + $0x74] sm:$0xf] %vm5579_vm4, %v6296_v19  ;;  %v6298_v45 = vpack.c.bf16 %v5050_v59, %v5050_v59  ;;  %v5049_v18 = vmax.f32 %v4632_v2, %v4856_v14  ;;  %v5105_v56 = vmax.f32 %v4744_v48, %v4968_v16  ;;  %5666 = vst.msk [vmem:[%s7588_s6 + $0x154] sm:$0xf] %vm5579_vm4, %v6352_v50  ;;  %v6709_v38 = vpop.f32.mrb[118].mxu0  ;;  %v6905_v4 = vpop.f32.mrb[118].mxu1 }
 0x1db   : > { %v6354_v49 = vpack.c.bf16 %v5106_v39, %v5106_v39  ;;  %v2696_v37 = vadd.f32 %v8281_v28, %v6709_v38  ;;  %v3480_v46 = vadd.f32 %v8281_v28, %v6905_v4  ;;  %v2687_v7 = vpop.f32.mrb[119].mxu0  ;;  %v3471_v42 = vpop.f32.mrb[119].mxu1  ;;  %v3900_v62 = vmax.f32 %v8483_v6, 0.0 }
 0x1dc   : > { %5612 = vst.msk [vmem:[%s7588_s6 + $0x7c] sm:$0x3] %vm5583_vm5, %v6298_v45  ;;  %v6297_v23 = vpack.c.bf16 %v5049_v18, %v5049_v18  ;;  %v6353_v41 = vpack.c.bf16 %v5105_v56, %v5105_v56  ;;  %v4096_v33 = vmax.f32 %v3456_v21, 0.0  ;;  %v3903_v58 = vmax.f32 %v2685_v0, 0.0 }
 0x1dd   : > { %5668 = vst.msk [vmem:[%s7588_s6 + $0x15c] sm:$0x3] %vm5583_vm5, %v6354_v49  ;;  %v6712_v44 = vpop.f32.mrb[120].mxu0  ;;  %v6908_v20 = vpop.f32.mrb[120].mxu1  ;;  %v3906_v47 = vmax.f32 %v2696_v37, 0.0  ;;  %v4102_v53 = vmax.f32 %v3480_v46, 0.0  ;;  %v2688_v45 = vadd.f32 %v8281_v28, %v2687_v7  ;;  %v3472_v49 = vadd.f32 %v8281_v28, %v3471_v42 }
 0x1de   : > { %5611 = vst.msk [vmem:[%s7588_s6 + $0x78] sm:$0xf] %vm5579_vm4, %v6297_v23  ;;  %5667 = vst.msk [vmem:[%s7588_s6 + $0x158] sm:$0xf] %vm5579_vm4, %v6353_v41  ;;  %v2709_v43 = vadd.f32 %v8281_v28, %v6712_v44  ;;  %v3493_v35 = vadd.f32 %v8281_v28, %v6908_v20  ;;  %v2700_v26 = vpop.f32.mrb[121].mxu0  ;;  %v3484_v54 = vpop.f32.mrb[121].mxu1  ;;  %v2693_v23 = vadd.f32 %v8281_v28, %v8488_v3 }
 0x1df   : > { %v4099_v9 = vmax.f32 %v3469_v34, 0.0  ;;  %v2701_v17 = vadd.f32 %v8281_v28, %v2700_v26  ;;  %v3485_v10 = vadd.f32 %v8281_v28, %v3484_v54  ;;  %v6713_v40 = vpop.f32.mrb[122].mxu0  ;;  %v6909_v60 = vpop.f32.mrb[122].mxu1  ;;  %v4235_v63 = vmax.f32 %v3899_v1, %v3906_v47 }
 0x1e0   : > { %v4333_v51 = vmax.f32 %v4095_v31, %v4102_v53  ;;  %v3909_v8 = vmax.f32 %v2709_v43, 0.0  ;;  %v4105_v11 = vmax.f32 %v3493_v35, 0.0  ;;  %v2703_v55 = vpop.f32.mrb[123].mxu0  ;;  %v3487_v12 = vpop.f32.mrb[123].mxu1  ;;  %v2712_v36 = vadd.f32 %v8281_v28, %v6713_v40 }
 0x1e1   : > { %v3907_v13 = vmax.f32 %v2701_v17, 0.0  ;;  %v4103_v24 = vmax.f32 %v3485_v10, 0.0  ;;  %v3496_v19 = vadd.f32 %v8281_v28, %v6909_v60  ;;  %4432 = vst.msk [vmem:[#allocation2 + $0x1c0] sm:$0xff] %vm4375_vm3, %v4235_v63  ;;  %v2704_v2 = vadd.f32 %v8281_v28, %v2703_v55 }
 0x1e2   : > { %4530 = vst.msk [vmem:[#allocation2 + $0x4d0] sm:$0xff] %vm4375_vm3, %v4333_v51  ;;  %v4238_v59 = vmax.f32 %v3902_v22, %v3909_v8  ;;  %v4336_v25 = vmax.f32 %v4098_v57, %v4105_v11  ;;  %v3488_v27 = vadd.f32 %v8281_v28, %v3487_v12  ;;  %v3910_v39 = vmax.f32 %v2712_v36, 0.0 }
 0x1e3   : > { %v4236_v29 = vmax.f32 %v3900_v62, %v3907_v13  ;;  %v4334_v50 = vmax.f32 %v4096_v33, %v4103_v24  ;;  %v4106_v14 = vmax.f32 %v3496_v19, 0.0  ;;  %v3901_v48 = vmax.f32 %v8495_v61, 0.0 }
 0x1e4   : > { %v4097_v16 = vmax.f32 %v8498_v5, 0.0  ;;  %4435 = vst.msk [vmem:[#allocation2 + $0x1d8] sm:$0xff] %vm4375_vm3, %v4238_v59  ;;  %4533 = vst.msk [vmem:[#allocation2 + $0x4e8] sm:$0xff] %vm4375_vm3, %v4336_v25  ;;  %v3908_v15 = vmax.f32 %v2704_v2, 0.0  ;;  %v4104_v6 = vmax.f32 %v3488_v27, 0.0  ;;  %v4239_v18 = vmax.f32 %v3903_v58, %v3910_v39 }
 0x1e5   : > { %4433 = vst.msk [vmem:[#allocation2 + $0x1c8] sm:$0xff] %vm4375_vm3, %v4236_v29  ;;  %4531 = vst.msk [vmem:[#allocation2 + $0x4d8] sm:$0xff] %vm4375_vm3, %v4334_v50  ;;  %v4337_v56 = vmax.f32 %v4099_v9, %v4106_v14  ;;  %v6716_v21 = vpop.f32.mrb[124].mxu0  ;;  %v6912_v5 = vpop.f32.mrb[124].mxu1  ;;  %v3477_v31 = vadd.f32 %v8281_v28, %v8490_v32  ;;  %v3904_v3 = vmax.f32 %v2688_v45, 0.0  ;;  %v4100_v42 = vmax.f32 %v3472_v49, 0.0 }
 0x1e6   : > { %v4237_v61 = vmax.f32 %v3901_v48, %v3908_v15  ;;  %v4335_v30 = vmax.f32 %v4097_v16, %v4104_v6  ;;  %v2716_v52 = vpop.f32.mrb[125].mxu0  ;;  %4436 = vst.msk [vmem:[#allocation2 + $0x1e0] sm:$0xff] %vm4375_vm3, %v4239_v18  ;;  %v3500_v0 = vpop.f32.mrb[125].mxu1  ;;  %v3905_v62 = vmax.f32 %v2693_v23, 0.0  ;;  %v8548_v11 = vadd.f32 %v8281_v28, %v6716_v21 }
 0x1e7   : > { %4534 = vst.msk [vmem:[#allocation2 + $0x4f0] sm:$0xff] %vm4375_vm3, %v4337_v56  ;;  %v2717_v41 = vadd.f32 %v8281_v28, %v2716_v52  ;;  %v6717_v34 = vpop.f32.mrb[126].mxu0  ;;  %v3501_v38 = vadd.f32 %v8281_v28, %v3500_v0  ;;  %v6913_v4 = vpop.f32.mrb[126].mxu1  ;;  %v4101_v35 = vmax.f32 %v3477_v31, 0.0  ;;  %v8551_v55 = vadd.f32 %v8281_v28, %v6912_v5 }
 0x1e8   : > { %4434 = vst.msk [vmem:[#allocation2 + $0x1d0] sm:$0xff] %vm4375_vm3, %v4237_v61  ;;  %4532 = vst.msk [vmem:[#allocation2 + $0x4e0] sm:$0xff] %vm4375_vm3, %v4335_v30  ;;  %v2719_v1 = vpop.f32.mrb[127].mxu0  ;;  %v3503_v7 = vpop.f32.mrb[127].mxu1  ;;  %v8555_v19 = vadd.f32 %v8281_v28, %v6717_v34  ;;  %v8558_v59 = vadd.f32 %v8281_v28, %v6913_v4  ;;  %v3913_v6 = vmax.f32 %v8548_v11, 0.0 }
 0x1e9   : > { %v3911_v37 = vmax.f32 %v2717_v41, 0.0  ;;  %v2720_v46 = vadd.f32 %v8281_v28, %v2719_v1  ;;  %v4107_v22 = vmax.f32 %v3501_v38, 0.0  ;;  %v3504_v57 = vadd.f32 %v8281_v28, %v3503_v7 }
 0x1ea   : > { %v4109_v45 = vmax.f32 %v8551_v55, 0.0  ;;  %v3914_v21 = vmax.f32 %v8555_v19, 0.0  ;;  %v4110_v49 = vmax.f32 %v8558_v59, 0.0 }
 0x1eb   : > { %v4240_v33 = vmax.f32 %v3904_v3, %v3911_v37  ;;  %v3912_v44 = vmax.f32 %v2720_v46, 0.0  ;;  %v4338_v43 = vmax.f32 %v4100_v42, %v4107_v22  ;;  %v4108_v58 = vmax.f32 %v3504_v57, 0.0 }
 0x1ec   : > { %v4636_v20 = vld [vmem:[#allocation2 + $0x1c0] ss:$2 sm:$0xff]  ;;  %v4860_v47 = vld [vmem:[#allocation2 + $0x1c1] ss:$2 sm:$0xff]  ;;  %v4748_v53 = vld [vmem:[#allocation2 + $0x4d0] ss:$2 sm:$0xff] }
 0x1ed   : > { %v5051_v26 = vmax.f32 %v4636_v20, %v4860_v47  ;;  %v4972_v54 = vld [vmem:[#allocation2 + $0x4d1] ss:$2 sm:$0xff]  ;;  %4437 = vst.msk [vmem:[#allocation2 + $0x1e8] sm:$0xff] %vm4375_vm3, %v4240_v33  ;;  %v4241_v32 = vmax.f32 %v3905_v62, %v3912_v44  ;;  %v6720_v9 = vpop.f32.mrb[128].mxu0  ;;  %4535 = vst.msk [vmem:[#allocation2 + $0x4f8] sm:$0xff] %vm4375_vm3, %v4338_v43  ;;  %v4339_v12 = vmax.f32 %v4101_v35, %v4108_v58 }
 0x1ee   : > { %v5107_v17 = vmax.f32 %v4748_v53, %v4972_v54  ;;  %v6916_v10 = vpop.f32.mrb[128].mxu1  ;;  %v2732_v40 = vpop.f32.mrb[129].mxu0  ;;  %v8564_v29 = vadd.f32 %v8281_v28, %v6720_v9 }
 0x1ef   : > { %v6299_v60 = vpack.c.bf16 %v5051_v26, %v5051_v26  ;;  %v4638_v63 = vld [vmem:[#allocation2 + $0x1d0] ss:$2 sm:$0xff]  ;;  %v4862_v51 = vld [vmem:[#allocation2 + $0x1d1] ss:$2 sm:$0xff]  ;;  %v4750_v8 = vld [vmem:[#allocation2 + $0x4e0] ss:$2 sm:$0xff]  ;;  %v8567_v50 = vadd.f32 %v8281_v28, %v2732_v40  ;;  %v8583_v4 = vadd.f32 %v8281_v28, %v6916_v10 }
 0x1f0   : > { %4438 = vst.msk [vmem:[#allocation2 + $0x1f0] sm:$0xff] %vm4375_vm3, %v4241_v32  ;;  %v6355_v13 = vpack.c.bf16 %v5107_v17, %v5107_v17  ;;  %v5052_v24 = vmax.f32 %v4638_v63, %v4862_v51  ;;  %v4974_v36 = vld [vmem:[#allocation2 + $0x4e1] ss:$2 sm:$0xff]  ;;  %v3516_v25 = vpop.f32.mrb[129].mxu1  ;;  %v6721_v2 = vpop.f32.mrb[130].mxu0  ;;  %4536 = vst.msk [vmem:[#allocation2 + $0x500] sm:$0xff] %vm4375_vm3, %v4339_v12 }
 0x1f1   : > { %5613 = vst.msk [vmem:[%s7588_s6 + $0x80] sm:$0xf] %vm5579_vm4, %v6299_v60  ;;  %v5108_v27 = vmax.f32 %v4750_v8, %v4974_v36  ;;  %v6917_v39 = vpop.f32.mrb[130].mxu1  ;;  %v2735_v14 = vpop.f32.mrb[131].mxu0  ;;  %v3917_v52 = vmax.f32 %v8564_v29, 0.0  ;;  %v3915_v23 = vmax.f32 %v8567_v50, 0.0  ;;  %v3517_v41 = vadd.f32 %v8281_v28, %v3516_v25 }
 0x1f2   : > { %5669 = vst.msk [vmem:[%s7588_s6 + $0x160] sm:$0xf] %vm5579_vm4, %v6355_v13  ;;  %v6300_v48 = vpack.c.bf16 %v5052_v24, %v5052_v24  ;;  %v3519_v16 = vpop.f32.mrb[131].mxu1  ;;  %v8586_v3 = vadd.f32 %v8281_v28, %v6721_v2  ;;  %v8589_v37 = vadd.f32 %v8281_v28, %v6917_v39  ;;  %v8592_v62 = vadd.f32 %v8281_v28, %v2735_v14  ;;  %v8615_v63 = vld [vmem:[%s9044_s2] ss:$0 sm:$0xff] }
 0x1f3   : > { %v6356_v15 = vpack.c.bf16 %v5108_v27, %v5108_v27  ;;  %v4111_v53 = vmax.f32 %v3517_v41, 0.0  ;;  %v8599_v43 = vadd.f32 %v8281_v28, %v3519_v16 }
 0x1f4   : > { %5614 = vst.msk [vmem:[%s7588_s6 + $0x84] sm:$0xf] %vm5579_vm4, %v6300_v48  ;;  %v4640_v18 = vld [vmem:[#allocation2 + $0x1e0] ss:$2 sm:$0xff]  ;;  %v4864_v56 = vld [vmem:[#allocation2 + $0x1e1] ss:$2 sm:$0xff] }
 0x1f5   : > { %5670 = vst.msk [vmem:[%s7588_s6 + $0x164] sm:$0xf] %vm5579_vm4, %v6356_v15  ;;  %v5053_v61 = vmax.f32 %v4640_v18, %v4864_v56  ;;  %v4752_v30 = vld [vmem:[#allocation2 + $0x4f0] ss:$2 sm:$0xff]  ;;  %v4976_v5 = vld [vmem:[#allocation2 + $0x4f1] ss:$2 sm:$0xff] }
 0x1f6   : > { %v5109_v0 = vmax.f32 %v4752_v30, %v4976_v5  ;;  %v6724_v46 = vpop.f32.mrb[132].mxu0  ;;  %v6920_v7 = vpop.f32.mrb[132].mxu1  ;;  %v3918_v60 = vmax.f32 %v8586_v3, 0.0  ;;  %v3916_v24 = vmax.f32 %v8592_v62, 0.0  ;;  %v4112_v39 = vmax.f32 %v8599_v43, 0.0 }
 0x1f7   : > { %v4642_v34 = vld [vmem:[#allocation2 + $0x1f0] ss:$2 sm:$0xf]  ;;  %v4866_v38 = vld [vmem:[#allocation2 + $0x1f1] ss:$2 sm:$0xf]  ;;  %v6301_v1 = vpack.c.bf16 %v5053_v61, %v5053_v61  ;;  %v2757_v33 = vadd.f32 %v8281_v28, %v6724_v46  ;;  %v3541_v44 = vadd.f32 %v8281_v28, %v6920_v7 }
 0x1f8   : > { %v5054_v31 = vmax.f32 %v4642_v34, %v4866_v38  ;;  %v6357_v42 = vpack.c.bf16 %v5109_v0, %v5109_v0  ;;  %v4754_v22 = vld [vmem:[#allocation2 + $0x500] ss:$2 sm:$0xf]  ;;  %v4978_v57 = vld [vmem:[#allocation2 + $0x501] ss:$2 sm:$0xf] }
 0x1f9   : > { %5615 = vst.msk [vmem:[%s7588_s6 + $0x88] sm:$0xf] %vm5579_vm4, %v6301_v1  ;;  %v5110_v47 = vmax.f32 %v4754_v22, %v4978_v57  ;;  %v2748_v35 = vpop.f32.mrb[133].mxu0  ;;  %v3532_v26 = vpop.f32.mrb[133].mxu1  ;;  %v3921_v54 = vmax.f32 %v2757_v33, 0.0  ;;  %v4117_v32 = vmax.f32 %v3541_v44, 0.0 }
 0x1fa   : > { %v6302_v20 = vpack.c.bf16 %v5054_v31, %v5054_v31  ;;  %5671 = vst.msk [vmem:[%s7588_s6 + $0x168] sm:$0xf] %vm5579_vm4, %v6357_v42  ;;  %v8604_v58 = vadd.f32 %v8281_v28, %v2748_v35  ;;  %v8607_v9 = vadd.f32 %v8281_v28, %v3532_v26  ;;  %v6725_v17 = vpop.f32.mrb[134].mxu0  ;;  %v6921_v10 = vpop.f32.mrb[134].mxu1  ;;  %v4114_v28 = vmax.f32 %v8589_v37, 0.0 }
 0x1fb   : > { %v6358_v40 = vpack.c.bf16 %v5110_v47, %v5110_v47  ;;  %v2760_v51 = vadd.f32 %v8615_v63, %v6725_v17  ;;  %v3544_v8 = vadd.f32 %v8615_v63, %v6921_v10  ;;  %v2751_v12 = vpop.f32.mrb[135].mxu0  ;;  %v3535_v13 = vpop.f32.mrb[135].mxu1  ;;  %v4243_v36 = vmax.f32 %v3914_v21, %v3921_v54 }
 0x1fc   : > { %5616 = vst.msk [vmem:[%s7588_s6 + $0x8c] sm:$0x3] %vm5583_vm5, %v6302_v20  ;;  %v4341_v19 = vmax.f32 %v4110_v49, %v4117_v32  ;;  %v2752_v2 = vadd.f32 %v8615_v63, %v2751_v12  ;;  %v3536_v27 = vadd.f32 %v8615_v63, %v3535_v13  ;;  %v3919_v14 = vmax.f32 %v8604_v58, 0.0 }
 0x1fd   : > { %5672 = vst.msk [vmem:[%s7588_s6 + $0x16c] sm:$0x3] %vm5583_vm5, %v6358_v40  ;;  %v3922_v59 = vmax.f32 %v2760_v51, 0.0  ;;  %v4118_v25 = vmax.f32 %v3544_v8, 0.0  ;;  %v6728_v50 = vpop.f32.mrb[136].mxu0  ;;  %v4115_v48 = vmax.f32 %v8607_v9, 0.0 }
 0x1fe   : > { %4440 = vst.msk [vmem:[#allocation2 + $0x200] sm:$0xff] %vm4375_vm3, %v4243_v36  ;;  %4538 = vst.msk [vmem:[#allocation2 + $0x510] sm:$0xff] %vm4375_vm3, %v4341_v19  ;;  %v2773_v16 = vadd.f32 %v8615_v63, %v6728_v50  ;;  %v6924_v15 = vpop.f32.mrb[136].mxu1  ;;  %v2764_v18 = vpop.f32.mrb[137].mxu0  ;;  %v3920_v49 = vmax.f32 %v2752_v2, 0.0  ;;  %v4116_v61 = vmax.f32 %v3536_v27, 0.0 }
 0x1ff   : > { %v4244_v56 = vmax.f32 %v3915_v23, %v3922_v59  ;;  %v4342_v21 = vmax.f32 %v4111_v53, %v4118_v25  ;;  %v3548_v30 = vpop.f32.mrb[137].mxu1  ;;  %v6729_v5 = vpop.f32.mrb[138].mxu0  ;;  %v3557_v0 = vadd.f32 %v8615_v63, %v6924_v15  ;;  %v2765_v34 = vadd.f32 %v8615_v63, %v2764_v18 }
 0x200   : > { %v3925_v41 = vmax.f32 %v2773_v16, 0.0  ;;  %v3549_v38 = vadd.f32 %v8615_v63, %v3548_v30  ;;  %v6925_v1 = vpop.f32.mrb[138].mxu1  ;;  %v2767_v31 = vpop.f32.mrb[139].mxu0  ;;  %v4242_v23 = vmax.f32 %v3913_v6, %v3920_v49  ;;  %v4340_v3 = vmax.f32 %v4109_v45, %v4116_v61 }
 0x201   : > { %4441 = vst.msk [vmem:[#allocation2 + $0x208] sm:$0xff] %vm4375_vm3, %v4244_v56  ;;  %4539 = vst.msk [vmem:[#allocation2 + $0x518] sm:$0xff] %vm4375_vm3, %v4342_v21  ;;  %v2776_v37 = vadd.f32 %v8615_v63, %v6729_v5  ;;  %v3560_v46 = vadd.f32 %v8615_v63, %v6925_v1  ;;  %v3551_v7 = vpop.f32.mrb[139].mxu1  ;;  %v4121_v22 = vmax.f32 %v3557_v0, 0.0  ;;  %v3923_v57 = vmax.f32 %v2765_v34, 0.0 }
 0x202   : > { %v4247_v42 = vmax.f32 %v3918_v60, %v3925_v41  ;;  %v4119_v62 = vmax.f32 %v3549_v38, 0.0  ;;  %4439 = vst.msk [vmem:[#allocation2 + $0x1f8] sm:$0xff] %vm4375_vm3, %v4242_v23  ;;  %4537 = vst.msk [vmem:[#allocation2 + $0x508] sm:$0xff] %vm4375_vm3, %v4340_v3  ;;  %v2768_v11 = vadd.f32 %v8615_v63, %v2767_v31  ;;  %v3552_v55 = vadd.f32 %v8615_v63, %v3551_v7 }
 0x203   : > { %v3926_v33 = vmax.f32 %v2776_v37, 0.0  ;;  %v4122_v44 = vmax.f32 %v3560_v46, 0.0  ;;  %v4113_v6 = vmax.f32 %v8583_v4, 0.0  ;;  %v4345_v45 = vmax.f32 %v4114_v28, %v4121_v22 }
 0x204   : > { %4444 = vst.msk [vmem:[#allocation2 + $0x220] sm:$0xff] %vm4375_vm3, %v4247_v42  ;;  %v4245_v20 = vmax.f32 %v3916_v24, %v3923_v57  ;;  %v4343_v47 = vmax.f32 %v4112_v39, %v4119_v62  ;;  %v3924_v35 = vmax.f32 %v2768_v11, 0.0  ;;  %v4120_v26 = vmax.f32 %v3552_v55, 0.0 }
 0x205   : > { %v4248_v53 = vmax.f32 %v3919_v14, %v3926_v33  ;;  %v4346_v43 = vmax.f32 %v4115_v48, %v4122_v44  ;;  %v6732_v54 = vpop.f32.mrb[140].mxu0  ;;  %4542 = vst.msk [vmem:[#allocation2 + $0x530] sm:$0xff] %vm4375_vm3, %v4345_v45 }
 0x206   : > { %4442 = vst.msk [vmem:[#allocation2 + $0x210] sm:$0xff] %vm4375_vm3, %v4245_v20  ;;  %4540 = vst.msk [vmem:[#allocation2 + $0x520] sm:$0xff] %vm4375_vm3, %v4343_v47  ;;  %v6928_v32 = vpop.f32.mrb[140].mxu1  ;;  %v2780_v58 = vpop.f32.mrb[141].mxu0  ;;  %v4246_v4 = vmax.f32 %v3917_v52, %v3924_v35  ;;  %v4344_v9 = vmax.f32 %v4113_v6, %v4120_v26  ;;  %v8656_v40 = vadd.f32 %v8615_v63, %v6732_v54 }
 0x207   : > { %4445 = vst.msk [vmem:[#allocation2 + $0x228] sm:$0xff] %vm4375_vm3, %v4248_v53  ;;  %4543 = vst.msk [vmem:[#allocation2 + $0x538] sm:$0xff] %vm4375_vm3, %v4346_v43  ;;  %v3564_v17 = vpop.f32.mrb[141].mxu1  ;;  %v6733_v10 = vpop.f32.mrb[142].mxu0  ;;  %v8666_v56 = vadd.f32 %v8615_v63, %v6928_v32  ;;  %v2781_v21 = vadd.f32 %v8615_v63, %v2780_v58 }
 0x208   : > { %v6929_v60 = vpop.f32.mrb[142].mxu1  ;;  %v2783_v51 = vpop.f32.mrb[143].mxu0  ;;  %4443 = vst.msk [vmem:[#allocation2 + $0x218] sm:$0xff] %vm4375_vm3, %v4246_v4  ;;  %4541 = vst.msk [vmem:[#allocation2 + $0x528] sm:$0xff] %vm4375_vm3, %v4344_v9  ;;  %v3929_v36 = vmax.f32 %v8656_v40, 0.0  ;;  %v3565_v41 = vadd.f32 %v8615_v63, %v3564_v17  ;;  %v8673_v0 = vadd.f32 %v8615_v63, %v6733_v10 }
 0x209   : > { %v3567_v8 = vpop.f32.mrb[143].mxu1  ;;  %v4644_v12 = vld [vmem:[#allocation2 + $0x1f8] ss:$2 sm:$0xff]  ;;  %v4868_v13 = vld [vmem:[#allocation2 + $0x1f9] ss:$2 sm:$0xff]  ;;  %v3576_v37 = vadd.f32 %v8615_v63, %v6929_v60  ;;  %v2784_v46 = vadd.f32 %v8615_v63, %v2783_v51  ;;  %v3927_v11 = vmax.f32 %v2781_v21, 0.0 }
 0x20a   : > { %v4756_v28 = vld [vmem:[#allocation2 + $0x508] ss:$2 sm:$0xff]  ;;  %v5055_v24 = vmax.f32 %v4644_v12, %v4868_v13  ;;  %v4980_v29 = vld [vmem:[#allocation2 + $0x509] ss:$2 sm:$0xff]  ;;  %v3568_v57 = vadd.f32 %v8615_v63, %v3567_v8  ;;  %v4123_v32 = vmax.f32 %v3565_v41, 0.0  ;;  %v3930_v58 = vmax.f32 %v8673_v0, 0.0 }
 0x20b   : > { %v5111_v52 = vmax.f32 %v4756_v28, %v4980_v29  ;;  %v4126_v4 = vmax.f32 %v3576_v37, 0.0  ;;  %v3928_v9 = vmax.f32 %v2784_v46, 0.0 }
 0x20c   : > { %v6303_v19 = vpack.c.bf16 %v5055_v24, %v5055_v24  ;;  %v4124_v10 = vmax.f32 %v3568_v57, 0.0 }
 0x20d   : > { %v4646_v59 = vld [vmem:[#allocation2 + $0x208] ss:$2 sm:$0xff]  ;;  %v4870_v25 = vld [vmem:[#allocation2 + $0x209] ss:$2 sm:$0xff]  ;;  %v4758_v2 = vld [vmem:[#allocation2 + $0x518] ss:$2 sm:$0xff]  ;;  %v6359_v27 = vpack.c.bf16 %v5111_v52, %v5111_v52 }
 0x20e   : > { %v5056_v50 = vmax.f32 %v4646_v59, %v4870_v25  ;;  %v4982_v39 = vld [vmem:[#allocation2 + $0x519] ss:$2 sm:$0xff]  ;;  %v4650_v14 = vld [vmem:[#allocation2 + $0x228] ss:$2 sm:$0xf]  ;;  %v8661_v48 = vpop.f32.mrb[144].mxu0 }
 0x20f   : > { %5617 = vst.msk [vmem:[%s7588_s6 + $0x90] sm:$0xf] %vm5579_vm4, %v6303_v19  ;;  %v5112_v16 = vmax.f32 %v4758_v2, %v4982_v39  ;;  %v4874_v15 = vld [vmem:[#allocation2 + $0x229] ss:$2 sm:$0xf]  ;;  %v8675_v34 = vpop.f32.mrb[144].mxu1 }
 0x210   : > { %v4762_v18 = vld [vmem:[#allocation2 + $0x538] ss:$2 sm:$0xf]  ;;  %5673 = vst.msk [vmem:[%s7588_s6 + $0x170] sm:$0xf] %vm5579_vm4, %v6359_v27  ;;  %v6304_v49 = vpack.c.bf16 %v5056_v50, %v5056_v50  ;;  %v5058_v61 = vmax.f32 %v4650_v14, %v4874_v15  ;;  %v2796_v62 = vpop.f32.mrb[145].mxu0 }
 0x211   : > { %v4986_v30 = vld [vmem:[#allocation2 + $0x539] ss:$2 sm:$0xf]  ;;  %v4648_v5 = vld [vmem:[#allocation2 + $0x218] ss:$2 sm:$0xff]  ;;  %v6360_v38 = vpack.c.bf16 %v5112_v16, %v5112_v16  ;;  %v3580_v33 = vpop.f32.mrb[145].mxu1  ;;  %v2797_v55 = vadd.f32 %v8615_v63, %v2796_v62 }
 0x212   : > { %v5114_v1 = vmax.f32 %v4762_v18, %v4986_v30  ;;  %v4872_v31 = vld [vmem:[#allocation2 + $0x219] ss:$2 sm:$0xff]  ;;  %v4760_v23 = vld [vmem:[#allocation2 + $0x528] ss:$2 sm:$0xff]  ;;  %v4984_v3 = vld [vmem:[#allocation2 + $0x529] ss:$2 sm:$0xff]  ;;  %v6306_v7 = vpack.c.bf16 %v5058_v61, %v5058_v61  ;;  %v3581_v6 = vadd.f32 %v8615_v63, %v3580_v33 }
 0x213   : > { %5618 = vst.msk [vmem:[%s7588_s6 + $0x94] sm:$0xf] %vm5579_vm4, %v6304_v49  ;;  %v5057_v42 = vmax.f32 %v4648_v5, %v4872_v31  ;;  %v5113_v22 = vmax.f32 %v4760_v23, %v4984_v3  ;;  %5674 = vst.msk [vmem:[%s7588_s6 + $0x174] sm:$0xf] %vm5579_vm4, %v6360_v38  ;;  %v6737_v45 = vpop.f32.mrb[146].mxu0  ;;  %v6933_v20 = vpop.f32.mrb[146].mxu1 }
 0x214   : > { %v6362_v44 = vpack.c.bf16 %v5114_v1, %v5114_v1  ;;  %5620 = vst.msk [vmem:[%s7588_s6 + $0x9c] sm:$0x3] %vm5583_vm5, %v6306_v7  ;;  %v2808_v43 = vadd.f32 %v8615_v63, %v6737_v45  ;;  %v3592_v35 = vadd.f32 %v8615_v63, %v6933_v20  ;;  %v2799_v26 = vpop.f32.mrb[147].mxu0  ;;  %v3583_v54 = vpop.f32.mrb[147].mxu1  ;;  %v3931_v28 = vmax.f32 %v2797_v55, 0.0 }
 0x215   : > { %v6305_v47 = vpack.c.bf16 %v5057_v42, %v5057_v42  ;;  %v6361_v53 = vpack.c.bf16 %v5113_v22, %v5113_v22  ;;  %v6740_v17 = vpop.f32.mrb[148].mxu0  ;;  %v4127_v24 = vmax.f32 %v3581_v6, 0.0  ;;  %v4125_v23 = vmax.f32 %v8666_v56, 0.0 }
 0x216   : > { %5676 = vst.msk [vmem:[%s7588_s6 + $0x17c] sm:$0x3] %vm5583_vm5, %v6362_v44  ;;  %v3934_v60 = vmax.f32 %v2808_v43, 0.0  ;;  %v4130_v51 = vmax.f32 %v3592_v35, 0.0  ;;  %v2821_v8 = vadd.f32 %v8615_v63, %v6740_v17  ;;  %v6936_v12 = vpop.f32.mrb[148].mxu1  ;;  %v2812_v13 = vpop.f32.mrb[149].mxu0  ;;  %v2800_v7 = vadd.f32 %v8615_v63, %v2799_v26 }
 0x217   : > { %5619 = vst.msk [vmem:[%s7588_s6 + $0x98] sm:$0xf] %vm5579_vm4, %v6305_v47  ;;  %5675 = vst.msk [vmem:[%s7588_s6 + $0x178] sm:$0xf] %vm5579_vm4, %v6361_v53  ;;  %v3605_v29 = vadd.f32 %v8615_v63, %v6936_v12  ;;  %v2813_v52 = vadd.f32 %v8615_v63, %v2812_v13  ;;  %v3596_v19 = vpop.f32.mrb[149].mxu1  ;;  %v6741_v59 = vpop.f32.mrb[150].mxu0  ;;  %v3584_v62 = vadd.f32 %v8615_v63, %v3583_v54 }
 0x218   : > { %v4249_v25 = vmax.f32 %v3927_v11, %v3934_v60  ;;  %v4347_v2 = vmax.f32 %v4123_v32, %v4130_v51  ;;  %v3937_v27 = vmax.f32 %v2821_v8, 0.0  ;;  %v3597_v50 = vadd.f32 %v8615_v63, %v3596_v19  ;;  %v6937_v39 = vpop.f32.mrb[150].mxu1  ;;  %v2815_v14 = vpop.f32.mrb[151].mxu0 }
 0x219   : > { %v4133_v16 = vmax.f32 %v3605_v29, 0.0  ;;  %v3935_v15 = vmax.f32 %v2813_v52, 0.0  ;;  %v2824_v18 = vadd.f32 %v8615_v63, %v6741_v59  ;;  %v3608_v21 = vadd.f32 %v8615_v63, %v6937_v39  ;;  %v3599_v49 = vpop.f32.mrb[151].mxu1 }
 0x21a   : > { %4446 = vst.msk [vmem:[#allocation2 + $0x230] sm:$0xff] %vm4375_vm3, %v4249_v25  ;;  %4544 = vst.msk [vmem:[#allocation2 + $0x540] sm:$0xff] %vm4375_vm3, %v4347_v2  ;;  %v4252_v61 = vmax.f32 %v3930_v58, %v3937_v27  ;;  %v4131_v30 = vmax.f32 %v3597_v50, 0.0  ;;  %v2816_v5 = vadd.f32 %v8615_v63, %v2815_v14  ;;  %v3600_v41 = vadd.f32 %v8615_v63, %v3599_v49 }
 0x21b   : > { %v4350_v0 = vmax.f32 %v4126_v4, %v4133_v16  ;;  %v4250_v38 = vmax.f32 %v3928_v9, %v3935_v15  ;;  %v3938_v1 = vmax.f32 %v2824_v18, 0.0  ;;  %v4134_v31 = vmax.f32 %v3608_v21, 0.0 }
 0x21c   : > { %4449 = vst.msk [vmem:[#allocation2 + $0x248] sm:$0xff] %vm4375_vm3, %v4252_v61  ;;  %v4348_v3 = vmax.f32 %v4124_v10, %v4131_v30  ;;  %v3936_v37 = vmax.f32 %v2816_v5, 0.0  ;;  %v4132_v46 = vmax.f32 %v3600_v41, 0.0  ;;  %v2805_v55 = vadd.f32 %v8615_v63, %v8661_v48 }
 0x21d   : > { %4547 = vst.msk [vmem:[#allocation2 + $0x558] sm:$0xff] %vm4375_vm3, %v4350_v0  ;;  %4447 = vst.msk [vmem:[#allocation2 + $0x238] sm:$0xff] %vm4375_vm3, %v4250_v38  ;;  %v4253_v42 = vmax.f32 %v3931_v28, %v3938_v1  ;;  %v4351_v22 = vmax.f32 %v4127_v24, %v4134_v31  ;;  %v6744_v57 = vpop.f32.mrb[152].mxu0  ;;  %v3589_v47 = vadd.f32 %v8615_v63, %v8675_v34  ;;  %v3932_v48 = vmax.f32 %v2800_v7, 0.0 }
 0x21e   : > { %4545 = vst.msk [vmem:[#allocation2 + $0x548] sm:$0xff] %vm4375_vm3, %v4348_v3  ;;  %v4251_v56 = vmax.f32 %v3929_v36, %v3936_v37  ;;  %v4349_v33 = vmax.f32 %v4125_v23, %v4132_v46  ;;  %v6940_v44 = vpop.f32.mrb[152].mxu1  ;;  %v2828_v11 = vpop.f32.mrb[153].mxu0  ;;  %v4128_v54 = vmax.f32 %v3584_v62, 0.0  ;;  %v3933_v4 = vmax.f32 %v2805_v55, 0.0 }
 0x21f   : > { %4450 = vst.msk [vmem:[#allocation2 + $0x250] sm:$0xff] %vm4375_vm3, %v4253_v42  ;;  %4548 = vst.msk [vmem:[#allocation2 + $0x560] sm:$0xff] %vm4375_vm3, %v4351_v22  ;;  %v2829_v6 = vadd.f32 %v8615_v63, %v2828_v11  ;;  %v3612_v45 = vpop.f32.mrb[153].mxu1  ;;  %v6745_v20 = vpop.f32.mrb[154].mxu0  ;;  %v4129_v17 = vmax.f32 %v3589_v47, 0.0  ;;  %v8731_v14 = vadd.f32 %v8615_v63, %v6744_v57  ;;  %v8734_v16 = vadd.f32 %v8615_v63, %v6940_v44 }
 0x220   : > { %4448 = vst.msk [vmem:[#allocation2 + $0x240] sm:$0xff] %vm4375_vm3, %v4251_v56  ;;  %4546 = vst.msk [vmem:[#allocation2 + $0x550] sm:$0xff] %vm4375_vm3, %v4349_v33  ;;  %v3613_v40 = vadd.f32 %v8615_v63, %v3612_v45  ;;  %v6941_v36 = vpop.f32.mrb[154].mxu1  ;;  %v2831_v53 = vpop.f32.mrb[155].mxu0  ;;  %v8737_v15 = vadd.f32 %v8615_v63, %v6745_v20 }
 0x221   : > { %v3939_v43 = vmax.f32 %v2829_v6, 0.0  ;;  %v2832_v35 = vadd.f32 %v8615_v63, %v2831_v53  ;;  %v3615_v26 = vpop.f32.mrb[155].mxu1  ;;  %v8741_v61 = vadd.f32 %v8615_v63, %v6941_v36  ;;  %v3941_v7 = vmax.f32 %v8731_v14, 0.0 }
 0x222   : > { %v4135_v32 = vmax.f32 %v3613_v40, 0.0  ;;  %v3616_v58 = vadd.f32 %v8615_v63, %v3615_v26  ;;  %v4137_v42 = vmax.f32 %v8734_v16, 0.0  ;;  %v3942_v22 = vmax.f32 %v8737_v15, 0.0 }
 0x223   : > { %v4254_v9 = vmax.f32 %v3932_v48, %v3939_v43  ;;  %v3940_v34 = vmax.f32 %v2832_v35, 0.0  ;;  %v4138_v56 = vmax.f32 %v8741_v61, 0.0 }
 0x224   : > { %v4652_v10 = vld [vmem:[#allocation2 + $0x230] ss:$2 sm:$0xff]  ;;  %v4876_v60 = vld [vmem:[#allocation2 + $0x231] ss:$2 sm:$0xff]  ;;  %v4352_v51 = vmax.f32 %v4128_v54, %v4135_v32  ;;  %v4136_v8 = vmax.f32 %v3616_v58, 0.0 }
 0x225   : > { %v5059_v12 = vmax.f32 %v4652_v10, %v4876_v60  ;;  %v4764_v13 = vld [vmem:[#allocation2 + $0x540] ss:$2 sm:$0xff]  ;;  %v4988_v28 = vld [vmem:[#allocation2 + $0x541] ss:$2 sm:$0xff]  ;;  %4451 = vst.msk [vmem:[#allocation2 + $0x258] sm:$0xff] %vm4375_vm3, %v4254_v9  ;;  %v4255_v24 = vmax.f32 %v3933_v4, %v3940_v34  ;;  %v6748_v29 = vpop.f32.mrb[156].mxu0 }
 0x226   : > { %v5115_v52 = vmax.f32 %v4764_v13, %v4988_v28  ;;  %4549 = vst.msk [vmem:[#allocation2 + $0x568] sm:$0xff] %vm4375_vm3, %v4352_v51  ;;  %v4353_v19 = vmax.f32 %v4129_v17, %v4136_v8  ;;  %v6944_v59 = vpop.f32.mrb[156].mxu1  ;;  %v2844_v25 = vpop.f32.mrb[157].mxu0  ;;  %v8745_v30 = vadd.f32 %v8615_v63, %v6748_v29 }
 0x227   : > { %v6307_v2 = vpack.c.bf16 %v5059_v12, %v5059_v12  ;;  %v4654_v27 = vld [vmem:[#allocation2 + $0x240] ss:$2 sm:$0xff]  ;;  %v4878_v50 = vld [vmem:[#allocation2 + $0x241] ss:$2 sm:$0xff]  ;;  %v4766_v39 = vld [vmem:[#allocation2 + $0x550] ss:$2 sm:$0xff]  ;;  %v8750_v38 = vadd.f32 %v8615_v63, %v2844_v25  ;;  %v8778_v32 = vadd.f32 %v8615_v63, %v6944_v59 }
 0x228   : > { %4452 = vst.msk [vmem:[#allocation2 + $0x260] sm:$0xff] %vm4375_vm3, %v4255_v24  ;;  %v6363_v18 = vpack.c.bf16 %v5115_v52, %v5115_v52  ;;  %v5060_v21 = vmax.f32 %v4654_v27, %v4878_v50  ;;  %v4990_v49 = vld [vmem:[#allocation2 + $0x551] ss:$2 sm:$0xff]  ;;  %4550 = vst.msk [vmem:[#allocation2 + $0x570] sm:$0xff] %vm4375_vm3, %v4353_v19  ;;  %v3628_v5 = vpop.f32.mrb[157].mxu1  ;;  %v6749_v41 = vpop.f32.mrb[158].mxu0 }
 0x229   : > { %5621 = vst.msk [vmem:[%s7588_s6 + $0xa0] sm:$0xf] %vm5579_vm4, %v6307_v2  ;;  %v5116_v0 = vmax.f32 %v4766_v39, %v4990_v49  ;;  %v8753_v1 = vadd.f32 %v8615_v63, %v3628_v5  ;;  %v6945_v31 = vpop.f32.mrb[158].mxu1  ;;  %v2847_v23 = vpop.f32.mrb[159].mxu0  ;;  %v3945_v33 = vmax.f32 %v8745_v30, 0.0  ;;  %v8765_v44 = vadd.f32 %v8615_v63, %v6749_v41 }
 0x22a   : > { %5677 = vst.msk [vmem:[%s7588_s6 + $0x180] sm:$0xf] %vm5579_vm4, %v6363_v18  ;;  %v6308_v3 = vpack.c.bf16 %v5060_v21, %v5060_v21  ;;  %v3631_v37 = vpop.f32.mrb[159].mxu1  ;;  %v3943_v45 = vmax.f32 %v8750_v38, 0.0  ;;  %v8772_v47 = vadd.f32 %v8615_v63, %v6945_v31  ;;  %v8775_v48 = vadd.f32 %v8615_v63, %v2847_v23 }
 0x22b   : > { %v6364_v46 = vpack.c.bf16 %v5116_v0, %v5116_v0  ;;  %v4139_v20 = vmax.f32 %v8753_v1, 0.0  ;;  %v3946_v9 = vmax.f32 %v8765_v44, 0.0  ;;  %v8782_v34 = vadd.f32 %v8615_v63, %v3631_v37 }
 0x22c   : > { %5622 = vst.msk [vmem:[%s7588_s6 + $0xa4] sm:$0xf] %vm5579_vm4, %v6308_v3  ;;  %v4656_v57 = vld [vmem:[#allocation2 + $0x250] ss:$2 sm:$0xff]  ;;  %v4880_v62 = vld [vmem:[#allocation2 + $0x251] ss:$2 sm:$0xff] }
 0x22d   : > { %5678 = vst.msk [vmem:[%s7588_s6 + $0x184] sm:$0xf] %vm5579_vm4, %v6364_v46  ;;  %v5061_v11 = vmax.f32 %v4656_v57, %v4880_v62  ;;  %v4768_v55 = vld [vmem:[#allocation2 + $0x560] ss:$2 sm:$0xff]  ;;  %v4992_v6 = vld [vmem:[#allocation2 + $0x561] ss:$2 sm:$0xff] }
 0x22e   : > { %v5117_v40 = vmax.f32 %v4768_v55, %v4992_v6  ;;  %v6752_v17 = vpop.f32.mrb[160].mxu0  ;;  %v6948_v10 = vpop.f32.mrb[160].mxu1  ;;  %v4142_v51 = vmax.f32 %v8772_v47, 0.0  ;;  %v3944_v29 = vmax.f32 %v8775_v48, 0.0  ;;  %v4140_v21 = vmax.f32 %v8782_v34, 0.0 }
 0x22f   : > { %v4658_v36 = vld [vmem:[#allocation2 + $0x260] ss:$2 sm:$0xf]  ;;  %v4882_v53 = vld [vmem:[#allocation2 + $0x261] ss:$2 sm:$0xf]  ;;  %v6309_v43 = vpack.c.bf16 %v5061_v11, %v5061_v11  ;;  %v2869_v8 = vadd.f32 %v8615_v63, %v6752_v17  ;;  %v3653_v12 = vadd.f32 %v8615_v63, %v6948_v10 }
 0x230   : > { %v5062_v35 = vmax.f32 %v4658_v36, %v4882_v53  ;;  %v4770_v26 = vld [vmem:[#allocation2 + $0x570] ss:$2 sm:$0xf]  ;;  %v4994_v54 = vld [vmem:[#allocation2 + $0x571] ss:$2 sm:$0xf]  ;;  %v6365_v58 = vpack.c.bf16 %v5117_v40, %v5117_v40 }
 0x231   : > { %v5118_v4 = vmax.f32 %v4770_v26, %v4994_v54  ;;  %5623 = vst.msk [vmem:[%s7588_s6 + $0xa8] sm:$0xf] %vm5579_vm4, %v6309_v43  ;;  %v2860_v13 = vpop.f32.mrb[161].mxu0  ;;  %v3644_v28 = vpop.f32.mrb[161].mxu1  ;;  %v3949_v2 = vmax.f32 %v2869_v8, 0.0  ;;  %v4145_v27 = vmax.f32 %v3653_v12, 0.0 }
 0x232   : > { %v6310_v60 = vpack.c.bf16 %v5062_v35, %v5062_v35  ;;  %5679 = vst.msk [vmem:[%s7588_s6 + $0x188] sm:$0xf] %vm5579_vm4, %v6365_v58  ;;  %v8793_v52 = vadd.f32 %v8615_v63, %v2860_v13  ;;  %v8796_v19 = vadd.f32 %v8615_v63, %v3644_v28  ;;  %v6753_v59 = vpop.f32.mrb[162].mxu0  ;;  %v6949_v25 = vpop.f32.mrb[162].mxu1 }
 0x233   : > { %v6366_v24 = vpack.c.bf16 %v5118_v4, %v5118_v4  ;;  %v2872_v50 = vadd.f32 %v8615_v63, %v6753_v59  ;;  %v3656_v39 = vadd.f32 %v8615_v63, %v6949_v25  ;;  %v2863_v15 = vpop.f32.mrb[163].mxu0  ;;  %v3647_v18 = vpop.f32.mrb[163].mxu1  ;;  %v4257_v41 = vmax.f32 %v3942_v22, %v3949_v2 }
 0x234   : > { %5624 = vst.msk [vmem:[%s7588_s6 + $0xac] sm:$0x3] %vm5583_vm5, %v6310_v60  ;;  %v3947_v49 = vmax.f32 %v8793_v52, 0.0  ;;  %v2864_v61 = vadd.f32 %v8615_v63, %v2863_v15  ;;  %v3648_v5 = vadd.f32 %v8615_v63, %v3647_v18  ;;  %v4355_v0 = vmax.f32 %v4138_v56, %v4145_v27 }
 0x235   : > { %5680 = vst.msk [vmem:[%s7588_s6 + $0x18c] sm:$0x3] %vm5583_vm5, %v6366_v24  ;;  %v3950_v38 = vmax.f32 %v2872_v50, 0.0  ;;  %v4146_v1 = vmax.f32 %v3656_v39, 0.0  ;;  %v6756_v31 = vpop.f32.mrb[164].mxu0  ;;  %v4143_v23 = vmax.f32 %v8796_v19, 0.0 }
 0x236   : > { %v3948_v3 = vmax.f32 %v2864_v61, 0.0  ;;  %v4144_v37 = vmax.f32 %v3648_v5, 0.0  ;;  %v2885_v46 = vadd.f32 %v8615_v63, %v6756_v31  ;;  %v6952_v57 = vpop.f32.mrb[164].mxu1  ;;  %v2876_v62 = vpop.f32.mrb[165].mxu0  ;;  %4454 = vst.msk [vmem:[#allocation2 + $0x270] sm:$0xff] %vm4375_vm3, %v4257_v41  ;;  %4552 = vst.msk [vmem:[#allocation2 + $0x580] sm:$0xff] %vm4375_vm3, %v4355_v0 }
 0x237   : > { %v4258_v11 = vmax.f32 %v3943_v45, %v3950_v38  ;;  %v4356_v55 = vmax.f32 %v4139_v20, %v4146_v1  ;;  %v3669_v22 = vadd.f32 %v8615_v63, %v6952_v57  ;;  %v2877_v56 = vadd.f32 %v8615_v63, %v2876_v62  ;;  %v3660_v6 = vpop.f32.mrb[165].mxu1  ;;  %v6757_v47 = vpop.f32.mrb[166].mxu0 }
 0x238   : > { %v4256_v40 = vmax.f32 %v3941_v7, %v3948_v3  ;;  %v4354_v36 = vmax.f32 %v4137_v42, %v4144_v37  ;;  %v3953_v53 = vmax.f32 %v2885_v46, 0.0  ;;  %v3661_v48 = vadd.f32 %v8615_v63, %v3660_v6  ;;  %v6953_v43 = vpop.f32.mrb[166].mxu1  ;;  %v2879_v35 = vpop.f32.mrb[167].mxu0 }
 0x239   : > { %4455 = vst.msk [vmem:[#allocation2 + $0x278] sm:$0xff] %vm4375_vm3, %v4258_v11  ;;  %4553 = vst.msk [vmem:[#allocation2 + $0x588] sm:$0xff] %vm4375_vm3, %v4356_v55  ;;  %v4149_v45 = vmax.f32 %v3669_v22, 0.0  ;;  %v3951_v20 = vmax.f32 %v2877_v56, 0.0  ;;  %v2888_v26 = vadd.f32 %v8615_v63, %v6757_v47  ;;  %v3672_v54 = vadd.f32 %v8615_v63, %v6953_v43  ;;  %v3663_v14 = vpop.f32.mrb[167].mxu1 }
 0x23a   : > { %4453 = vst.msk [vmem:[#allocation2 + $0x268] sm:$0xff] %vm4375_vm3, %v4256_v40  ;;  %4551 = vst.msk [vmem:[#allocation2 + $0x578] sm:$0xff] %vm4375_vm3, %v4354_v36  ;;  %v4261_v16 = vmax.f32 %v3946_v9, %v3953_v53  ;;  %v4147_v7 = vmax.f32 %v3661_v48, 0.0  ;;  %v2880_v42 = vadd.f32 %v8615_v63, %v2879_v35  ;;  %v3664_v58 = vadd.f32 %v8615_v63, %v3663_v14 }
 0x23b   : > { %v4359_v4 = vmax.f32 %v4142_v51, %v4149_v45  ;;  %v4259_v34 = vmax.f32 %v3944_v29, %v3951_v20  ;;  %v3954_v17 = vmax.f32 %v2888_v26, 0.0  ;;  %v4150_v10 = vmax.f32 %v3672_v54, 0.0 }
 0x23c   : > { %v4141_v60 = vmax.f32 %v8778_v32, 0.0  ;;  %4458 = vst.msk [vmem:[#allocation2 + $0x290] sm:$0xff] %vm4375_vm3, %v4261_v16  ;;  %v4357_v8 = vmax.f32 %v4140_v21, %v4147_v7  ;;  %v3952_v12 = vmax.f32 %v2880_v42, 0.0  ;;  %v4148_v13 = vmax.f32 %v3664_v58, 0.0 }
 0x23d   : > { %4556 = vst.msk [vmem:[#allocation2 + $0x5a0] sm:$0xff] %vm4375_vm3, %v4359_v4  ;;  %4456 = vst.msk [vmem:[#allocation2 + $0x280] sm:$0xff] %vm4375_vm3, %v4259_v34  ;;  %v4262_v44 = vmax.f32 %v3947_v49, %v3954_v17  ;;  %v4360_v9 = vmax.f32 %v4143_v23, %v4150_v10  ;;  %v6760_v28 = vpop.f32.mrb[168].mxu0 }
 0x23e   : > { %4554 = vst.msk [vmem:[#allocation2 + $0x590] sm:$0xff] %vm4375_vm3, %v4357_v8  ;;  %v4260_v51 = vmax.f32 %v3945_v33, %v3952_v12  ;;  %v4358_v24 = vmax.f32 %v4141_v60, %v4148_v13  ;;  %v6956_v29 = vpop.f32.mrb[168].mxu1  ;;  %v2892_v32 = vpop.f32.mrb[169].mxu0  ;;  %v8847_v62 = vadd.f32 %v8615_v63, %v6760_v28 }
 0x23f   : > { %4459 = vst.msk [vmem:[#allocation2 + $0x298] sm:$0xff] %vm4375_vm3, %v4262_v44  ;;  %4557 = vst.msk [vmem:[#allocation2 + $0x5a8] sm:$0xff] %vm4375_vm3, %v4360_v9  ;;  %v3676_v52 = vpop.f32.mrb[169].mxu1  ;;  %v6761_v19 = vpop.f32.mrb[170].mxu0  ;;  %v8850_v11 = vadd.f32 %v8615_v63, %v6956_v29  ;;  %v2893_v40 = vadd.f32 %v8615_v63, %v2892_v32 }
 0x240   : > { %4457 = vst.msk [vmem:[#allocation2 + $0x288] sm:$0xff] %vm4375_vm3, %v4260_v51  ;;  %4555 = vst.msk [vmem:[#allocation2 + $0x598] sm:$0xff] %vm4375_vm3, %v4358_v24  ;;  %v6957_v59 = vpop.f32.mrb[170].mxu1  ;;  %v2895_v25 = vpop.f32.mrb[171].mxu0  ;;  %v3677_v36 = vadd.f32 %v8615_v63, %v3676_v52  ;;  %v2904_v35 = vadd.f32 %v8615_v63, %v6761_v19  ;;  %v3957_v13 = vmax.f32 %v8847_v62, 0.0 }
 0x241   : > { %v4660_v2 = vld [vmem:[#allocation2 + $0x268] ss:$2 sm:$0xff]  ;;  %v4884_v27 = vld [vmem:[#allocation2 + $0x269] ss:$2 sm:$0xff]  ;;  %v4772_v30 = vld [vmem:[#allocation2 + $0x578] ss:$2 sm:$0xff]  ;;  %v3688_v45 = vadd.f32 %v8615_v63, %v6957_v59  ;;  %v2896_v16 = vadd.f32 %v8615_v63, %v2895_v25 }
 0x242   : > { %v5063_v33 = vmax.f32 %v4660_v2, %v4884_v27  ;;  %v4996_v50 = vld [vmem:[#allocation2 + $0x579] ss:$2 sm:$0xff]  ;;  %v3679_v39 = vpop.f32.mrb[171].mxu1  ;;  %v3955_v44 = vmax.f32 %v2893_v40, 0.0  ;;  %v4151_v51 = vmax.f32 %v3677_v36, 0.0  ;;  %v3958_v24 = vmax.f32 %v2904_v35, 0.0 }
 0x243   : > { %v5119_v15 = vmax.f32 %v4772_v30, %v4996_v50  ;;  %v3680_v7 = vadd.f32 %v8615_v63, %v3679_v39  ;;  %v4154_v29 = vmax.f32 %v3688_v45, 0.0  ;;  %v3956_v19 = vmax.f32 %v2896_v16, 0.0 }
 0x244   : > { %v6311_v18 = vpack.c.bf16 %v5063_v33, %v5063_v33  ;;  %v4662_v21 = vld [vmem:[#allocation2 + $0x278] ss:$2 sm:$0xff]  ;;  %v4886_v49 = vld [vmem:[#allocation2 + $0x279] ss:$2 sm:$0xff]  ;;  %v4153_v36 = vmax.f32 %v8850_v11, 0.0 }
 0x245   : > { %v6367_v61 = vpack.c.bf16 %v5119_v15, %v5119_v15  ;;  %v5064_v5 = vmax.f32 %v4662_v21, %v4886_v49  ;;  %v4774_v41 = vld [vmem:[#allocation2 + $0x588] ss:$2 sm:$0xff]  ;;  %v4998_v0 = vld [vmem:[#allocation2 + $0x589] ss:$2 sm:$0xff]  ;;  %v8840_v38 = vpop.f32.mrb[172].mxu0  ;;  %v4152_v59 = vmax.f32 %v3680_v7, 0.0 }
 0x246   : > { %5625 = vst.msk [vmem:[%s7588_s6 + $0xb0] sm:$0xf] %vm5579_vm4, %v6311_v18  ;;  %v5120_v1 = vmax.f32 %v4774_v41, %v4998_v0  ;;  %v4666_v31 = vld [vmem:[#allocation2 + $0x298] ss:$2 sm:$0xf]  ;;  %v8858_v20 = vpop.f32.mrb[172].mxu1 }
 0x247   : > { %v4890_v23 = vld [vmem:[#allocation2 + $0x299] ss:$2 sm:$0xf]  ;;  %5681 = vst.msk [vmem:[%s7588_s6 + $0x190] sm:$0xf] %vm5579_vm4, %v6367_v61  ;;  %v6312_v3 = vpack.c.bf16 %v5064_v5, %v5064_v5  ;;  %v2908_v26 = vpop.f32.mrb[173].mxu0 }
 0x248   : > { %v5066_v37 = vmax.f32 %v4666_v31, %v4890_v23  ;;  %v4778_v46 = vld [vmem:[#allocation2 + $0x5a8] ss:$2 sm:$0xf]  ;;  %v5002_v57 = vld [vmem:[#allocation2 + $0x5a9] ss:$2 sm:$0xf]  ;;  %v6368_v55 = vpack.c.bf16 %v5120_v1, %v5120_v1  ;;  %v2909_v34 = vadd.f32 %v8615_v63, %v2908_v26 }
 0x249   : > { %v5122_v22 = vmax.f32 %v4778_v46, %v5002_v57  ;;  %v4664_v56 = vld [vmem:[#allocation2 + $0x288] ss:$2 sm:$0xff]  ;;  %v4888_v6 = vld [vmem:[#allocation2 + $0x289] ss:$2 sm:$0xff]  ;;  %v4776_v47 = vld [vmem:[#allocation2 + $0x598] ss:$2 sm:$0xff] }
 0x24a   : > { %5626 = vst.msk [vmem:[%s7588_s6 + $0xb4] sm:$0xf] %vm5579_vm4, %v6312_v3  ;;  %v6314_v53 = vpack.c.bf16 %v5066_v37, %v5066_v37  ;;  %v5065_v48 = vmax.f32 %v4664_v56, %v4888_v6  ;;  %v5000_v43 = vld [vmem:[#allocation2 + $0x599] ss:$2 sm:$0xff]  ;;  %5682 = vst.msk [vmem:[%s7588_s6 + $0x194] sm:$0xf] %vm5579_vm4, %v6368_v55 }
 0x24b   : > { %v6370_v54 = vpack.c.bf16 %v5122_v22, %v5122_v22  ;;  %v5121_v14 = vmax.f32 %v4776_v47, %v5000_v43  ;;  %v3692_v42 = vpop.f32.mrb[173].mxu1  ;;  %v6765_v58 = vpop.f32.mrb[174].mxu0  ;;  %v3959_v33 = vmax.f32 %v2909_v34, 0.0 }
 0x24c   : > { %5628 = vst.msk [vmem:[%s7588_s6 + $0xbc] sm:$0x3] %vm5583_vm5, %v6314_v53  ;;  %v6313_v4 = vpack.c.bf16 %v5065_v48, %v5065_v48  ;;  %v3693_v17 = vadd.f32 %v8615_v63, %v3692_v42  ;;  %v2920_v10 = vadd.f32 %v8615_v63, %v6765_v58  ;;  %v6961_v60 = vpop.f32.mrb[174].mxu1  ;;  %v2911_v8 = vpop.f32.mrb[175].mxu0  ;;  %v2917_v58 = vadd.f32 %v8615_v63, %v8840_v38 }
 0x24d   : > { %5684 = vst.msk [vmem:[%s7588_s6 + $0x19c] sm:$0x3] %vm5583_vm5, %v6370_v54  ;;  %v6369_v12 = vpack.c.bf16 %v5121_v14, %v5121_v14  ;;  %v3704_v9 = vadd.f32 %v8615_v63, %v6961_v60  ;;  %v3695_v28 = vpop.f32.mrb[175].mxu1  ;;  %v6768_v52 = vpop.f32.mrb[176].mxu0  ;;  %v2912_v35 = vadd.f32 %v8615_v63, %v2911_v8 }
 0x24e   : > { %5627 = vst.msk [vmem:[%s7588_s6 + $0xb8] sm:$0xf] %vm5579_vm4, %v6313_v4  ;;  %v3962_v32 = vmax.f32 %v2920_v10, 0.0  ;;  %v2933_v2 = vadd.f32 %v8615_v63, %v6768_v52  ;;  %v6964_v27 = vpop.f32.mrb[176].mxu1  ;;  %v2924_v30 = vpop.f32.mrb[177].mxu0  ;;  %v4155_v50 = vmax.f32 %v3693_v17, 0.0  ;;  %v3696_v16 = vadd.f32 %v8615_v63, %v3695_v28 }
 0x24f   : > { %5683 = vst.msk [vmem:[%s7588_s6 + $0x198] sm:$0xf] %vm5579_vm4, %v6369_v12  ;;  %v4158_v25 = vmax.f32 %v3704_v9, 0.0  ;;  %v3717_v15 = vadd.f32 %v8615_v63, %v6964_v27  ;;  %v3708_v18 = vpop.f32.mrb[177].mxu1  ;;  %v6769_v21 = vpop.f32.mrb[178].mxu0  ;;  %v2925_v5 = vadd.f32 %v8615_v63, %v2924_v30  ;;  %v3701_v10 = vadd.f32 %v8615_v63, %v8858_v20 }
 0x250   : > { %v4263_v39 = vmax.f32 %v3955_v44, %v3962_v32  ;;  %v3965_v61 = vmax.f32 %v2933_v2, 0.0  ;;  %v3709_v41 = vadd.f32 %v8615_v63, %v3708_v18  ;;  %v6965_v0 = vpop.f32.mrb[178].mxu1  ;;  %v2927_v1 = vpop.f32.mrb[179].mxu0  ;;  %v2936_v23 = vadd.f32 %v8615_v63, %v6769_v21  ;;  %v8907_v44 = vld [vmem:[%s9044_s2] ss:$0 sm:$0xff] }
 0x251   : > { %v4361_v49 = vmax.f32 %v4151_v51, %v4158_v25  ;;  %v4161_v31 = vmax.f32 %v3717_v15, 0.0  ;;  %v3720_v3 = vadd.f32 %v8615_v63, %v6965_v0  ;;  %v2928_v37 = vadd.f32 %v8615_v63, %v2927_v1  ;;  %v3711_v46 = vpop.f32.mrb[179].mxu1 }
 0x252   : > { %4460 = vst.msk [vmem:[#allocation2 + $0x2a0] sm:$0xff] %vm4375_vm3, %v4263_v39  ;;  %v4266_v57 = vmax.f32 %v3958_v24, %v3965_v61  ;;  %v3963_v62 = vmax.f32 %v2925_v5, 0.0  ;;  %v4159_v55 = vmax.f32 %v3709_v41, 0.0  ;;  %v3712_v22 = vadd.f32 %v8615_v63, %v3711_v46 }
 0x253   : > { %4558 = vst.msk [vmem:[#allocation2 + $0x5b0] sm:$0xff] %vm4375_vm3, %v4361_v49  ;;  %v4364_v56 = vmax.f32 %v4154_v29, %v4161_v31  ;;  %v3966_v6 = vmax.f32 %v2936_v23, 0.0  ;;  %v4162_v47 = vmax.f32 %v3720_v3, 0.0  ;;  %v3964_v40 = vmax.f32 %v2928_v37, 0.0 }
 0x254   : > { %4463 = vst.msk [vmem:[#allocation2 + $0x2b8] sm:$0xff] %vm4375_vm3, %v4266_v57  ;;  %v4264_v53 = vmax.f32 %v3956_v19, %v3963_v62  ;;  %v4362_v48 = vmax.f32 %v4152_v59, %v4159_v55  ;;  %v4160_v43 = vmax.f32 %v3712_v22, 0.0  ;;  %v3960_v38 = vmax.f32 %v2912_v35, 0.0 }
 0x255   : > { %4561 = vst.msk [vmem:[#allocation2 + $0x5c8] sm:$0xff] %vm4375_vm3, %v4364_v56  ;;  %v4267_v45 = vmax.f32 %v3959_v33, %v3966_v6  ;;  %v4365_v26 = vmax.f32 %v4155_v50, %v4162_v47  ;;  %v4265_v54 = vmax.f32 %v3957_v13, %v3964_v40  ;;  %v6772_v14 = vpop.f32.mrb[180].mxu0  ;;  %v4156_v51 = vmax.f32 %v3696_v16, 0.0 }
 0x256   : > { %4461 = vst.msk [vmem:[#allocation2 + $0x2a8] sm:$0xff] %vm4375_vm3, %v4264_v53  ;;  %4559 = vst.msk [vmem:[#allocation2 + $0x5b8] sm:$0xff] %vm4375_vm3, %v4362_v48  ;;  %v4363_v11 = vmax.f32 %v4153_v36, %v4160_v43  ;;  %v6968_v7 = vpop.f32.mrb[180].mxu1  ;;  %v2940_v42 = vpop.f32.mrb[181].mxu0  ;;  %v3961_v29 = vmax.f32 %v2917_v58, 0.0  ;;  %v8913_v18 = vadd.f32 %v8907_v44, %v6772_v14 }
 0x257   : > { %4464 = vst.msk [vmem:[#allocation2 + $0x2c0] sm:$0xff] %vm4375_vm3, %v4267_v45  ;;  %4562 = vst.msk [vmem:[#allocation2 + $0x5d0] sm:$0xff] %vm4375_vm3, %v4365_v26  ;;  %v2941_v4 = vadd.f32 %v8615_v63, %v2940_v42  ;;  %v3724_v34 = vpop.f32.mrb[181].mxu1  ;;  %v6773_v17 = vpop.f32.mrb[182].mxu0  ;;  %v8917_v0 = vadd.f32 %v8907_v44, %v6968_v7 }
 0x258   : > { %4462 = vst.msk [vmem:[#allocation2 + $0x2b0] sm:$0xff] %vm4375_vm3, %v4265_v54  ;;  %4560 = vst.msk [vmem:[#allocation2 + $0x5c0] sm:$0xff] %vm4375_vm3, %v4363_v11  ;;  %v3725_v60 = vadd.f32 %v8615_v63, %v3724_v34  ;;  %v6969_v8 = vpop.f32.mrb[182].mxu1  ;;  %v2943_v12 = vpop.f32.mrb[183].mxu0  ;;  %v4157_v63 = vmax.f32 %v3701_v10, 0.0  ;;  %v8920_v1 = vadd.f32 %v8907_v44, %v6773_v17  ;;  %v3969_v35 = vmax.f32 %v8913_v18, 0.0 }
 0x259   : > { %v3967_v13 = vmax.f32 %v2941_v4, 0.0  ;;  %v2944_v9 = vadd.f32 %v8907_v44, %v2943_v12  ;;  %v3727_v28 = vpop.f32.mrb[183].mxu1  ;;  %v8924_v46 = vadd.f32 %v8907_v44, %v6969_v8  ;;  %v4165_v45 = vmax.f32 %v8917_v0, 0.0 }
 0x25a   : > { %v4163_v24 = vmax.f32 %v3725_v60, 0.0  ;;  %v3728_v20 = vadd.f32 %v8907_v44, %v3727_v28  ;;  %v3970_v26 = vmax.f32 %v8920_v1, 0.0 }
 0x25b   : > { %v4268_v32 = vmax.f32 %v3960_v38, %v3967_v13  ;;  %v3968_v52 = vmax.f32 %v2944_v9, 0.0  ;;  %v4166_v16 = vmax.f32 %v8924_v46, 0.0 }
 0x25c   : > { %v4366_v19 = vmax.f32 %v4156_v51, %v4163_v24  ;;  %v4164_v59 = vmax.f32 %v3728_v20, 0.0 }
 0x25d   : > { %v4668_v25 = vld [vmem:[#allocation2 + $0x2a0] ss:$2 sm:$0xff]  ;;  %v4892_v2 = vld [vmem:[#allocation2 + $0x2a1] ss:$2 sm:$0xff]  ;;  %v4780_v27 = vld [vmem:[#allocation2 + $0x5b0] ss:$2 sm:$0xff]  ;;  %v4269_v30 = vmax.f32 %v3961_v29, %v3968_v52 }
 0x25e   : > { %4465 = vst.msk [vmem:[#allocation2 + $0x2c8] sm:$0xff] %vm4375_vm3, %v4268_v32  ;;  %v5067_v33 = vmax.f32 %v4668_v25, %v4892_v2  ;;  %v5004_v50 = vld [vmem:[#allocation2 + $0x5b1] ss:$2 sm:$0xff]  ;;  %4563 = vst.msk [vmem:[#allocation2 + $0x5d8] sm:$0xff] %vm4375_vm3, %v4366_v19  ;;  %v4367_v21 = vmax.f32 %v4157_v63, %v4164_v59  ;;  %v6776_v31 = vpop.f32.mrb[184].mxu0  ;;  %v6972_v23 = vpop.f32.mrb[184].mxu1 }
 0x25f   : > { %v4670_v39 = vld [vmem:[#allocation2 + $0x2b0] ss:$2 sm:$0xff]  ;;  %v4894_v15 = vld [vmem:[#allocation2 + $0x2b1] ss:$2 sm:$0xff]  ;;  %v5123_v49 = vmax.f32 %v4780_v27, %v5004_v50  ;;  %v4782_v5 = vld [vmem:[#allocation2 + $0x5c0] ss:$2 sm:$0xff]  ;;  %v8928_v57 = vadd.f32 %v8907_v44, %v6776_v31  ;;  %v8961_v24 = vadd.f32 %v8907_v44, %v6972_v23 }
 0x260   : > { %v5068_v61 = vmax.f32 %v4670_v39, %v4894_v15  ;;  %v5006_v41 = vld [vmem:[#allocation2 + $0x5c1] ss:$2 sm:$0xff]  ;;  %4466 = vst.msk [vmem:[#allocation2 + $0x2d0] sm:$0xff] %vm4375_vm3, %v4269_v30  ;;  %v6315_v3 = vpack.c.bf16 %v5067_v33, %v5067_v33  ;;  %4564 = vst.msk [vmem:[#allocation2 + $0x5e0] sm:$0xff] %vm4375_vm3, %v4367_v21  ;;  %v2956_v62 = vpop.f32.mrb[185].mxu0  ;;  %v3740_v55 = vpop.f32.mrb[185].mxu1 }
 0x261   : > { %v5124_v37 = vmax.f32 %v4782_v5, %v5006_v41  ;;  %v6371_v22 = vpack.c.bf16 %v5123_v49, %v5123_v49  ;;  %v8931_v6 = vadd.f32 %v8907_v44, %v2956_v62  ;;  %v8934_v47 = vadd.f32 %v8907_v44, %v3740_v55  ;;  %v6777_v40 = vpop.f32.mrb[186].mxu0  ;;  %v6973_v36 = vpop.f32.mrb[186].mxu1 }
 0x262   : > { %v6316_v56 = vpack.c.bf16 %v5068_v61, %v5068_v61  ;;  %5629 = vst.msk [vmem:[%s7588_s6 + $0xc0] sm:$0xf] %vm5579_vm4, %v6315_v3  ;;  %v2959_v48 = vpop.f32.mrb[187].mxu0  ;;  %v3743_v43 = vpop.f32.mrb[187].mxu1  ;;  %v3973_v11 = vmax.f32 %v8928_v57, 0.0  ;;  %v8950_v7 = vadd.f32 %v8907_v44, %v6777_v40  ;;  %v8955_v10 = vadd.f32 %v8907_v44, %v6973_v36 }
 0x263   : > { %v6372_v53 = vpack.c.bf16 %v5124_v37, %v5124_v37  ;;  %5685 = vst.msk [vmem:[%s7588_s6 + $0x1a0] sm:$0xf] %vm5579_vm4, %v6371_v22  ;;  %v3971_v34 = vmax.f32 %v8931_v6, 0.0  ;;  %v4167_v17 = vmax.f32 %v8934_v47, 0.0  ;;  %v8958_v38 = vadd.f32 %v8907_v44, %v2959_v48 }
 0x264   : > { %5630 = vst.msk [vmem:[%s7588_s6 + $0xc4] sm:$0xf] %vm5579_vm4, %v6316_v56  ;;  %v3974_v32 = vmax.f32 %v8950_v7, 0.0  ;;  %v8965_v52 = vadd.f32 %v8907_v44, %v3743_v43  ;;  %v4170_v25 = vmax.f32 %v8955_v10, 0.0 }
 0x265   : > { %5686 = vst.msk [vmem:[%s7588_s6 + $0x1a4] sm:$0xf] %vm5579_vm4, %v6372_v53  ;;  %v4672_v54 = vld [vmem:[#allocation2 + $0x2c0] ss:$2 sm:$0xff]  ;;  %v4896_v14 = vld [vmem:[#allocation2 + $0x2c1] ss:$2 sm:$0xff] }
 0x266   : > { %v5069_v42 = vmax.f32 %v4672_v54, %v4896_v14  ;;  %v4784_v58 = vld [vmem:[#allocation2 + $0x5d0] ss:$2 sm:$0xff]  ;;  %v5008_v4 = vld [vmem:[#allocation2 + $0x5d1] ss:$2 sm:$0xff]  ;;  %v6780_v63 = vpop.f32.mrb[188].mxu0  ;;  %v6976_v19 = vpop.f32.mrb[188].mxu1 }
 0x267   : > { %v5125_v60 = vmax.f32 %v4784_v58, %v5008_v4  ;;  %v4674_v8 = vld [vmem:[#allocation2 + $0x2d0] ss:$2 sm:$0xf]  ;;  %v4898_v12 = vld [vmem:[#allocation2 + $0x2d1] ss:$2 sm:$0xf]  ;;  %v2981_v2 = vadd.f32 %v8907_v44, %v6780_v63  ;;  %v3765_v27 = vadd.f32 %v8907_v44, %v6976_v19 }
 0x268   : > { %v6317_v13 = vpack.c.bf16 %v5069_v42, %v5069_v42  ;;  %v5070_v9 = vmax.f32 %v4674_v8, %v4898_v12  ;;  %v4786_v28 = vld [vmem:[#allocation2 + $0x5e0] ss:$2 sm:$0xf]  ;;  %v5010_v51 = vld [vmem:[#allocation2 + $0x5e1] ss:$2 sm:$0xf] }
 0x269   : > { %v6373_v20 = vpack.c.bf16 %v5125_v60, %v5125_v60  ;;  %v5126_v29 = vmax.f32 %v4786_v28, %v5010_v51  ;;  %v2972_v30 = vpop.f32.mrb[189].mxu0  ;;  %v3756_v33 = vpop.f32.mrb[189].mxu1  ;;  %v3972_v39 = vmax.f32 %v8958_v38, 0.0  ;;  %v3977_v5 = vmax.f32 %v2981_v2, 0.0 }
 0x26a   : > { %5631 = vst.msk [vmem:[%s7588_s6 + $0xc8] sm:$0xf] %vm5579_vm4, %v6317_v13  ;;  %v6318_v59 = vpack.c.bf16 %v5070_v9, %v5070_v9  ;;  %v8976_v15 = vadd.f32 %v8907_v44, %v2972_v30  ;;  %v8979_v21 = vadd.f32 %v8907_v44, %v3756_v33  ;;  %v6781_v49 = vpop.f32.mrb[190].mxu0  ;;  %v6977_v61 = vpop.f32.mrb[190].mxu1  ;;  %v4173_v41 = vmax.f32 %v3765_v27, 0.0 }
 0x26b   : > { %5687 = vst.msk [vmem:[%s7588_s6 + $0x1a8] sm:$0xf] %vm5579_vm4, %v6373_v20  ;;  %v6374_v50 = vpack.c.bf16 %v5126_v29, %v5126_v29  ;;  %v2984_v1 = vadd.f32 %v8907_v44, %v6781_v49  ;;  %v3768_v31 = vadd.f32 %v8907_v44, %v6977_v61  ;;  %v2975_v23 = vpop.f32.mrb[191].mxu0  ;;  %v3759_v3 = vpop.f32.mrb[191].mxu1  ;;  %v4168_v37 = vmax.f32 %v8965_v52, 0.0 }
 0x26c   : > { %5632 = vst.msk [vmem:[%s7588_s6 + $0xcc] sm:$0x3] %vm5583_vm5, %v6318_v59  ;;  %v3975_v46 = vmax.f32 %v8976_v15, 0.0  ;;  %v2976_v62 = vadd.f32 %v8907_v44, %v2975_v23  ;;  %v3760_v55 = vadd.f32 %v8907_v44, %v3759_v3  ;;  %v4271_v22 = vmax.f32 %v3970_v26, %v3977_v5 }
 0x26d   : > { %5688 = vst.msk [vmem:[%s7588_s6 + $0x1ac] sm:$0x3] %vm5583_vm5, %v6374_v50  ;;  %v4369_v56 = vmax.f32 %v4166_v16, %v4173_v41  ;;  %v3978_v6 = vmax.f32 %v2984_v1, 0.0  ;;  %v4174_v47 = vmax.f32 %v3768_v31, 0.0  ;;  %v6784_v40 = vpop.f32.mrb[192].mxu0  ;;  %v4171_v36 = vmax.f32 %v8979_v21, 0.0 }
 0x26e   : > { %v3976_v53 = vmax.f32 %v2976_v62, 0.0  ;;  %v4172_v48 = vmax.f32 %v3760_v55, 0.0  ;;  %v2997_v43 = vadd.f32 %v8907_v44, %v6784_v40  ;;  %v6980_v54 = vpop.f32.mrb[192].mxu1  ;;  %v2988_v14 = vpop.f32.mrb[193].mxu0  ;;  %4468 = vst.msk [vmem:[#allocation2 + $0x2e0] sm:$0xff] %vm4375_vm3, %v4271_v22  ;;  %v4169_v59 = vmax.f32 %v8961_v24, 0.0 }
 0x26f   : > { %4566 = vst.msk [vmem:[#allocation2 + $0x5f0] sm:$0xff] %vm4375_vm3, %v4369_v56  ;;  %v4272_v42 = vmax.f32 %v3971_v34, %v3978_v6  ;;  %v4370_v58 = vmax.f32 %v4167_v17, %v4174_v47  ;;  %v3781_v26 = vadd.f32 %v8907_v44, %v6980_v54  ;;  %v2989_v16 = vadd.f32 %v8907_v44, %v2988_v14  ;;  %v3772_v4 = vpop.f32.mrb[193].mxu1  ;;  %v6785_v10 = vpop.f32.mrb[194].mxu0 }
 0x270   : > { %v4270_v60 = vmax.f32 %v3969_v35, %v3976_v53  ;;  %v4368_v8 = vmax.f32 %v4165_v45, %v4172_v48  ;;  %v3981_v12 = vmax.f32 %v2997_v43, 0.0  ;;  %v3773_v38 = vadd.f32 %v8907_v44, %v3772_v4  ;;  %v6981_v13 = vpop.f32.mrb[194].mxu1  ;;  %v2991_v9 = vpop.f32.mrb[195].mxu0 }
 0x271   : > { %4469 = vst.msk [vmem:[#allocation2 + $0x2e8] sm:$0xff] %vm4375_vm3, %v4272_v42  ;;  %4567 = vst.msk [vmem:[#allocation2 + $0x5f8] sm:$0xff] %vm4375_vm3, %v4370_v58  ;;  %v4177_v34 = vmax.f32 %v3781_v26, 0.0  ;;  %v3979_v17 = vmax.f32 %v2989_v16, 0.0  ;;  %v3000_v28 = vadd.f32 %v8907_v44, %v6785_v10  ;;  %v3784_v51 = vadd.f32 %v8907_v44, %v6981_v13  ;;  %v3775_v18 = vpop.f32.mrb[195].mxu1 }
 0x272   : > { %4467 = vst.msk [vmem:[#allocation2 + $0x2d8] sm:$0xff] %vm4375_vm3, %v4270_v60  ;;  %4565 = vst.msk [vmem:[#allocation2 + $0x5e8] sm:$0xff] %vm4375_vm3, %v4368_v8  ;;  %v4275_v0 = vmax.f32 %v3974_v32, %v3981_v12  ;;  %v4175_v35 = vmax.f32 %v3773_v38, 0.0  ;;  %v2992_v45 = vadd.f32 %v8907_v44, %v2991_v9  ;;  %v3776_v20 = vadd.f32 %v8907_v44, %v3775_v18 }
 0x273   : > { %v4373_v29 = vmax.f32 %v4170_v25, %v4177_v34  ;;  %v4273_v52 = vmax.f32 %v3972_v39, %v3979_v17  ;;  %v3982_v63 = vmax.f32 %v3000_v28, 0.0  ;;  %v4178_v19 = vmax.f32 %v3784_v51, 0.0 }
 0x274   : > { %4472 = vst.msk [vmem:[#allocation2 + $0x300] sm:$0xff] %vm4375_vm3, %v4275_v0  ;;  %v4371_v2 = vmax.f32 %v4168_v37, %v4175_v35  ;;  %v3980_v27 = vmax.f32 %v2992_v45, 0.0  ;;  %v4176_v30 = vmax.f32 %v3776_v20, 0.0 }
 0x275   : > { %4570 = vst.msk [vmem:[#allocation2 + $0x610] sm:$0xff] %vm4375_vm3, %v4373_v29  ;;  %4470 = vst.msk [vmem:[#allocation2 + $0x2f0] sm:$0xff] %vm4375_vm3, %v4273_v52  ;;  %v4276_v7 = vmax.f32 %v3975_v46, %v3982_v63  ;;  %v4374_v32 = vmax.f32 %v4171_v36, %v4178_v19 }
 0x276   : > { %4568 = vst.msk [vmem:[#allocation2 + $0x600] sm:$0xff] %vm4375_vm3, %v4371_v2  ;;  %v4274_v44 = vmax.f32 %v3973_v11, %v3980_v27  ;;  %v4372_v25 = vmax.f32 %v4169_v59, %v4176_v30 }
 0x277   : > { %4473 = vst.msk [vmem:[#allocation2 + $0x308] sm:$0xff] %vm4375_vm3, %v4276_v7  ;;  %4571 = vst.msk [vmem:[#allocation2 + $0x618] sm:$0xff] %vm4375_vm3, %v4374_v32 }
 0x278   : > { %4471 = vst.msk [vmem:[#allocation2 + $0x2f8] sm:$0xff] %vm4375_vm3, %v4274_v44  ;;  %4569 = vst.msk [vmem:[#allocation2 + $0x608] sm:$0xff] %vm4375_vm3, %v4372_v25 }
 0x279   : > { %v4676_v24 = vld [vmem:[#allocation2 + $0x2d8] ss:$2 sm:$0xff]  ;;  %v4900_v33 = vld [vmem:[#allocation2 + $0x2d9] ss:$2 sm:$0xff]  ;;  %v4788_v50 = vld [vmem:[#allocation2 + $0x5e8] ss:$2 sm:$0xff] }
 0x27a   : > { %v5071_v39 = vmax.f32 %v4676_v24, %v4900_v33  ;;  %v5012_v15 = vld [vmem:[#allocation2 + $0x5e9] ss:$2 sm:$0xff] }
 0x27b   : > { %v5127_v21 = vmax.f32 %v4788_v50, %v5012_v15 }
 0x27c   : > { %v6319_v49 = vpack.c.bf16 %v5071_v39, %v5071_v39  ;;  %v4678_v57 = vld [vmem:[#allocation2 + $0x2e8] ss:$2 sm:$0xff]  ;;  %v4902_v11 = vld [vmem:[#allocation2 + $0x2e9] ss:$2 sm:$0xff] }
 0x27d   : > { %v6375_v61 = vpack.c.bf16 %v5127_v21, %v5127_v21  ;;  %v5072_v5 = vmax.f32 %v4678_v57, %v4902_v11  ;;  %v4790_v41 = vld [vmem:[#allocation2 + $0x5f8] ss:$2 sm:$0xff]  ;;  %v5014_v1 = vld [vmem:[#allocation2 + $0x5f9] ss:$2 sm:$0xff] }
 0x27e   : > { %5633 = vst.msk [vmem:[%s7588_s6 + $0xd0] sm:$0xf] %vm5579_vm4, %v6319_v49  ;;  %v5128_v31 = vmax.f32 %v4790_v41, %v5014_v1  ;;  %v4682_v23 = vld [vmem:[#allocation2 + $0x308] ss:$2 sm:$0xf] }
 0x27f   : > { %v4906_v3 = vld [vmem:[#allocation2 + $0x309] ss:$2 sm:$0xf]  ;;  %5689 = vst.msk [vmem:[%s7588_s6 + $0x1b0] sm:$0xf] %vm5579_vm4, %v6375_v61  ;;  %v6320_v37 = vpack.c.bf16 %v5072_v5, %v5072_v5 }
 0x280   : > { %v5074_v46 = vmax.f32 %v4682_v23, %v4906_v3  ;;  %v4794_v62 = vld [vmem:[#allocation2 + $0x618] ss:$2 sm:$0xf]  ;;  %v5018_v55 = vld [vmem:[#allocation2 + $0x619] ss:$2 sm:$0xf]  ;;  %v6376_v22 = vpack.c.bf16 %v5128_v31, %v5128_v31 }
 0x281   : > { %v5130_v56 = vmax.f32 %v4794_v62, %v5018_v55  ;;  %v4680_v6 = vld [vmem:[#allocation2 + $0x2f8] ss:$2 sm:$0xff]  ;;  %v4904_v47 = vld [vmem:[#allocation2 + $0x2f9] ss:$2 sm:$0xff]  ;;  %v4792_v40 = vld [vmem:[#allocation2 + $0x608] ss:$2 sm:$0xff] }
 0x282   : > { %5634 = vst.msk [vmem:[%s7588_s6 + $0xd4] sm:$0xf] %vm5579_vm4, %v6320_v37  ;;  %v6322_v36 = vpack.c.bf16 %v5074_v46, %v5074_v46  ;;  %v5073_v53 = vmax.f32 %v4680_v6, %v4904_v47  ;;  %v5016_v48 = vld [vmem:[#allocation2 + $0x609] ss:$2 sm:$0xff]  ;;  %5690 = vst.msk [vmem:[%s7588_s6 + $0x1b4] sm:$0xf] %vm5579_vm4, %v6376_v22 }
 0x283   : > { %v6378_v43 = vpack.c.bf16 %v5130_v56, %v5130_v56  ;;  %v5129_v54 = vmax.f32 %v4792_v40, %v5016_v48 }
 0x284   : > { %5636 = vst.msk [vmem:[%s7588_s6 + $0xdc] sm:$0x3] %vm5583_vm5, %v6322_v36  ;;  %v6321_v14 = vpack.c.bf16 %v5073_v53, %v5073_v53 }
 0x285   : > { %5692 = vst.msk [vmem:[%s7588_s6 + $0x1bc] sm:$0x3] %vm5583_vm5, %v6378_v43  ;;  %v6377_v42 = vpack.c.bf16 %v5129_v54, %v5129_v54 }
 0x286   : > { %5635 = vst.msk [vmem:[%s7588_s6 + $0xd8] sm:$0xf] %vm5579_vm4, %v6321_v14 }
 0x287   : > { %5691 = vst.msk [vmem:[%s7588_s6 + $0x1b8] sm:$0xf] %vm5579_vm4, %v6377_v42 }
 0x288 PF: > { %s13_s12 = sadd.s32 1, %s7214_s12  }
 0x289   : > { %p10_p4 = scmp.ge.s32.totalorder %s13_s12, 4  }
 0x28b   :  { %12 = sbr.rel (!%p10_p4) target bundleno = 1 (0x1), region = 285 }

// kernel: net_forward.5
= control target key start
LH: loop header
LB: loop body
LE: loop exit
PB: predicated region body
PF: predicated region fallthrough
CT: control target
= control target key end

     0   :  { %10 = vsyncpa [#allocation4], 0  ;;  %s6791_s18 = smov 0   ;;  %s7626_s0 = inlined_call_operand.vmem [shape: bf16[2,9216], index: 0, kind: input, shape index: {}]   ;;  %s7627_s1 = inlined_call_operand.vmem [shape: bf16[9216,512], index: 1, kind: input, shape index: {}]   ;;  %s7628_s2 = inlined_call_operand.vmem [shape: f32[1,512], index: 2, kind: input, shape index: {}]   ;;  %s7629_s3 = inlined_call_operand.vmem [shape: bf16[512,128], index: 3, kind: input, shape index: {}]   ;;  %s7630_s4 = inlined_call_operand.vmem [shape: f32[1,128], index: 4, kind: input, shape index: {}]   ;;  %s7631_s5 = inlined_call_operand.hbm [shape: f32[2,128], index: 5, kind: output, shape index: {}]  }
   0x1 LB: > { %s6797_s19 = sadd.s32 4294967295, %s6755_s18   ;;  %p5075_p0 = scmp.ge.s32.totalorder %s6755_s18, 1  ;;  %s6755_s18 = sphi %s6791_s18, %s16_s18  }
   0x2   : > { %p195_p1 = scmp.lt.s32.totalorder %s6755_s18, 5 }
   0x4   : > { %p196_p2 = pnand %p5075_p0, %p195_p1 }
   0x5   : > { %s223_s20 = smul.u32 (!%p196_p2), 18, %s6797_s19  ;;  %p5078_p5 = scmp.ne.s32.totalorder (!%p196_p2), %s6797_s19, 0 }
   0x6   : > { %199 = sbr.rel (%p196_p2) target bundleno = 1084 (0x43c), region = 40 }
   0x7   : > { %s228_s21 = smul.u32 (!%p196_p2), 288, %s6797_s19  ;;  %p224_p3 = scmp.lt.s32.totalorder (!%p196_p2), %s223_s20, 71 }
   0x9   : > { %p229_p4 = scmp.lt.s32.totalorder (!%p196_p2), %s228_s21, 1151 }
   0xd   : > { %s7633_s20 = smov (!%p224_p3, %s223_s20), 71  ;;  %s7635_s21 = smov (!%p229_p4, %s228_s21), 1151 }
   0xe   : > { %s6806_s24 = scalar_lea.vmem %s7626_s0, %s7633_s20  ;;  %s5694_s25 = sshll.u32 %s7635_s21, 4  ;;  %v6757_v0 = vmov (!%p5078_p5), 0.0  }
   0xf   : > { %s6811_s28 = scalar_lea.vmem %s7627_s1, %s5694_s25  ;;  %239 = sbr.rel (%p5078_p5) target bundleno = 22 (0x16), region = 44  ;;  %240 = vst [vmem:[#allocation2] sm:$0xff] (!%p5078_p5), %v6757_v0 }
  0x16 PF: > { %v5821_v1 = vld [vmem:[%s6811_s28 + $0x4] ss:$16 sps:$4 sm:$0xff]   ;;  %v5823_v2 = vld [vmem:[%s6811_s28 + $0xc] ss:$16 sps:$4 sm:$0xff]   ;;  %v5825_v3 = vld [vmem:[%s6811_s28] ss:$16 sps:$4 sm:$0xff]   ;;  %v828_v39 = vlaneseq }
  0x17   : > { %3842 = vmatprep.subr.bf16.mxu0 %v5821_v1  ;;  %v5826_v4 = vld [vmem:[%s6811_s28 + $0x8] ss:$16 sps:$4 sm:$0xff]   ;;  %4211 = vmatprep.subr.bf16.mxu1 %v5823_v2  ;;  %v5827_v5 = vld [vmem:[%s6811_s28 + $0x24] ss:$16 sps:$4 sm:$0xff]   ;;  %v5829_v6 = vld [vmem:[%s6811_s28 + $0x2c] ss:$16 sps:$4 sm:$0xff]  }
  0x18   : > { %3843 = vmatpush1.bf16.msra.mxu0 %v5825_v3  ;;  %4212 = vmatpush1.bf16.msra.mxu1 %v5826_v4  ;;  %v5831_v7 = vld [vmem:[%s6811_s28 + $0x20] ss:$16 sps:$4 sm:$0xff]   ;;  %v5832_v8 = vld [vmem:[%s6811_s28 + $0x28] ss:$16 sps:$4 sm:$0xff]   ;;  %v5833_v9 = vld [vmem:[%s6811_s28 + $0x44] ss:$16 sps:$4 sm:$0xff]  }
  0x19   : > { %3844 = vmatprep.subr.bf16.mxu0 %v5827_v5  ;;  %4213 = vmatprep.subr.bf16.mxu1 %v5829_v6  ;;  %v5835_v10 = vld [vmem:[%s6811_s28 + $0x4c] ss:$16 sps:$4 sm:$0xff]   ;;  %v5837_v11 = vld [vmem:[%s6811_s28 + $0x40] ss:$16 sps:$4 sm:$0xff]   ;;  %v5838_v12 = vld [vmem:[%s6811_s28 + $0x48] ss:$16 sps:$4 sm:$0xff]  }
  0x1a   : > { %v5839_v13 = vld [vmem:[%s6811_s28 + $0x64] ss:$16 sps:$4 sm:$0xff]   ;;  %v5841_v14 = vld [vmem:[%s6811_s28 + $0x6c] ss:$16 sps:$4 sm:$0xff]   ;;  %v5843_v15 = vld [vmem:[%s6811_s28 + $0x60] ss:$16 sps:$4 sm:$0xff]  }
  0x1b   : > { %v5844_v16 = vld [vmem:[%s6811_s28 + $0x68] ss:$16 sps:$4 sm:$0xff]   ;;  %v5845_v17 = vld [vmem:[%s6811_s28 + $0x84] ss:$16 sps:$4 sm:$0xff]   ;;  %v5847_v18 = vld [vmem:[%s6811_s28 + $0x8c] ss:$16 sps:$4 sm:$0xff]  }
  0x1c   : > { %3845 = vmatpush1.bf16.msra.mxu0 %v5831_v7  ;;  %4214 = vmatpush1.bf16.msra.mxu1 %v5832_v8  ;;  %v5849_v19 = vld [vmem:[%s6811_s28 + $0x80] ss:$16 sps:$4 sm:$0xff]   ;;  %v5850_v20 = vld [vmem:[%s6811_s28 + $0x88] ss:$16 sps:$4 sm:$0xff]   ;;  %v5851_v21 = vld [vmem:[%s6811_s28 + $0xa4] ss:$16 sps:$4 sm:$0xff]  }
  0x1d   : > { %3846 = vmatprep.subr.bf16.mxu0 %v5833_v9  ;;  %4215 = vmatprep.subr.bf16.mxu1 %v5835_v10  ;;  %v5853_v22 = vld [vmem:[%s6811_s28 + $0xac] ss:$16 sps:$4 sm:$0xff]   ;;  %v5855_v23 = vld [vmem:[%s6811_s28 + $0xa0] ss:$16 sps:$4 sm:$0xff]   ;;  %v5856_v24 = vld [vmem:[%s6811_s28 + $0xa8] ss:$16 sps:$4 sm:$0xff]  }
  0x1e   : > { %v5857_v25 = vld [vmem:[%s6811_s28 + $0xc4] ss:$16 sps:$4 sm:$0xff]   ;;  %v5859_v26 = vld [vmem:[%s6811_s28 + $0xcc] ss:$16 sps:$4 sm:$0xff]   ;;  %v5861_v27 = vld [vmem:[%s6811_s28 + $0xc0] ss:$16 sps:$4 sm:$0xff]  }
  0x1f   : > { %v5862_v28 = vld [vmem:[%s6811_s28 + $0xc8] ss:$16 sps:$4 sm:$0xff]   ;;  %v5863_v29 = vld [vmem:[%s6811_s28 + $0xe4] ss:$16 sps:$4 sm:$0xff]   ;;  %v5865_v30 = vld [vmem:[%s6811_s28 + $0xec] ss:$16 sps:$4 sm:$0xff]  }
  0x20   : > { %3847 = vmatpush1.bf16.msra.mxu0 %v5837_v11  ;;  %4216 = vmatpush1.bf16.msra.mxu1 %v5838_v12  ;;  %v5867_v31 = vld [vmem:[%s6811_s28 + $0xe0] ss:$16 sps:$4 sm:$0xff]   ;;  %v5868_v32 = vld [vmem:[%s6811_s28 + $0xe8] ss:$16 sps:$4 sm:$0xff]   ;;  %v5869_v33 = vld [vmem:[%s6811_s28 + $0x104] ss:$16 sps:$4 sm:$0xff]  }
  0x21   : > { %3848 = vmatprep.subr.bf16.mxu0 %v5839_v13  ;;  %4217 = vmatprep.subr.bf16.mxu1 %v5841_v14  ;;  %v5871_v34 = vld [vmem:[%s6811_s28 + $0x10c] ss:$16 sps:$4 sm:$0xff]   ;;  %v5873_v35 = vld [vmem:[%s6811_s28 + $0x100] ss:$16 sps:$4 sm:$0xff]   ;;  %v5874_v36 = vld [vmem:[%s6811_s28 + $0x108] ss:$16 sps:$4 sm:$0xff]  }
  0x22   : > { %v6758_v37 = vmov 1966171168   ;;  %v5875_v40 = vld [vmem:[%s6811_s28 + $0x124] ss:$16 sps:$4 sm:$0xff]   ;;  %v5877_v41 = vld [vmem:[%s6811_s28 + $0x12c] ss:$16 sps:$4 sm:$0xff]  }
  0x23   : > { %v826_v38 = vunpack.c.l.s4 %v6758_v37  ;;  %v5879_v42 = vld [vmem:[%s6811_s28 + $0x120] ss:$16 sps:$4 sm:$0xff]   ;;  %v6853_v44 = vshrl.u32 %v828_v39, 7  ;;  %v5880_v45 = vld [vmem:[%s6811_s28 + $0x128] ss:$16 sps:$4 sm:$0xff]   ;;  %p5656_p6 = scmp.ne.s32.totalorder %s6797_s19, 3 }
  0x24   : > { %3849 = vmatpush1.bf16.msra.mxu0 %v5843_v15  ;;  %4218 = vmatpush1.bf16.msra.mxu1 %v5844_v16  ;;  %v5881_v46 = vld [vmem:[%s6811_s28 + $0x144] ss:$16 sps:$4 sm:$0xff]   ;;  %v5883_v47 = vld [vmem:[%s6811_s28 + $0x14c] ss:$16 sps:$4 sm:$0xff]   ;;  %v5885_v48 = vld [vmem:[%s6811_s28 + $0x140] ss:$16 sps:$4 sm:$0xff]  }
  0x25   : > { %3850 = vmatprep.subr.bf16.mxu0 %v5845_v17  ;;  %4219 = vmatprep.subr.bf16.mxu1 %v5847_v18  ;;  %v827_v43 = vunpack.c.0.s8 %v826_v38  ;;  %v5886_v49 = vld [vmem:[%s6811_s28 + $0x148] ss:$16 sps:$4 sm:$0xff]   ;;  %v5887_v51 = vld [vmem:[%s6811_s28 + $0x164] ss:$16 sps:$4 sm:$0xff]   ;;  %v5889_v52 = vld [vmem:[%s6811_s28 + $0x16c] ss:$16 sps:$4 sm:$0xff]  }
  0x26   : > { %v6866_v53 = vld [vmem:[%s6806_s24] sm:$0xff]  ;;  %v5892_v56 = vld [vmem:[%s6811_s28 + $0x168] ss:$16 sps:$4 sm:$0xff]   ;;  %v5895_v58 = vld [vmem:[%s6811_s28 + $0x18c] ss:$16 sps:$4 sm:$0xff]  }
  0x27   : > { %v6861_v50 = vsub.s32 %v827_v43, %v6853_v44  ;;  %v5891_v54 = vld [vmem:[%s6811_s28 + $0x160] ss:$16 sps:$4 sm:$0xff]   ;;  %v5893_v57 = vld [vmem:[%s6811_s28 + $0x184] ss:$16 sps:$4 sm:$0xff]   ;;  %v5898_v62 = vld [vmem:[%s6811_s28 + $0x188] ss:$16 sps:$4 sm:$0xff]  }
  0x28   : > { %3851 = vmatpush1.bf16.msra.mxu0 %v5849_v19  ;;  %4220 = vmatpush1.bf16.msra.mxu1 %v5850_v20  ;;  %v5897_v60 = vld [vmem:[%s6811_s28 + $0x180] ss:$16 sps:$4 sm:$0xff]   ;;  %v5899_v63 = vld [vmem:[%s6811_s28 + $0x1a4] ss:$16 sps:$4 sm:$0xff]   ;;  %v5901_v0 = vld [vmem:[%s6811_s28 + $0x1ac] ss:$16 sps:$4 sm:$0xff]  }
  0x29   : > { %3852 = vmatprep.subr.bf16.mxu0 %v5851_v21  ;;  %4221 = vmatprep.subr.bf16.mxu1 %v5853_v22  ;;  %v831_v55 = vrot.slane %v6866_v53, %v6861_v50  ;;  %v5903_v1 = vld [vmem:[%s6811_s28 + $0x1a0] ss:$16 sps:$4 sm:$0xff]   ;;  %v5904_v2 = vld [vmem:[%s6811_s28 + $0x1a8] ss:$16 sps:$4 sm:$0xff]   ;;  %v5905_v3 = vld [vmem:[%s6811_s28 + $0x1c4] ss:$16 sps:$4 sm:$0xff]  }
  0x2a   : > { %v5907_v4 = vld [vmem:[%s6811_s28 + $0x1cc] ss:$16 sps:$4 sm:$0xff]   ;;  %v5909_v5 = vld [vmem:[%s6811_s28 + $0x1c0] ss:$16 sps:$4 sm:$0xff]   ;;  %v5910_v6 = vld [vmem:[%s6811_s28 + $0x1c8] ss:$16 sps:$4 sm:$0xff]  }
  0x2b   : > { %v839_v59 = vcombine.high %v831_v55, %v831_v55  ;;  %v5911_v7 = vld [vmem:[%s6811_s28 + $0x1e4] ss:$16 sps:$4 sm:$0xff]   ;;  %v5913_v8 = vld [vmem:[%s6811_s28 + $0x1ec] ss:$16 sps:$4 sm:$0xff]   ;;  %v5915_v9 = vld [vmem:[%s6811_s28 + $0x1e0] ss:$16 sps:$4 sm:$0xff]   ;;  %v6893_v14 = vrot.slane %v831_v55, %v6861_v50 }
  0x2c   : > { %3853 = vmatpush1.bf16.msra.mxu0 %v5855_v23  ;;  %4222 = vmatpush1.bf16.msra.mxu1 %v5856_v24  ;;  %v5916_v10 = vld [vmem:[%s6811_s28 + $0x1e8] ss:$16 sps:$4 sm:$0xff]   ;;  %v5919_v11 = vld [vmem:[%s6811_s28 + $0x204] ss:$16 sps:$4 sm:$0xff]   ;;  %v5922_v12 = vld [vmem:[%s6811_s28 + $0x20c] ss:$16 sps:$4 sm:$0xff]  }
  0x2d   : > { %3854 = vmatprep.subr.bf16.mxu0 %v5857_v25  ;;  %4223 = vmatprep.subr.bf16.mxu1 %v5859_v26  ;;  %v861_v61 = vrot.slane %v839_v59, %v6861_v50  ;;  %v5917_v13 = vld [vmem:[%s6811_s28 + $0x200] ss:$16 sps:$4 sm:$0xff]   ;;  %v5920_v15 = vld [vmem:[%s6811_s28 + $0x208] ss:$16 sps:$4 sm:$0xff]   ;;  %v5925_v16 = vld [vmem:[%s6811_s28 + $0x224] ss:$16 sps:$4 sm:$0xff]  }
  0x2e   : > { %v5928_v17 = vld [vmem:[%s6811_s28 + $0x22c] ss:$16 sps:$4 sm:$0xff]   ;;  %v5923_v19 = vld [vmem:[%s6811_s28 + $0x220] ss:$16 sps:$4 sm:$0xff]   ;;  %v5926_v20 = vld [vmem:[%s6811_s28 + $0x228] ss:$16 sps:$4 sm:$0xff]  }
  0x2f   : > { %3874 = vmatprep.mubr.bf16.mxu0 %v861_v61  ;;  %4243 = vmatprep.mubr.bf16.mxu1 %v861_v61  ;;  %v871_v18 = vcombine.high %v861_v61, %v861_v61  ;;  %v5931_v21 = vld [vmem:[%s6811_s28 + $0x244] ss:$16 sps:$4 sm:$0xff]   ;;  %v5934_v22 = vld [vmem:[%s6811_s28 + $0x24c] ss:$16 sps:$4 sm:$0xff]   ;;  %v5929_v23 = vld [vmem:[%s6811_s28 + $0x240] ss:$16 sps:$4 sm:$0xff]  }
  0x30   : > { %3855 = vmatpush1.bf16.msra.mxu0 %v5861_v27  ;;  %4224 = vmatpush1.bf16.msra.mxu1 %v5862_v28  ;;  %v5932_v24 = vld [vmem:[%s6811_s28 + $0x248] ss:$16 sps:$4 sm:$0xff]   ;;  %v5937_v25 = vld [vmem:[%s6811_s28 + $0x264] ss:$16 sps:$4 sm:$0xff]   ;;  %v5940_v26 = vld [vmem:[%s6811_s28 + $0x26c] ss:$16 sps:$4 sm:$0xff]  }
  0x31   : > { %3856 = vmatprep.subr.bf16.mxu0 %v5863_v29  ;;  %4225 = vmatprep.subr.bf16.mxu1 %v5865_v30  ;;  %v5935_v27 = vld [vmem:[%s6811_s28 + $0x260] ss:$16 sps:$4 sm:$0xff]   ;;  %v5938_v28 = vld [vmem:[%s6811_s28 + $0x268] ss:$16 sps:$4 sm:$0xff]   ;;  %v5943_v29 = vld [vmem:[%s6811_s28 + $0x284] ss:$16 sps:$4 sm:$0xff]  }
  0x32   : > { %v5946_v30 = vld [vmem:[%s6811_s28 + $0x28c] ss:$16 sps:$4 sm:$0xff]   ;;  %v5955_v37 = vld [vmem:[%s6811_s28 + $0x2c4] ss:$16 sps:$4 sm:$0xff]   ;;  %v5953_v39 = vld [vmem:[%s6811_s28 + $0x2c0] ss:$16 sps:$4 sm:$0xff]  }
  0x33   : > { %v5958_v38 = vld [vmem:[%s6811_s28 + $0x2cc] ss:$16 sps:$4 sm:$0xff]   ;;  %v5959_v43 = vld [vmem:[%s6811_s28 + $0x2e0] ss:$16 sps:$4 sm:$0xff]   ;;  %v5974_v55 = vld [vmem:[%s6811_s28 + $0x328] ss:$16 sps:$4 sm:$0xff]  }
  0x34   : > { %3857 = vmatpush1.bf16.msra.mxu0 %v5867_v31  ;;  %4226 = vmatpush1.bf16.msra.mxu1 %v5868_v32  ;;  %v5941_v31 = vld [vmem:[%s6811_s28 + $0x280] ss:$16 sps:$4 sm:$0xff]   ;;  %v5944_v32 = vld [vmem:[%s6811_s28 + $0x288] ss:$16 sps:$4 sm:$0xff]   ;;  %v5988_v61 = vld [vmem:[%s6811_s28 + $0x36c] ss:$16 sps:$4 sm:$0xff]  }
  0x35   : > { %3858 = vmatprep.subr.bf16.mxu0 %v5869_v33  ;;  %4227 = vmatprep.subr.bf16.mxu1 %v5871_v34  ;;  %v5949_v33 = vld [vmem:[%s6811_s28 + $0x2a4] ss:$16 sps:$4 sm:$0xff]   ;;  %v5952_v34 = vld [vmem:[%s6811_s28 + $0x2ac] ss:$16 sps:$4 sm:$0xff]   ;;  %v5980_v59 = vld [vmem:[%s6811_s28 + $0x348] ss:$16 sps:$4 sm:$0xff]  }
  0x38   : > { %3859 = vmatpush1.bf16.msra.mxu0 %v5873_v35  ;;  %4228 = vmatpush1.bf16.msra.mxu1 %v5874_v36  ;;  %v5947_v35 = vld [vmem:[%s6811_s28 + $0x2a0] ss:$16 sps:$4 sm:$0xff]   ;;  %v5950_v36 = vld [vmem:[%s6811_s28 + $0x2a8] ss:$16 sps:$4 sm:$0xff]  }
  0x39   : > { %3860 = vmatprep.subr.bf16.mxu0 %v5875_v40  ;;  %4229 = vmatprep.subr.bf16.mxu1 %v5877_v41  ;;  %v5956_v40 = vld [vmem:[%s6811_s28 + $0x2c8] ss:$16 sps:$4 sm:$0xff]   ;;  %v5961_v41 = vld [vmem:[%s6811_s28 + $0x2e4] ss:$16 sps:$4 sm:$0xff]  }
  0x3c   : > { %3861 = vmatpush1.bf16.msra.mxu0 %v5879_v42  ;;  %4230 = vmatpush1.bf16.msra.mxu1 %v5880_v45  ;;  %v5964_v42 = vld [vmem:[%s6811_s28 + $0x2ec] ss:$16 sps:$4 sm:$0xff]   ;;  %v5962_v45 = vld [vmem:[%s6811_s28 + $0x2e8] ss:$16 sps:$4 sm:$0xff]  }
  0x3d   : > { %3862 = vmatprep.subr.bf16.mxu0 %v5881_v46  ;;  %4231 = vmatprep.subr.bf16.mxu1 %v5883_v47  ;;  %v5967_v46 = vld [vmem:[%s6811_s28 + $0x304] ss:$16 sps:$4 sm:$0xff]   ;;  %v5970_v47 = vld [vmem:[%s6811_s28 + $0x30c] ss:$16 sps:$4 sm:$0xff]  }
  0x40   : > { %3863 = vmatpush1.bf16.msra.mxu0 %v5885_v48  ;;  %4232 = vmatpush1.bf16.msra.mxu1 %v5886_v49  ;;  %v5965_v48 = vld [vmem:[%s6811_s28 + $0x300] ss:$16 sps:$4 sm:$0xff]   ;;  %v5968_v49 = vld [vmem:[%s6811_s28 + $0x308] ss:$16 sps:$4 sm:$0xff]  }
  0x41   : > { %3864 = vmatprep.subr.bf16.mxu0 %v5887_v51  ;;  %4233 = vmatprep.subr.bf16.mxu1 %v5889_v52  ;;  %v5973_v51 = vld [vmem:[%s6811_s28 + $0x324] ss:$16 sps:$4 sm:$0xff]   ;;  %v5976_v52 = vld [vmem:[%s6811_s28 + $0x32c] ss:$16 sps:$4 sm:$0xff]  }
  0x44   : > { %3865 = vmatpush1.bf16.msra.mxu0 %v5891_v54  ;;  %4234 = vmatpush1.bf16.msra.mxu1 %v5892_v56  ;;  %v5971_v54 = vld [vmem:[%s6811_s28 + $0x320] ss:$16 sps:$4 sm:$0xff]   ;;  %v5979_v56 = vld [vmem:[%s6811_s28 + $0x344] ss:$16 sps:$4 sm:$0xff]  }
  0x45   : > { %3866 = vmatprep.subr.bf16.mxu0 %v5893_v57  ;;  %4235 = vmatprep.subr.bf16.mxu1 %v5895_v58  ;;  %v5982_v57 = vld [vmem:[%s6811_s28 + $0x34c] ss:$16 sps:$4 sm:$0xff]   ;;  %v5977_v58 = vld [vmem:[%s6811_s28 + $0x340] ss:$16 sps:$4 sm:$0xff]  }
  0x48   : > { %3867 = vmatpush1.bf16.msra.mxu0 %v5897_v60  ;;  %4236 = vmatpush1.bf16.msra.mxu1 %v5898_v62  ;;  %v5985_v60 = vld [vmem:[%s6811_s28 + $0x364] ss:$16 sps:$4 sm:$0xff]   ;;  %v5983_v62 = vld [vmem:[%s6811_s28 + $0x360] ss:$16 sps:$4 sm:$0xff]  }
  0x49   : > { %3868 = vmatprep.subr.bf16.mxu0 %v5899_v63  ;;  %4237 = vmatprep.subr.bf16.mxu1 %v5901_v0  ;;  %v5986_v63 = vld [vmem:[%s6811_s28 + $0x368] ss:$16 sps:$4 sm:$0xff]   ;;  %v5991_v0 = vld [vmem:[%s6811_s28 + $0x384] ss:$16 sps:$4 sm:$0xff]  }
  0x4c   : > { %3869 = vmatpush1.bf16.msra.mxu0 %v5903_v1  ;;  %4238 = vmatpush1.bf16.msra.mxu1 %v5904_v2  ;;  %v5994_v1 = vld [vmem:[%s6811_s28 + $0x38c] ss:$16 sps:$4 sm:$0xff]   ;;  %v5989_v2 = vld [vmem:[%s6811_s28 + $0x380] ss:$16 sps:$4 sm:$0xff]  }
  0x4d   : > { %3870 = vmatprep.subr.bf16.mxu0 %v5905_v3  ;;  %4239 = vmatprep.subr.bf16.mxu1 %v5907_v4  ;;  %v5992_v3 = vld [vmem:[%s6811_s28 + $0x388] ss:$16 sps:$4 sm:$0xff]   ;;  %v5997_v4 = vld [vmem:[%s6811_s28 + $0x3a4] ss:$16 sps:$4 sm:$0xff]  }
  0x50   : > { %3871 = vmatpush1.bf16.msra.mxu0 %v5909_v5  ;;  %4240 = vmatpush1.bf16.msra.mxu1 %v5910_v6  ;;  %v6000_v5 = vld [vmem:[%s6811_s28 + $0x3ac] ss:$16 sps:$4 sm:$0xff]   ;;  %v5995_v6 = vld [vmem:[%s6811_s28 + $0x3a0] ss:$16 sps:$4 sm:$0xff]  }
  0x51   : > { %3872 = vmatprep.subr.bf16.mxu0 %v5911_v7  ;;  %4241 = vmatprep.subr.bf16.mxu1 %v5913_v8  ;;  %v5998_v7 = vld [vmem:[%s6811_s28 + $0x3a8] ss:$16 sps:$4 sm:$0xff]   ;;  %v6003_v8 = vld [vmem:[%s6811_s28 + $0x3c4] ss:$16 sps:$4 sm:$0xff]  }
  0x54   : > { %3873 = vmatpush1.bf16.msra.mxu0 %v5915_v9  ;;  %4242 = vmatpush1.bf16.msra.mxu1 %v5916_v10  ;;  %v6006_v9 = vld [vmem:[%s6811_s28 + $0x3cc] ss:$16 sps:$4 sm:$0xff]   ;;  %v824_v10 = vcombine.high %v6866_v53, %v6866_v53  ;;  %v6010_v53 = vld [vmem:[%s6811_s28 + $0x3e8] ss:$16 sps:$4 sm:$0xff]  }
  0x55   : > { %3883 = vmatprep.subr.bf16.mxu0 %v5919_v11  ;;  %4252 = vmatprep.subr.bf16.mxu1 %v5922_v12  ;;  %v6001_v11 = vld [vmem:[%s6811_s28 + $0x3c0] ss:$16 sps:$4 sm:$0xff]   ;;  %v6004_v12 = vld [vmem:[%s6811_s28 + $0x3c8] ss:$16 sps:$4 sm:$0xff]  }
  0x57   : > { %3875 = vmatmul.mubr.bf16.vlgmr.msra.gmra.mrb[0].mxu0 %v6893_v14  ;;  %4244 = vmatmul.mubr.bf16.vlgmr.msra.gmra.mrb[0].mxu1 %v6893_v14 }
  0x58   : > { %3884 = vmatpush1.bf16.msra.mxu0 %v5917_v13  ;;  %4253 = vmatpush1.bf16.msra.mxu1 %v5920_v15  ;;  %v6009_v13 = vld [vmem:[%s6811_s28 + $0x3e4] ss:$16 sps:$4 sm:$0xff]   ;;  %v6012_v15 = vld [vmem:[%s6811_s28 + $0x3ec] ss:$16 sps:$4 sm:$0xff]  }
  0x59   : > { %3885 = vmatprep.subr.bf16.mxu0 %v5925_v16  ;;  %4254 = vmatprep.subr.bf16.mxu1 %v5928_v17  ;;  %v6959_v16 = vrot.slane %v824_v10, %v6861_v50  ;;  %v6007_v17 = vld [vmem:[%s6811_s28 + $0x3e0] ss:$16 sps:$4 sm:$0xff]   ;;  %v6088_v10 = vld [vmem:[%s6811_s28 + $0x588] ss:$16 sps:$4 sm:$0xff]  }
  0x5a   : > { %3915 = vmatprep.mubr.bf16.mxu0 %v871_v18  ;;  %4284 = vmatprep.mubr.bf16.mxu1 %v871_v18  ;;  %v6015_v18 = vld [vmem:[%s6811_s28 + $0x404] ss:$16 sps:$4 sm:$0xff]  }
  0x5c   : > { %3886 = vmatpush1.bf16.msra.mxu0 %v5923_v19  ;;  %4255 = vmatpush1.bf16.msra.mxu1 %v5926_v20  ;;  %v6018_v19 = vld [vmem:[%s6811_s28 + $0x40c] ss:$16 sps:$4 sm:$0xff]   ;;  %v840_v20 = vcombine.high %v6959_v16, %v6959_v16 }
  0x5d   : > { %3887 = vmatprep.subr.bf16.mxu0 %v5931_v21  ;;  %4256 = vmatprep.subr.bf16.mxu1 %v5934_v22  ;;  %v6013_v21 = vld [vmem:[%s6811_s28 + $0x400] ss:$16 sps:$4 sm:$0xff]   ;;  %v869_v22 = vcombine.high %v6893_v14, %v6893_v14  ;;  %v6022_v14 = vld [vmem:[%s6811_s28 + $0x428] ss:$16 sps:$4 sm:$0xff]  }
  0x60   : > { %3888 = vmatpush1.bf16.msra.mxu0 %v5929_v23  ;;  %4257 = vmatpush1.bf16.msra.mxu1 %v5932_v24  ;;  %v6016_v23 = vld [vmem:[%s6811_s28 + $0x408] ss:$16 sps:$4 sm:$0xff]   ;;  %v6021_v24 = vld [vmem:[%s6811_s28 + $0x424] ss:$16 sps:$4 sm:$0xff]  }
  0x61   : > { %3889 = vmatprep.subr.bf16.mxu0 %v5937_v25  ;;  %4258 = vmatprep.subr.bf16.mxu1 %v5940_v26  ;;  %v6024_v25 = vld [vmem:[%s6811_s28 + $0x42c] ss:$16 sps:$4 sm:$0xff]   ;;  %v6974_v26 = vrot.slane %v840_v20, %v6861_v50  ;;  %v6105_v20 = vld [vmem:[%s6811_s28 + $0x5e4] ss:$16 sps:$4 sm:$0xff]  }
  0x64   : > { %3890 = vmatpush1.bf16.msra.mxu0 %v5935_v27  ;;  %4259 = vmatpush1.bf16.msra.mxu1 %v5938_v28  ;;  %v6019_v27 = vld [vmem:[%s6811_s28 + $0x420] ss:$16 sps:$4 sm:$0xff]   ;;  %v6027_v28 = vld [vmem:[%s6811_s28 + $0x444] ss:$16 sps:$4 sm:$0xff]  }
  0x65   : > { %3891 = vmatprep.subr.bf16.mxu0 %v5943_v29  ;;  %4260 = vmatprep.subr.bf16.mxu1 %v5946_v30  ;;  %v6030_v29 = vld [vmem:[%s6811_s28 + $0x44c] ss:$16 sps:$4 sm:$0xff]   ;;  %v6025_v30 = vld [vmem:[%s6811_s28 + $0x440] ss:$16 sps:$4 sm:$0xff]  }
  0x68   : > { %3892 = vmatpush1.bf16.msra.mxu0 %v5941_v31  ;;  %4261 = vmatpush1.bf16.msra.mxu1 %v5944_v32  ;;  %v6028_v31 = vld [vmem:[%s6811_s28 + $0x448] ss:$16 sps:$4 sm:$0xff]   ;;  %v6033_v32 = vld [vmem:[%s6811_s28 + $0x464] ss:$16 sps:$4 sm:$0xff]  }
  0x69   : > { %3893 = vmatprep.subr.bf16.mxu0 %v5949_v33  ;;  %4262 = vmatprep.subr.bf16.mxu1 %v5952_v34  ;;  %v6036_v33 = vld [vmem:[%s6811_s28 + $0x46c] ss:$16 sps:$4 sm:$0xff]   ;;  %v6031_v34 = vld [vmem:[%s6811_s28 + $0x460] ss:$16 sps:$4 sm:$0xff]  }
  0x6c   : > { %3894 = vmatpush1.bf16.msra.mxu0 %v5947_v35  ;;  %4263 = vmatpush1.bf16.msra.mxu1 %v5950_v36  ;;  %v6034_v35 = vld [vmem:[%s6811_s28 + $0x468] ss:$16 sps:$4 sm:$0xff]   ;;  %v6039_v36 = vld [vmem:[%s6811_s28 + $0x484] ss:$16 sps:$4 sm:$0xff]  }
  0x6d   : > { %3895 = vmatprep.subr.bf16.mxu0 %v5955_v37  ;;  %4264 = vmatprep.subr.bf16.mxu1 %v5958_v38  ;;  %v6042_v37 = vld [vmem:[%s6811_s28 + $0x48c] ss:$16 sps:$4 sm:$0xff]   ;;  %v6037_v38 = vld [vmem:[%s6811_s28 + $0x480] ss:$16 sps:$4 sm:$0xff]  }
  0x70   : > { %3896 = vmatpush1.bf16.msra.mxu0 %v5953_v39  ;;  %4265 = vmatpush1.bf16.msra.mxu1 %v5956_v40  ;;  %v6040_v39 = vld [vmem:[%s6811_s28 + $0x488] ss:$16 sps:$4 sm:$0xff]   ;;  %v6045_v40 = vld [vmem:[%s6811_s28 + $0x4a4] ss:$16 sps:$4 sm:$0xff]  }
  0x71   : > { %3897 = vmatprep.subr.bf16.mxu0 %v5961_v41  ;;  %4266 = vmatprep.subr.bf16.mxu1 %v5964_v42  ;;  %v6048_v41 = vld [vmem:[%s6811_s28 + $0x4ac] ss:$16 sps:$4 sm:$0xff]   ;;  %v6043_v42 = vld [vmem:[%s6811_s28 + $0x4a0] ss:$16 sps:$4 sm:$0xff]  }
  0x74   : > { %3898 = vmatpush1.bf16.msra.mxu0 %v5959_v43  ;;  %4267 = vmatpush1.bf16.msra.mxu1 %v5962_v45  ;;  %v6046_v43 = vld [vmem:[%s6811_s28 + $0x4a8] ss:$16 sps:$4 sm:$0xff]   ;;  %v6051_v45 = vld [vmem:[%s6811_s28 + $0x4c4] ss:$16 sps:$4 sm:$0xff]  }
  0x75   : > { %3899 = vmatprep.subr.bf16.mxu0 %v5967_v46  ;;  %4268 = vmatprep.subr.bf16.mxu1 %v5970_v47  ;;  %v6054_v46 = vld [vmem:[%s6811_s28 + $0x4cc] ss:$16 sps:$4 sm:$0xff]   ;;  %v6049_v47 = vld [vmem:[%s6811_s28 + $0x4c0] ss:$16 sps:$4 sm:$0xff]  }
  0x78   : > { %3900 = vmatpush1.bf16.msra.mxu0 %v5965_v48  ;;  %4269 = vmatpush1.bf16.msra.mxu1 %v5968_v49  ;;  %v6052_v48 = vld [vmem:[%s6811_s28 + $0x4c8] ss:$16 sps:$4 sm:$0xff]   ;;  %v6057_v49 = vld [vmem:[%s6811_s28 + $0x4e4] ss:$16 sps:$4 sm:$0xff]  }
  0x79   : > { %3901 = vmatprep.subr.bf16.mxu0 %v5973_v51  ;;  %4270 = vmatprep.subr.bf16.mxu1 %v5976_v52  ;;  %v6060_v51 = vld [vmem:[%s6811_s28 + $0x4ec] ss:$16 sps:$4 sm:$0xff]   ;;  %v6055_v52 = vld [vmem:[%s6811_s28 + $0x4e0] ss:$16 sps:$4 sm:$0xff]  }
  0x7c   : > { %3902 = vmatpush1.bf16.msra.mxu0 %v5971_v54  ;;  %4271 = vmatpush1.bf16.msra.mxu1 %v5974_v55  ;;  %v6058_v54 = vld [vmem:[%s6811_s28 + $0x4e8] ss:$16 sps:$4 sm:$0xff]   ;;  %v6063_v55 = vld [vmem:[%s6811_s28 + $0x504] ss:$16 sps:$4 sm:$0xff]  }
  0x7d   : > { %3903 = vmatprep.subr.bf16.mxu0 %v5979_v56  ;;  %4272 = vmatprep.subr.bf16.mxu1 %v5982_v57  ;;  %v6066_v56 = vld [vmem:[%s6811_s28 + $0x50c] ss:$16 sps:$4 sm:$0xff]   ;;  %v6061_v57 = vld [vmem:[%s6811_s28 + $0x500] ss:$16 sps:$4 sm:$0xff]  }
  0x80   : > { %3904 = vmatpush1.bf16.msra.mxu0 %v5977_v58  ;;  %4273 = vmatpush1.bf16.msra.mxu1 %v5980_v59  ;;  %v6064_v58 = vld [vmem:[%s6811_s28 + $0x508] ss:$16 sps:$4 sm:$0xff]   ;;  %v6069_v59 = vld [vmem:[%s6811_s28 + $0x524] ss:$16 sps:$4 sm:$0xff]  }
  0x81   : > { %3905 = vmatprep.subr.bf16.mxu0 %v5985_v60  ;;  %4274 = vmatprep.subr.bf16.mxu1 %v5988_v61  ;;  %v6072_v60 = vld [vmem:[%s6811_s28 + $0x52c] ss:$16 sps:$4 sm:$0xff]   ;;  %v6067_v61 = vld [vmem:[%s6811_s28 + $0x520] ss:$16 sps:$4 sm:$0xff]  }
  0x84   : > { %3906 = vmatpush1.bf16.msra.mxu0 %v5983_v62  ;;  %4275 = vmatpush1.bf16.msra.mxu1 %v5986_v63  ;;  %v6070_v62 = vld [vmem:[%s6811_s28 + $0x528] ss:$16 sps:$4 sm:$0xff]   ;;  %v6075_v63 = vld [vmem:[%s6811_s28 + $0x544] ss:$16 sps:$4 sm:$0xff]  }
  0x85   : > { %3907 = vmatprep.subr.bf16.mxu0 %v5991_v0  ;;  %4276 = vmatprep.subr.bf16.mxu1 %v5994_v1  ;;  %v6078_v0 = vld [vmem:[%s6811_s28 + $0x54c] ss:$16 sps:$4 sm:$0xff]   ;;  %v6073_v1 = vld [vmem:[%s6811_s28 + $0x540] ss:$16 sps:$4 sm:$0xff]  }
  0x88   : > { %3908 = vmatpush1.bf16.msra.mxu0 %v5989_v2  ;;  %4277 = vmatpush1.bf16.msra.mxu1 %v5992_v3  ;;  %v6076_v2 = vld [vmem:[%s6811_s28 + $0x548] ss:$16 sps:$4 sm:$0xff]   ;;  %v6081_v3 = vld [vmem:[%s6811_s28 + $0x564] ss:$16 sps:$4 sm:$0xff]  }
  0x89   : > { %3909 = vmatprep.subr.bf16.mxu0 %v5997_v4  ;;  %4278 = vmatprep.subr.bf16.mxu1 %v6000_v5  ;;  %v6084_v4 = vld [vmem:[%s6811_s28 + $0x56c] ss:$16 sps:$4 sm:$0xff]   ;;  %v6079_v5 = vld [vmem:[%s6811_s28 + $0x560] ss:$16 sps:$4 sm:$0xff]  }
  0x8c   : > { %3910 = vmatpush1.bf16.msra.mxu0 %v5995_v6  ;;  %4279 = vmatpush1.bf16.msra.mxu1 %v5998_v7  ;;  %v6082_v6 = vld [vmem:[%s6811_s28 + $0x568] ss:$16 sps:$4 sm:$0xff]   ;;  %v6087_v7 = vld [vmem:[%s6811_s28 + $0x584] ss:$16 sps:$4 sm:$0xff]  }
  0x8d   : > { %3911 = vmatprep.subr.bf16.mxu0 %v6003_v8  ;;  %4280 = vmatprep.subr.bf16.mxu1 %v6006_v9  ;;  %v6090_v8 = vld [vmem:[%s6811_s28 + $0x58c] ss:$16 sps:$4 sm:$0xff]   ;;  %v6085_v9 = vld [vmem:[%s6811_s28 + $0x580] ss:$16 sps:$4 sm:$0xff]  }
  0x90   : > { %3912 = vmatpush1.bf16.msra.mxu0 %v6001_v11  ;;  %4281 = vmatpush1.bf16.msra.mxu1 %v6004_v12  ;;  %v6093_v11 = vld [vmem:[%s6811_s28 + $0x5a4] ss:$16 sps:$4 sm:$0xff]   ;;  %v6096_v12 = vld [vmem:[%s6811_s28 + $0x5ac] ss:$16 sps:$4 sm:$0xff]  }
  0x91   : > { %3913 = vmatprep.subr.bf16.mxu0 %v6009_v13  ;;  %4282 = vmatprep.subr.bf16.mxu1 %v6012_v15  ;;  %v6091_v13 = vld [vmem:[%s6811_s28 + $0x5a0] ss:$16 sps:$4 sm:$0xff]   ;;  %v6094_v15 = vld [vmem:[%s6811_s28 + $0x5a8] ss:$16 sps:$4 sm:$0xff]  }
  0x94   : > { %3914 = vmatpush1.bf16.msra.mxu0 %v6007_v17  ;;  %4283 = vmatpush1.bf16.msra.mxu1 %v6010_v53  ;;  %v6099_v17 = vld [vmem:[%s6811_s28 + $0x5c4] ss:$16 sps:$4 sm:$0xff]   ;;  %v6102_v53 = vld [vmem:[%s6811_s28 + $0x5cc] ss:$16 sps:$4 sm:$0xff]  }
  0x95   : > { %3924 = vmatprep.subr.bf16.mxu0 %v6015_v18  ;;  %4293 = vmatprep.subr.bf16.mxu1 %v6018_v19  ;;  %v6097_v18 = vld [vmem:[%s6811_s28 + $0x5c0] ss:$16 sps:$4 sm:$0xff]   ;;  %v6100_v19 = vld [vmem:[%s6811_s28 + $0x5c8] ss:$16 sps:$4 sm:$0xff]  }
  0x97   : > { %3916 = vmatmul.mubr.bf16.vlgmr.msra.gmra.mrb[0].mxu0 %v869_v22  ;;  %4285 = vmatmul.mubr.bf16.vlgmr.msra.gmra.mrb[0].mxu1 %v869_v22  ;;  %v6103_v22 = vld [vmem:[%s6811_s28 + $0x5e0] ss:$16 sps:$4 sm:$0xff]  }
  0x98   : > { %3925 = vmatpush1.bf16.msra.mxu0 %v6013_v21  ;;  %4294 = vmatpush1.bf16.msra.mxu1 %v6016_v23  ;;  %v6108_v21 = vld [vmem:[%s6811_s28 + $0x5ec] ss:$16 sps:$4 sm:$0xff]   ;;  %v6106_v23 = vld [vmem:[%s6811_s28 + $0x5e8] ss:$16 sps:$4 sm:$0xff]  }
  0x99   : > { %3926 = vmatprep.subr.bf16.mxu0 %v6021_v24  ;;  %4295 = vmatprep.subr.bf16.mxu1 %v6024_v25  ;;  %v6112_v24 = vld [vmem:[%s6811_s28 + $0x604] ss:$16 sps:$4 sm:$0xff]   ;;  %v6115_v25 = vld [vmem:[%s6811_s28 + $0x60c] ss:$16 sps:$4 sm:$0xff]  }
  0x9a   : > { %3956 = vmatprep.mubr.bf16.mxu0 %v6974_v26  ;;  %4325 = vmatprep.mubr.bf16.mxu1 %v6974_v26 }
  0x9c   : > { %3927 = vmatpush1.bf16.msra.mxu0 %v6019_v27  ;;  %4296 = vmatpush1.bf16.msra.mxu1 %v6022_v14  ;;  %v6110_v27 = vld [vmem:[%s6811_s28 + $0x600] ss:$16 sps:$4 sm:$0xff]   ;;  %v7041_v14 = vrot.slane %v6959_v16, %v6861_v50 }
  0x9d   : > { %3928 = vmatprep.subr.bf16.mxu0 %v6027_v28  ;;  %4297 = vmatprep.subr.bf16.mxu1 %v6030_v29  ;;  %v6113_v28 = vld [vmem:[%s6811_s28 + $0x608] ss:$16 sps:$4 sm:$0xff]   ;;  %v6118_v29 = vld [vmem:[%s6811_s28 + $0x624] ss:$16 sps:$4 sm:$0xff]   ;;  %v6116_v16 = vld [vmem:[%s6811_s28 + $0x620] ss:$16 sps:$4 sm:$0xff]  }
  0xa0   : > { %3929 = vmatpush1.bf16.msra.mxu0 %v6025_v30  ;;  %4298 = vmatpush1.bf16.msra.mxu1 %v6028_v31  ;;  %v6121_v30 = vld [vmem:[%s6811_s28 + $0x62c] ss:$16 sps:$4 sm:$0xff]   ;;  %v872_v31 = vcombine.high %v6974_v26, %v6974_v26  ;;  %v6122_v26 = vld [vmem:[%s6811_s28 + $0x640] ss:$16 sps:$4 sm:$0xff]  }
  0xa1   : > { %3930 = vmatprep.subr.bf16.mxu0 %v6033_v32  ;;  %4299 = vmatprep.subr.bf16.mxu1 %v6036_v33  ;;  %v6119_v32 = vld [vmem:[%s6811_s28 + $0x628] ss:$16 sps:$4 sm:$0xff]   ;;  %v6124_v33 = vld [vmem:[%s6811_s28 + $0x644] ss:$16 sps:$4 sm:$0xff]  }
  0xa4   : > { %3931 = vmatpush1.bf16.msra.mxu0 %v6031_v34  ;;  %4300 = vmatpush1.bf16.msra.mxu1 %v6034_v35  ;;  %v6127_v34 = vld [vmem:[%s6811_s28 + $0x64c] ss:$16 sps:$4 sm:$0xff]   ;;  %v6125_v35 = vld [vmem:[%s6811_s28 + $0x648] ss:$16 sps:$4 sm:$0xff]  }
  0xa5   : > { %3932 = vmatprep.subr.bf16.mxu0 %v6039_v36  ;;  %4301 = vmatprep.subr.bf16.mxu1 %v6042_v37  ;;  %v6130_v36 = vld [vmem:[%s6811_s28 + $0x664] ss:$16 sps:$4 sm:$0xff]   ;;  %v6133_v37 = vld [vmem:[%s6811_s28 + $0x66c] ss:$16 sps:$4 sm:$0xff]  }
  0xa8   : > { %3933 = vmatpush1.bf16.msra.mxu0 %v6037_v38  ;;  %4302 = vmatpush1.bf16.msra.mxu1 %v6040_v39  ;;  %v6128_v38 = vld [vmem:[%s6811_s28 + $0x660] ss:$16 sps:$4 sm:$0xff]   ;;  %v6131_v39 = vld [vmem:[%s6811_s28 + $0x668] ss:$16 sps:$4 sm:$0xff]  }
  0xa9   : > { %3934 = vmatprep.subr.bf16.mxu0 %v6045_v40  ;;  %4303 = vmatprep.subr.bf16.mxu1 %v6048_v41  ;;  %v6136_v40 = vld [vmem:[%s6811_s28 + $0x684] ss:$16 sps:$4 sm:$0xff]   ;;  %v6139_v41 = vld [vmem:[%s6811_s28 + $0x68c] ss:$16 sps:$4 sm:$0xff]  }
  0xac   : > { %3935 = vmatpush1.bf16.msra.mxu0 %v6043_v42  ;;  %4304 = vmatpush1.bf16.msra.mxu1 %v6046_v43  ;;  %v6134_v42 = vld [vmem:[%s6811_s28 + $0x680] ss:$16 sps:$4 sm:$0xff]   ;;  %v6137_v43 = vld [vmem:[%s6811_s28 + $0x688] ss:$16 sps:$4 sm:$0xff]  }
  0xad   : > { %3936 = vmatprep.subr.bf16.mxu0 %v6051_v45  ;;  %4305 = vmatprep.subr.bf16.mxu1 %v6054_v46  ;;  %v6142_v45 = vld [vmem:[%s6811_s28 + $0x6a4] ss:$16 sps:$4 sm:$0xff]   ;;  %v6145_v46 = vld [vmem:[%s6811_s28 + $0x6ac] ss:$16 sps:$4 sm:$0xff]  }
  0xb0   : > { %3937 = vmatpush1.bf16.msra.mxu0 %v6049_v47  ;;  %4306 = vmatpush1.bf16.msra.mxu1 %v6052_v48  ;;  %v6140_v47 = vld [vmem:[%s6811_s28 + $0x6a0] ss:$16 sps:$4 sm:$0xff]   ;;  %v6143_v48 = vld [vmem:[%s6811_s28 + $0x6a8] ss:$16 sps:$4 sm:$0xff]  }
  0xb1   : > { %3938 = vmatprep.subr.bf16.mxu0 %v6057_v49  ;;  %4307 = vmatprep.subr.bf16.mxu1 %v6060_v51  ;;  %v6148_v49 = vld [vmem:[%s6811_s28 + $0x6c4] ss:$16 sps:$4 sm:$0xff]   ;;  %v6151_v51 = vld [vmem:[%s6811_s28 + $0x6cc] ss:$16 sps:$4 sm:$0xff]  }
  0xb4   : > { %3939 = vmatpush1.bf16.msra.mxu0 %v6055_v52  ;;  %4308 = vmatpush1.bf16.msra.mxu1 %v6058_v54  ;;  %v6146_v52 = vld [vmem:[%s6811_s28 + $0x6c0] ss:$16 sps:$4 sm:$0xff]   ;;  %v6149_v54 = vld [vmem:[%s6811_s28 + $0x6c8] ss:$16 sps:$4 sm:$0xff]  }
  0xb5   : > { %3940 = vmatprep.subr.bf16.mxu0 %v6063_v55  ;;  %4309 = vmatprep.subr.bf16.mxu1 %v6066_v56  ;;  %v6154_v55 = vld [vmem:[%s6811_s28 + $0x6e4] ss:$16 sps:$4 sm:$0xff]   ;;  %v6157_v56 = vld [vmem:[%s6811_s28 + $0x6ec] ss:$16 sps:$4 sm:$0xff]  }
  0xb8   : > { %3941 = vmatpush1.bf16.msra.mxu0 %v6061_v57  ;;  %4310 = vmatpush1.bf16.msra.mxu1 %v6064_v58  ;;  %v6152_v57 = vld [vmem:[%s6811_s28 + $0x6e0] ss:$16 sps:$4 sm:$0xff]   ;;  %v6155_v58 = vld [vmem:[%s6811_s28 + $0x6e8] ss:$16 sps:$4 sm:$0xff]  }
  0xb9   : > { %3942 = vmatprep.subr.bf16.mxu0 %v6069_v59  ;;  %4311 = vmatprep.subr.bf16.mxu1 %v6072_v60  ;;  %v6160_v59 = vld [vmem:[%s6811_s28 + $0x704] ss:$16 sps:$4 sm:$0xff]   ;;  %v6163_v60 = vld [vmem:[%s6811_s28 + $0x70c] ss:$16 sps:$4 sm:$0xff]  }
  0xbc   : > { %3943 = vmatpush1.bf16.msra.mxu0 %v6067_v61  ;;  %4312 = vmatpush1.bf16.msra.mxu1 %v6070_v62  ;;  %v6158_v61 = vld [vmem:[%s6811_s28 + $0x700] ss:$16 sps:$4 sm:$0xff]   ;;  %v6161_v62 = vld [vmem:[%s6811_s28 + $0x708] ss:$16 sps:$4 sm:$0xff]  }
  0xbd   : > { %3944 = vmatprep.subr.bf16.mxu0 %v6075_v63  ;;  %4313 = vmatprep.subr.bf16.mxu1 %v6078_v0  ;;  %v6166_v63 = vld [vmem:[%s6811_s28 + $0x724] ss:$16 sps:$4 sm:$0xff]   ;;  %v6169_v0 = vld [vmem:[%s6811_s28 + $0x72c] ss:$16 sps:$4 sm:$0xff]  }
  0xc0   : > { %3945 = vmatpush1.bf16.msra.mxu0 %v6073_v1  ;;  %4314 = vmatpush1.bf16.msra.mxu1 %v6076_v2  ;;  %v6164_v1 = vld [vmem:[%s6811_s28 + $0x720] ss:$16 sps:$4 sm:$0xff]   ;;  %v6167_v2 = vld [vmem:[%s6811_s28 + $0x728] ss:$16 sps:$4 sm:$0xff]  }
  0xc1   : > { %3946 = vmatprep.subr.bf16.mxu0 %v6081_v3  ;;  %4315 = vmatprep.subr.bf16.mxu1 %v6084_v4  ;;  %v6172_v3 = vld [vmem:[%s6811_s28 + $0x744] ss:$16 sps:$4 sm:$0xff]   ;;  %v6175_v4 = vld [vmem:[%s6811_s28 + $0x74c] ss:$16 sps:$4 sm:$0xff]  }
  0xc4   : > { %3947 = vmatpush1.bf16.msra.mxu0 %v6079_v5  ;;  %4316 = vmatpush1.bf16.msra.mxu1 %v6082_v6  ;;  %v6170_v5 = vld [vmem:[%s6811_s28 + $0x740] ss:$16 sps:$4 sm:$0xff]   ;;  %v6173_v6 = vld [vmem:[%s6811_s28 + $0x748] ss:$16 sps:$4 sm:$0xff]  }
  0xc5   : > { %3948 = vmatprep.subr.bf16.mxu0 %v6087_v7  ;;  %4317 = vmatprep.subr.bf16.mxu1 %v6090_v8  ;;  %v6178_v7 = vld [vmem:[%s6811_s28 + $0x764] ss:$16 sps:$4 sm:$0xff]   ;;  %v6181_v8 = vld [vmem:[%s6811_s28 + $0x76c] ss:$16 sps:$4 sm:$0xff]  }
  0xc8   : > { %3949 = vmatpush1.bf16.msra.mxu0 %v6085_v9  ;;  %4318 = vmatpush1.bf16.msra.mxu1 %v6088_v10  ;;  %v6176_v9 = vld [vmem:[%s6811_s28 + $0x760] ss:$16 sps:$4 sm:$0xff]   ;;  %v6179_v10 = vld [vmem:[%s6811_s28 + $0x768] ss:$16 sps:$4 sm:$0xff]  }
  0xc9   : > { %3950 = vmatprep.subr.bf16.mxu0 %v6093_v11  ;;  %4319 = vmatprep.subr.bf16.mxu1 %v6096_v12  ;;  %v6184_v11 = vld [vmem:[%s6811_s28 + $0x784] ss:$16 sps:$4 sm:$0xff]   ;;  %v6187_v12 = vld [vmem:[%s6811_s28 + $0x78c] ss:$16 sps:$4 sm:$0xff]  }
  0xcc   : > { %3951 = vmatpush1.bf16.msra.mxu0 %v6091_v13  ;;  %4320 = vmatpush1.bf16.msra.mxu1 %v6094_v15  ;;  %v6182_v13 = vld [vmem:[%s6811_s28 + $0x780] ss:$16 sps:$4 sm:$0xff]   ;;  %v6185_v15 = vld [vmem:[%s6811_s28 + $0x788] ss:$16 sps:$4 sm:$0xff]  }
  0xcd   : > { %3952 = vmatprep.subr.bf16.mxu0 %v6099_v17  ;;  %4321 = vmatprep.subr.bf16.mxu1 %v6102_v53  ;;  %v6190_v17 = vld [vmem:[%s6811_s28 + $0x7a4] ss:$16 sps:$4 sm:$0xff]   ;;  %v6193_v53 = vld [vmem:[%s6811_s28 + $0x7ac] ss:$16 sps:$4 sm:$0xff]  }
  0xd0   : > { %3953 = vmatpush1.bf16.msra.mxu0 %v6097_v18  ;;  %4322 = vmatpush1.bf16.msra.mxu1 %v6100_v19  ;;  %v6188_v18 = vld [vmem:[%s6811_s28 + $0x7a0] ss:$16 sps:$4 sm:$0xff]   ;;  %v6191_v19 = vld [vmem:[%s6811_s28 + $0x7a8] ss:$16 sps:$4 sm:$0xff]  }
  0xd1   : > { %3954 = vmatprep.subr.bf16.mxu0 %v6105_v20  ;;  %4323 = vmatprep.subr.bf16.mxu1 %v6108_v21  ;;  %v6196_v20 = vld [vmem:[%s6811_s28 + $0x7c4] ss:$16 sps:$4 sm:$0xff]   ;;  %v6199_v21 = vld [vmem:[%s6811_s28 + $0x7cc] ss:$16 sps:$4 sm:$0xff]  }
  0xd4   : > { %3955 = vmatpush1.bf16.msra.mxu0 %v6103_v22  ;;  %4324 = vmatpush1.bf16.msra.mxu1 %v6106_v23  ;;  %v7103_v22 = vld [vmem:[%s6806_s24 + $0x8] sm:$0xff]  ;;  %v6194_v23 = vld [vmem:[%s6811_s28 + $0x7c0] ss:$16 sps:$4 sm:$0xff]  }
  0xd5   : > { %3965 = vmatprep.subr.bf16.mxu0 %v6112_v24  ;;  %4334 = vmatprep.subr.bf16.mxu1 %v6115_v25  ;;  %v6197_v24 = vld [vmem:[%s6811_s28 + $0x7c8] ss:$16 sps:$4 sm:$0xff]   ;;  %v6202_v25 = vld [vmem:[%s6811_s28 + $0x7e4] ss:$16 sps:$4 sm:$0xff]  }
  0xd7   : > { %3957 = vmatmul.mubr.bf16.vlgmr.msra.gmra.mrb[0].mxu0 %v7041_v14  ;;  %4326 = vmatmul.mubr.bf16.vlgmr.msra.gmra.mrb[0].mxu1 %v7041_v14 }
  0xd8   : > { %3966 = vmatpush1.bf16.msra.mxu0 %v6110_v27  ;;  %4335 = vmatpush1.bf16.msra.mxu1 %v6113_v28  ;;  %v6205_v27 = vld [vmem:[%s6811_s28 + $0x7ec] ss:$16 sps:$4 sm:$0xff]   ;;  %v7111_v28 = vrot.slane %v7103_v22, %v6861_v50 }
  0xd9   : > { %3967 = vmatprep.subr.bf16.mxu0 %v6118_v29  ;;  %4336 = vmatprep.subr.bf16.mxu1 %v6121_v30  ;;  %v6200_v29 = vld [vmem:[%s6811_s28 + $0x7e0] ss:$16 sps:$4 sm:$0xff]   ;;  %v6203_v30 = vld [vmem:[%s6811_s28 + $0x7e8] ss:$16 sps:$4 sm:$0xff]  }
  0xda   : > { %3997 = vmatprep.mubr.bf16.mxu0 %v872_v31  ;;  %4366 = vmatprep.mubr.bf16.mxu1 %v872_v31  ;;  %v6208_v31 = vld [vmem:[%s6811_s28 + $0x804] ss:$16 sps:$4 sm:$0xff]  }
  0xdc   : > { %3968 = vmatpush1.bf16.msra.mxu0 %v6116_v16  ;;  %4337 = vmatpush1.bf16.msra.mxu1 %v6119_v32  ;;  %v6211_v16 = vld [vmem:[%s6811_s28 + $0x80c] ss:$16 sps:$4 sm:$0xff]   ;;  %v888_v32 = vcombine.high %v7111_v28, %v7111_v28 }
  0xdd   : > { %3969 = vmatprep.subr.bf16.mxu0 %v6124_v33  ;;  %4338 = vmatprep.subr.bf16.mxu1 %v6127_v34  ;;  %v870_v33 = vcombine.high %v7041_v14, %v7041_v14  ;;  %v6206_v34 = vld [vmem:[%s6811_s28 + $0x800] ss:$16 sps:$4 sm:$0xff]  }
  0xde   : > { %v6212_v14 = vld [vmem:[%s6811_s28 + $0x820] ss:$16 sps:$4 sm:$0xff]  }
  0xe0   : > { %3970 = vmatpush1.bf16.msra.mxu0 %v6122_v26  ;;  %4339 = vmatpush1.bf16.msra.mxu1 %v6125_v35  ;;  %v6209_v26 = vld [vmem:[%s6811_s28 + $0x808] ss:$16 sps:$4 sm:$0xff]   ;;  %v6214_v35 = vld [vmem:[%s6811_s28 + $0x824] ss:$16 sps:$4 sm:$0xff]  }
  0xe1   : > { %3971 = vmatprep.subr.bf16.mxu0 %v6130_v36  ;;  %4340 = vmatprep.subr.bf16.mxu1 %v6133_v37  ;;  %v6217_v36 = vld [vmem:[%s6811_s28 + $0x82c] ss:$16 sps:$4 sm:$0xff]   ;;  %v7126_v37 = vrot.slane %v888_v32, %v6861_v50  ;;  %v6293_v32 = vld [vmem:[%s6811_s28 + $0x9c8] ss:$16 sps:$4 sm:$0xff]  }
  0xe4   : > { %3972 = vmatpush1.bf16.msra.mxu0 %v6128_v38  ;;  %4341 = vmatpush1.bf16.msra.mxu1 %v6131_v39  ;;  %v6215_v38 = vld [vmem:[%s6811_s28 + $0x828] ss:$16 sps:$4 sm:$0xff]   ;;  %v6220_v39 = vld [vmem:[%s6811_s28 + $0x844] ss:$16 sps:$4 sm:$0xff]  }
  0xe5   : > { %3973 = vmatprep.subr.bf16.mxu0 %v6136_v40  ;;  %4342 = vmatprep.subr.bf16.mxu1 %v6139_v41  ;;  %v6223_v40 = vld [vmem:[%s6811_s28 + $0x84c] ss:$16 sps:$4 sm:$0xff]   ;;  %v6218_v41 = vld [vmem:[%s6811_s28 + $0x840] ss:$16 sps:$4 sm:$0xff]  }
  0xe8   : > { %3974 = vmatpush1.bf16.msra.mxu0 %v6134_v42  ;;  %4343 = vmatpush1.bf16.msra.mxu1 %v6137_v43  ;;  %v6221_v42 = vld [vmem:[%s6811_s28 + $0x848] ss:$16 sps:$4 sm:$0xff]   ;;  %v6226_v43 = vld [vmem:[%s6811_s28 + $0x864] ss:$16 sps:$4 sm:$0xff]  }
  0xe9   : > { %3975 = vmatprep.subr.bf16.mxu0 %v6142_v45  ;;  %4344 = vmatprep.subr.bf16.mxu1 %v6145_v46  ;;  %v6229_v45 = vld [vmem:[%s6811_s28 + $0x86c] ss:$16 sps:$4 sm:$0xff]   ;;  %v6224_v46 = vld [vmem:[%s6811_s28 + $0x860] ss:$16 sps:$4 sm:$0xff]  }
  0xec   : > { %3976 = vmatpush1.bf16.msra.mxu0 %v6140_v47  ;;  %4345 = vmatpush1.bf16.msra.mxu1 %v6143_v48  ;;  %v6227_v47 = vld [vmem:[%s6811_s28 + $0x868] ss:$16 sps:$4 sm:$0xff]   ;;  %v6232_v48 = vld [vmem:[%s6811_s28 + $0x884] ss:$16 sps:$4 sm:$0xff]  }
  0xed   : > { %3977 = vmatprep.subr.bf16.mxu0 %v6148_v49  ;;  %4346 = vmatprep.subr.bf16.mxu1 %v6151_v51  ;;  %v6235_v49 = vld [vmem:[%s6811_s28 + $0x88c] ss:$16 sps:$4 sm:$0xff]   ;;  %v6230_v51 = vld [vmem:[%s6811_s28 + $0x880] ss:$16 sps:$4 sm:$0xff]  }
  0xf0   : > { %3978 = vmatpush1.bf16.msra.mxu0 %v6146_v52  ;;  %4347 = vmatpush1.bf16.msra.mxu1 %v6149_v54  ;;  %v6233_v52 = vld [vmem:[%s6811_s28 + $0x888] ss:$16 sps:$4 sm:$0xff]   ;;  %v6238_v54 = vld [vmem:[%s6811_s28 + $0x8a4] ss:$16 sps:$4 sm:$0xff]  }
  0xf1   : > { %3979 = vmatprep.subr.bf16.mxu0 %v6154_v55  ;;  %4348 = vmatprep.subr.bf16.mxu1 %v6157_v56  ;;  %v6241_v55 = vld [vmem:[%s6811_s28 + $0x8ac] ss:$16 sps:$4 sm:$0xff]   ;;  %v6236_v56 = vld [vmem:[%s6811_s28 + $0x8a0] ss:$16 sps:$4 sm:$0xff]  }
  0xf4   : > { %3980 = vmatpush1.bf16.msra.mxu0 %v6152_v57  ;;  %4349 = vmatpush1.bf16.msra.mxu1 %v6155_v58  ;;  %v6239_v57 = vld [vmem:[%s6811_s28 + $0x8a8] ss:$16 sps:$4 sm:$0xff]   ;;  %v6244_v58 = vld [vmem:[%s6811_s28 + $0x8c4] ss:$16 sps:$4 sm:$0xff]  }
  0xf5   : > { %3981 = vmatprep.subr.bf16.mxu0 %v6160_v59  ;;  %4350 = vmatprep.subr.bf16.mxu1 %v6163_v60  ;;  %v6247_v59 = vld [vmem:[%s6811_s28 + $0x8cc] ss:$16 sps:$4 sm:$0xff]   ;;  %v6242_v60 = vld [vmem:[%s6811_s28 + $0x8c0] ss:$16 sps:$4 sm:$0xff]  }
  0xf8   : > { %3982 = vmatpush1.bf16.msra.mxu0 %v6158_v61  ;;  %4351 = vmatpush1.bf16.msra.mxu1 %v6161_v62  ;;  %v6245_v61 = vld [vmem:[%s6811_s28 + $0x8c8] ss:$16 sps:$4 sm:$0xff]   ;;  %v6250_v62 = vld [vmem:[%s6811_s28 + $0x8e4] ss:$16 sps:$4 sm:$0xff]  }
  0xf9   : > { %3983 = vmatprep.subr.bf16.mxu0 %v6166_v63  ;;  %4352 = vmatprep.subr.bf16.mxu1 %v6169_v0  ;;  %v6253_v63 = vld [vmem:[%s6811_s28 + $0x8ec] ss:$16 sps:$4 sm:$0xff]   ;;  %v6248_v0 = vld [vmem:[%s6811_s28 + $0x8e0] ss:$16 sps:$4 sm:$0xff]  }
  0xfc   : > { %3984 = vmatpush1.bf16.msra.mxu0 %v6164_v1  ;;  %4353 = vmatpush1.bf16.msra.mxu1 %v6167_v2  ;;  %v6251_v1 = vld [vmem:[%s6811_s28 + $0x8e8] ss:$16 sps:$4 sm:$0xff]   ;;  %v6256_v2 = vld [vmem:[%s6811_s28 + $0x904] ss:$16 sps:$4 sm:$0xff]  }
  0xfd   : > { %3985 = vmatprep.subr.bf16.mxu0 %v6172_v3  ;;  %4354 = vmatprep.subr.bf16.mxu1 %v6175_v4  ;;  %v6259_v3 = vld [vmem:[%s6811_s28 + $0x90c] ss:$16 sps:$4 sm:$0xff]   ;;  %v6254_v4 = vld [vmem:[%s6811_s28 + $0x900] ss:$16 sps:$4 sm:$0xff]  }
 0x100   : > { %3986 = vmatpush1.bf16.msra.mxu0 %v6170_v5  ;;  %4355 = vmatpush1.bf16.msra.mxu1 %v6173_v6  ;;  %v6257_v5 = vld [vmem:[%s6811_s28 + $0x908] ss:$16 sps:$4 sm:$0xff]   ;;  %v6262_v6 = vld [vmem:[%s6811_s28 + $0x924] ss:$16 sps:$4 sm:$0xff]  }
 0x101   : > { %3987 = vmatprep.subr.bf16.mxu0 %v6178_v7  ;;  %4356 = vmatprep.subr.bf16.mxu1 %v6181_v8  ;;  %v6265_v7 = vld [vmem:[%s6811_s28 + $0x92c] ss:$16 sps:$4 sm:$0xff]   ;;  %v6260_v8 = vld [vmem:[%s6811_s28 + $0x920] ss:$16 sps:$4 sm:$0xff]  }
 0x104   : > { %3988 = vmatpush1.bf16.msra.mxu0 %v6176_v9  ;;  %4357 = vmatpush1.bf16.msra.mxu1 %v6179_v10  ;;  %v6263_v9 = vld [vmem:[%s6811_s28 + $0x928] ss:$16 sps:$4 sm:$0xff]   ;;  %v6268_v10 = vld [vmem:[%s6811_s28 + $0x944] ss:$16 sps:$4 sm:$0xff]  }
 0x105   : > { %3989 = vmatprep.subr.bf16.mxu0 %v6184_v11  ;;  %4358 = vmatprep.subr.bf16.mxu1 %v6187_v12  ;;  %v6271_v11 = vld [vmem:[%s6811_s28 + $0x94c] ss:$16 sps:$4 sm:$0xff]   ;;  %v6266_v12 = vld [vmem:[%s6811_s28 + $0x940] ss:$16 sps:$4 sm:$0xff]  }
 0x108   : > { %3990 = vmatpush1.bf16.msra.mxu0 %v6182_v13  ;;  %4359 = vmatpush1.bf16.msra.mxu1 %v6185_v15  ;;  %v6269_v13 = vld [vmem:[%s6811_s28 + $0x948] ss:$16 sps:$4 sm:$0xff]   ;;  %v6274_v15 = vld [vmem:[%s6811_s28 + $0x964] ss:$16 sps:$4 sm:$0xff]  }
 0x109   : > { %3991 = vmatprep.subr.bf16.mxu0 %v6190_v17  ;;  %4360 = vmatprep.subr.bf16.mxu1 %v6193_v53  ;;  %v6277_v17 = vld [vmem:[%s6811_s28 + $0x96c] ss:$16 sps:$4 sm:$0xff]   ;;  %v6272_v53 = vld [vmem:[%s6811_s28 + $0x960] ss:$16 sps:$4 sm:$0xff]  }
 0x10c   : > { %3992 = vmatpush1.bf16.msra.mxu0 %v6188_v18  ;;  %4361 = vmatpush1.bf16.msra.mxu1 %v6191_v19  ;;  %v6275_v18 = vld [vmem:[%s6811_s28 + $0x968] ss:$16 sps:$4 sm:$0xff]   ;;  %v6280_v19 = vld [vmem:[%s6811_s28 + $0x984] ss:$16 sps:$4 sm:$0xff]  }
 0x10d   : > { %3993 = vmatprep.subr.bf16.mxu0 %v6196_v20  ;;  %4362 = vmatprep.subr.bf16.mxu1 %v6199_v21  ;;  %v6283_v20 = vld [vmem:[%s6811_s28 + $0x98c] ss:$16 sps:$4 sm:$0xff]   ;;  %v6278_v21 = vld [vmem:[%s6811_s28 + $0x980] ss:$16 sps:$4 sm:$0xff]  }
 0x110   : > { %3994 = vmatpush1.bf16.msra.mxu0 %v6194_v23  ;;  %4363 = vmatpush1.bf16.msra.mxu1 %v6197_v24  ;;  %v6281_v23 = vld [vmem:[%s6811_s28 + $0x988] ss:$16 sps:$4 sm:$0xff]   ;;  %v6286_v24 = vld [vmem:[%s6811_s28 + $0x9a4] ss:$16 sps:$4 sm:$0xff]  }
 0x111   : > { %3995 = vmatprep.subr.bf16.mxu0 %v6202_v25  ;;  %4364 = vmatprep.subr.bf16.mxu1 %v6205_v27  ;;  %v6289_v25 = vld [vmem:[%s6811_s28 + $0x9ac] ss:$16 sps:$4 sm:$0xff]   ;;  %v6284_v27 = vld [vmem:[%s6811_s28 + $0x9a0] ss:$16 sps:$4 sm:$0xff]  }
 0x114   : > { %3996 = vmatpush1.bf16.msra.mxu0 %v6200_v29  ;;  %4365 = vmatpush1.bf16.msra.mxu1 %v6203_v30  ;;  %v6287_v29 = vld [vmem:[%s6811_s28 + $0x9a8] ss:$16 sps:$4 sm:$0xff]   ;;  %v6292_v30 = vld [vmem:[%s6811_s28 + $0x9c4] ss:$16 sps:$4 sm:$0xff]  }
 0x115   : > { %4006 = vmatprep.subr.bf16.mxu0 %v6208_v31  ;;  %4375 = vmatprep.subr.bf16.mxu1 %v6211_v16  ;;  %v6295_v31 = vld [vmem:[%s6811_s28 + $0x9cc] ss:$16 sps:$4 sm:$0xff]   ;;  %v6290_v16 = vld [vmem:[%s6811_s28 + $0x9c0] ss:$16 sps:$4 sm:$0xff]  }
 0x117   : > { %3998 = vmatmul.mubr.bf16.vlgmr.msra.gmra.mrb[0].mxu0 %v870_v33  ;;  %4367 = vmatmul.mubr.bf16.vlgmr.msra.gmra.mrb[0].mxu1 %v870_v33  ;;  %v6298_v33 = vld [vmem:[%s6811_s28 + $0x9e4] ss:$16 sps:$4 sm:$0xff]  }
 0x118   : > { %4007 = vmatpush1.bf16.msra.mxu0 %v6206_v34  ;;  %4376 = vmatpush1.bf16.msra.mxu1 %v6209_v26  ;;  %v6301_v34 = vld [vmem:[%s6811_s28 + $0x9ec] ss:$16 sps:$4 sm:$0xff]   ;;  %v6296_v26 = vld [vmem:[%s6811_s28 + $0x9e0] ss:$16 sps:$4 sm:$0xff]  }
 0x119   : > { %4008 = vmatprep.subr.bf16.mxu0 %v6214_v35  ;;  %4377 = vmatprep.subr.bf16.mxu1 %v6217_v36  ;;  %v6299_v35 = vld [vmem:[%s6811_s28 + $0x9e8] ss:$16 sps:$4 sm:$0xff]   ;;  %v6304_v36 = vld [vmem:[%s6811_s28 + $0xa04] ss:$16 sps:$4 sm:$0xff]  }
 0x11a   : > { %4038 = vmatprep.mubr.bf16.mxu0 %v7126_v37  ;;  %4407 = vmatprep.mubr.bf16.mxu1 %v7126_v37 }
 0x11c   : > { %4009 = vmatpush1.bf16.msra.mxu0 %v6212_v14  ;;  %4378 = vmatpush1.bf16.msra.mxu1 %v6215_v38  ;;  %v6307_v14 = vld [vmem:[%s6811_s28 + $0xa0c] ss:$16 sps:$4 sm:$0xff]   ;;  %v7192_v38 = vrot.slane %v7111_v28, %v6861_v50  ;;  %v6308_v28 = vld [vmem:[%s6811_s28 + $0xa20] ss:$16 sps:$4 sm:$0xff]  }
 0x11d   : > { %4010 = vmatprep.subr.bf16.mxu0 %v6220_v39  ;;  %4379 = vmatprep.subr.bf16.mxu1 %v6223_v40  ;;  %v6302_v39 = vld [vmem:[%s6811_s28 + $0xa00] ss:$16 sps:$4 sm:$0xff]   ;;  %v6305_v40 = vld [vmem:[%s6811_s28 + $0xa08] ss:$16 sps:$4 sm:$0xff]  }
 0x120   : > { %4011 = vmatpush1.bf16.msra.mxu0 %v6218_v41  ;;  %4380 = vmatpush1.bf16.msra.mxu1 %v6221_v42  ;;  %v6310_v41 = vld [vmem:[%s6811_s28 + $0xa24] ss:$16 sps:$4 sm:$0xff]   ;;  %v6313_v42 = vld [vmem:[%s6811_s28 + $0xa2c] ss:$16 sps:$4 sm:$0xff]  }
 0x121   : > { %4012 = vmatprep.subr.bf16.mxu0 %v6226_v43  ;;  %4381 = vmatprep.subr.bf16.mxu1 %v6229_v45  ;;  %v920_v43 = vcombine.high %v7126_v37, %v7126_v37  ;;  %v6311_v45 = vld [vmem:[%s6811_s28 + $0xa28] ss:$16 sps:$4 sm:$0xff]   ;;  %v6314_v37 = vld [vmem:[%s6811_s28 + $0xa40] ss:$16 sps:$4 sm:$0xff]  }
 0x124   : > { %4013 = vmatpush1.bf16.msra.mxu0 %v6224_v46  ;;  %4382 = vmatpush1.bf16.msra.mxu1 %v6227_v47  ;;  %v6316_v46 = vld [vmem:[%s6811_s28 + $0xa44] ss:$16 sps:$4 sm:$0xff]   ;;  %v6319_v47 = vld [vmem:[%s6811_s28 + $0xa4c] ss:$16 sps:$4 sm:$0xff]  }
 0x125   : > { %4014 = vmatprep.subr.bf16.mxu0 %v6232_v48  ;;  %4383 = vmatprep.subr.bf16.mxu1 %v6235_v49  ;;  %v6317_v48 = vld [vmem:[%s6811_s28 + $0xa48] ss:$16 sps:$4 sm:$0xff]   ;;  %v6322_v49 = vld [vmem:[%s6811_s28 + $0xa64] ss:$16 sps:$4 sm:$0xff]  }
 0x128   : > { %4015 = vmatpush1.bf16.msra.mxu0 %v6230_v51  ;;  %4384 = vmatpush1.bf16.msra.mxu1 %v6233_v52  ;;  %v6325_v51 = vld [vmem:[%s6811_s28 + $0xa6c] ss:$16 sps:$4 sm:$0xff]   ;;  %v6320_v52 = vld [vmem:[%s6811_s28 + $0xa60] ss:$16 sps:$4 sm:$0xff]  }
 0x129   : > { %4016 = vmatprep.subr.bf16.mxu0 %v6238_v54  ;;  %4385 = vmatprep.subr.bf16.mxu1 %v6241_v55  ;;  %v6323_v54 = vld [vmem:[%s6811_s28 + $0xa68] ss:$16 sps:$4 sm:$0xff]   ;;  %v6328_v55 = vld [vmem:[%s6811_s28 + $0xa84] ss:$16 sps:$4 sm:$0xff]  }
 0x12c   : > { %4017 = vmatpush1.bf16.msra.mxu0 %v6236_v56  ;;  %4386 = vmatpush1.bf16.msra.mxu1 %v6239_v57  ;;  %v6331_v56 = vld [vmem:[%s6811_s28 + $0xa8c] ss:$16 sps:$4 sm:$0xff]   ;;  %v6326_v57 = vld [vmem:[%s6811_s28 + $0xa80] ss:$16 sps:$4 sm:$0xff]  }
 0x12d   : > { %4018 = vmatprep.subr.bf16.mxu0 %v6244_v58  ;;  %4387 = vmatprep.subr.bf16.mxu1 %v6247_v59  ;;  %v6329_v58 = vld [vmem:[%s6811_s28 + $0xa88] ss:$16 sps:$4 sm:$0xff]   ;;  %v6334_v59 = vld [vmem:[%s6811_s28 + $0xaa4] ss:$16 sps:$4 sm:$0xff]  }
 0x130   : > { %4019 = vmatpush1.bf16.msra.mxu0 %v6242_v60  ;;  %4388 = vmatpush1.bf16.msra.mxu1 %v6245_v61  ;;  %v6337_v60 = vld [vmem:[%s6811_s28 + $0xaac] ss:$16 sps:$4 sm:$0xff]   ;;  %v6332_v61 = vld [vmem:[%s6811_s28 + $0xaa0] ss:$16 sps:$4 sm:$0xff]  }
 0x131   : > { %4020 = vmatprep.subr.bf16.mxu0 %v6250_v62  ;;  %4389 = vmatprep.subr.bf16.mxu1 %v6253_v63  ;;  %v6335_v62 = vld [vmem:[%s6811_s28 + $0xaa8] ss:$16 sps:$4 sm:$0xff]   ;;  %v6340_v63 = vld [vmem:[%s6811_s28 + $0xac4] ss:$16 sps:$4 sm:$0xff]  }
 0x134   : > { %4021 = vmatpush1.bf16.msra.mxu0 %v6248_v0  ;;  %4390 = vmatpush1.bf16.msra.mxu1 %v6251_v1  ;;  %v6343_v0 = vld [vmem:[%s6811_s28 + $0xacc] ss:$16 sps:$4 sm:$0xff]   ;;  %v6338_v1 = vld [vmem:[%s6811_s28 + $0xac0] ss:$16 sps:$4 sm:$0xff]  }
 0x135   : > { %4022 = vmatprep.subr.bf16.mxu0 %v6256_v2  ;;  %4391 = vmatprep.subr.bf16.mxu1 %v6259_v3  ;;  %v6341_v2 = vld [vmem:[%s6811_s28 + $0xac8] ss:$16 sps:$4 sm:$0xff]   ;;  %v6346_v3 = vld [vmem:[%s6811_s28 + $0xae4] ss:$16 sps:$4 sm:$0xff]  }
 0x138   : > { %4023 = vmatpush1.bf16.msra.mxu0 %v6254_v4  ;;  %4392 = vmatpush1.bf16.msra.mxu1 %v6257_v5  ;;  %v6349_v4 = vld [vmem:[%s6811_s28 + $0xaec] ss:$16 sps:$4 sm:$0xff]   ;;  %v6344_v5 = vld [vmem:[%s6811_s28 + $0xae0] ss:$16 sps:$4 sm:$0xff]  }
 0x139   : > { %4024 = vmatprep.subr.bf16.mxu0 %v6262_v6  ;;  %4393 = vmatprep.subr.bf16.mxu1 %v6265_v7  ;;  %v6347_v6 = vld [vmem:[%s6811_s28 + $0xae8] ss:$16 sps:$4 sm:$0xff]   ;;  %v6352_v7 = vld [vmem:[%s6811_s28 + $0xb04] ss:$16 sps:$4 sm:$0xff]  }
 0x13c   : > { %4025 = vmatpush1.bf16.msra.mxu0 %v6260_v8  ;;  %4394 = vmatpush1.bf16.msra.mxu1 %v6263_v9  ;;  %v6355_v8 = vld [vmem:[%s6811_s28 + $0xb0c] ss:$16 sps:$4 sm:$0xff]   ;;  %v6350_v9 = vld [vmem:[%s6811_s28 + $0xb00] ss:$16 sps:$4 sm:$0xff]  }
 0x13d   : > { %4026 = vmatprep.subr.bf16.mxu0 %v6268_v10  ;;  %4395 = vmatprep.subr.bf16.mxu1 %v6271_v11  ;;  %v6353_v10 = vld [vmem:[%s6811_s28 + $0xb08] ss:$16 sps:$4 sm:$0xff]   ;;  %v6358_v11 = vld [vmem:[%s6811_s28 + $0xb24] ss:$16 sps:$4 sm:$0xff]  }
 0x140   : > { %4027 = vmatpush1.bf16.msra.mxu0 %v6266_v12  ;;  %4396 = vmatpush1.bf16.msra.mxu1 %v6269_v13  ;;  %v6361_v12 = vld [vmem:[%s6811_s28 + $0xb2c] ss:$16 sps:$4 sm:$0xff]   ;;  %v6356_v13 = vld [vmem:[%s6811_s28 + $0xb20] ss:$16 sps:$4 sm:$0xff]  }
 0x141   : > { %4028 = vmatprep.subr.bf16.mxu0 %v6274_v15  ;;  %4397 = vmatprep.subr.bf16.mxu1 %v6277_v17  ;;  %v6359_v15 = vld [vmem:[%s6811_s28 + $0xb28] ss:$16 sps:$4 sm:$0xff]   ;;  %v6364_v17 = vld [vmem:[%s6811_s28 + $0xb44] ss:$16 sps:$4 sm:$0xff]  }
 0x144   : > { %4029 = vmatpush1.bf16.msra.mxu0 %v6272_v53  ;;  %4398 = vmatpush1.bf16.msra.mxu1 %v6275_v18  ;;  %v6367_v53 = vld [vmem:[%s6811_s28 + $0xb4c] ss:$16 sps:$4 sm:$0xff]   ;;  %v6362_v18 = vld [vmem:[%s6811_s28 + $0xb40] ss:$16 sps:$4 sm:$0xff]  }
 0x145   : > { %4030 = vmatprep.subr.bf16.mxu0 %v6280_v19  ;;  %4399 = vmatprep.subr.bf16.mxu1 %v6283_v20  ;;  %v6365_v19 = vld [vmem:[%s6811_s28 + $0xb48] ss:$16 sps:$4 sm:$0xff]   ;;  %v6370_v20 = vld [vmem:[%s6811_s28 + $0xb64] ss:$16 sps:$4 sm:$0xff]  }
 0x148   : > { %4031 = vmatpush1.bf16.msra.mxu0 %v6278_v21  ;;  %4400 = vmatpush1.bf16.msra.mxu1 %v6281_v23  ;;  %v6373_v21 = vld [vmem:[%s6811_s28 + $0xb6c] ss:$16 sps:$4 sm:$0xff]   ;;  %v6368_v23 = vld [vmem:[%s6811_s28 + $0xb60] ss:$16 sps:$4 sm:$0xff]  }
 0x149   : > { %4032 = vmatprep.subr.bf16.mxu0 %v6286_v24  ;;  %4401 = vmatprep.subr.bf16.mxu1 %v6289_v25  ;;  %v6371_v24 = vld [vmem:[%s6811_s28 + $0xb68] ss:$16 sps:$4 sm:$0xff]   ;;  %v6376_v25 = vld [vmem:[%s6811_s28 + $0xb84] ss:$16 sps:$4 sm:$0xff]  }
 0x14c   : > { %4033 = vmatpush1.bf16.msra.mxu0 %v6284_v27  ;;  %4402 = vmatpush1.bf16.msra.mxu1 %v6287_v29  ;;  %v6379_v27 = vld [vmem:[%s6811_s28 + $0xb8c] ss:$16 sps:$4 sm:$0xff]   ;;  %v6374_v29 = vld [vmem:[%s6811_s28 + $0xb80] ss:$16 sps:$4 sm:$0xff]  }
 0x14d   : > { %4034 = vmatprep.subr.bf16.mxu0 %v6292_v30  ;;  %4403 = vmatprep.subr.bf16.mxu1 %v6295_v31  ;;  %v6377_v30 = vld [vmem:[%s6811_s28 + $0xb88] ss:$16 sps:$4 sm:$0xff]   ;;  %v6382_v31 = vld [vmem:[%s6811_s28 + $0xba4] ss:$16 sps:$4 sm:$0xff]  }
 0x150   : > { %4035 = vmatpush1.bf16.msra.mxu0 %v6290_v16  ;;  %4404 = vmatpush1.bf16.msra.mxu1 %v6293_v32  ;;  %v6385_v16 = vld [vmem:[%s6811_s28 + $0xbac] ss:$16 sps:$4 sm:$0xff]   ;;  %v6380_v32 = vld [vmem:[%s6811_s28 + $0xba0] ss:$16 sps:$4 sm:$0xff]  }
 0x151   : > { %4036 = vmatprep.subr.bf16.mxu0 %v6298_v33  ;;  %4405 = vmatprep.subr.bf16.mxu1 %v6301_v34  ;;  %v6383_v33 = vld [vmem:[%s6811_s28 + $0xba8] ss:$16 sps:$4 sm:$0xff]   ;;  %v6388_v34 = vld [vmem:[%s6811_s28 + $0xbc4] ss:$16 sps:$4 sm:$0xff]  }
 0x154   : > { %4037 = vmatpush1.bf16.msra.mxu0 %v6296_v26  ;;  %4406 = vmatpush1.bf16.msra.mxu1 %v6299_v35  ;;  %v6391_v26 = vld [vmem:[%s6811_s28 + $0xbcc] ss:$16 sps:$4 sm:$0xff]   ;;  %v873_v35 = vcombine.high %v7103_v22, %v7103_v22  ;;  %v6392_v22 = vld [vmem:[%s6811_s28 + $0xbe0] ss:$16 sps:$4 sm:$0xff]  }
 0x155   : > { %4047 = vmatprep.subr.bf16.mxu0 %v6304_v36  ;;  %4416 = vmatprep.subr.bf16.mxu1 %v6307_v14  ;;  %v6386_v36 = vld [vmem:[%s6811_s28 + $0xbc0] ss:$16 sps:$4 sm:$0xff]   ;;  %v6389_v14 = vld [vmem:[%s6811_s28 + $0xbc8] ss:$16 sps:$4 sm:$0xff]  }
 0x157   : > { %4039 = vmatmul.mubr.bf16.vlgmr.msra.gmra.mrb[0].mxu0 %v7192_v38  ;;  %4408 = vmatmul.mubr.bf16.vlgmr.msra.gmra.mrb[0].mxu1 %v7192_v38 }
 0x158   : > { %4048 = vmatpush1.bf16.msra.mxu0 %v6302_v39  ;;  %4417 = vmatpush1.bf16.msra.mxu1 %v6305_v40  ;;  %v6394_v39 = vld [vmem:[%s6811_s28 + $0xbe4] ss:$16 sps:$4 sm:$0xff]   ;;  %v6397_v40 = vld [vmem:[%s6811_s28 + $0xbec] ss:$16 sps:$4 sm:$0xff]  }
 0x159   : > { %4049 = vmatprep.subr.bf16.mxu0 %v6310_v41  ;;  %4418 = vmatprep.subr.bf16.mxu1 %v6313_v42  ;;  %v7261_v41 = vrot.slane %v873_v35, %v6861_v50  ;;  %v6395_v42 = vld [vmem:[%s6811_s28 + $0xbe8] ss:$16 sps:$4 sm:$0xff]  }
 0x15a   : > { %4079 = vmatprep.mubr.bf16.mxu0 %v920_v43  ;;  %4448 = vmatprep.mubr.bf16.mxu1 %v920_v43  ;;  %v6400_v43 = vld [vmem:[%s6811_s28 + $0xc04] ss:$16 sps:$4 sm:$0xff]   ;;  %v6473_v35 = vld [vmem:[%s6811_s28 + $0xd88] ss:$16 sps:$4 sm:$0xff]  }
 0x15c   : > { %4050 = vmatpush1.bf16.msra.mxu0 %v6308_v28  ;;  %4419 = vmatpush1.bf16.msra.mxu1 %v6311_v45  ;;  %v6403_v28 = vld [vmem:[%s6811_s28 + $0xc0c] ss:$16 sps:$4 sm:$0xff]   ;;  %v889_v45 = vcombine.high %v7261_v41, %v7261_v41 }
 0x15d   : > { %4051 = vmatprep.subr.bf16.mxu0 %v6316_v46  ;;  %4420 = vmatprep.subr.bf16.mxu1 %v6319_v47  ;;  %v918_v46 = vcombine.high %v7192_v38, %v7192_v38  ;;  %v6398_v47 = vld [vmem:[%s6811_s28 + $0xc00] ss:$16 sps:$4 sm:$0xff]  }
 0x15e   : > { %v6404_v38 = vld [vmem:[%s6811_s28 + $0xc20] ss:$16 sps:$4 sm:$0xff]  }
 0x160   : > { %4052 = vmatpush1.bf16.msra.mxu0 %v6314_v37  ;;  %4421 = vmatpush1.bf16.msra.mxu1 %v6317_v48  ;;  %v6401_v37 = vld [vmem:[%s6811_s28 + $0xc08] ss:$16 sps:$4 sm:$0xff]   ;;  %v6406_v48 = vld [vmem:[%s6811_s28 + $0xc24] ss:$16 sps:$4 sm:$0xff]  }
 0x161   : > { %4053 = vmatprep.subr.bf16.mxu0 %v6322_v49  ;;  %4422 = vmatprep.subr.bf16.mxu1 %v6325_v51  ;;  %v6409_v49 = vld [vmem:[%s6811_s28 + $0xc2c] ss:$16 sps:$4 sm:$0xff]   ;;  %v7276_v51 = vrot.slane %v889_v45, %v6861_v50  ;;  %v6490_v45 = vld [vmem:[%s6811_s28 + $0xde4] ss:$16 sps:$4 sm:$0xff]  }
 0x164   : > { %4054 = vmatpush1.bf16.msra.mxu0 %v6320_v52  ;;  %4423 = vmatpush1.bf16.msra.mxu1 %v6323_v54  ;;  %v6407_v52 = vld [vmem:[%s6811_s28 + $0xc28] ss:$16 sps:$4 sm:$0xff]   ;;  %v6412_v54 = vld [vmem:[%s6811_s28 + $0xc44] ss:$16 sps:$4 sm:$0xff]  }
 0x165   : > { %4055 = vmatprep.subr.bf16.mxu0 %v6328_v55  ;;  %4424 = vmatprep.subr.bf16.mxu1 %v6331_v56  ;;  %v6415_v55 = vld [vmem:[%s6811_s28 + $0xc4c] ss:$16 sps:$4 sm:$0xff]   ;;  %v6410_v56 = vld [vmem:[%s6811_s28 + $0xc40] ss:$16 sps:$4 sm:$0xff]  }
 0x168   : > { %4056 = vmatpush1.bf16.msra.mxu0 %v6326_v57  ;;  %4425 = vmatpush1.bf16.msra.mxu1 %v6329_v58  ;;  %v6413_v57 = vld [vmem:[%s6811_s28 + $0xc48] ss:$16 sps:$4 sm:$0xff]   ;;  %v6418_v58 = vld [vmem:[%s6811_s28 + $0xc64] ss:$16 sps:$4 sm:$0xff]  }
 0x169   : > { %4057 = vmatprep.subr.bf16.mxu0 %v6334_v59  ;;  %4426 = vmatprep.subr.bf16.mxu1 %v6337_v60  ;;  %v6421_v59 = vld [vmem:[%s6811_s28 + $0xc6c] ss:$16 sps:$4 sm:$0xff]   ;;  %v6416_v60 = vld [vmem:[%s6811_s28 + $0xc60] ss:$16 sps:$4 sm:$0xff]  }
 0x16c   : > { %4058 = vmatpush1.bf16.msra.mxu0 %v6332_v61  ;;  %4427 = vmatpush1.bf16.msra.mxu1 %v6335_v62  ;;  %v6419_v61 = vld [vmem:[%s6811_s28 + $0xc68] ss:$16 sps:$4 sm:$0xff]   ;;  %v6424_v62 = vld [vmem:[%s6811_s28 + $0xc84] ss:$16 sps:$4 sm:$0xff]  }
 0x16d   : > { %4059 = vmatprep.subr.bf16.mxu0 %v6340_v63  ;;  %4428 = vmatprep.subr.bf16.mxu1 %v6343_v0  ;;  %v6427_v63 = vld [vmem:[%s6811_s28 + $0xc8c] ss:$16 sps:$4 sm:$0xff]   ;;  %v6422_v0 = vld [vmem:[%s6811_s28 + $0xc80] ss:$16 sps:$4 sm:$0xff]  }
 0x170   : > { %4060 = vmatpush1.bf16.msra.mxu0 %v6338_v1  ;;  %4429 = vmatpush1.bf16.msra.mxu1 %v6341_v2  ;;  %v6425_v1 = vld [vmem:[%s6811_s28 + $0xc88] ss:$16 sps:$4 sm:$0xff]   ;;  %v6430_v2 = vld [vmem:[%s6811_s28 + $0xca4] ss:$16 sps:$4 sm:$0xff]  }
 0x171   : > { %4061 = vmatprep.subr.bf16.mxu0 %v6346_v3  ;;  %4430 = vmatprep.subr.bf16.mxu1 %v6349_v4  ;;  %v6433_v3 = vld [vmem:[%s6811_s28 + $0xcac] ss:$16 sps:$4 sm:$0xff]   ;;  %v6428_v4 = vld [vmem:[%s6811_s28 + $0xca0] ss:$16 sps:$4 sm:$0xff]  }
 0x174   : > { %4062 = vmatpush1.bf16.msra.mxu0 %v6344_v5  ;;  %4431 = vmatpush1.bf16.msra.mxu1 %v6347_v6  ;;  %v6431_v5 = vld [vmem:[%s6811_s28 + $0xca8] ss:$16 sps:$4 sm:$0xff]   ;;  %v6436_v6 = vld [vmem:[%s6811_s28 + $0xcc4] ss:$16 sps:$4 sm:$0xff]  }
 0x175   : > { %4063 = vmatprep.subr.bf16.mxu0 %v6352_v7  ;;  %4432 = vmatprep.subr.bf16.mxu1 %v6355_v8  ;;  %v6439_v7 = vld [vmem:[%s6811_s28 + $0xccc] ss:$16 sps:$4 sm:$0xff]   ;;  %v6434_v8 = vld [vmem:[%s6811_s28 + $0xcc0] ss:$16 sps:$4 sm:$0xff]  }
 0x178   : > { %4064 = vmatpush1.bf16.msra.mxu0 %v6350_v9  ;;  %4433 = vmatpush1.bf16.msra.mxu1 %v6353_v10  ;;  %v6437_v9 = vld [vmem:[%s6811_s28 + $0xcc8] ss:$16 sps:$4 sm:$0xff]   ;;  %v6442_v10 = vld [vmem:[%s6811_s28 + $0xce4] ss:$16 sps:$4 sm:$0xff]  }
 0x179   : > { %4065 = vmatprep.subr.bf16.mxu0 %v6358_v11  ;;  %4434 = vmatprep.subr.bf16.mxu1 %v6361_v12  ;;  %v6445_v11 = vld [vmem:[%s6811_s28 + $0xcec] ss:$16 sps:$4 sm:$0xff]   ;;  %v6440_v12 = vld [vmem:[%s6811_s28 + $0xce0] ss:$16 sps:$4 sm:$0xff]  }
 0x17c   : > { %4066 = vmatpush1.bf16.msra.mxu0 %v6356_v13  ;;  %4435 = vmatpush1.bf16.msra.mxu1 %v6359_v15  ;;  %v6443_v13 = vld [vmem:[%s6811_s28 + $0xce8] ss:$16 sps:$4 sm:$0xff]   ;;  %v6448_v15 = vld [vmem:[%s6811_s28 + $0xd04] ss:$16 sps:$4 sm:$0xff]  }
 0x17d   : > { %4067 = vmatprep.subr.bf16.mxu0 %v6364_v17  ;;  %4436 = vmatprep.subr.bf16.mxu1 %v6367_v53  ;;  %v6451_v17 = vld [vmem:[%s6811_s28 + $0xd0c] ss:$16 sps:$4 sm:$0xff]   ;;  %v6446_v53 = vld [vmem:[%s6811_s28 + $0xd00] ss:$16 sps:$4 sm:$0xff]  }
 0x180   : > { %4068 = vmatpush1.bf16.msra.mxu0 %v6362_v18  ;;  %4437 = vmatpush1.bf16.msra.mxu1 %v6365_v19  ;;  %v6449_v18 = vld [vmem:[%s6811_s28 + $0xd08] ss:$16 sps:$4 sm:$0xff]   ;;  %v6454_v19 = vld [vmem:[%s6811_s28 + $0xd24] ss:$16 sps:$4 sm:$0xff]  }
 0x181   : > { %4069 = vmatprep.subr.bf16.mxu0 %v6370_v20  ;;  %4438 = vmatprep.subr.bf16.mxu1 %v6373_v21  ;;  %v6457_v20 = vld [vmem:[%s6811_s28 + $0xd2c] ss:$16 sps:$4 sm:$0xff]   ;;  %v6452_v21 = vld [vmem:[%s6811_s28 + $0xd20] ss:$16 sps:$4 sm:$0xff]  }
 0x184   : > { %4070 = vmatpush1.bf16.msra.mxu0 %v6368_v23  ;;  %4439 = vmatpush1.bf16.msra.mxu1 %v6371_v24  ;;  %v6455_v23 = vld [vmem:[%s6811_s28 + $0xd28] ss:$16 sps:$4 sm:$0xff]   ;;  %v6460_v24 = vld [vmem:[%s6811_s28 + $0xd44] ss:$16 sps:$4 sm:$0xff]  }
 0x185   : > { %4071 = vmatprep.subr.bf16.mxu0 %v6376_v25  ;;  %4440 = vmatprep.subr.bf16.mxu1 %v6379_v27  ;;  %v6463_v25 = vld [vmem:[%s6811_s28 + $0xd4c] ss:$16 sps:$4 sm:$0xff]   ;;  %v6458_v27 = vld [vmem:[%s6811_s28 + $0xd40] ss:$16 sps:$4 sm:$0xff]  }
 0x188   : > { %4072 = vmatpush1.bf16.msra.mxu0 %v6374_v29  ;;  %4441 = vmatpush1.bf16.msra.mxu1 %v6377_v30  ;;  %v6461_v29 = vld [vmem:[%s6811_s28 + $0xd48] ss:$16 sps:$4 sm:$0xff]   ;;  %v6466_v30 = vld [vmem:[%s6811_s28 + $0xd64] ss:$16 sps:$4 sm:$0xff]  }
 0x189   : > { %4073 = vmatprep.subr.bf16.mxu0 %v6382_v31  ;;  %4442 = vmatprep.subr.bf16.mxu1 %v6385_v16  ;;  %v6469_v31 = vld [vmem:[%s6811_s28 + $0xd6c] ss:$16 sps:$4 sm:$0xff]   ;;  %v6464_v16 = vld [vmem:[%s6811_s28 + $0xd60] ss:$16 sps:$4 sm:$0xff]  }
 0x18c   : > { %4074 = vmatpush1.bf16.msra.mxu0 %v6380_v32  ;;  %4443 = vmatpush1.bf16.msra.mxu1 %v6383_v33  ;;  %v6467_v32 = vld [vmem:[%s6811_s28 + $0xd68] ss:$16 sps:$4 sm:$0xff]   ;;  %v6472_v33 = vld [vmem:[%s6811_s28 + $0xd84] ss:$16 sps:$4 sm:$0xff]  }
 0x18d   : > { %4075 = vmatprep.subr.bf16.mxu0 %v6388_v34  ;;  %4444 = vmatprep.subr.bf16.mxu1 %v6391_v26  ;;  %v6475_v34 = vld [vmem:[%s6811_s28 + $0xd8c] ss:$16 sps:$4 sm:$0xff]   ;;  %v6470_v26 = vld [vmem:[%s6811_s28 + $0xd80] ss:$16 sps:$4 sm:$0xff]  }
 0x190   : > { %4076 = vmatpush1.bf16.msra.mxu0 %v6386_v36  ;;  %4445 = vmatpush1.bf16.msra.mxu1 %v6389_v14  ;;  %v6478_v36 = vld [vmem:[%s6811_s28 + $0xda4] ss:$16 sps:$4 sm:$0xff]   ;;  %v6481_v14 = vld [vmem:[%s6811_s28 + $0xdac] ss:$16 sps:$4 sm:$0xff]  }
 0x191   : > { %4077 = vmatprep.subr.bf16.mxu0 %v6394_v39  ;;  %4446 = vmatprep.subr.bf16.mxu1 %v6397_v40  ;;  %v6476_v39 = vld [vmem:[%s6811_s28 + $0xda0] ss:$16 sps:$4 sm:$0xff]   ;;  %v6479_v40 = vld [vmem:[%s6811_s28 + $0xda8] ss:$16 sps:$4 sm:$0xff]  }
 0x194   : > { %4078 = vmatpush1.bf16.msra.mxu0 %v6392_v22  ;;  %4447 = vmatpush1.bf16.msra.mxu1 %v6395_v42  ;;  %v6484_v22 = vld [vmem:[%s6811_s28 + $0xdc4] ss:$16 sps:$4 sm:$0xff]   ;;  %v6487_v42 = vld [vmem:[%s6811_s28 + $0xdcc] ss:$16 sps:$4 sm:$0xff]  }
 0x195   : > { %4088 = vmatprep.subr.bf16.mxu0 %v6400_v43  ;;  %4457 = vmatprep.subr.bf16.mxu1 %v6403_v28  ;;  %v6482_v43 = vld [vmem:[%s6811_s28 + $0xdc0] ss:$16 sps:$4 sm:$0xff]   ;;  %v6485_v28 = vld [vmem:[%s6811_s28 + $0xdc8] ss:$16 sps:$4 sm:$0xff]  }
 0x197   : > { %4080 = vmatmul.mubr.bf16.vlgmr.msra.gmra.mrb[0].mxu0 %v918_v46  ;;  %4449 = vmatmul.mubr.bf16.vlgmr.msra.gmra.mrb[0].mxu1 %v918_v46  ;;  %v6493_v46 = vld [vmem:[%s6811_s28 + $0xdec] ss:$16 sps:$4 sm:$0xff]  }
 0x198   : > { %4089 = vmatpush1.bf16.msra.mxu0 %v6398_v47  ;;  %4458 = vmatpush1.bf16.msra.mxu1 %v6401_v37  ;;  %v6488_v47 = vld [vmem:[%s6811_s28 + $0xde0] ss:$16 sps:$4 sm:$0xff]   ;;  %v6491_v37 = vld [vmem:[%s6811_s28 + $0xde8] ss:$16 sps:$4 sm:$0xff]  }
 0x199   : > { %4090 = vmatprep.subr.bf16.mxu0 %v6406_v48  ;;  %4459 = vmatprep.subr.bf16.mxu1 %v6409_v49  ;;  %v6497_v48 = vld [vmem:[%s6811_s28 + $0xe04] ss:$16 sps:$4 sm:$0xff]   ;;  %v6500_v49 = vld [vmem:[%s6811_s28 + $0xe0c] ss:$16 sps:$4 sm:$0xff]  }
 0x19a   : > { %4120 = vmatprep.mubr.bf16.mxu0 %v7276_v51  ;;  %4489 = vmatprep.mubr.bf16.mxu1 %v7276_v51 }
 0x19c   : > { %4091 = vmatpush1.bf16.msra.mxu0 %v6404_v38  ;;  %4460 = vmatpush1.bf16.msra.mxu1 %v6407_v52  ;;  %v7342_v38 = vrot.slane %v7261_v41, %v6861_v50  ;;  %v6495_v52 = vld [vmem:[%s6811_s28 + $0xe00] ss:$16 sps:$4 sm:$0xff]  }
 0x19d   : > { %4092 = vmatprep.subr.bf16.mxu0 %v6412_v54  ;;  %4461 = vmatprep.subr.bf16.mxu1 %v6415_v55  ;;  %v6498_v54 = vld [vmem:[%s6811_s28 + $0xe08] ss:$16 sps:$4 sm:$0xff]   ;;  %v6503_v55 = vld [vmem:[%s6811_s28 + $0xe24] ss:$16 sps:$4 sm:$0xff]   ;;  %v6501_v41 = vld [vmem:[%s6811_s28 + $0xe20] ss:$16 sps:$4 sm:$0xff]  }
 0x1a0   : > { %4093 = vmatpush1.bf16.msra.mxu0 %v6410_v56  ;;  %4462 = vmatpush1.bf16.msra.mxu1 %v6413_v57  ;;  %v6506_v56 = vld [vmem:[%s6811_s28 + $0xe2c] ss:$16 sps:$4 sm:$0xff]   ;;  %v921_v57 = vcombine.high %v7276_v51, %v7276_v51  ;;  %v6507_v51 = vld [vmem:[%s6811_s28 + $0xe40] ss:$16 sps:$4 sm:$0xff]  }
 0x1a1   : > { %4094 = vmatprep.subr.bf16.mxu0 %v6418_v58  ;;  %4463 = vmatprep.subr.bf16.mxu1 %v6421_v59  ;;  %v6504_v58 = vld [vmem:[%s6811_s28 + $0xe28] ss:$16 sps:$4 sm:$0xff]   ;;  %v6509_v59 = vld [vmem:[%s6811_s28 + $0xe44] ss:$16 sps:$4 sm:$0xff]  }
 0x1a4   : > { %4095 = vmatpush1.bf16.msra.mxu0 %v6416_v60  ;;  %4464 = vmatpush1.bf16.msra.mxu1 %v6419_v61  ;;  %v6512_v60 = vld [vmem:[%s6811_s28 + $0xe4c] ss:$16 sps:$4 sm:$0xff]   ;;  %v6510_v61 = vld [vmem:[%s6811_s28 + $0xe48] ss:$16 sps:$4 sm:$0xff]  }
 0x1a5   : > { %4096 = vmatprep.subr.bf16.mxu0 %v6424_v62  ;;  %4465 = vmatprep.subr.bf16.mxu1 %v6427_v63  ;;  %v6515_v62 = vld [vmem:[%s6811_s28 + $0xe64] ss:$16 sps:$4 sm:$0xff]   ;;  %v6518_v63 = vld [vmem:[%s6811_s28 + $0xe6c] ss:$16 sps:$4 sm:$0xff]  }
 0x1a8   : > { %4097 = vmatpush1.bf16.msra.mxu0 %v6422_v0  ;;  %4466 = vmatpush1.bf16.msra.mxu1 %v6425_v1  ;;  %v6513_v0 = vld [vmem:[%s6811_s28 + $0xe60] ss:$16 sps:$4 sm:$0xff]   ;;  %v6516_v1 = vld [vmem:[%s6811_s28 + $0xe68] ss:$16 sps:$4 sm:$0xff]  }
 0x1a9   : > { %4098 = vmatprep.subr.bf16.mxu0 %v6430_v2  ;;  %4467 = vmatprep.subr.bf16.mxu1 %v6433_v3  ;;  %v6521_v2 = vld [vmem:[%s6811_s28 + $0xe84] ss:$16 sps:$4 sm:$0xff]   ;;  %v6524_v3 = vld [vmem:[%s6811_s28 + $0xe8c] ss:$16 sps:$4 sm:$0xff]  }
 0x1ac   : > { %4099 = vmatpush1.bf16.msra.mxu0 %v6428_v4  ;;  %4468 = vmatpush1.bf16.msra.mxu1 %v6431_v5  ;;  %v6519_v4 = vld [vmem:[%s6811_s28 + $0xe80] ss:$16 sps:$4 sm:$0xff]   ;;  %v6522_v5 = vld [vmem:[%s6811_s28 + $0xe88] ss:$16 sps:$4 sm:$0xff]  }
 0x1ad   : > { %4100 = vmatprep.subr.bf16.mxu0 %v6436_v6  ;;  %4469 = vmatprep.subr.bf16.mxu1 %v6439_v7  ;;  %v6527_v6 = vld [vmem:[%s6811_s28 + $0xea4] ss:$16 sps:$4 sm:$0xff]   ;;  %v6530_v7 = vld [vmem:[%s6811_s28 + $0xeac] ss:$16 sps:$4 sm:$0xff]  }
 0x1b0   : > { %4101 = vmatpush1.bf16.msra.mxu0 %v6434_v8  ;;  %4470 = vmatpush1.bf16.msra.mxu1 %v6437_v9  ;;  %v6525_v8 = vld [vmem:[%s6811_s28 + $0xea0] ss:$16 sps:$4 sm:$0xff]   ;;  %v6528_v9 = vld [vmem:[%s6811_s28 + $0xea8] ss:$16 sps:$4 sm:$0xff]  }
 0x1b1   : > { %4102 = vmatprep.subr.bf16.mxu0 %v6442_v10  ;;  %4471 = vmatprep.subr.bf16.mxu1 %v6445_v11  ;;  %v6533_v10 = vld [vmem:[%s6811_s28 + $0xec4] ss:$16 sps:$4 sm:$0xff]   ;;  %v6536_v11 = vld [vmem:[%s6811_s28 + $0xecc] ss:$16 sps:$4 sm:$0xff]  }
 0x1b4   : > { %4103 = vmatpush1.bf16.msra.mxu0 %v6440_v12  ;;  %4472 = vmatpush1.bf16.msra.mxu1 %v6443_v13  ;;  %v6531_v12 = vld [vmem:[%s6811_s28 + $0xec0] ss:$16 sps:$4 sm:$0xff]   ;;  %v6534_v13 = vld [vmem:[%s6811_s28 + $0xec8] ss:$16 sps:$4 sm:$0xff]  }
 0x1b5   : > { %4104 = vmatprep.subr.bf16.mxu0 %v6448_v15  ;;  %4473 = vmatprep.subr.bf16.mxu1 %v6451_v17  ;;  %v6539_v15 = vld [vmem:[%s6811_s28 + $0xee4] ss:$16 sps:$4 sm:$0xff]   ;;  %v6542_v17 = vld [vmem:[%s6811_s28 + $0xeec] ss:$16 sps:$4 sm:$0xff]  }
 0x1b8   : > { %4105 = vmatpush1.bf16.msra.mxu0 %v6446_v53  ;;  %4474 = vmatpush1.bf16.msra.mxu1 %v6449_v18  ;;  %v6537_v53 = vld [vmem:[%s6811_s28 + $0xee0] ss:$16 sps:$4 sm:$0xff]   ;;  %v6540_v18 = vld [vmem:[%s6811_s28 + $0xee8] ss:$16 sps:$4 sm:$0xff]  }
 0x1b9   : > { %4106 = vmatprep.subr.bf16.mxu0 %v6454_v19  ;;  %4475 = vmatprep.subr.bf16.mxu1 %v6457_v20  ;;  %v6545_v19 = vld [vmem:[%s6811_s28 + $0xf04] ss:$16 sps:$4 sm:$0xff]   ;;  %v6548_v20 = vld [vmem:[%s6811_s28 + $0xf0c] ss:$16 sps:$4 sm:$0xff]  }
 0x1bc   : > { %4107 = vmatpush1.bf16.msra.mxu0 %v6452_v21  ;;  %4476 = vmatpush1.bf16.msra.mxu1 %v6455_v23  ;;  %v6543_v21 = vld [vmem:[%s6811_s28 + $0xf00] ss:$16 sps:$4 sm:$0xff]   ;;  %v6546_v23 = vld [vmem:[%s6811_s28 + $0xf08] ss:$16 sps:$4 sm:$0xff]  }
 0x1bd   : > { %4108 = vmatprep.subr.bf16.mxu0 %v6460_v24  ;;  %4477 = vmatprep.subr.bf16.mxu1 %v6463_v25  ;;  %v6551_v24 = vld [vmem:[%s6811_s28 + $0xf24] ss:$16 sps:$4 sm:$0xff]   ;;  %v6554_v25 = vld [vmem:[%s6811_s28 + $0xf2c] ss:$16 sps:$4 sm:$0xff]  }
 0x1c0   : > { %4109 = vmatpush1.bf16.msra.mxu0 %v6458_v27  ;;  %4478 = vmatpush1.bf16.msra.mxu1 %v6461_v29  ;;  %v6549_v27 = vld [vmem:[%s6811_s28 + $0xf20] ss:$16 sps:$4 sm:$0xff]   ;;  %v6552_v29 = vld [vmem:[%s6811_s28 + $0xf28] ss:$16 sps:$4 sm:$0xff]  }
 0x1c1   : > { %4110 = vmatprep.subr.bf16.mxu0 %v6466_v30  ;;  %4479 = vmatprep.subr.bf16.mxu1 %v6469_v31  ;;  %v6557_v30 = vld [vmem:[%s6811_s28 + $0xf44] ss:$16 sps:$4 sm:$0xff]   ;;  %v6560_v31 = vld [vmem:[%s6811_s28 + $0xf4c] ss:$16 sps:$4 sm:$0xff]  }
 0x1c4   : > { %4111 = vmatpush1.bf16.msra.mxu0 %v6464_v16  ;;  %4480 = vmatpush1.bf16.msra.mxu1 %v6467_v32  ;;  %v6555_v16 = vld [vmem:[%s6811_s28 + $0xf40] ss:$16 sps:$4 sm:$0xff]   ;;  %v6558_v32 = vld [vmem:[%s6811_s28 + $0xf48] ss:$16 sps:$4 sm:$0xff]  }
 0x1c5   : > { %4112 = vmatprep.subr.bf16.mxu0 %v6472_v33  ;;  %4481 = vmatprep.subr.bf16.mxu1 %v6475_v34  ;;  %v6563_v33 = vld [vmem:[%s6811_s28 + $0xf64] ss:$16 sps:$4 sm:$0xff]   ;;  %v6566_v34 = vld [vmem:[%s6811_s28 + $0xf6c] ss:$16 sps:$4 sm:$0xff]  }
 0x1c8   : > { %4113 = vmatpush1.bf16.msra.mxu0 %v6470_v26  ;;  %4482 = vmatpush1.bf16.msra.mxu1 %v6473_v35  ;;  %v6561_v26 = vld [vmem:[%s6811_s28 + $0xf60] ss:$16 sps:$4 sm:$0xff]   ;;  %v6564_v35 = vld [vmem:[%s6811_s28 + $0xf68] ss:$16 sps:$4 sm:$0xff]  }
 0x1c9   : > { %4114 = vmatprep.subr.bf16.mxu0 %v6478_v36  ;;  %4483 = vmatprep.subr.bf16.mxu1 %v6481_v14  ;;  %v6569_v36 = vld [vmem:[%s6811_s28 + $0xf84] ss:$16 sps:$4 sm:$0xff]   ;;  %v6572_v14 = vld [vmem:[%s6811_s28 + $0xf8c] ss:$16 sps:$4 sm:$0xff]  }
 0x1cc   : > { %4115 = vmatpush1.bf16.msra.mxu0 %v6476_v39  ;;  %4484 = vmatpush1.bf16.msra.mxu1 %v6479_v40  ;;  %v6567_v39 = vld [vmem:[%s6811_s28 + $0xf80] ss:$16 sps:$4 sm:$0xff]   ;;  %v6570_v40 = vld [vmem:[%s6811_s28 + $0xf88] ss:$16 sps:$4 sm:$0xff]  }
 0x1cd   : > { %4116 = vmatprep.subr.bf16.mxu0 %v6484_v22  ;;  %4485 = vmatprep.subr.bf16.mxu1 %v6487_v42  ;;  %v6575_v22 = vld [vmem:[%s6811_s28 + $0xfa4] ss:$16 sps:$4 sm:$0xff]   ;;  %v6578_v42 = vld [vmem:[%s6811_s28 + $0xfac] ss:$16 sps:$4 sm:$0xff]  }
 0x1d0   : > { %4117 = vmatpush1.bf16.msra.mxu0 %v6482_v43  ;;  %4486 = vmatpush1.bf16.msra.mxu1 %v6485_v28  ;;  %v6573_v43 = vld [vmem:[%s6811_s28 + $0xfa0] ss:$16 sps:$4 sm:$0xff]   ;;  %v6576_v28 = vld [vmem:[%s6811_s28 + $0xfa8] ss:$16 sps:$4 sm:$0xff]  }
 0x1d1   : > { %4118 = vmatprep.subr.bf16.mxu0 %v6490_v45  ;;  %4487 = vmatprep.subr.bf16.mxu1 %v6493_v46  ;;  %v6581_v45 = vld [vmem:[%s6811_s28 + $0xfc4] ss:$16 sps:$4 sm:$0xff]   ;;  %v6584_v46 = vld [vmem:[%s6811_s28 + $0xfcc] ss:$16 sps:$4 sm:$0xff]  }
 0x1d4   : > { %4119 = vmatpush1.bf16.msra.mxu0 %v6488_v47  ;;  %4488 = vmatpush1.bf16.msra.mxu1 %v6491_v37  ;;  %v6579_v47 = vld [vmem:[%s6811_s28 + $0xfc0] ss:$16 sps:$4 sm:$0xff]   ;;  %v6582_v37 = vld [vmem:[%s6811_s28 + $0xfc8] ss:$16 sps:$4 sm:$0xff]  }
 0x1d5   : > { %4129 = vmatprep.subr.bf16.mxu0 %v6497_v48  ;;  %4498 = vmatprep.subr.bf16.mxu1 %v6500_v49  ;;  %v6587_v48 = vld [vmem:[%s6811_s28 + $0xfe4] ss:$16 sps:$4 sm:$0xff]   ;;  %v6590_v49 = vld [vmem:[%s6811_s28 + $0xfec] ss:$16 sps:$4 sm:$0xff]  }
 0x1d7   : > { %4121 = vmatmul.mubr.bf16.vlgmr.msra.gmra.mrb[0].mxu0 %v7342_v38  ;;  %4490 = vmatmul.mubr.bf16.vlgmr.msra.gmra.mrb[0].mxu1 %v7342_v38 }
 0x1d8   : > { %4130 = vmatpush1.bf16.msra.mxu0 %v6495_v52  ;;  %4499 = vmatpush1.bf16.msra.mxu1 %v6498_v54  ;;  %v7409_v52 = vld.sshfl [vmem:[%s6806_s24 + $0x10] sm:$0x11 pattern:$0x75316420] }
 0x1d9   : > { %4131 = vmatprep.subr.bf16.mxu0 %v6503_v55  ;;  %4500 = vmatprep.subr.bf16.mxu1 %v6506_v56  ;;  %v6585_v54 = vld [vmem:[%s6811_s28 + $0xfe0] ss:$16 sps:$4 sm:$0xff]   ;;  %v6588_v55 = vld [vmem:[%s6811_s28 + $0xfe8] ss:$16 sps:$4 sm:$0xff]   ;;  %v6593_v56 = vld [vmem:[%s6811_s28 + $0x1004] ss:$16 sps:$4 sm:$0xff]  }
 0x1da   : > { %4161 = vmatprep.mubr.bf16.mxu0 %v921_v57  ;;  %4530 = vmatprep.mubr.bf16.mxu1 %v921_v57  ;;  %v6596_v57 = vld [vmem:[%s6811_s28 + $0x100c] ss:$16 sps:$4 sm:$0xff]  }
 0x1dc   : > { %4132 = vmatpush1.bf16.msra.mxu0 %v6501_v41  ;;  %4501 = vmatpush1.bf16.msra.mxu1 %v6504_v58  ;;  %v929_v41 = vcombine.high %v7409_v52, %v7409_v52  ;;  %v919_v58 = vcombine.high %v7342_v38, %v7342_v38  ;;  %v6597_v38 = vld [vmem:[%s6811_s28 + $0x1020] ss:$16 sps:$4 sm:$0xff]  }
 0x1dd   : > { %4133 = vmatprep.subr.bf16.mxu0 %v6509_v59  ;;  %4502 = vmatprep.subr.bf16.mxu1 %v6512_v60  ;;  %v6591_v59 = vld [vmem:[%s6811_s28 + $0x1000] ss:$16 sps:$4 sm:$0xff]   ;;  %v6594_v60 = vld [vmem:[%s6811_s28 + $0x1008] ss:$16 sps:$4 sm:$0xff]  }
 0x1e0   : > { %4134 = vmatpush1.bf16.msra.mxu0 %v6507_v51  ;;  %4503 = vmatpush1.bf16.msra.mxu1 %v6510_v61  ;;  %v6599_v51 = vld [vmem:[%s6811_s28 + $0x1024] ss:$16 sps:$4 sm:$0xff]   ;;  %v6602_v61 = vld [vmem:[%s6811_s28 + $0x102c] ss:$16 sps:$4 sm:$0xff]  }
 0x1e1   : > { %4135 = vmatprep.subr.bf16.mxu0 %v6515_v62  ;;  %4504 = vmatprep.subr.bf16.mxu1 %v6518_v63  ;;  %v943_v62 = vrot.slane %v929_v41, %v6861_v50  ;;  %v6600_v63 = vld [vmem:[%s6811_s28 + $0x1028] ss:$16 sps:$4 sm:$0xff]   ;;  %v6683_v41 = vld [vmem:[%s6811_s28 + $0x11e4] ss:$16 sps:$4 sm:$0xff]  }
 0x1e4   : > { %4136 = vmatpush1.bf16.msra.mxu0 %v6513_v0  ;;  %4505 = vmatpush1.bf16.msra.mxu1 %v6516_v1  ;;  %v6605_v0 = vld [vmem:[%s6811_s28 + $0x1044] ss:$16 sps:$4 sm:$0xff]   ;;  %v6608_v1 = vld [vmem:[%s6811_s28 + $0x104c] ss:$16 sps:$4 sm:$0xff]  }
 0x1e5   : > { %4137 = vmatprep.subr.bf16.mxu0 %v6521_v2  ;;  %4506 = vmatprep.subr.bf16.mxu1 %v6524_v3  ;;  %v6603_v2 = vld [vmem:[%s6811_s28 + $0x1040] ss:$16 sps:$4 sm:$0xff]   ;;  %v6606_v3 = vld [vmem:[%s6811_s28 + $0x1048] ss:$16 sps:$4 sm:$0xff]  }
 0x1e8   : > { %4138 = vmatpush1.bf16.msra.mxu0 %v6519_v4  ;;  %4507 = vmatpush1.bf16.msra.mxu1 %v6522_v5  ;;  %v6611_v4 = vld [vmem:[%s6811_s28 + $0x1064] ss:$16 sps:$4 sm:$0xff]   ;;  %v6614_v5 = vld [vmem:[%s6811_s28 + $0x106c] ss:$16 sps:$4 sm:$0xff]  }
 0x1e9   : > { %4139 = vmatprep.subr.bf16.mxu0 %v6527_v6  ;;  %4508 = vmatprep.subr.bf16.mxu1 %v6530_v7  ;;  %v6609_v6 = vld [vmem:[%s6811_s28 + $0x1060] ss:$16 sps:$4 sm:$0xff]   ;;  %v6612_v7 = vld [vmem:[%s6811_s28 + $0x1068] ss:$16 sps:$4 sm:$0xff]  }
 0x1ec   : > { %4140 = vmatpush1.bf16.msra.mxu0 %v6525_v8  ;;  %4509 = vmatpush1.bf16.msra.mxu1 %v6528_v9  ;;  %v6617_v8 = vld [vmem:[%s6811_s28 + $0x1084] ss:$16 sps:$4 sm:$0xff]   ;;  %v6620_v9 = vld [vmem:[%s6811_s28 + $0x108c] ss:$16 sps:$4 sm:$0xff]  }
 0x1ed   : > { %4141 = vmatprep.subr.bf16.mxu0 %v6533_v10  ;;  %4510 = vmatprep.subr.bf16.mxu1 %v6536_v11  ;;  %v6615_v10 = vld [vmem:[%s6811_s28 + $0x1080] ss:$16 sps:$4 sm:$0xff]   ;;  %v6618_v11 = vld [vmem:[%s6811_s28 + $0x1088] ss:$16 sps:$4 sm:$0xff]  }
 0x1f0   : > { %4142 = vmatpush1.bf16.msra.mxu0 %v6531_v12  ;;  %4511 = vmatpush1.bf16.msra.mxu1 %v6534_v13  ;;  %v6623_v12 = vld [vmem:[%s6811_s28 + $0x10a4] ss:$16 sps:$4 sm:$0xff]   ;;  %v6626_v13 = vld [vmem:[%s6811_s28 + $0x10ac] ss:$16 sps:$4 sm:$0xff]  }
 0x1f1   : > { %4143 = vmatprep.subr.bf16.mxu0 %v6539_v15  ;;  %4512 = vmatprep.subr.bf16.mxu1 %v6542_v17  ;;  %v6621_v15 = vld [vmem:[%s6811_s28 + $0x10a0] ss:$16 sps:$4 sm:$0xff]   ;;  %v6624_v17 = vld [vmem:[%s6811_s28 + $0x10a8] ss:$16 sps:$4 sm:$0xff]  }
 0x1f4   : > { %4144 = vmatpush1.bf16.msra.mxu0 %v6537_v53  ;;  %4513 = vmatpush1.bf16.msra.mxu1 %v6540_v18  ;;  %v6629_v53 = vld [vmem:[%s6811_s28 + $0x10c4] ss:$16 sps:$4 sm:$0xff]   ;;  %v6632_v18 = vld [vmem:[%s6811_s28 + $0x10cc] ss:$16 sps:$4 sm:$0xff]  }
 0x1f5   : > { %4145 = vmatprep.subr.bf16.mxu0 %v6545_v19  ;;  %4514 = vmatprep.subr.bf16.mxu1 %v6548_v20  ;;  %v6627_v19 = vld [vmem:[%s6811_s28 + $0x10c0] ss:$16 sps:$4 sm:$0xff]   ;;  %v6630_v20 = vld [vmem:[%s6811_s28 + $0x10c8] ss:$16 sps:$4 sm:$0xff]  }
 0x1f8   : > { %4146 = vmatpush1.bf16.msra.mxu0 %v6543_v21  ;;  %4515 = vmatpush1.bf16.msra.mxu1 %v6546_v23  ;;  %v6635_v21 = vld [vmem:[%s6811_s28 + $0x10e4] ss:$16 sps:$4 sm:$0xff]   ;;  %v6638_v23 = vld [vmem:[%s6811_s28 + $0x10ec] ss:$16 sps:$4 sm:$0xff]  }
 0x1f9   : > { %4147 = vmatprep.subr.bf16.mxu0 %v6551_v24  ;;  %4516 = vmatprep.subr.bf16.mxu1 %v6554_v25  ;;  %v6633_v24 = vld [vmem:[%s6811_s28 + $0x10e0] ss:$16 sps:$4 sm:$0xff]   ;;  %v6636_v25 = vld [vmem:[%s6811_s28 + $0x10e8] ss:$16 sps:$4 sm:$0xff]  }
 0x1fc   : > { %4148 = vmatpush1.bf16.msra.mxu0 %v6549_v27  ;;  %4517 = vmatpush1.bf16.msra.mxu1 %v6552_v29  ;;  %v6641_v27 = vld [vmem:[%s6811_s28 + $0x1104] ss:$16 sps:$4 sm:$0xff]   ;;  %v6644_v29 = vld [vmem:[%s6811_s28 + $0x110c] ss:$16 sps:$4 sm:$0xff]  }
 0x1fd   : > { %4149 = vmatprep.subr.bf16.mxu0 %v6557_v30  ;;  %4518 = vmatprep.subr.bf16.mxu1 %v6560_v31  ;;  %v6639_v30 = vld [vmem:[%s6811_s28 + $0x1100] ss:$16 sps:$4 sm:$0xff]   ;;  %v6642_v31 = vld [vmem:[%s6811_s28 + $0x1108] ss:$16 sps:$4 sm:$0xff]  }
 0x200   : > { %4150 = vmatpush1.bf16.msra.mxu0 %v6555_v16  ;;  %4519 = vmatpush1.bf16.msra.mxu1 %v6558_v32  ;;  %v6647_v16 = vld [vmem:[%s6811_s28 + $0x1124] ss:$16 sps:$4 sm:$0xff]   ;;  %v6650_v32 = vld [vmem:[%s6811_s28 + $0x112c] ss:$16 sps:$4 sm:$0xff]  }
 0x201   : > { %4151 = vmatprep.subr.bf16.mxu0 %v6563_v33  ;;  %4520 = vmatprep.subr.bf16.mxu1 %v6566_v34  ;;  %v6645_v33 = vld [vmem:[%s6811_s28 + $0x1120] ss:$16 sps:$4 sm:$0xff]   ;;  %v6648_v34 = vld [vmem:[%s6811_s28 + $0x1128] ss:$16 sps:$4 sm:$0xff]  }
 0x204   : > { %4152 = vmatpush1.bf16.msra.mxu0 %v6561_v26  ;;  %4521 = vmatpush1.bf16.msra.mxu1 %v6564_v35  ;;  %v6653_v26 = vld [vmem:[%s6811_s28 + $0x1144] ss:$16 sps:$4 sm:$0xff]   ;;  %v6656_v35 = vld [vmem:[%s6811_s28 + $0x114c] ss:$16 sps:$4 sm:$0xff]  }
 0x205   : > { %4153 = vmatprep.subr.bf16.mxu0 %v6569_v36  ;;  %4522 = vmatprep.subr.bf16.mxu1 %v6572_v14  ;;  %v6651_v36 = vld [vmem:[%s6811_s28 + $0x1140] ss:$16 sps:$4 sm:$0xff]   ;;  %v6654_v14 = vld [vmem:[%s6811_s28 + $0x1148] ss:$16 sps:$4 sm:$0xff]  }
 0x208   : > { %4154 = vmatpush1.bf16.msra.mxu0 %v6567_v39  ;;  %4523 = vmatpush1.bf16.msra.mxu1 %v6570_v40  ;;  %v6659_v39 = vld [vmem:[%s6811_s28 + $0x1164] ss:$16 sps:$4 sm:$0xff]   ;;  %v6662_v40 = vld [vmem:[%s6811_s28 + $0x116c] ss:$16 sps:$4 sm:$0xff]  }
 0x209   : > { %4155 = vmatprep.subr.bf16.mxu0 %v6575_v22  ;;  %4524 = vmatprep.subr.bf16.mxu1 %v6578_v42  ;;  %v6657_v22 = vld [vmem:[%s6811_s28 + $0x1160] ss:$16 sps:$4 sm:$0xff]   ;;  %v6660_v42 = vld [vmem:[%s6811_s28 + $0x1168] ss:$16 sps:$4 sm:$0xff]  }
 0x20c   : > { %4156 = vmatpush1.bf16.msra.mxu0 %v6573_v43  ;;  %4525 = vmatpush1.bf16.msra.mxu1 %v6576_v28  ;;  %v6665_v43 = vld [vmem:[%s6811_s28 + $0x1184] ss:$16 sps:$4 sm:$0xff]   ;;  %v6668_v28 = vld [vmem:[%s6811_s28 + $0x118c] ss:$16 sps:$4 sm:$0xff]  }
 0x20d   : > { %4157 = vmatprep.subr.bf16.mxu0 %v6581_v45  ;;  %4526 = vmatprep.subr.bf16.mxu1 %v6584_v46  ;;  %v6663_v45 = vld [vmem:[%s6811_s28 + $0x1180] ss:$16 sps:$4 sm:$0xff]   ;;  %v6666_v46 = vld [vmem:[%s6811_s28 + $0x1188] ss:$16 sps:$4 sm:$0xff]  }
 0x210   : > { %4158 = vmatpush1.bf16.msra.mxu0 %v6579_v47  ;;  %4527 = vmatpush1.bf16.msra.mxu1 %v6582_v37  ;;  %v6671_v47 = vld [vmem:[%s6811_s28 + $0x11a4] ss:$16 sps:$4 sm:$0xff]   ;;  %v6674_v37 = vld [vmem:[%s6811_s28 + $0x11ac] ss:$16 sps:$4 sm:$0xff]  }
 0x211   : > { %4159 = vmatprep.subr.bf16.mxu0 %v6587_v48  ;;  %4528 = vmatprep.subr.bf16.mxu1 %v6590_v49  ;;  %v6669_v48 = vld [vmem:[%s6811_s28 + $0x11a0] ss:$16 sps:$4 sm:$0xff]   ;;  %v6672_v49 = vld [vmem:[%s6811_s28 + $0x11a8] ss:$16 sps:$4 sm:$0xff]  }
 0x214   : > { %4160 = vmatpush1.bf16.msra.mxu0 %v6585_v54  ;;  %4529 = vmatpush1.bf16.msra.mxu1 %v6588_v55  ;;  %v6677_v54 = vld [vmem:[%s6811_s28 + $0x11c4] ss:$16 sps:$4 sm:$0xff]   ;;  %v6680_v55 = vld [vmem:[%s6811_s28 + $0x11cc] ss:$16 sps:$4 sm:$0xff]  }
 0x215   : > { %4170 = vmatprep.subr.bf16.mxu0 %v6593_v56  ;;  %4539 = vmatprep.subr.bf16.mxu1 %v6596_v57  ;;  %v6675_v56 = vld [vmem:[%s6811_s28 + $0x11c0] ss:$16 sps:$4 sm:$0xff]   ;;  %v6678_v57 = vld [vmem:[%s6811_s28 + $0x11c8] ss:$16 sps:$4 sm:$0xff]  }
 0x217   : > { %4162 = vmatmul.mubr.bf16.vlgmr.msra.gmra.mrb[0].mxu0 %v919_v58  ;;  %4531 = vmatmul.mubr.bf16.vlgmr.msra.gmra.mrb[0].mxu1 %v919_v58  ;;  %v6686_v58 = vld [vmem:[%s6811_s28 + $0x11ec] ss:$16 sps:$4 sm:$0xff]  }
 0x218   : > { %4171 = vmatpush1.bf16.msra.mxu0 %v6591_v59  ;;  %4540 = vmatpush1.bf16.msra.mxu1 %v6594_v60  ;;  %v6681_v59 = vld [vmem:[%s6811_s28 + $0x11e0] ss:$16 sps:$4 sm:$0xff]   ;;  %v6684_v60 = vld [vmem:[%s6811_s28 + $0x11e8] ss:$16 sps:$4 sm:$0xff]  }
 0x219   : > { %4172 = vmatprep.subr.bf16.mxu0 %v6599_v51  ;;  %4541 = vmatprep.subr.bf16.mxu1 %v6602_v61  ;;  %v936_v51 = vrot.slane %v7409_v52, %v6861_v50  ;;  %v6759_v61 = vmov 1983009808  }
 0x21a   : > { %4202 = vmatprep.mubr.bf16.mxu0 %v943_v62  ;;  %4571 = vmatprep.mubr.bf16.mxu1 %v943_v62  ;;  %v4587_v62 = vunpack.c.l.s4 %v6759_v61 }
 0x21c   : > { %4173 = vmatpush1.bf16.msra.mxu0 %v6597_v38  ;;  %4542 = vmatpush1.bf16.msra.mxu1 %v6600_v63  ;;  %v4588_v38 = vunpack.c.0.s8 %v4587_v62 }
 0x21d   : > { %4174 = vmatprep.subr.bf16.mxu0 %v6605_v0  ;;  %4543 = vmatprep.subr.bf16.mxu1 %v6608_v1 }
 0x21e   : > { %v7485_v1 = vsub.s32 %v4588_v38, %v6853_v44 }
 0x220   : > { %4175 = vmatpush1.bf16.msra.mxu0 %v6603_v2  ;;  %4544 = vmatpush1.bf16.msra.mxu1 %v6606_v3 }
 0x221   : > { %4176 = vmatprep.subr.bf16.mxu0 %v6611_v4  ;;  %4545 = vmatprep.subr.bf16.mxu1 %v6614_v5 }
 0x224   : > { %4177 = vmatpush1.bf16.msra.mxu0 %v6609_v6  ;;  %4546 = vmatpush1.bf16.msra.mxu1 %v6612_v7 }
 0x225   : > { %4178 = vmatprep.subr.bf16.mxu0 %v6617_v8  ;;  %4547 = vmatprep.subr.bf16.mxu1 %v6620_v9 }
 0x228   : > { %4179 = vmatpush1.bf16.msra.mxu0 %v6615_v10  ;;  %4548 = vmatpush1.bf16.msra.mxu1 %v6618_v11  ;;  %v241_v10 = vld [vmem:[#allocation2] sm:$0xff] }
 0x229   : > { %4180 = vmatprep.subr.bf16.mxu0 %v6623_v12  ;;  %4549 = vmatprep.subr.bf16.mxu1 %v6626_v13  ;;  %v6687_v13 = vld [vmem:[%s7629_s3 + $0x40] sm:$0xff] (!%p5656_p6)  }
 0x22c   : > { %4181 = vmatpush1.bf16.msra.mxu0 %v6621_v15  ;;  %4550 = vmatpush1.bf16.msra.mxu1 %v6624_v17  ;;  %v6688_v15 = vld [vmem:[%s7629_s3 + $0xc0] sm:$0xff] (!%p5656_p6)  }
 0x22d   : > { %4182 = vmatprep.subr.bf16.mxu0 %v6629_v53  ;;  %4551 = vmatprep.subr.bf16.mxu1 %v6632_v18  ;;  %v6689_v17 = vld [vmem:[%s7629_s3] sm:$0xff] (!%p5656_p6)   ;;  %v6691_v18 = vld [vmem:[%s7629_s3 + $0x48] sm:$0xff] (!%p5656_p6)  }
 0x22e   : > { %v6690_v53 = vld [vmem:[%s7629_s3 + $0x80] sm:$0xff] (!%p5656_p6)  }
 0x230   : > { %4183 = vmatpush1.bf16.msra.mxu0 %v6627_v19  ;;  %4552 = vmatpush1.bf16.msra.mxu1 %v6630_v20  ;;  %v6692_v19 = vld [vmem:[%s7629_s3 + $0xc8] sm:$0xff] (!%p5656_p6)  }
 0x231   : > { %4184 = vmatprep.subr.bf16.mxu0 %v6635_v21  ;;  %4553 = vmatprep.subr.bf16.mxu1 %v6638_v23  ;;  %v6693_v20 = vld [vmem:[%s7629_s3 + $0x8] sm:$0xff] (!%p5656_p6)   ;;  %v6695_v23 = vld [vmem:[%s7629_s3 + $0x50] sm:$0xff] (!%p5656_p6)  }
 0x232   : > { %v6694_v21 = vld [vmem:[%s7629_s3 + $0x88] sm:$0xff] (!%p5656_p6)  }
 0x234   : > { %4185 = vmatpush1.bf16.msra.mxu0 %v6633_v24  ;;  %4554 = vmatpush1.bf16.msra.mxu1 %v6636_v25  ;;  %v6696_v24 = vld [vmem:[%s7629_s3 + $0xd0] sm:$0xff] (!%p5656_p6)  }
 0x235   : > { %4186 = vmatprep.subr.bf16.mxu0 %v6641_v27  ;;  %4555 = vmatprep.subr.bf16.mxu1 %v6644_v29  ;;  %v6697_v25 = vld [vmem:[%s7629_s3 + $0x10] sm:$0xff] (!%p5656_p6)   ;;  %v6699_v29 = vld [vmem:[%s7629_s3 + $0x58] sm:$0xff] (!%p5656_p6)  }
 0x236   : > { %v6698_v27 = vld [vmem:[%s7629_s3 + $0x90] sm:$0xff] (!%p5656_p6)  }
 0x238   : > { %4187 = vmatpush1.bf16.msra.mxu0 %v6639_v30  ;;  %4556 = vmatpush1.bf16.msra.mxu1 %v6642_v31  ;;  %v6700_v30 = vld [vmem:[%s7629_s3 + $0xd8] sm:$0xff] (!%p5656_p6)  }
 0x239   : > { %4188 = vmatprep.subr.bf16.mxu0 %v6647_v16  ;;  %4557 = vmatprep.subr.bf16.mxu1 %v6650_v32  ;;  %v6701_v31 = vld [vmem:[%s7629_s3 + $0x18] sm:$0xff] (!%p5656_p6)   ;;  %v6703_v32 = vld [vmem:[%s7629_s3 + $0x60] sm:$0xff] (!%p5656_p6)  }
 0x23a   : > { %v6702_v16 = vld [vmem:[%s7629_s3 + $0x98] sm:$0xff] (!%p5656_p6)  }
 0x23c   : > { %4189 = vmatpush1.bf16.msra.mxu0 %v6645_v33  ;;  %4558 = vmatpush1.bf16.msra.mxu1 %v6648_v34  ;;  %v6704_v33 = vld [vmem:[%s7629_s3 + $0xe0] sm:$0xff] (!%p5656_p6)  }
 0x23d   : > { %4190 = vmatprep.subr.bf16.mxu0 %v6653_v26  ;;  %4559 = vmatprep.subr.bf16.mxu1 %v6656_v35  ;;  %v6705_v34 = vld [vmem:[%s7629_s3 + $0x20] sm:$0xff] (!%p5656_p6)   ;;  %v6707_v35 = vld [vmem:[%s7629_s3 + $0x68] sm:$0xff] (!%p5656_p6)  }
 0x23e   : > { %v6706_v26 = vld [vmem:[%s7629_s3 + $0xa0] sm:$0xff] (!%p5656_p6)  }
 0x240   : > { %4191 = vmatpush1.bf16.msra.mxu0 %v6651_v36  ;;  %4560 = vmatpush1.bf16.msra.mxu1 %v6654_v14  ;;  %v6708_v36 = vld [vmem:[%s7629_s3 + $0xe8] sm:$0xff] (!%p5656_p6)  }
 0x241   : > { %4192 = vmatprep.subr.bf16.mxu0 %v6659_v39  ;;  %4561 = vmatprep.subr.bf16.mxu1 %v6662_v40  ;;  %v6709_v14 = vld [vmem:[%s7629_s3 + $0x28] sm:$0xff] (!%p5656_p6)   ;;  %v6711_v40 = vld [vmem:[%s7629_s3 + $0x70] sm:$0xff] (!%p5656_p6)  }
 0x242   : > { %v6710_v39 = vld [vmem:[%s7629_s3 + $0xa8] sm:$0xff] (!%p5656_p6)  }
 0x244   : > { %4193 = vmatpush1.bf16.msra.mxu0 %v6657_v22  ;;  %4562 = vmatpush1.bf16.msra.mxu1 %v6660_v42  ;;  %v6712_v22 = vld [vmem:[%s7629_s3 + $0xf0] sm:$0xff] (!%p5656_p6)  }
 0x245   : > { %4194 = vmatprep.subr.bf16.mxu0 %v6665_v43  ;;  %4563 = vmatprep.subr.bf16.mxu1 %v6668_v28  ;;  %v6713_v42 = vld [vmem:[%s7629_s3 + $0x30] sm:$0xff] (!%p5656_p6)   ;;  %v4613_v43 = vsub.s32 (!%p5656_p6), 0, %v6853_v44 }
 0x246   : > { %v6714_v28 = vld [vmem:[%s7629_s3 + $0xb0] sm:$0xff] (!%p5656_p6)  }
 0x248   : > { %4195 = vmatpush1.bf16.msra.mxu0 %v6663_v45  ;;  %4564 = vmatpush1.bf16.msra.mxu1 %v6666_v46  ;;  %v4617_v45 = vsub.s32 (!%p5656_p6), 1, %v6853_v44  ;;  %v6715_v46 = vld [vmem:[%s7629_s3 + $0x78] sm:$0xff] (!%p5656_p6)  }
 0x249   : > { %4196 = vmatprep.subr.bf16.mxu0 %v6671_v47  ;;  %4565 = vmatprep.subr.bf16.mxu1 %v6674_v37  ;;  %v4621_v47 = vsub.s32 (!%p5656_p6), 2, %v6853_v44  ;;  %v6716_v37 = vld [vmem:[%s7629_s3 + $0xf8] sm:$0xff] (!%p5656_p6)  }
 0x24c   : > { %4197 = vmatpush1.bf16.msra.mxu0 %v6669_v48  ;;  %4566 = vmatpush1.bf16.msra.mxu1 %v6672_v49  ;;  %v4625_v48 = vsub.s32 (!%p5656_p6), 3, %v6853_v44  ;;  %v6717_v49 = vld [vmem:[%s7629_s3 + $0x38] sm:$0xff] (!%p5656_p6)  }
 0x24d   : > { %4198 = vmatprep.subr.bf16.mxu0 %v6677_v54  ;;  %4567 = vmatprep.subr.bf16.mxu1 %v6680_v55  ;;  %v6718_v54 = vld [vmem:[%s7629_s3 + $0xb8] sm:$0xff] (!%p5656_p6)   ;;  %v4609_v55 = vld [vmem:[%s7628_s2] sm:$0xf] (!%p5656_p6) }
 0x24e   : > { %v4626_v44 = vrot.slane (!%p5656_p6), %v4609_v55, %v4625_v48 }
 0x250   : > { %4199 = vmatpush1.bf16.msra.mxu0 %v6675_v56  ;;  %4568 = vmatpush1.bf16.msra.mxu1 %v6678_v57  ;;  %v4614_v56 = vrot.slane (!%p5656_p6), %v4609_v55, %v4613_v43  ;;  %v4618_v57 = vrot.slane (!%p5656_p6), %v4609_v55, %v4617_v45 }
 0x251   : > { %4200 = vmatprep.subr.bf16.mxu0 %v6683_v41  ;;  %4569 = vmatprep.subr.bf16.mxu1 %v6686_v58  ;;  %v4622_v41 = vrot.slane (!%p5656_p6), %v4609_v55, %v4621_v47 }
 0x252   : > { %v4627_v58 = vcombine.low (!%p5656_p6), %v4614_v56, %v4618_v57 }
 0x254   : > { %4201 = vmatpush1.bf16.msra.mxu0 %v6681_v59  ;;  %4570 = vmatpush1.bf16.msra.mxu1 %v6684_v60  ;;  %v4628_v59 = vcombine.low (!%p5656_p6), %v4622_v41, %v4626_v44  ;;  %v4635_v60 = vrot.slane (!%p5656_p6), %v4627_v58, %v7485_v1 }
 0x255   : > { %5695 = vmatprep.subr.bf16.mxu0 (!%p5656_p6), %v6687_v13  ;;  %5717 = vmatprep.subr.bf16.mxu1 (!%p5656_p6), %v6688_v15 }
 0x257   : > { %4203 = vmatmul.mubr.bf16.vlgmr.msra.gmra.mrb[0].mxu0 %v936_v51  ;;  %4572 = vmatmul.mubr.bf16.vlgmr.msra.gmra.mrb[0].mxu1 %v936_v51  ;;  %v4642_v51 = vrot.slane (!%p5656_p6), %v4628_v59, %v7485_v1 }
 0x258   : > { %5696 = vmatpush3.bf16.msra.mxu0 (!%p5656_p6), %v6689_v17  ;;  %5718 = vmatpush3.bf16.msra.mxu1 (!%p5656_p6), %v6690_v53 }
 0x259   : > { %5697 = vmatprep.subr.bf16.mxu0 (!%p5656_p6), %v6691_v18  ;;  %5719 = vmatprep.subr.bf16.mxu1 (!%p5656_p6), %v6692_v19  ;;  %v4643_v62 = vcombine.low (!%p5656_p6), %v4635_v60, %v4642_v51 }
 0x25c   : > { %5698 = vmatpush3.bf16.msra.mxu0 (!%p5656_p6), %v6693_v20  ;;  %5720 = vmatpush3.bf16.msra.mxu1 (!%p5656_p6), %v6694_v21 }
 0x25d   : > { %5699 = vmatprep.subr.bf16.mxu0 (!%p5656_p6), %v6695_v23  ;;  %5721 = vmatprep.subr.bf16.mxu1 (!%p5656_p6), %v6696_v24 }
 0x260   : > { %5700 = vmatpush3.bf16.msra.mxu0 (!%p5656_p6), %v6697_v25  ;;  %5722 = vmatpush3.bf16.msra.mxu1 (!%p5656_p6), %v6698_v27 }
 0x261   : > { %5701 = vmatprep.subr.bf16.mxu0 (!%p5656_p6), %v6699_v29  ;;  %5723 = vmatprep.subr.bf16.mxu1 (!%p5656_p6), %v6700_v30 }
 0x264   : > { %5702 = vmatpush3.bf16.msra.mxu0 (!%p5656_p6), %v6701_v31  ;;  %5724 = vmatpush3.bf16.msra.mxu1 (!%p5656_p6), %v6702_v16 }
 0x265   : > { %5703 = vmatprep.subr.bf16.mxu0 (!%p5656_p6), %v6703_v32  ;;  %5725 = vmatprep.subr.bf16.mxu1 (!%p5656_p6), %v6704_v33 }
 0x268   : > { %5704 = vmatpush3.bf16.msra.mxu0 (!%p5656_p6), %v6705_v34  ;;  %5726 = vmatpush3.bf16.msra.mxu1 (!%p5656_p6), %v6706_v26 }
 0x269   : > { %5705 = vmatprep.subr.bf16.mxu0 (!%p5656_p6), %v6707_v35  ;;  %5727 = vmatprep.subr.bf16.mxu1 (!%p5656_p6), %v6708_v36 }
 0x26c   : > { %5706 = vmatpush3.bf16.msra.mxu0 (!%p5656_p6), %v6709_v14  ;;  %5728 = vmatpush3.bf16.msra.mxu1 (!%p5656_p6), %v6710_v39 }
 0x26d   : > { %5707 = vmatprep.subr.bf16.mxu0 (!%p5656_p6), %v6711_v40  ;;  %5729 = vmatprep.subr.bf16.mxu1 (!%p5656_p6), %v6712_v22 }
 0x270   : > { %5708 = vmatpush3.bf16.msra.mxu0 (!%p5656_p6), %v6713_v42  ;;  %5730 = vmatpush3.bf16.msra.mxu1 (!%p5656_p6), %v6714_v28 }
 0x271   : > { %5709 = vmatprep.subr.bf16.mxu0 (!%p5656_p6), %v6715_v46  ;;  %5731 = vmatprep.subr.bf16.mxu1 (!%p5656_p6), %v6716_v37 }
 0x274   : > { %5710 = vmatpush3.bf16.msra.mxu0 (!%p5656_p6), %v6717_v49  ;;  %5732 = vmatpush3.bf16.msra.mxu1 (!%p5656_p6), %v6718_v54 }
 0x32a   : > { %v4204_v63 = vpop.f32.mrb[0].mxu0  ;;  %v4573_v0 = vpop.f32.mrb[0].mxu1 }
 0x32b   : > { %v4206_v2 = vpop.f32.mrb[1].mxu0  ;;  %v4575_v3 = vpop.f32.mrb[1].mxu1 }
 0x32c   : > { %v4584_v4 = vcombine.low %v4204_v63, %v4206_v2  ;;  %v4585_v5 = vcombine.low %v4573_v0, %v4575_v3  ;;  %v4208_v6 = vpop.f32.mrb[2].mxu0  ;;  %v4577_v7 = vpop.f32.mrb[2].mxu1 }
 0x32d   : > { %v4209_v8 = vpop.f32.mrb[3].mxu0  ;;  %v4578_v50 = vpop.f32.mrb[3].mxu1 }
 0x32e   : > { %v4592_v52 = vrot.slane %v4584_v4, %v7485_v1  ;;  %v4599_v9 = vrot.slane %v4585_v5, %v7485_v1  ;;  %4607 = sbr.rel (%p5656_p6) target bundleno = 1059 (0x423), region = 48 }
 0x330   : > { %v4600_v11 = vcombine.low %v4592_v52, %v4599_v9  ;;  %v5657_v9 = vld [vmem:[%s7630_s4] ss:$0 sm:$0xff] (!%p5656_p6) }
 0x332   : > { %v4602_v12 = vadd.f32 %v4600_v11, %v241_v10 }
 0x334   : > { %4603 = vst [vmem:[#allocation2] sm:$0xff] %v4602_v12 }
 0x33b   : > { %v4608_v61 = vld [vmem:[#allocation2] sm:$0xff] }
 0x33c   : > { %v4645_v38 = vadd.f32 %v4643_v62, %v4608_v61 }
 0x33e   : > { %v4646_v63 = vmax.f32 %v4645_v38, 0.0 }
 0x340   : > { %v4655_v0 = vrot.slane %v4646_v63, %v7485_v1  ;;  %v4648_v2 = vcombine.high %v4646_v63, %v4646_v63 }
 0x342   : > { %v4663_v3 = vcombine.high %v4655_v0, %v4655_v0  ;;  %v4662_v4 = vrot.slane %v4648_v2, %v7485_v1  ;;  %v4669_v5 = vpack.c.bf16 %v4655_v0, %v4655_v0 }
 0x344   : > { %v4670_v6 = vpack.c.bf16 %v4663_v3, %v4663_v3  ;;  %v4664_v7 = vcombine.high %v4662_v4, %v4662_v4  ;;  %v4671_v8 = vpack.c.bf16 %v4662_v4, %v4662_v4 }
 0x346   : > { %4968 = vmatprep.mubr.bf16.mxu0 %v4670_v6  ;;  %v4672_v50 = vpack.c.bf16 %v4664_v7, %v4664_v7 }
 0x347   : > { %4969 = vmatmul.mubr.bf16.vlgmr.msra.gmra.mrb[0].mxu0 %v4669_v5 }
 0x348   : > { %5008 = vmatprep.mubr.bf16.mxu1 %v4672_v50 }
 0x349   : > { %5009 = vmatmul.mubr.bf16.vlgmr.msra.gmra.mrb[0].mxu1 %v4671_v8 }
 0x41a   : > { %v5711_v52 = vpop.f32.mrb[0].mxu0 }
 0x41b   : > { %v5712_v10 = vpop.f32.mrb[1].mxu0 }
 0x41c   : > { %v5733_v11 = vpop.f32.mrb[0].mxu1  ;;  %v5713_v12 = vadd.f32 %v5712_v10, %v5711_v52  ;;  %v5714_v13 = vpop.f32.mrb[2].mxu0 }
 0x41d   : > { %v5734_v15 = vpop.f32.mrb[1].mxu1  ;;  %v5715_v1 = vpop.f32.mrb[3].mxu0 }
 0x41e   : > { %v4971_v17 = vadd.f32 %v5713_v12, %v5657_v9  ;;  %v5735_v53 = vadd.f32 %v5734_v15, %v5733_v11  ;;  %v5736_v18 = vpop.f32.mrb[2].mxu1 }
 0x41f   : > { %v5737_v19 = vpop.f32.mrb[3].mxu1 }
 0x420   : > { %v5011_v20 = vadd.f32 %v5735_v53, %v4971_v17 }
 0x422   : > { %5016 = vst [vmem:[#allocation3] sm:$0x3] %v5011_v20 }
 0x423 PF: > { %p5807_p7 = scmp.eq.s32.totalorder %s6797_s19, 3  ;;  %s6760_s28 = smov [#allocation3]  }
 0x424   : > { %s5024_s29 = sshll.u32 %s6760_s28, 4  ;;  %s5025_s29 = int_to_ptr.vmem [resolvable:$true] %s5024_s29 }
 0x425   : > { %s6719_s30 = scalar_lea.vmem %s5025_s29, 32  ;;  %p6726_p11 = scmp.lt.s32.totalorder %s5025_s29, %s5025_s29 }
 0x426   : > { %p6720_p8 = scmp.ne.s32.totalorder %s5025_s29, %s6719_s30  ;;  %p6727_p12 = scmp.lt.s32.totalorder %s6719_s30, %s6719_s30 }
 0x428   : > { %p6721_p9 = pnand %p6720_p8, %p5807_p7  ;;  %p6728_p13 = por %p6727_p12, %p6726_p11 }
 0x42a   : > { %p6722_p10 = pneg %p6721_p9 }
 0x42c   : > { %p6729_p0 = pnand %p6728_p13, %p6722_p10 }
 0x42e   : > { %6732 = shalt.err (!%p6729_p0)
}
 0x42f   : > { %s6733_s8 = scalar_lea.hbm %s7631_s5, 32 }
 0x430   : > { %p6734_p1 = scmp.ne.s32.totalorder %s7631_s5, %s6733_s8  ;;  %p6739_p4 = scmp.lt.u32.totalorder %s6733_s8, %s7631_s5 }
 0x432   : > { %p6735_p2 = pnand %p6734_p1, %p5807_p7 }
 0x434   : > { %p6736_p3 = pneg %p6735_p2 }
 0x436   : > { %p6741_p5 = pnand %p6739_p4, %p6736_p3 }
 0x438   : > { %6744 = shalt.err (!%p6741_p5)
}
 0x439   : > { %5804 = dma.vmem_to_hbm [thread:$0]  (%p5807_p7), %s5025_s29, 32, %s7631_s5, [#allocation4]  }
 0x43a   : > { %6750 = dma.done.wait (%p5807_p7), [#allocation4], 32  }
 0x43b   : > { %6752 = vsyncadd (%p5807_p7), [#allocation4], 4294967264 }
 0x43c PF: > { %s16_s18 = sadd.s32 1, %s6755_s18  }
 0x43d   : > { %p13_p6 = scmp.ge.s32.totalorder %s16_s18, 6  }
 0x43f   :  { %15 = sbr.rel (!%p13_p6) target bundleno = 1 (0x1), region = 78 }
 0x446   :  { %5037 = vsyncpa [#allocation4], 1 }
 0x447   :  { %5039 = vsyncpa [#allocation4 + $0x1], 1 }

</bundles_post_ra>
